<compile_context>
chip_gen: v7x
topology: tpu7x:2x2x1
jax: 0.10.0
libtpu: 0.0.40
codegen_flags: <defaults>
</compile_context>

<pallas_src>
import functools

import numpy as np
import jax
import jax.numpy as jnp
from jax import lax
from jax.experimental import pallas as pl
from jax.experimental.pallas import tpu as pltpu

# ----------------------------- configuration --------------------------------
CFG = dict(
    enc_in=4, dec_in=4, c_out=4,
    d_model=32, n_heads=4, d_ff=64,
    e_layers=2, d_layers=1,
    moving_avg=5, num_rand_features=16,
    seq_len=16, label_len=8, pred_len=8,
    freq_dim=4,            # embed='timeF', freq='h' -> 4 time features
    distil=True,
)
assert CFG['e_layers'] == 2 and CFG['d_layers'] == 1 and CFG['distil'], \
    "fused kernel is specialized to the reference configuration"
assert CFG['seq_len'] == CFG['label_len'] + CFG['pred_len']

_VMEM = pl.BlockSpec(memory_space=pltpu.MemorySpace.VMEM)


# --------------------------- kernel argument order ---------------------------
def _favor_names(prefix):
    return [prefix + s for s in ('_wqkv', '_bqkv', '_proj', '_wo', '_bo')]


_CONST_NAMES = [
    'pe', 'A_full', 'A_half', 'Mavg_half', 'Mavg_dec', 'Sprev', 'Snext',
    'pool_sel', 'sel_lab', 'sel_mean', 'sel_pred', 'dmat',
    'mask_enc_full', 'mask_enc_half', 'mask_dec_self', 'cross_bias',
]

ARG_NAMES = (
    ['x_enc', 'x_mark_enc', 'x_mark_dec']
    + _CONST_NAMES
    + ['enc_emb_conv', 'enc_emb_time', 'dec_emb_conv', 'dec_emb_time']
    + sum([_favor_names(f'enc{i}') + [f'enc{i}_w1', f'enc{i}_w2']
           for i in range(CFG['e_layers'])], [])
    + ['cv_w', 'cv_b', 'bn_scale', 'bn_shift', 'enc_norm_g', 'enc_norm_b']
    + _favor_names('dec0_self')
    + ['dec0_cross_wq', 'dec0_cross_bq', 'dec0_cross_wkv', 'dec0_cross_bkv',
       'dec0_cross_wo', 'dec0_cross_bo', 'dec0_w1', 'dec0_w2', 'dec0_trend_w']
    + ['dec_norm_g', 'dec_norm_b', 'dec_proj_w', 'dec_proj_b']
)


# ----------------------------- kernel helpers --------------------------------
def _mm(a, b):
    return jnp.dot(a, b, preferred_element_type=jnp.float32)


def _circ_conv(x, s_prev, s_next, w_ref):
    """k=3 circular Conv1d over time.  The per-batch-block circular shifts are constant
    permutation matrices applied on the MXU, so the whole conv is a handful of small
    matmuls that never leave VMEM (no XLA roll/concat, no HBM im2col intermediate).
    w_ref has shape (3, c_in, c_out); per-tap ref indexing avoids unaligned slicing."""
    return (_mm(_mm(s_prev, x), w_ref[0]) + _mm(x, w_ref[1])
            + _mm(_mm(s_next, x), w_ref[2]))


# ------------------------------ the fused kernel ------------------------------
def _convformer_kernel(*refs):
    assert len(refs) == len(ARG_NAMES) + 1
    out_ref = refs[-1]
    r = dict(zip(ARG_NAMES, refs[:-1]))
    ld = lambda name: r[name][...]

    d = CFG['d_model']
    H = CFG['n_heads']
    E = d // H
    M = CFG['num_rand_features']

    sprev, snext = ld('Sprev'), ld('Snext')
    a_full, a_half = ld('A_full'), ld('A_half')
    dmat = ld('dmat')
    pe = ld('pe')

    def decomp(u, a):
        # Autoformer series decomposition: replicate-pad moving average as one MXU matmul
        trend = _mm(a, u)
        return u - trend, trend

    def ffn(x, prefix):
        return _mm(jax.nn.gelu(_mm(x, ld(prefix + '_w1'))), ld(prefix + '_w2'))

    def my_layernorm(x, g, b, mavg):
        mu = jnp.mean(x, axis=-1, keepdims=True)
        var = jnp.mean(jnp.square(x - mu), axis=-1, keepdims=True)
        xh = (x - mu) * lax.rsqrt(var + 1e-5) * g + b
        return xh - _mm(mavg, xh)          # subtract per-sequence (time) mean

    def favor_attention(x, prefix, mask):
        """FAVOR+ self-attention.  Feature maps are batched over (batch, head) via the
        block-diagonal random-feature matrix; per-head scores are batched over the batch
        dim with a multiplicative block-diagonal (+causal) mask."""
        dn = E ** -0.25
        ratio = M ** -0.5
        eps = 1e-4
        qkv = _mm(x, ld(prefix + '_wqkv')) + ld(prefix + '_bqkv')     # (R, 3d), one matmul
        q = qkv[:, 0 * d:1 * d] * dn
        k = qkv[:, 1 * d:2 * d] * dn
        v = qkv[:, 2 * d:3 * d]
        projb = ld(prefix + '_proj')          # (d, H*M) block-diag random features
        qd = _mm(q, projb)                    # all batches + heads in one matmul
        kd = _mm(k, projb)
        qdg = _mm(q * q, dmat)                # 0.5*||q_h||^2 broadcast to that head's M lanes
        kdg = _mm(k * k, dmat)
        wo = ld(prefix + '_wo')
        out = ld(prefix + '_bo')
        for h in range(H):                    # short per-head loop; live set stays tiny
            fs = slice(h * M, (h + 1) * M)
            qd_h, kd_h = qd[:, fs], kd[:, fs]
            q_stab = jnp.max(qd_h, axis=-1, keepdims=True)
            k_stab = jnp.max(jnp.max(kd_h, axis=-1, keepdims=True), axis=0, keepdims=True)
            qp = ratio * (jnp.exp(qd_h - qdg[:, fs] - q_stab) + eps)
            kp = ratio * (jnp.exp(kd_h - kdg[:, fs] - k_stab) + eps)
            s = lax.dot_general(qp, kp, (((1,), (1,)), ((), ())),
                                preferred_element_type=jnp.float32) * mask
            num = _mm(s, v[:, h * E:(h + 1) * E])
            den = jnp.sum(s, axis=-1, keepdims=True)
            head = num / (den + 1e-6)         # exact divide (review correctness note)
            # head merge + output projection folded into a sublane-aligned MXU accumulate
            out = out + _mm(head, wo[h * E:(h + 1) * E, :])
        return out

    def cross_attention(xq, xkv, bias):
        """Decoder FullAttention cross attention, batched over the batch dim with an
        additive -inf bias that keeps each sample attending only to its own keys."""
        scale = E ** -0.5
        q = _mm(xq, ld('dec0_cross_wq')) + ld('dec0_cross_bq')        # (Rq, d)
        kv = _mm(xkv, ld('dec0_cross_wkv')) + ld('dec0_cross_bkv')    # (Rk, 2d) fused k/v
        wo = ld('dec0_cross_wo')
        out = ld('dec0_cross_bo')
        for h in range(H):
            qh = q[:, h * E:(h + 1) * E]
            kh = kv[:, h * E:(h + 1) * E]
            vh = kv[:, d + h * E:d + (h + 1) * E]
            s = lax.dot_general(qh, kh, (((1,), (1,)), ((), ())),
                                preferred_element_type=jnp.float32) * scale + bias
            m = jnp.max(s, axis=-1, keepdims=True)
            p = jnp.exp(s - m)
            p = p / jnp.sum(p, axis=-1, keepdims=True)                # exact softmax divide
            out = out + _mm(_mm(p, vh), wo[h * E:(h + 1) * E, :])
        return out

    # =============================== encoder ===============================
    # ConvEmbedding (approx): circular k=3 value conv + timeF linear + positional embedding
    # TODO(synk): exact ConvStem depth of Convformer is unknown; single circular conv used.
    x_enc = ld('x_enc')                                               # (B*L, enc_in)
    x = (_circ_conv(x_enc, sprev, snext, r['enc_emb_conv'])
         + _mm(ld('x_mark_enc'), ld('enc_emb_time')) + pe)

    # encoder layer 0 (block length = seq_len)
    o = favor_attention(x, 'enc0', ld('mask_enc_full'))
    x, _ = decomp(x + o, a_full)
    x, _ = decomp(x + ffn(x, 'enc0'), a_full)

    # distilling ConvLayer: circular conv + BatchNorm(eval) + ELU + MaxPool1d(k=3, s=2, p=1)
    y = _circ_conv(x, sprev, snext, r['cv_w']) + ld('cv_b')
    y = y * ld('bn_scale') + ld('bn_shift')
    y = jnp.where(y > 0, y, jnp.exp(jnp.minimum(y, 0.0)) - 1.0)       # overflow-safe ELU
    psel = r['pool_sel']                                              # (3, B*L/2, B*L)
    x = jnp.maximum(jnp.maximum(_mm(psel[0], y), _mm(psel[1], y)), _mm(psel[2], y))

    # encoder layer 1 (block length = seq_len // 2)
    o = favor_attention(x, 'enc1', ld('mask_enc_half'))
    x, _ = decomp(x + o, a_half)
    x, _ = decomp(x + ffn(x, 'enc1'), a_half)

    enc_out = my_layernorm(x, ld('enc_norm_g'), ld('enc_norm_b'), ld('Mavg_half'))

    # =============================== decoder ===============================
    # initial decomposition of x_enc + label/pred window assembly via selection matmuls
    trend_full = _mm(a_full, x_enc)
    seasonal_init = _mm(ld('sel_lab'), x_enc - trend_full)
    trend = _mm(ld('sel_lab'), trend_full) + _mm(ld('sel_mean'), x_enc)

    x = (_circ_conv(seasonal_init, sprev, snext, r['dec_emb_conv'])
         + _mm(ld('x_mark_dec'), ld('dec_emb_time')) + pe)

    o = favor_attention(x, 'dec0_self', ld('mask_dec_self'))          # causal FAVOR+
    x, t1 = decomp(x + o, a_full)
    o = cross_attention(x, enc_out, ld('cross_bias'))
    x, t2 = decomp(x + o, a_full)
    x, t3 = decomp(x + ffn(x, 'dec0'), a_full)
    # trend projection: circular Conv1d(d_model -> c_out, k=3, bias=False)
    trend = trend + _circ_conv(t1 + t2 + t3, sprev, snext, r['dec0_trend_w'])

    x = my_layernorm(x, ld('dec_norm_g'), ld('dec_norm_b'), ld('Mavg_dec'))
    seasonal = _mm(x, ld('dec_proj_w')) + ld('dec_proj_b')

    # final prediction window: seasonal + trend, sliced with a constant selection matmul
    out_ref[...] = _mm(ld('sel_pred'), trend + seasonal)


# ---------------------------- constant matrices -------------------------------
@functools.lru_cache(maxsize=None)
def _constants(B):
    L, k = CFG['seq_len'], CFG['moving_avg']
    label, pred = CFG['label_len'], CFG['pred_len']
    Ld = label + pred                       # decoder length (== seq_len here)
    Lp = (L - 1) // 2 + 1                   # length after MaxPool1d(k=3, s=2, p=1)
    d, H = CFG['d_model'], CFG['n_heads']
    E, M = d // H, CFG['num_rand_features']

    def bd(m):                              # block-diagonal over the batch
        return np.kron(np.eye(B, dtype=np.float32), np.asarray(m, np.float32))

    def mavg(n):                            # Autoformer replicate-pad moving average
        pad = (k - 1) // 2
        a = np.zeros((n, n), np.float32)
        for t in range(n):
            for j in range(t - pad, t + pad + 1):
                a[t, min(max(j, 0), n - 1)] += 1.0 / k
        return a

    sprev = np.zeros((L, L), np.float32)
    snext = np.zeros((L, L), np.float32)
    for t in range(L):
        sprev[t, (t - 1) % L] = 1.0
        snext[t, (t + 1) % L] = 1.0

    pool = np.zeros((3, Lp, L), np.float32)      # MaxPool1d(3, 2, 1) row selectors
    for j in range(3):
        for t in range(Lp):
            pool[j, t, min(max(2 * t - 1 + j, 0), L - 1)] = 1.0

    sel_lab = np.zeros((Ld, L), np.float32)      # last label_len rows -> decoder prefix
    for t in range(label):
        sel_lab[t, L - label + t] = 1.0
    sel_mean = np.zeros((Ld, L), np.float32)     # per-sample time mean -> pred region
    sel_mean[label:, :] = 1.0 / L
    sel_pred = np.zeros((pred, Ld), np.float32)  # final [:, -pred_len:, :] slice
    for t in range(pred):
        sel_pred[t, label + t] = 1.0

    pos = np.arange(L, dtype=np.float32)[:, None]
    div = np.exp(np.arange(0, d, 2, dtype=np.float32) * (-np.log(10000.0) / d))
    pe = np.zeros((L, d), np.float32)
    pe[:, 0::2] = np.sin(pos * div)
    pe[:, 1::2] = np.cos(pos * div)

    cross_keep = np.kron(np.eye(B, dtype=np.float32), np.ones((Ld, Lp), np.float32))

    c = dict(
        pe=np.tile(pe, (B, 1)),
        A_full=bd(mavg(L)),
        A_half=bd(mavg(Lp)),
        Mavg_half=bd(np.full((Lp, Lp), 1.0 / Lp, np.float32)),
        Mavg_dec=bd(np.full((Ld, Ld), 1.0 / Ld, np.float32)),
        Sprev=bd(sprev),
        Snext=bd(snext),
        pool_sel=np.stack([bd(pool[j]) for j in range(3)]),
        sel_lab=bd(sel_lab),
        sel_mean=bd(sel_mean),
        sel_pred=bd(sel_pred),
        dmat=np.kron(np.eye(H, dtype=np.float32), np.full((E, M), 0.5, np.float32)),
        mask_enc_full=bd(np.ones((L, L), np.float32)),
        mask_enc_half=bd(np.ones((Lp, Lp), np.float32)),
        mask_dec_self=bd(np.tril(np.ones((Ld, Ld), np.float32))),
        cross_bias=((cross_keep - 1.0) * 1e30).astype(np.float32),
    )
    return {name: jnp.asarray(v) for name, v in c.items()}


# ------------------------------- forward wrapper ------------------------------
def model_forward(params, x_enc, x_mark_enc, x_dec, x_mark_dec):
    """Whole Convformer forward as ONE single-block pallas_call (everything in VMEM)."""
    B, Ls, _ = x_enc.shape
    Ld = x_dec.shape[1]     # x_dec data itself is unused by the reference forward (shape only)
    assert Ls == CFG['seq_len'] and Ld == CFG['label_len'] + CFG['pred_len']
    pred, cout = CFG['pred_len'], CFG['c_out']

    args = dict(_constants(B))
    args.update(params)
    args['x_enc'] = x_enc.reshape(B * Ls, -1)
    args['x_mark_enc'] = x_mark_enc.reshape(B * Ls, -1)
    args['x_mark_dec'] = x_mark_dec.reshape(B * Ld, -1)
    flat = [args[n] for n in ARG_NAMES]

    out = pl.pallas_call(
        _convformer_kernel,
        out_shape=jax.ShapeDtypeStruct((B * pred, cout), jnp.float32),
        in_specs=[_VMEM] * len(flat),
        out_specs=_VMEM,
    )(*flat)
    return out.reshape(B, pred, cout)


# ------------------------------- parameter init -------------------------------
def init_params(key):
    d, dff = CFG['d_model'], CFG['d_ff']
    H = CFG['n_heads']
    E = d // H
    M = CFG['num_rand_features']
    keys = iter(jax.random.split(key, 64))
    nk = lambda: next(keys)

    def mat(i, o):
        return jax.random.normal(nk(), (i, o), jnp.float32) * 0.02

    def conv3(cin, cout):
        # circular k=3 conv weights stored as (tap, c_in, c_out)
        return jax.random.normal(nk(), (3, cin, cout), jnp.float32) * 0.02

    zrow = lambda n: jnp.zeros((1, n), jnp.float32)
    orow = lambda n: jnp.ones((1, n), jnp.float32)

    p = {}
    p['enc_emb_conv'] = conv3(CFG['enc_in'], d)
    p['enc_emb_time'] = mat(CFG['freq_dim'], d)
    p['dec_emb_conv'] = conv3(CFG['dec_in'], d)
    p['dec_emb_time'] = mat(CFG['freq_dim'], d)

    def favor(prefix):
        p[prefix + '_wqkv'] = mat(d, 3 * d)          # fused q/k/v projection
        p[prefix + '_bqkv'] = zrow(3 * d)
        proj = jax.random.normal(nk(), (E, M), jnp.float32)   # shared across heads
        p[prefix + '_proj'] = jnp.kron(jnp.eye(H, dtype=jnp.float32), proj)   # (d, H*M)
        p[prefix + '_wo'] = mat(d, d)
        p[prefix + '_bo'] = zrow(d)

    for i in range(CFG['e_layers']):
        favor(f'enc{i}')
        p[f'enc{i}_w1'] = mat(d, dff)
        p[f'enc{i}_w2'] = mat(dff, d)

    # distilling ConvLayer; BatchNorm eval-mode running stats folded into scale/shift.
    # TODO(synk): with trained weights the real running stats must be folded in here.
    p['cv_w'] = conv3(d, d)
    p['cv_b'] = zrow(d)
    gamma, beta, rmean, rvar = orow(d), zrow(d), zrow(d), orow(d)
    scale = gamma * lax.rsqrt(rvar + 1e-5)
    p['bn_scale'] = scale
    p['bn_shift'] = beta - rmean * scale

    p['enc_norm_g'] = orow(d)
    p['enc_norm_b'] = zrow(d)

    favor('dec0_self')
    p['dec0_cross_wq'] = mat(d, d)
    p['dec0_cross_bq'] = zrow(d)
    p['dec0_cross_wkv'] = mat(d, 2 * d)
    p['dec0_cross_bkv'] = zrow(2 * d)
    p['dec0_cross_wo'] = mat(d, d)
    p['dec0_cross_bo'] = zrow(d)
    p['dec0_w1'] = mat(d, dff)
    p['dec0_w2'] = mat(dff, d)
    p['dec0_trend_w'] = conv3(d, CFG['c_out'])

    p['dec_norm_g'] = orow(d)
    p['dec_norm_b'] = zrow(d)
    p['dec_proj_w'] = mat(d, CFG['c_out'])
    p['dec_proj_b'] = zrow(CFG['c_out'])
    return p


# ------------------------------------ main ------------------------------------
if __name__ == "__main__":
    key = jax.random.PRNGKey(0)
    kp, k1, k2, k3, k4 = jax.random.split(key, 5)
    params = init_params(kp)

    B = 2
    x_enc = jax.random.normal(k1, (B, CFG['seq_len'], CFG['enc_in']), jnp.float32)
    x_mark_enc = jax.random.normal(k2, (B, CFG['seq_len'], CFG['freq_dim']), jnp.float32)
    dec_len = CFG['label_len'] + CFG['pred_len']
    x_dec = jax.random.normal(k3, (B, dec_len, CFG['dec_in']), jnp.float32)
    x_mark_dec = jax.random.normal(k4, (B, dec_len, CFG['freq_dim']), jnp.float32)

    out = jax.jit(model_forward)(params, x_enc, x_mark_enc, x_dec, x_mark_dec)
    out = jax.block_until_ready(out)
    assert out.shape == (B, CFG['pred_len'], CFG['c_out']), out.shape
    assert bool(jnp.all(jnp.isfinite(out)))
    print("KERNEL_OK")
</pallas_src>

<mosaic_0001>
module attributes {stable_mosaic.version = 11 : i64} {
  func.func @_convformer_kernel(%arg0: memref<32x4xf32, #tpu.memory_space<vmem>>, %arg1: memref<32x4xf32, #tpu.memory_space<vmem>>, %arg2: memref<32x4xf32, #tpu.memory_space<vmem>>, %arg3: memref<32x32xf32, #tpu.memory_space<vmem>>, %arg4: memref<32x32xf32, #tpu.memory_space<vmem>>, %arg5: memref<16x16xf32, #tpu.memory_space<vmem>>, %arg6: memref<16x16xf32, #tpu.memory_space<vmem>>, %arg7: memref<32x32xf32, #tpu.memory_space<vmem>>, %arg8: memref<32x32xf32, #tpu.memory_space<vmem>>, %arg9: memref<32x32xf32, #tpu.memory_space<vmem>>, %arg10: memref<3x16x32xf32, #tpu.memory_space<vmem>>, %arg11: memref<32x32xf32, #tpu.memory_space<vmem>>, %arg12: memref<32x32xf32, #tpu.memory_space<vmem>>, %arg13: memref<16x32xf32, #tpu.memory_space<vmem>>, %arg14: memref<32x64xf32, #tpu.memory_space<vmem>>, %arg15: memref<32x32xf32, #tpu.memory_space<vmem>>, %arg16: memref<16x16xf32, #tpu.memory_space<vmem>>, %arg17: memref<32x32xf32, #tpu.memory_space<vmem>>, %arg18: memref<32x16xf32, #tpu.memory_space<vmem>>, %arg19: memref<3x4x32xf32, #tpu.memory_space<vmem>>, %arg20: memref<4x32xf32, #tpu.memory_space<vmem>>, %arg21: memref<3x4x32xf32, #tpu.memory_space<vmem>>, %arg22: memref<4x32xf32, #tpu.memory_space<vmem>>, %arg23: memref<32x96xf32, #tpu.memory_space<vmem>>, %arg24: memref<1x96xf32, #tpu.memory_space<vmem>>, %arg25: memref<32x64xf32, #tpu.memory_space<vmem>>, %arg26: memref<32x32xf32, #tpu.memory_space<vmem>>, %arg27: memref<1x32xf32, #tpu.memory_space<vmem>>, %arg28: memref<32x64xf32, #tpu.memory_space<vmem>>, %arg29: memref<64x32xf32, #tpu.memory_space<vmem>>, %arg30: memref<32x96xf32, #tpu.memory_space<vmem>>, %arg31: memref<1x96xf32, #tpu.memory_space<vmem>>, %arg32: memref<32x64xf32, #tpu.memory_space<vmem>>, %arg33: memref<32x32xf32, #tpu.memory_space<vmem>>, %arg34: memref<1x32xf32, #tpu.memory_space<vmem>>, %arg35: memref<32x64xf32, #tpu.memory_space<vmem>>, %arg36: memref<64x32xf32, #tpu.memory_space<vmem>>, %arg37: memref<3x32x32xf32, #tpu.memory_space<vmem>>, %arg38: memref<1x32xf32, #tpu.memory_space<vmem>>, %arg39: memref<1x32xf32, #tpu.memory_space<vmem>>, %arg40: memref<1x32xf32, #tpu.memory_space<vmem>>, %arg41: memref<1x32xf32, #tpu.memory_space<vmem>>, %arg42: memref<1x32xf32, #tpu.memory_space<vmem>>, %arg43: memref<32x96xf32, #tpu.memory_space<vmem>>, %arg44: memref<1x96xf32, #tpu.memory_space<vmem>>, %arg45: memref<32x64xf32, #tpu.memory_space<vmem>>, %arg46: memref<32x32xf32, #tpu.memory_space<vmem>>, %arg47: memref<1x32xf32, #tpu.memory_space<vmem>>, %arg48: memref<32x32xf32, #tpu.memory_space<vmem>>, %arg49: memref<1x32xf32, #tpu.memory_space<vmem>>, %arg50: memref<32x64xf32, #tpu.memory_space<vmem>>, %arg51: memref<1x64xf32, #tpu.memory_space<vmem>>, %arg52: memref<32x32xf32, #tpu.memory_space<vmem>>, %arg53: memref<1x32xf32, #tpu.memory_space<vmem>>, %arg54: memref<32x64xf32, #tpu.memory_space<vmem>>, %arg55: memref<64x32xf32, #tpu.memory_space<vmem>>, %arg56: memref<3x32x4xf32, #tpu.memory_space<vmem>>, %arg57: memref<1x32xf32, #tpu.memory_space<vmem>>, %arg58: memref<1x32xf32, #tpu.memory_space<vmem>>, %arg59: memref<32x4xf32, #tpu.memory_space<vmem>>, %arg60: memref<1x4xf32, #tpu.memory_space<vmem>>, %arg61: memref<16x4xf32, #tpu.memory_space<vmem>>) attributes {dimension_semantics = [], scalar_prefetch = 0 : i64, scratch_operands = 0 : i64, tpu.core_type = #tpu.core_type<tc>} {
    %c0 = arith.constant 0 : index
    %c0_0 = arith.constant 0 : index
    %0 = vector.load %arg8[%c0, %c0_0] : memref<32x32xf32, #tpu.memory_space<vmem>>, vector<32x32xf32>
    %c0_1 = arith.constant 0 : index
    %c0_2 = arith.constant 0 : index
    %1 = vector.load %arg9[%c0_1, %c0_2] : memref<32x32xf32, #tpu.memory_space<vmem>>, vector<32x32xf32>
    %c0_3 = arith.constant 0 : index
    %c0_4 = arith.constant 0 : index
    %2 = vector.load %arg4[%c0_3, %c0_4] : memref<32x32xf32, #tpu.memory_space<vmem>>, vector<32x32xf32>
    %c0_5 = arith.constant 0 : index
    %c0_6 = arith.constant 0 : index
    %3 = vector.load %arg5[%c0_5, %c0_6] : memref<16x16xf32, #tpu.memory_space<vmem>>, vector<16x16xf32>
    %c0_7 = arith.constant 0 : index
    %c0_8 = arith.constant 0 : index
    %4 = vector.load %arg14[%c0_7, %c0_8] : memref<32x64xf32, #tpu.memory_space<vmem>>, vector<32x64xf32>
    %c0_9 = arith.constant 0 : index
    %c0_10 = arith.constant 0 : index
    %5 = vector.load %arg3[%c0_9, %c0_10] : memref<32x32xf32, #tpu.memory_space<vmem>>, vector<32x32xf32>
    %c0_11 = arith.constant 0 : index
    %c0_12 = arith.constant 0 : index
    %6 = vector.load %arg0[%c0_11, %c0_12] : memref<32x4xf32, #tpu.memory_space<vmem>>, vector<32x4xf32>
    %cst = arith.constant dense<0.000000e+00> : vector<32x4xf32>
    %7 = tpu.matmul %0, %6, %cst {dimension_numbers = #tpu.dot_dimension_numbers<[1], [0], [0], [1], [0, 0, 1, 1], [], []>} : vector<32x32xf32>, vector<32x4xf32>, vector<32x4xf32> -> vector<32x4xf32>
    %c0_13 = arith.constant 0 : index
    %c0_14 = arith.constant 0 : index
    %c0_15 = arith.constant 0 : index
    %8 = vector.load %arg19[%c0_13, %c0_14, %c0_15] : memref<3x4x32xf32, #tpu.memory_space<vmem>>, vector<1x4x32xf32>
    %9 = vector.shape_cast %8 : vector<1x4x32xf32> to vector<4x32xf32>
    %cst_16 = arith.constant dense<0.000000e+00> : vector<32x32xf32>
    %10 = tpu.matmul %7, %9, %cst_16 {dimension_numbers = #tpu.dot_dimension_numbers<[1], [0], [0], [1], [0, 0, 1, 1], [], []>} : vector<32x4xf32>, vector<4x32xf32>, vector<32x32xf32> -> vector<32x32xf32>
    %c1 = arith.constant 1 : index
    %c0_17 = arith.constant 0 : index
    %c0_18 = arith.constant 0 : index
    %11 = vector.load %arg19[%c1, %c0_17, %c0_18] : memref<3x4x32xf32, #tpu.memory_space<vmem>>, vector<1x4x32xf32>
    %12 = vector.shape_cast %11 : vector<1x4x32xf32> to vector<4x32xf32>
    %cst_19 = arith.constant dense<0.000000e+00> : vector<32x32xf32>
    %13 = tpu.matmul %6, %12, %cst_19 {dimension_numbers = #tpu.dot_dimension_numbers<[1], [0], [0], [1], [0, 0, 1, 1], [], []>} : vector<32x4xf32>, vector<4x32xf32>, vector<32x32xf32> -> vector<32x32xf32>
    %14 = arith.addf %10, %13 : vector<32x32xf32>
    %cst_20 = arith.constant dense<0.000000e+00> : vector<32x4xf32>
    %15 = tpu.matmul %1, %6, %cst_20 {dimension_numbers = #tpu.dot_dimension_numbers<[1], [0], [0], [1], [0, 0, 1, 1], [], []>} : vector<32x32xf32>, vector<32x4xf32>, vector<32x4xf32> -> vector<32x4xf32>
    %c2 = arith.constant 2 : index
    %c0_21 = arith.constant 0 : index
    %c0_22 = arith.constant 0 : index
    %16 = vector.load %arg19[%c2, %c0_21, %c0_22] : memref<3x4x32xf32, #tpu.memory_space<vmem>>, vector<1x4x32xf32>
    %17 = vector.shape_cast %16 : vector<1x4x32xf32> to vector<4x32xf32>
    %cst_23 = arith.constant dense<0.000000e+00> : vector<32x32xf32>
    %18 = tpu.matmul %15, %17, %cst_23 {dimension_numbers = #tpu.dot_dimension_numbers<[1], [0], [0], [1], [0, 0, 1, 1], [], []>} : vector<32x4xf32>, vector<4x32xf32>, vector<32x32xf32> -> vector<32x32xf32>
    %19 = arith.addf %14, %18 : vector<32x32xf32>
    %c0_24 = arith.constant 0 : index
    %c0_25 = arith.constant 0 : index
    %20 = vector.load %arg1[%c0_24, %c0_25] : memref<32x4xf32, #tpu.memory_space<vmem>>, vector<32x4xf32>
    %c0_26 = arith.constant 0 : index
    %c0_27 = arith.constant 0 : index
    %21 = vector.load %arg20[%c0_26, %c0_27] : memref<4x32xf32, #tpu.memory_space<vmem>>, vector<4x32xf32>
    %cst_28 = arith.constant dense<0.000000e+00> : vector<32x32xf32>
    %22 = tpu.matmul %20, %21, %cst_28 {dimension_numbers = #tpu.dot_dimension_numbers<[1], [0], [0], [1], [0, 0, 1, 1], [], []>} : vector<32x4xf32>, vector<4x32xf32>, vector<32x32xf32> -> vector<32x32xf32>
    %23 = arith.addf %19, %22 : vector<32x32xf32>
    %24 = arith.addf %23, %5 : vector<32x32xf32>
    %c0_29 = arith.constant 0 : index
    %c0_30 = arith.constant 0 : index
    %25 = vector.load %arg15[%c0_29, %c0_30] : memref<32x32xf32, #tpu.memory_space<vmem>>, vector<32x32xf32>
    %c0_31 = arith.constant 0 : index
    %c0_32 = arith.constant 0 : index
    %26 = vector.load %arg23[%c0_31, %c0_32] : memref<32x96xf32, #tpu.memory_space<vmem>>, vector<32x96xf32>
    %cst_33 = arith.constant dense<0.000000e+00> : vector<32x96xf32>
    %27 = tpu.matmul %24, %26, %cst_33 {dimension_numbers = #tpu.dot_dimension_numbers<[1], [0], [0], [1], [0, 0, 1, 1], [], []>} : vector<32x32xf32>, vector<32x96xf32>, vector<32x96xf32> -> vector<32x96xf32>
    %c0_34 = arith.constant 0 : index
    %c0_35 = arith.constant 0 : index
    %28 = vector.load %arg24[%c0_34, %c0_35] : memref<1x96xf32, #tpu.memory_space<vmem>>, vector<1x96xf32>
    %29 = vector.broadcast %28 : vector<1x96xf32> to vector<32x96xf32>
    %30 = arith.addf %27, %29 : vector<32x96xf32>
    %31 = vector.extract_strided_slice %30 {offsets = [0, 0], sizes = [32, 32], strides = [1, 1]} : vector<32x96xf32> to vector<32x32xf32>
    %cst_36 = arith.constant 0.594603539 : f32
    %32 = vector.broadcast %cst_36 : f32 to vector<32x32xf32>
    %33 = arith.mulf %31, %32 : vector<32x32xf32>
    %34 = vector.extract_strided_slice %30 {offsets = [0, 32], sizes = [32, 32], strides = [1, 1]} : vector<32x96xf32> to vector<32x32xf32>
    %cst_37 = arith.constant 0.594603539 : f32
    %35 = vector.broadcast %cst_37 : f32 to vector<32x32xf32>
    %36 = arith.mulf %34, %35 : vector<32x32xf32>
    %37 = vector.extract_strided_slice %30 {offsets = [0, 64], sizes = [32, 32], strides = [1, 1]} : vector<32x96xf32> to vector<32x32xf32>
    %c0_38 = arith.constant 0 : index
    %c0_39 = arith.constant 0 : index
    %38 = vector.load %arg25[%c0_38, %c0_39] : memref<32x64xf32, #tpu.memory_space<vmem>>, vector<32x64xf32>
    %cst_40 = arith.constant dense<0.000000e+00> : vector<32x64xf32>
    %39 = tpu.matmul %33, %38, %cst_40 {dimension_numbers = #tpu.dot_dimension_numbers<[1], [0], [0], [1], [0, 0, 1, 1], [], []>} : vector<32x32xf32>, vector<32x64xf32>, vector<32x64xf32> -> vector<32x64xf32>
    %cst_41 = arith.constant dense<0.000000e+00> : vector<32x64xf32>
    %40 = tpu.matmul %36, %38, %cst_41 {dimension_numbers = #tpu.dot_dimension_numbers<[1], [0], [0], [1], [0, 0, 1, 1], [], []>} : vector<32x32xf32>, vector<32x64xf32>, vector<32x64xf32> -> vector<32x64xf32>
    %41 = arith.mulf %33, %33 : vector<32x32xf32>
    %cst_42 = arith.constant dense<0.000000e+00> : vector<32x64xf32>
    %42 = tpu.matmul %41, %4, %cst_42 {dimension_numbers = #tpu.dot_dimension_numbers<[1], [0], [0], [1], [0, 0, 1, 1], [], []>} : vector<32x32xf32>, vector<32x64xf32>, vector<32x64xf32> -> vector<32x64xf32>
    %43 = arith.mulf %36, %36 : vector<32x32xf32>
    %cst_43 = arith.constant dense<0.000000e+00> : vector<32x64xf32>
    %44 = tpu.matmul %43, %4, %cst_43 {dimension_numbers = #tpu.dot_dimension_numbers<[1], [0], [0], [1], [0, 0, 1, 1], [], []>} : vector<32x32xf32>, vector<32x64xf32>, vector<32x64xf32> -> vector<32x64xf32>
    %c0_44 = arith.constant 0 : index
    %c0_45 = arith.constant 0 : index
    %45 = vector.load %arg26[%c0_44, %c0_45] : memref<32x32xf32, #tpu.memory_space<vmem>>, vector<32x32xf32>
    %c0_46 = arith.constant 0 : index
    %c0_47 = arith.constant 0 : index
    %46 = vector.load %arg27[%c0_46, %c0_47] : memref<1x32xf32, #tpu.memory_space<vmem>>, vector<1x32xf32>
    %47 = vector.extract_strided_slice %39 {offsets = [0, 0], sizes = [32, 16], strides = [1, 1]} : vector<32x64xf32> to vector<32x16xf32>
    %48 = vector.extract_strided_slice %40 {offsets = [0, 0], sizes = [32, 16], strides = [1, 1]} : vector<32x64xf32> to vector<32x16xf32>
    %cst_48 = arith.constant dense<0xFF800000> : vector<32xf32>
    %49 = vector.multi_reduction <maximumf>, %47, %cst_48 [1] : vector<32x16xf32> to vector<32xf32>
    %50 = vector.shape_cast %49 : vector<32xf32> to vector<32x1xf32>
    %cst_49 = arith.constant dense<0xFF800000> : vector<32xf32>
    %51 = vector.multi_reduction <maximumf>, %48, %cst_49 [1] : vector<32x16xf32> to vector<32xf32>
    %52 = vector.shape_cast %51 : vector<32xf32> to vector<32x1xf32>
    %cst_50 = arith.constant dense<0xFF800000> : vector<1xf32>
    %53 = vector.multi_reduction <maximumf>, %52, %cst_50 [0] : vector<32x1xf32> to vector<1xf32>
    %54 = vector.shape_cast %53 : vector<1xf32> to vector<1x1xf32>
    %55 = vector.extract_strided_slice %42 {offsets = [0, 0], sizes = [32, 16], strides = [1, 1]} : vector<32x64xf32> to vector<32x16xf32>
    %56 = arith.subf %47, %55 : vector<32x16xf32>
    %57 = vector.broadcast %50 : vector<32x1xf32> to vector<32x16xf32>
    %58 = arith.subf %56, %57 : vector<32x16xf32>
    %59 = math.exp %58 : vector<32x16xf32>
    %cst_51 = arith.constant 9.99999974E-5 : f32
    %60 = vector.broadcast %cst_51 : f32 to vector<32x16xf32>
    %61 = arith.addf %59, %60 : vector<32x16xf32>
    %cst_52 = arith.constant 2.500000e-01 : f32
    %62 = vector.broadcast %cst_52 : f32 to vector<32x16xf32>
    %63 = arith.mulf %62, %61 : vector<32x16xf32>
    %64 = vector.extract_strided_slice %44 {offsets = [0, 0], sizes = [32, 16], strides = [1, 1]} : vector<32x64xf32> to vector<32x16xf32>
    %65 = arith.subf %48, %64 : vector<32x16xf32>
    %66 = vector.broadcast %54 : vector<1x1xf32> to vector<32x16xf32>
    %67 = arith.subf %65, %66 : vector<32x16xf32>
    %68 = math.exp %67 : vector<32x16xf32>
    %cst_53 = arith.constant 9.99999974E-5 : f32
    %69 = vector.broadcast %cst_53 : f32 to vector<32x16xf32>
    %70 = arith.addf %68, %69 : vector<32x16xf32>
    %cst_54 = arith.constant 2.500000e-01 : f32
    %71 = vector.broadcast %cst_54 : f32 to vector<32x16xf32>
    %72 = arith.mulf %71, %70 : vector<32x16xf32>
    %cst_55 = arith.constant dense<0.000000e+00> : vector<32x32xf32>
    %73 = tpu.matmul %63, %72, %cst_55 {dimension_numbers = #tpu.dot_dimension_numbers<[1], [1], [0], [0], [0, 0, 1, 0], [], []>} : vector<32x16xf32>, vector<32x16xf32>, vector<32x32xf32> -> vector<32x32xf32>
    %74 = arith.mulf %73, %25 : vector<32x32xf32>
    %75 = vector.extract_strided_slice %37 {offsets = [0, 0], sizes = [32, 8], strides = [1, 1]} : vector<32x32xf32> to vector<32x8xf32>
    %cst_56 = arith.constant dense<0.000000e+00> : vector<32x8xf32>
    %76 = tpu.matmul %74, %75, %cst_56 {dimension_numbers = #tpu.dot_dimension_numbers<[1], [0], [0], [1], [0, 0, 1, 1], [], []>} : vector<32x32xf32>, vector<32x8xf32>, vector<32x8xf32> -> vector<32x8xf32>
    %cst_57 = arith.constant dense<0.000000e+00> : vector<32xf32>
    %77 = vector.multi_reduction <add>, %74, %cst_57 [1] : vector<32x32xf32> to vector<32xf32>
    %78 = vector.shape_cast %77 : vector<32xf32> to vector<32x1xf32>
    %cst_58 = arith.constant 9.99999997E-7 : f32
    %79 = vector.broadcast %cst_58 : f32 to vector<32x1xf32>
    %80 = arith.addf %78, %79 : vector<32x1xf32>
    %81 = vector.broadcast %80 : vector<32x1xf32> to vector<32x8xf32>
    %82 = arith.divf %76, %81 : vector<32x8xf32>
    %83 = vector.extract_strided_slice %45 {offsets = [0, 0], sizes = [8, 32], strides = [1, 1]} : vector<32x32xf32> to vector<8x32xf32>
    %cst_59 = arith.constant dense<0.000000e+00> : vector<32x32xf32>
    %84 = tpu.matmul %82, %83, %cst_59 {dimension_numbers = #tpu.dot_dimension_numbers<[1], [0], [0], [1], [0, 0, 1, 1], [], []>} : vector<32x8xf32>, vector<8x32xf32>, vector<32x32xf32> -> vector<32x32xf32>
    %85 = vector.broadcast %46 : vector<1x32xf32> to vector<32x32xf32>
    %86 = arith.addf %85, %84 : vector<32x32xf32>
    %87 = vector.extract_strided_slice %39 {offsets = [0, 16], sizes = [32, 16], strides = [1, 1]} : vector<32x64xf32> to vector<32x16xf32>
    %88 = vector.extract_strided_slice %40 {offsets = [0, 16], sizes = [32, 16], strides = [1, 1]} : vector<32x64xf32> to vector<32x16xf32>
    %cst_60 = arith.constant dense<0xFF800000> : vector<32xf32>
    %89 = vector.multi_reduction <maximumf>, %87, %cst_60 [1] : vector<32x16xf32> to vector<32xf32>
    %90 = vector.shape_cast %89 : vector<32xf32> to vector<32x1xf32>
    %cst_61 = arith.constant dense<0xFF800000> : vector<32xf32>
    %91 = vector.multi_reduction <maximumf>, %88, %cst_61 [1] : vector<32x16xf32> to vector<32xf32>
    %92 = vector.shape_cast %91 : vector<32xf32> to vector<32x1xf32>
    %cst_62 = arith.constant dense<0xFF800000> : vector<1xf32>
    %93 = vector.multi_reduction <maximumf>, %92, %cst_62 [0] : vector<32x1xf32> to vector<1xf32>
    %94 = vector.shape_cast %93 : vector<1xf32> to vector<1x1xf32>
    %95 = vector.extract_strided_slice %42 {offsets = [0, 16], sizes = [32, 16], strides = [1, 1]} : vector<32x64xf32> to vector<32x16xf32>
    %96 = arith.subf %87, %95 : vector<32x16xf32>
    %97 = vector.broadcast %90 : vector<32x1xf32> to vector<32x16xf32>
    %98 = arith.subf %96, %97 : vector<32x16xf32>
    %99 = math.exp %98 : vector<32x16xf32>
    %cst_63 = arith.constant 9.99999974E-5 : f32
    %100 = vector.broadcast %cst_63 : f32 to vector<32x16xf32>
    %101 = arith.addf %99, %100 : vector<32x16xf32>
    %cst_64 = arith.constant 2.500000e-01 : f32
    %102 = vector.broadcast %cst_64 : f32 to vector<32x16xf32>
    %103 = arith.mulf %102, %101 : vector<32x16xf32>
    %104 = vector.extract_strided_slice %44 {offsets = [0, 16], sizes = [32, 16], strides = [1, 1]} : vector<32x64xf32> to vector<32x16xf32>
    %105 = arith.subf %88, %104 : vector<32x16xf32>
    %106 = vector.broadcast %94 : vector<1x1xf32> to vector<32x16xf32>
    %107 = arith.subf %105, %106 : vector<32x16xf32>
    %108 = math.exp %107 : vector<32x16xf32>
    %cst_65 = arith.constant 9.99999974E-5 : f32
    %109 = vector.broadcast %cst_65 : f32 to vector<32x16xf32>
    %110 = arith.addf %108, %109 : vector<32x16xf32>
    %cst_66 = arith.constant 2.500000e-01 : f32
    %111 = vector.broadcast %cst_66 : f32 to vector<32x16xf32>
    %112 = arith.mulf %111, %110 : vector<32x16xf32>
    %cst_67 = arith.constant dense<0.000000e+00> : vector<32x32xf32>
    %113 = tpu.matmul %103, %112, %cst_67 {dimension_numbers = #tpu.dot_dimension_numbers<[1], [1], [0], [0], [0, 0, 1, 0], [], []>} : vector<32x16xf32>, vector<32x16xf32>, vector<32x32xf32> -> vector<32x32xf32>
    %114 = arith.mulf %113, %25 : vector<32x32xf32>
    %115 = vector.extract_strided_slice %37 {offsets = [0, 8], sizes = [32, 8], strides = [1, 1]} : vector<32x32xf32> to vector<32x8xf32>
    %cst_68 = arith.constant dense<0.000000e+00> : vector<32x8xf32>
    %116 = tpu.matmul %114, %115, %cst_68 {dimension_numbers = #tpu.dot_dimension_numbers<[1], [0], [0], [1], [0, 0, 1, 1], [], []>} : vector<32x32xf32>, vector<32x8xf32>, vector<32x8xf32> -> vector<32x8xf32>
    %cst_69 = arith.constant dense<0.000000e+00> : vector<32xf32>
    %117 = vector.multi_reduction <add>, %114, %cst_69 [1] : vector<32x32xf32> to vector<32xf32>
    %118 = vector.shape_cast %117 : vector<32xf32> to vector<32x1xf32>
    %cst_70 = arith.constant 9.99999997E-7 : f32
    %119 = vector.broadcast %cst_70 : f32 to vector<32x1xf32>
    %120 = arith.addf %118, %119 : vector<32x1xf32>
    %121 = vector.broadcast %120 : vector<32x1xf32> to vector<32x8xf32>
    %122 = arith.divf %116, %121 : vector<32x8xf32>
    %123 = vector.extract_strided_slice %45 {offsets = [8, 0], sizes = [8, 32], strides = [1, 1]} : vector<32x32xf32> to vector<8x32xf32>
    %cst_71 = arith.constant dense<0.000000e+00> : vector<32x32xf32>
    %124 = tpu.matmul %122, %123, %cst_71 {dimension_numbers = #tpu.dot_dimension_numbers<[1], [0], [0], [1], [0, 0, 1, 1], [], []>} : vector<32x8xf32>, vector<8x32xf32>, vector<32x32xf32> -> vector<32x32xf32>
    %125 = arith.addf %86, %124 : vector<32x32xf32>
    %126 = vector.extract_strided_slice %39 {offsets = [0, 32], sizes = [32, 16], strides = [1, 1]} : vector<32x64xf32> to vector<32x16xf32>
    %127 = vector.extract_strided_slice %40 {offsets = [0, 32], sizes = [32, 16], strides = [1, 1]} : vector<32x64xf32> to vector<32x16xf32>
    %cst_72 = arith.constant dense<0xFF800000> : vector<32xf32>
    %128 = vector.multi_reduction <maximumf>, %126, %cst_72 [1] : vector<32x16xf32> to vector<32xf32>
    %129 = vector.shape_cast %128 : vector<32xf32> to vector<32x1xf32>
    %cst_73 = arith.constant dense<0xFF800000> : vector<32xf32>
    %130 = vector.multi_reduction <maximumf>, %127, %cst_73 [1] : vector<32x16xf32> to vector<32xf32>
    %131 = vector.shape_cast %130 : vector<32xf32> to vector<32x1xf32>
    %cst_74 = arith.constant dense<0xFF800000> : vector<1xf32>
    %132 = vector.multi_reduction <maximumf>, %131, %cst_74 [0] : vector<32x1xf32> to vector<1xf32>
    %133 = vector.shape_cast %132 : vector<1xf32> to vector<1x1xf32>
    %134 = vector.extract_strided_slice %42 {offsets = [0, 32], sizes = [32, 16], strides = [1, 1]} : vector<32x64xf32> to vector<32x16xf32>
    %135 = arith.subf %126, %134 : vector<32x16xf32>
    %136 = vector.broadcast %129 : vector<32x1xf32> to vector<32x16xf32>
    %137 = arith.subf %135, %136 : vector<32x16xf32>
    %138 = math.exp %137 : vector<32x16xf32>
    %cst_75 = arith.constant 9.99999974E-5 : f32
    %139 = vector.broadcast %cst_75 : f32 to vector<32x16xf32>
    %140 = arith.addf %138, %139 : vector<32x16xf32>
    %cst_76 = arith.constant 2.500000e-01 : f32
    %141 = vector.broadcast %cst_76 : f32 to vector<32x16xf32>
    %142 = arith.mulf %141, %140 : vector<32x16xf32>
    %143 = vector.extract_strided_slice %44 {offsets = [0, 32], sizes = [32, 16], strides = [1, 1]} : vector<32x64xf32> to vector<32x16xf32>
    %144 = arith.subf %127, %143 : vector<32x16xf32>
    %145 = vector.broadcast %133 : vector<1x1xf32> to vector<32x16xf32>
    %146 = arith.subf %144, %145 : vector<32x16xf32>
    %147 = math.exp %146 : vector<32x16xf32>
    %cst_77 = arith.constant 9.99999974E-5 : f32
    %148 = vector.broadcast %cst_77 : f32 to vector<32x16xf32>
    %149 = arith.addf %147, %148 : vector<32x16xf32>
    %cst_78 = arith.constant 2.500000e-01 : f32
    %150 = vector.broadcast %cst_78 : f32 to vector<32x16xf32>
    %151 = arith.mulf %150, %149 : vector<32x16xf32>
    %cst_79 = arith.constant dense<0.000000e+00> : vector<32x32xf32>
    %152 = tpu.matmul %142, %151, %cst_79 {dimension_numbers = #tpu.dot_dimension_numbers<[1], [1], [0], [0], [0, 0, 1, 0], [], []>} : vector<32x16xf32>, vector<32x16xf32>, vector<32x32xf32> -> vector<32x32xf32>
    %153 = arith.mulf %152, %25 : vector<32x32xf32>
    %154 = vector.extract_strided_slice %37 {offsets = [0, 16], sizes = [32, 8], strides = [1, 1]} : vector<32x32xf32> to vector<32x8xf32>
    %cst_80 = arith.constant dense<0.000000e+00> : vector<32x8xf32>
    %155 = tpu.matmul %153, %154, %cst_80 {dimension_numbers = #tpu.dot_dimension_numbers<[1], [0], [0], [1], [0, 0, 1, 1], [], []>} : vector<32x32xf32>, vector<32x8xf32>, vector<32x8xf32> -> vector<32x8xf32>
    %cst_81 = arith.constant dense<0.000000e+00> : vector<32xf32>
    %156 = vector.multi_reduction <add>, %153, %cst_81 [1] : vector<32x32xf32> to vector<32xf32>
    %157 = vector.shape_cast %156 : vector<32xf32> to vector<32x1xf32>
    %cst_82 = arith.constant 9.99999997E-7 : f32
    %158 = vector.broadcast %cst_82 : f32 to vector<32x1xf32>
    %159 = arith.addf %157, %158 : vector<32x1xf32>
    %160 = vector.broadcast %159 : vector<32x1xf32> to vector<32x8xf32>
    %161 = arith.divf %155, %160 : vector<32x8xf32>
    %162 = vector.extract_strided_slice %45 {offsets = [16, 0], sizes = [8, 32], strides = [1, 1]} : vector<32x32xf32> to vector<8x32xf32>
    %cst_83 = arith.constant dense<0.000000e+00> : vector<32x32xf32>
    %163 = tpu.matmul %161, %162, %cst_83 {dimension_numbers = #tpu.dot_dimension_numbers<[1], [0], [0], [1], [0, 0, 1, 1], [], []>} : vector<32x8xf32>, vector<8x32xf32>, vector<32x32xf32> -> vector<32x32xf32>
    %164 = arith.addf %125, %163 : vector<32x32xf32>
    %165 = vector.extract_strided_slice %39 {offsets = [0, 48], sizes = [32, 16], strides = [1, 1]} : vector<32x64xf32> to vector<32x16xf32>
    %166 = vector.extract_strided_slice %40 {offsets = [0, 48], sizes = [32, 16], strides = [1, 1]} : vector<32x64xf32> to vector<32x16xf32>
    %cst_84 = arith.constant dense<0xFF800000> : vector<32xf32>
    %167 = vector.multi_reduction <maximumf>, %165, %cst_84 [1] : vector<32x16xf32> to vector<32xf32>
    %168 = vector.shape_cast %167 : vector<32xf32> to vector<32x1xf32>
    %cst_85 = arith.constant dense<0xFF800000> : vector<32xf32>
    %169 = vector.multi_reduction <maximumf>, %166, %cst_85 [1] : vector<32x16xf32> to vector<32xf32>
    %170 = vector.shape_cast %169 : vector<32xf32> to vector<32x1xf32>
    %cst_86 = arith.constant dense<0xFF800000> : vector<1xf32>
    %171 = vector.multi_reduction <maximumf>, %170, %cst_86 [0] : vector<32x1xf32> to vector<1xf32>
    %172 = vector.shape_cast %171 : vector<1xf32> to vector<1x1xf32>
    %173 = vector.extract_strided_slice %42 {offsets = [0, 48], sizes = [32, 16], strides = [1, 1]} : vector<32x64xf32> to vector<32x16xf32>
    %174 = arith.subf %165, %173 : vector<32x16xf32>
    %175 = vector.broadcast %168 : vector<32x1xf32> to vector<32x16xf32>
    %176 = arith.subf %174, %175 : vector<32x16xf32>
    %177 = math.exp %176 : vector<32x16xf32>
    %cst_87 = arith.constant 9.99999974E-5 : f32
    %178 = vector.broadcast %cst_87 : f32 to vector<32x16xf32>
    %179 = arith.addf %177, %178 : vector<32x16xf32>
    %cst_88 = arith.constant 2.500000e-01 : f32
    %180 = vector.broadcast %cst_88 : f32 to vector<32x16xf32>
    %181 = arith.mulf %180, %179 : vector<32x16xf32>
    %182 = vector.extract_strided_slice %44 {offsets = [0, 48], sizes = [32, 16], strides = [1, 1]} : vector<32x64xf32> to vector<32x16xf32>
    %183 = arith.subf %166, %182 : vector<32x16xf32>
    %184 = vector.broadcast %172 : vector<1x1xf32> to vector<32x16xf32>
    %185 = arith.subf %183, %184 : vector<32x16xf32>
    %186 = math.exp %185 : vector<32x16xf32>
    %cst_89 = arith.constant 9.99999974E-5 : f32
    %187 = vector.broadcast %cst_89 : f32 to vector<32x16xf32>
    %188 = arith.addf %186, %187 : vector<32x16xf32>
    %cst_90 = arith.constant 2.500000e-01 : f32
    %189 = vector.broadcast %cst_90 : f32 to vector<32x16xf32>
    %190 = arith.mulf %189, %188 : vector<32x16xf32>
    %cst_91 = arith.constant dense<0.000000e+00> : vector<32x32xf32>
    %191 = tpu.matmul %181, %190, %cst_91 {dimension_numbers = #tpu.dot_dimension_numbers<[1], [1], [0], [0], [0, 0, 1, 0], [], []>} : vector<32x16xf32>, vector<32x16xf32>, vector<32x32xf32> -> vector<32x32xf32>
    %192 = arith.mulf %191, %25 : vector<32x32xf32>
    %193 = vector.extract_strided_slice %37 {offsets = [0, 24], sizes = [32, 8], strides = [1, 1]} : vector<32x32xf32> to vector<32x8xf32>
    %cst_92 = arith.constant dense<0.000000e+00> : vector<32x8xf32>
    %194 = tpu.matmul %192, %193, %cst_92 {dimension_numbers = #tpu.dot_dimension_numbers<[1], [0], [0], [1], [0, 0, 1, 1], [], []>} : vector<32x32xf32>, vector<32x8xf32>, vector<32x8xf32> -> vector<32x8xf32>
    %cst_93 = arith.constant dense<0.000000e+00> : vector<32xf32>
    %195 = vector.multi_reduction <add>, %192, %cst_93 [1] : vector<32x32xf32> to vector<32xf32>
    %196 = vector.shape_cast %195 : vector<32xf32> to vector<32x1xf32>
    %cst_94 = arith.constant 9.99999997E-7 : f32
    %197 = vector.broadcast %cst_94 : f32 to vector<32x1xf32>
    %198 = arith.addf %196, %197 : vector<32x1xf32>
    %199 = vector.broadcast %198 : vector<32x1xf32> to vector<32x8xf32>
    %200 = arith.divf %194, %199 : vector<32x8xf32>
    %201 = vector.extract_strided_slice %45 {offsets = [24, 0], sizes = [8, 32], strides = [1, 1]} : vector<32x32xf32> to vector<8x32xf32>
    %cst_95 = arith.constant dense<0.000000e+00> : vector<32x32xf32>
    %202 = tpu.matmul %200, %201, %cst_95 {dimension_numbers = #tpu.dot_dimension_numbers<[1], [0], [0], [1], [0, 0, 1, 1], [], []>} : vector<32x8xf32>, vector<8x32xf32>, vector<32x32xf32> -> vector<32x32xf32>
    %203 = arith.addf %164, %202 : vector<32x32xf32>
    %204 = arith.addf %24, %203 : vector<32x32xf32>
    %cst_96 = arith.constant dense<0.000000e+00> : vector<32x32xf32>
    %205 = tpu.matmul %2, %204, %cst_96 {dimension_numbers = #tpu.dot_dimension_numbers<[1], [0], [0], [1], [0, 0, 1, 1], [], []>} : vector<32x32xf32>, vector<32x32xf32>, vector<32x32xf32> -> vector<32x32xf32>
    %206 = arith.subf %204, %205 : vector<32x32xf32>
    %c0_97 = arith.constant 0 : index
    %c0_98 = arith.constant 0 : index
    %207 = vector.load %arg28[%c0_97, %c0_98] : memref<32x64xf32, #tpu.memory_space<vmem>>, vector<32x64xf32>
    %cst_99 = arith.constant dense<0.000000e+00> : vector<32x64xf32>
    %208 = tpu.matmul %206, %207, %cst_99 {dimension_numbers = #tpu.dot_dimension_numbers<[1], [0], [0], [1], [0, 0, 1, 1], [], []>} : vector<32x32xf32>, vector<32x64xf32>, vector<32x64xf32> -> vector<32x64xf32>
    %209 = arith.mulf %208, %208 : vector<32x64xf32>
    %210 = arith.mulf %208, %209 : vector<32x64xf32>
    %cst_100 = arith.constant 4.471500e-02 : f32
    %211 = vector.broadcast %cst_100 : f32 to vector<32x64xf32>
    %212 = arith.mulf %211, %210 : vector<32x64xf32>
    %213 = arith.addf %208, %212 : vector<32x64xf32>
    %cst_101 = arith.constant 0.797884583 : f32
    %214 = vector.broadcast %cst_101 : f32 to vector<32x64xf32>
    %215 = arith.mulf %214, %213 : vector<32x64xf32>
    %216 = math.tanh %215 : vector<32x64xf32>
    %cst_102 = arith.constant 1.000000e+00 : f32
    %217 = vector.broadcast %cst_102 : f32 to vector<32x64xf32>
    %218 = arith.addf %217, %216 : vector<32x64xf32>
    %cst_103 = arith.constant 5.000000e-01 : f32
    %219 = vector.broadcast %cst_103 : f32 to vector<32x64xf32>
    %220 = arith.mulf %219, %218 : vector<32x64xf32>
    %221 = arith.mulf %208, %220 : vector<32x64xf32>
    %c0_104 = arith.constant 0 : index
    %c0_105 = arith.constant 0 : index
    %222 = vector.load %arg29[%c0_104, %c0_105] : memref<64x32xf32, #tpu.memory_space<vmem>>, vector<64x32xf32>
    %cst_106 = arith.constant dense<0.000000e+00> : vector<32x32xf32>
    %223 = tpu.matmul %221, %222, %cst_106 {dimension_numbers = #tpu.dot_dimension_numbers<[1], [0], [0], [1], [0, 0, 1, 1], [], []>} : vector<32x64xf32>, vector<64x32xf32>, vector<32x32xf32> -> vector<32x32xf32>
    %224 = arith.addf %206, %223 : vector<32x32xf32>
    %cst_107 = arith.constant dense<0.000000e+00> : vector<32x32xf32>
    %225 = tpu.matmul %2, %224, %cst_107 {dimension_numbers = #tpu.dot_dimension_numbers<[1], [0], [0], [1], [0, 0, 1, 1], [], []>} : vector<32x32xf32>, vector<32x32xf32>, vector<32x32xf32> -> vector<32x32xf32>
    %226 = arith.subf %224, %225 : vector<32x32xf32>
    %cst_108 = arith.constant dense<0.000000e+00> : vector<32x32xf32>
    %227 = tpu.matmul %0, %226, %cst_108 {dimension_numbers = #tpu.dot_dimension_numbers<[1], [0], [0], [1], [0, 0, 1, 1], [], []>} : vector<32x32xf32>, vector<32x32xf32>, vector<32x32xf32> -> vector<32x32xf32>
    %c0_109 = arith.constant 0 : index
    %c0_110 = arith.constant 0 : index
    %c0_111 = arith.constant 0 : index
    %228 = vector.load %arg37[%c0_109, %c0_110, %c0_111] : memref<3x32x32xf32, #tpu.memory_space<vmem>>, vector<1x32x32xf32>
    %229 = vector.shape_cast %228 : vector<1x32x32xf32> to vector<32x32xf32>
    %cst_112 = arith.constant dense<0.000000e+00> : vector<32x32xf32>
    %230 = tpu.matmul %227, %229, %cst_112 {dimension_numbers = #tpu.dot_dimension_numbers<[1], [0], [0], [1], [0, 0, 1, 1], [], []>} : vector<32x32xf32>, vector<32x32xf32>, vector<32x32xf32> -> vector<32x32xf32>
    %c1_113 = arith.constant 1 : index
    %c0_114 = arith.constant 0 : index
    %c0_115 = arith.constant 0 : index
    %231 = vector.load %arg37[%c1_113, %c0_114, %c0_115] : memref<3x32x32xf32, #tpu.memory_space<vmem>>, vector<1x32x32xf32>
    %232 = vector.shape_cast %231 : vector<1x32x32xf32> to vector<32x32xf32>
    %cst_116 = arith.constant dense<0.000000e+00> : vector<32x32xf32>
    %233 = tpu.matmul %226, %232, %cst_116 {dimension_numbers = #tpu.dot_dimension_numbers<[1], [0], [0], [1], [0, 0, 1, 1], [], []>} : vector<32x32xf32>, vector<32x32xf32>, vector<32x32xf32> -> vector<32x32xf32>
    %234 = arith.addf %230, %233 : vector<32x32xf32>
    %cst_117 = arith.constant dense<0.000000e+00> : vector<32x32xf32>
    %235 = tpu.matmul %1, %226, %cst_117 {dimension_numbers = #tpu.dot_dimension_numbers<[1], [0], [0], [1], [0, 0, 1, 1], [], []>} : vector<32x32xf32>, vector<32x32xf32>, vector<32x32xf32> -> vector<32x32xf32>
    %c2_118 = arith.constant 2 : index
    %c0_119 = arith.constant 0 : index
    %c0_120 = arith.constant 0 : index
    %236 = vector.load %arg37[%c2_118, %c0_119, %c0_120] : memref<3x32x32xf32, #tpu.memory_space<vmem>>, vector<1x32x32xf32>
    %237 = vector.shape_cast %236 : vector<1x32x32xf32> to vector<32x32xf32>
    %cst_121 = arith.constant dense<0.000000e+00> : vector<32x32xf32>
    %238 = tpu.matmul %235, %237, %cst_121 {dimension_numbers = #tpu.dot_dimension_numbers<[1], [0], [0], [1], [0, 0, 1, 1], [], []>} : vector<32x32xf32>, vector<32x32xf32>, vector<32x32xf32> -> vector<32x32xf32>
    %239 = arith.addf %234, %238 : vector<32x32xf32>
    %c0_122 = arith.constant 0 : index
    %c0_123 = arith.constant 0 : index
    %240 = vector.load %arg38[%c0_122, %c0_123] : memref<1x32xf32, #tpu.memory_space<vmem>>, vector<1x32xf32>
    %241 = vector.broadcast %240 : vector<1x32xf32> to vector<32x32xf32>
    %242 = arith.addf %239, %241 : vector<32x32xf32>
    %c0_124 = arith.constant 0 : index
    %c0_125 = arith.constant 0 : index
    %243 = vector.load %arg39[%c0_124, %c0_125] : memref<1x32xf32, #tpu.memory_space<vmem>>, vector<1x32xf32>
    %244 = vector.broadcast %243 : vector<1x32xf32> to vector<32x32xf32>
    %245 = arith.mulf %242, %244 : vector<32x32xf32>
    %c0_126 = arith.constant 0 : index
    %c0_127 = arith.constant 0 : index
    %246 = vector.load %arg40[%c0_126, %c0_127] : memref<1x32xf32, #tpu.memory_space<vmem>>, vector<1x32xf32>
    %247 = vector.broadcast %246 : vector<1x32xf32> to vector<32x32xf32>
    %248 = arith.addf %245, %247 : vector<32x32xf32>
    %cst_128 = arith.constant 0.000000e+00 : f32
    %249 = vector.broadcast %cst_128 : f32 to vector<32x32xf32>
    %250 = arith.cmpf ogt, %248, %249 : vector<32x32xf32>
    %cst_129 = arith.constant 0.000000e+00 : f32
    %251 = vector.broadcast %cst_129 : f32 to vector<32x32xf32>
    %252 = arith.minimumf %248, %251 : vector<32x32xf32>
    %253 = math.exp %252 : vector<32x32xf32>
    %cst_130 = arith.constant 1.000000e+00 : f32
    %254 = vector.broadcast %cst_130 : f32 to vector<32x32xf32>
    %255 = arith.subf %253, %254 : vector<32x32xf32>
    %256 = arith.select %250, %248, %255 : vector<32x32xi1>, vector<32x32xf32>
    %c0_131 = arith.constant 0 : index
    %c0_132 = arith.constant 0 : index
    %c0_133 = arith.constant 0 : index
    %257 = vector.load %arg10[%c0_131, %c0_132, %c0_133] : memref<3x16x32xf32, #tpu.memory_space<vmem>>, vector<1x16x32xf32>
    %258 = vector.shape_cast %257 : vector<1x16x32xf32> to vector<16x32xf32>
    %cst_134 = arith.constant dense<0.000000e+00> : vector<16x32xf32>
    %259 = tpu.matmul %258, %256, %cst_134 {dimension_numbers = #tpu.dot_dimension_numbers<[1], [0], [0], [1], [0, 0, 1, 1], [], []>} : vector<16x32xf32>, vector<32x32xf32>, vector<16x32xf32> -> vector<16x32xf32>
    %c1_135 = arith.constant 1 : index
    %c0_136 = arith.constant 0 : index
    %c0_137 = arith.constant 0 : index
    %260 = vector.load %arg10[%c1_135, %c0_136, %c0_137] : memref<3x16x32xf32, #tpu.memory_space<vmem>>, vector<1x16x32xf32>
    %261 = vector.shape_cast %260 : vector<1x16x32xf32> to vector<16x32xf32>
    %cst_138 = arith.constant dense<0.000000e+00> : vector<16x32xf32>
    %262 = tpu.matmul %261, %256, %cst_138 {dimension_numbers = #tpu.dot_dimension_numbers<[1], [0], [0], [1], [0, 0, 1, 1], [], []>} : vector<16x32xf32>, vector<32x32xf32>, vector<16x32xf32> -> vector<16x32xf32>
    %263 = arith.maximumf %259, %262 : vector<16x32xf32>
    %c2_139 = arith.constant 2 : index
    %c0_140 = arith.constant 0 : index
    %c0_141 = arith.constant 0 : index
    %264 = vector.load %arg10[%c2_139, %c0_140, %c0_141] : memref<3x16x32xf32, #tpu.memory_space<vmem>>, vector<1x16x32xf32>
    %265 = vector.shape_cast %264 : vector<1x16x32xf32> to vector<16x32xf32>
    %cst_142 = arith.constant dense<0.000000e+00> : vector<16x32xf32>
    %266 = tpu.matmul %265, %256, %cst_142 {dimension_numbers = #tpu.dot_dimension_numbers<[1], [0], [0], [1], [0, 0, 1, 1], [], []>} : vector<16x32xf32>, vector<32x32xf32>, vector<16x32xf32> -> vector<16x32xf32>
    %267 = arith.maximumf %263, %266 : vector<16x32xf32>
    %c0_143 = arith.constant 0 : index
    %c0_144 = arith.constant 0 : index
    %268 = vector.load %arg16[%c0_143, %c0_144] : memref<16x16xf32, #tpu.memory_space<vmem>>, vector<16x16xf32>
    %c0_145 = arith.constant 0 : index
    %c0_146 = arith.constant 0 : index
    %269 = vector.load %arg30[%c0_145, %c0_146] : memref<32x96xf32, #tpu.memory_space<vmem>>, vector<32x96xf32>
    %cst_147 = arith.constant dense<0.000000e+00> : vector<16x96xf32>
    %270 = tpu.matmul %267, %269, %cst_147 {dimension_numbers = #tpu.dot_dimension_numbers<[1], [0], [0], [1], [0, 0, 1, 1], [], []>} : vector<16x32xf32>, vector<32x96xf32>, vector<16x96xf32> -> vector<16x96xf32>
    %c0_148 = arith.constant 0 : index
    %c0_149 = arith.constant 0 : index
    %271 = vector.load %arg31[%c0_148, %c0_149] : memref<1x96xf32, #tpu.memory_space<vmem>>, vector<1x96xf32>
    %272 = vector.broadcast %271 : vector<1x96xf32> to vector<16x96xf32>
    %273 = arith.addf %270, %272 : vector<16x96xf32>
    %274 = vector.extract_strided_slice %273 {offsets = [0, 0], sizes = [16, 32], strides = [1, 1]} : vector<16x96xf32> to vector<16x32xf32>
    %cst_150 = arith.constant 0.594603539 : f32
    %275 = vector.broadcast %cst_150 : f32 to vector<16x32xf32>
    %276 = arith.mulf %274, %275 : vector<16x32xf32>
    %277 = vector.extract_strided_slice %273 {offsets = [0, 32], sizes = [16, 32], strides = [1, 1]} : vector<16x96xf32> to vector<16x32xf32>
    %cst_151 = arith.constant 0.594603539 : f32
    %278 = vector.broadcast %cst_151 : f32 to vector<16x32xf32>
    %279 = arith.mulf %277, %278 : vector<16x32xf32>
    %280 = vector.extract_strided_slice %273 {offsets = [0, 64], sizes = [16, 32], strides = [1, 1]} : vector<16x96xf32> to vector<16x32xf32>
    %c0_152 = arith.constant 0 : index
    %c0_153 = arith.constant 0 : index
    %281 = vector.load %arg32[%c0_152, %c0_153] : memref<32x64xf32, #tpu.memory_space<vmem>>, vector<32x64xf32>
    %cst_154 = arith.constant dense<0.000000e+00> : vector<16x64xf32>
    %282 = tpu.matmul %276, %281, %cst_154 {dimension_numbers = #tpu.dot_dimension_numbers<[1], [0], [0], [1], [0, 0, 1, 1], [], []>} : vector<16x32xf32>, vector<32x64xf32>, vector<16x64xf32> -> vector<16x64xf32>
    %cst_155 = arith.constant dense<0.000000e+00> : vector<16x64xf32>
    %283 = tpu.matmul %279, %281, %cst_155 {dimension_numbers = #tpu.dot_dimension_numbers<[1], [0], [0], [1], [0, 0, 1, 1], [], []>} : vector<16x32xf32>, vector<32x64xf32>, vector<16x64xf32> -> vector<16x64xf32>
    %284 = arith.mulf %276, %276 : vector<16x32xf32>
    %cst_156 = arith.constant dense<0.000000e+00> : vector<16x64xf32>
    %285 = tpu.matmul %284, %4, %cst_156 {dimension_numbers = #tpu.dot_dimension_numbers<[1], [0], [0], [1], [0, 0, 1, 1], [], []>} : vector<16x32xf32>, vector<32x64xf32>, vector<16x64xf32> -> vector<16x64xf32>
    %286 = arith.mulf %279, %279 : vector<16x32xf32>
    %cst_157 = arith.constant dense<0.000000e+00> : vector<16x64xf32>
    %287 = tpu.matmul %286, %4, %cst_157 {dimension_numbers = #tpu.dot_dimension_numbers<[1], [0], [0], [1], [0, 0, 1, 1], [], []>} : vector<16x32xf32>, vector<32x64xf32>, vector<16x64xf32> -> vector<16x64xf32>
    %c0_158 = arith.constant 0 : index
    %c0_159 = arith.constant 0 : index
    %288 = vector.load %arg33[%c0_158, %c0_159] : memref<32x32xf32, #tpu.memory_space<vmem>>, vector<32x32xf32>
    %c0_160 = arith.constant 0 : index
    %c0_161 = arith.constant 0 : index
    %289 = vector.load %arg34[%c0_160, %c0_161] : memref<1x32xf32, #tpu.memory_space<vmem>>, vector<1x32xf32>
    %290 = vector.extract_strided_slice %282 {offsets = [0, 0], sizes = [16, 16], strides = [1, 1]} : vector<16x64xf32> to vector<16x16xf32>
    %291 = vector.extract_strided_slice %283 {offsets = [0, 0], sizes = [16, 16], strides = [1, 1]} : vector<16x64xf32> to vector<16x16xf32>
    %cst_162 = arith.constant dense<0xFF800000> : vector<16xf32>
    %292 = vector.multi_reduction <maximumf>, %290, %cst_162 [1] : vector<16x16xf32> to vector<16xf32>
    %293 = vector.shape_cast %292 : vector<16xf32> to vector<16x1xf32>
    %cst_163 = arith.constant dense<0xFF800000> : vector<16xf32>
    %294 = vector.multi_reduction <maximumf>, %291, %cst_163 [1] : vector<16x16xf32> to vector<16xf32>
    %295 = vector.shape_cast %294 : vector<16xf32> to vector<16x1xf32>
    %cst_164 = arith.constant dense<0xFF800000> : vector<1xf32>
    %296 = vector.multi_reduction <maximumf>, %295, %cst_164 [0] : vector<16x1xf32> to vector<1xf32>
    %297 = vector.shape_cast %296 : vector<1xf32> to vector<1x1xf32>
    %298 = vector.extract_strided_slice %285 {offsets = [0, 0], sizes = [16, 16], strides = [1, 1]} : vector<16x64xf32> to vector<16x16xf32>
    %299 = arith.subf %290, %298 : vector<16x16xf32>
    %300 = vector.broadcast %293 : vector<16x1xf32> to vector<16x16xf32>
    %301 = arith.subf %299, %300 : vector<16x16xf32>
    %302 = math.exp %301 : vector<16x16xf32>
    %cst_165 = arith.constant 9.99999974E-5 : f32
    %303 = vector.broadcast %cst_165 : f32 to vector<16x16xf32>
    %304 = arith.addf %302, %303 : vector<16x16xf32>
    %cst_166 = arith.constant 2.500000e-01 : f32
    %305 = vector.broadcast %cst_166 : f32 to vector<16x16xf32>
    %306 = arith.mulf %305, %304 : vector<16x16xf32>
    %307 = vector.extract_strided_slice %287 {offsets = [0, 0], sizes = [16, 16], strides = [1, 1]} : vector<16x64xf32> to vector<16x16xf32>
    %308 = arith.subf %291, %307 : vector<16x16xf32>
    %309 = vector.broadcast %297 : vector<1x1xf32> to vector<16x16xf32>
    %310 = arith.subf %308, %309 : vector<16x16xf32>
    %311 = math.exp %310 : vector<16x16xf32>
    %cst_167 = arith.constant 9.99999974E-5 : f32
    %312 = vector.broadcast %cst_167 : f32 to vector<16x16xf32>
    %313 = arith.addf %311, %312 : vector<16x16xf32>
    %cst_168 = arith.constant 2.500000e-01 : f32
    %314 = vector.broadcast %cst_168 : f32 to vector<16x16xf32>
    %315 = arith.mulf %314, %313 : vector<16x16xf32>
    %cst_169 = arith.constant dense<0.000000e+00> : vector<16x16xf32>
    %316 = tpu.matmul %306, %315, %cst_169 {dimension_numbers = #tpu.dot_dimension_numbers<[1], [1], [0], [0], [0, 0, 1, 0], [], []>} : vector<16x16xf32>, vector<16x16xf32>, vector<16x16xf32> -> vector<16x16xf32>
    %317 = arith.mulf %316, %268 : vector<16x16xf32>
    %318 = vector.extract_strided_slice %280 {offsets = [0, 0], sizes = [16, 8], strides = [1, 1]} : vector<16x32xf32> to vector<16x8xf32>
    %cst_170 = arith.constant dense<0.000000e+00> : vector<16x8xf32>
    %319 = tpu.matmul %317, %318, %cst_170 {dimension_numbers = #tpu.dot_dimension_numbers<[1], [0], [0], [1], [0, 0, 1, 1], [], []>} : vector<16x16xf32>, vector<16x8xf32>, vector<16x8xf32> -> vector<16x8xf32>
    %cst_171 = arith.constant dense<0.000000e+00> : vector<16xf32>
    %320 = vector.multi_reduction <add>, %317, %cst_171 [1] : vector<16x16xf32> to vector<16xf32>
    %321 = vector.shape_cast %320 : vector<16xf32> to vector<16x1xf32>
    %cst_172 = arith.constant 9.99999997E-7 : f32
    %322 = vector.broadcast %cst_172 : f32 to vector<16x1xf32>
    %323 = arith.addf %321, %322 : vector<16x1xf32>
    %324 = vector.broadcast %323 : vector<16x1xf32> to vector<16x8xf32>
    %325 = arith.divf %319, %324 : vector<16x8xf32>
    %326 = vector.extract_strided_slice %288 {offsets = [0, 0], sizes = [8, 32], strides = [1, 1]} : vector<32x32xf32> to vector<8x32xf32>
    %cst_173 = arith.constant dense<0.000000e+00> : vector<16x32xf32>
    %327 = tpu.matmul %325, %326, %cst_173 {dimension_numbers = #tpu.dot_dimension_numbers<[1], [0], [0], [1], [0, 0, 1, 1], [], []>} : vector<16x8xf32>, vector<8x32xf32>, vector<16x32xf32> -> vector<16x32xf32>
    %328 = vector.broadcast %289 : vector<1x32xf32> to vector<16x32xf32>
    %329 = arith.addf %328, %327 : vector<16x32xf32>
    %330 = vector.extract_strided_slice %282 {offsets = [0, 16], sizes = [16, 16], strides = [1, 1]} : vector<16x64xf32> to vector<16x16xf32>
    %331 = vector.extract_strided_slice %283 {offsets = [0, 16], sizes = [16, 16], strides = [1, 1]} : vector<16x64xf32> to vector<16x16xf32>
    %cst_174 = arith.constant dense<0xFF800000> : vector<16xf32>
    %332 = vector.multi_reduction <maximumf>, %330, %cst_174 [1] : vector<16x16xf32> to vector<16xf32>
    %333 = vector.shape_cast %332 : vector<16xf32> to vector<16x1xf32>
    %cst_175 = arith.constant dense<0xFF800000> : vector<16xf32>
    %334 = vector.multi_reduction <maximumf>, %331, %cst_175 [1] : vector<16x16xf32> to vector<16xf32>
    %335 = vector.shape_cast %334 : vector<16xf32> to vector<16x1xf32>
    %cst_176 = arith.constant dense<0xFF800000> : vector<1xf32>
    %336 = vector.multi_reduction <maximumf>, %335, %cst_176 [0] : vector<16x1xf32> to vector<1xf32>
    %337 = vector.shape_cast %336 : vector<1xf32> to vector<1x1xf32>
    %338 = vector.extract_strided_slice %285 {offsets = [0, 16], sizes = [16, 16], strides = [1, 1]} : vector<16x64xf32> to vector<16x16xf32>
    %339 = arith.subf %330, %338 : vector<16x16xf32>
    %340 = vector.broadcast %333 : vector<16x1xf32> to vector<16x16xf32>
    %341 = arith.subf %339, %340 : vector<16x16xf32>
    %342 = math.exp %341 : vector<16x16xf32>
    %cst_177 = arith.constant 9.99999974E-5 : f32
    %343 = vector.broadcast %cst_177 : f32 to vector<16x16xf32>
    %344 = arith.addf %342, %343 : vector<16x16xf32>
    %cst_178 = arith.constant 2.500000e-01 : f32
    %345 = vector.broadcast %cst_178 : f32 to vector<16x16xf32>
    %346 = arith.mulf %345, %344 : vector<16x16xf32>
    %347 = vector.extract_strided_slice %287 {offsets = [0, 16], sizes = [16, 16], strides = [1, 1]} : vector<16x64xf32> to vector<16x16xf32>
    %348 = arith.subf %331, %347 : vector<16x16xf32>
    %349 = vector.broadcast %337 : vector<1x1xf32> to vector<16x16xf32>
    %350 = arith.subf %348, %349 : vector<16x16xf32>
    %351 = math.exp %350 : vector<16x16xf32>
    %cst_179 = arith.constant 9.99999974E-5 : f32
    %352 = vector.broadcast %cst_179 : f32 to vector<16x16xf32>
    %353 = arith.addf %351, %352 : vector<16x16xf32>
    %cst_180 = arith.constant 2.500000e-01 : f32
    %354 = vector.broadcast %cst_180 : f32 to vector<16x16xf32>
    %355 = arith.mulf %354, %353 : vector<16x16xf32>
    %cst_181 = arith.constant dense<0.000000e+00> : vector<16x16xf32>
    %356 = tpu.matmul %346, %355, %cst_181 {dimension_numbers = #tpu.dot_dimension_numbers<[1], [1], [0], [0], [0, 0, 1, 0], [], []>} : vector<16x16xf32>, vector<16x16xf32>, vector<16x16xf32> -> vector<16x16xf32>
    %357 = arith.mulf %356, %268 : vector<16x16xf32>
    %358 = vector.extract_strided_slice %280 {offsets = [0, 8], sizes = [16, 8], strides = [1, 1]} : vector<16x32xf32> to vector<16x8xf32>
    %cst_182 = arith.constant dense<0.000000e+00> : vector<16x8xf32>
    %359 = tpu.matmul %357, %358, %cst_182 {dimension_numbers = #tpu.dot_dimension_numbers<[1], [0], [0], [1], [0, 0, 1, 1], [], []>} : vector<16x16xf32>, vector<16x8xf32>, vector<16x8xf32> -> vector<16x8xf32>
    %cst_183 = arith.constant dense<0.000000e+00> : vector<16xf32>
    %360 = vector.multi_reduction <add>, %357, %cst_183 [1] : vector<16x16xf32> to vector<16xf32>
    %361 = vector.shape_cast %360 : vector<16xf32> to vector<16x1xf32>
    %cst_184 = arith.constant 9.99999997E-7 : f32
    %362 = vector.broadcast %cst_184 : f32 to vector<16x1xf32>
    %363 = arith.addf %361, %362 : vector<16x1xf32>
    %364 = vector.broadcast %363 : vector<16x1xf32> to vector<16x8xf32>
    %365 = arith.divf %359, %364 : vector<16x8xf32>
    %366 = vector.extract_strided_slice %288 {offsets = [8, 0], sizes = [8, 32], strides = [1, 1]} : vector<32x32xf32> to vector<8x32xf32>
    %cst_185 = arith.constant dense<0.000000e+00> : vector<16x32xf32>
    %367 = tpu.matmul %365, %366, %cst_185 {dimension_numbers = #tpu.dot_dimension_numbers<[1], [0], [0], [1], [0, 0, 1, 1], [], []>} : vector<16x8xf32>, vector<8x32xf32>, vector<16x32xf32> -> vector<16x32xf32>
    %368 = arith.addf %329, %367 : vector<16x32xf32>
    %369 = vector.extract_strided_slice %282 {offsets = [0, 32], sizes = [16, 16], strides = [1, 1]} : vector<16x64xf32> to vector<16x16xf32>
    %370 = vector.extract_strided_slice %283 {offsets = [0, 32], sizes = [16, 16], strides = [1, 1]} : vector<16x64xf32> to vector<16x16xf32>
    %cst_186 = arith.constant dense<0xFF800000> : vector<16xf32>
    %371 = vector.multi_reduction <maximumf>, %369, %cst_186 [1] : vector<16x16xf32> to vector<16xf32>
    %372 = vector.shape_cast %371 : vector<16xf32> to vector<16x1xf32>
    %cst_187 = arith.constant dense<0xFF800000> : vector<16xf32>
    %373 = vector.multi_reduction <maximumf>, %370, %cst_187 [1] : vector<16x16xf32> to vector<16xf32>
    %374 = vector.shape_cast %373 : vector<16xf32> to vector<16x1xf32>
    %cst_188 = arith.constant dense<0xFF800000> : vector<1xf32>
    %375 = vector.multi_reduction <maximumf>, %374, %cst_188 [0] : vector<16x1xf32> to vector<1xf32>
    %376 = vector.shape_cast %375 : vector<1xf32> to vector<1x1xf32>
    %377 = vector.extract_strided_slice %285 {offsets = [0, 32], sizes = [16, 16], strides = [1, 1]} : vector<16x64xf32> to vector<16x16xf32>
    %378 = arith.subf %369, %377 : vector<16x16xf32>
    %379 = vector.broadcast %372 : vector<16x1xf32> to vector<16x16xf32>
    %380 = arith.subf %378, %379 : vector<16x16xf32>
    %381 = math.exp %380 : vector<16x16xf32>
    %cst_189 = arith.constant 9.99999974E-5 : f32
    %382 = vector.broadcast %cst_189 : f32 to vector<16x16xf32>
    %383 = arith.addf %381, %382 : vector<16x16xf32>
    %cst_190 = arith.constant 2.500000e-01 : f32
    %384 = vector.broadcast %cst_190 : f32 to vector<16x16xf32>
    %385 = arith.mulf %384, %383 : vector<16x16xf32>
    %386 = vector.extract_strided_slice %287 {offsets = [0, 32], sizes = [16, 16], strides = [1, 1]} : vector<16x64xf32> to vector<16x16xf32>
    %387 = arith.subf %370, %386 : vector<16x16xf32>
    %388 = vector.broadcast %376 : vector<1x1xf32> to vector<16x16xf32>
    %389 = arith.subf %387, %388 : vector<16x16xf32>
    %390 = math.exp %389 : vector<16x16xf32>
    %cst_191 = arith.constant 9.99999974E-5 : f32
    %391 = vector.broadcast %cst_191 : f32 to vector<16x16xf32>
    %392 = arith.addf %390, %391 : vector<16x16xf32>
    %cst_192 = arith.constant 2.500000e-01 : f32
    %393 = vector.broadcast %cst_192 : f32 to vector<16x16xf32>
    %394 = arith.mulf %393, %392 : vector<16x16xf32>
    %cst_193 = arith.constant dense<0.000000e+00> : vector<16x16xf32>
    %395 = tpu.matmul %385, %394, %cst_193 {dimension_numbers = #tpu.dot_dimension_numbers<[1], [1], [0], [0], [0, 0, 1, 0], [], []>} : vector<16x16xf32>, vector<16x16xf32>, vector<16x16xf32> -> vector<16x16xf32>
    %396 = arith.mulf %395, %268 : vector<16x16xf32>
    %397 = vector.extract_strided_slice %280 {offsets = [0, 16], sizes = [16, 8], strides = [1, 1]} : vector<16x32xf32> to vector<16x8xf32>
    %cst_194 = arith.constant dense<0.000000e+00> : vector<16x8xf32>
    %398 = tpu.matmul %396, %397, %cst_194 {dimension_numbers = #tpu.dot_dimension_numbers<[1], [0], [0], [1], [0, 0, 1, 1], [], []>} : vector<16x16xf32>, vector<16x8xf32>, vector<16x8xf32> -> vector<16x8xf32>
    %cst_195 = arith.constant dense<0.000000e+00> : vector<16xf32>
    %399 = vector.multi_reduction <add>, %396, %cst_195 [1] : vector<16x16xf32> to vector<16xf32>
    %400 = vector.shape_cast %399 : vector<16xf32> to vector<16x1xf32>
    %cst_196 = arith.constant 9.99999997E-7 : f32
    %401 = vector.broadcast %cst_196 : f32 to vector<16x1xf32>
    %402 = arith.addf %400, %401 : vector<16x1xf32>
    %403 = vector.broadcast %402 : vector<16x1xf32> to vector<16x8xf32>
    %404 = arith.divf %398, %403 : vector<16x8xf32>
    %405 = vector.extract_strided_slice %288 {offsets = [16, 0], sizes = [8, 32], strides = [1, 1]} : vector<32x32xf32> to vector<8x32xf32>
    %cst_197 = arith.constant dense<0.000000e+00> : vector<16x32xf32>
    %406 = tpu.matmul %404, %405, %cst_197 {dimension_numbers = #tpu.dot_dimension_numbers<[1], [0], [0], [1], [0, 0, 1, 1], [], []>} : vector<16x8xf32>, vector<8x32xf32>, vector<16x32xf32> -> vector<16x32xf32>
    %407 = arith.addf %368, %406 : vector<16x32xf32>
    %408 = vector.extract_strided_slice %282 {offsets = [0, 48], sizes = [16, 16], strides = [1, 1]} : vector<16x64xf32> to vector<16x16xf32>
    %409 = vector.extract_strided_slice %283 {offsets = [0, 48], sizes = [16, 16], strides = [1, 1]} : vector<16x64xf32> to vector<16x16xf32>
    %cst_198 = arith.constant dense<0xFF800000> : vector<16xf32>
    %410 = vector.multi_reduction <maximumf>, %408, %cst_198 [1] : vector<16x16xf32> to vector<16xf32>
    %411 = vector.shape_cast %410 : vector<16xf32> to vector<16x1xf32>
    %cst_199 = arith.constant dense<0xFF800000> : vector<16xf32>
    %412 = vector.multi_reduction <maximumf>, %409, %cst_199 [1] : vector<16x16xf32> to vector<16xf32>
    %413 = vector.shape_cast %412 : vector<16xf32> to vector<16x1xf32>
    %cst_200 = arith.constant dense<0xFF800000> : vector<1xf32>
    %414 = vector.multi_reduction <maximumf>, %413, %cst_200 [0] : vector<16x1xf32> to vector<1xf32>
    %415 = vector.shape_cast %414 : vector<1xf32> to vector<1x1xf32>
    %416 = vector.extract_strided_slice %285 {offsets = [0, 48], sizes = [16, 16], strides = [1, 1]} : vector<16x64xf32> to vector<16x16xf32>
    %417 = arith.subf %408, %416 : vector<16x16xf32>
    %418 = vector.broadcast %411 : vector<16x1xf32> to vector<16x16xf32>
    %419 = arith.subf %417, %418 : vector<16x16xf32>
    %420 = math.exp %419 : vector<16x16xf32>
    %cst_201 = arith.constant 9.99999974E-5 : f32
    %421 = vector.broadcast %cst_201 : f32 to vector<16x16xf32>
    %422 = arith.addf %420, %421 : vector<16x16xf32>
    %cst_202 = arith.constant 2.500000e-01 : f32
    %423 = vector.broadcast %cst_202 : f32 to vector<16x16xf32>
    %424 = arith.mulf %423, %422 : vector<16x16xf32>
    %425 = vector.extract_strided_slice %287 {offsets = [0, 48], sizes = [16, 16], strides = [1, 1]} : vector<16x64xf32> to vector<16x16xf32>
    %426 = arith.subf %409, %425 : vector<16x16xf32>
    %427 = vector.broadcast %415 : vector<1x1xf32> to vector<16x16xf32>
    %428 = arith.subf %426, %427 : vector<16x16xf32>
    %429 = math.exp %428 : vector<16x16xf32>
    %cst_203 = arith.constant 9.99999974E-5 : f32
    %430 = vector.broadcast %cst_203 : f32 to vector<16x16xf32>
    %431 = arith.addf %429, %430 : vector<16x16xf32>
    %cst_204 = arith.constant 2.500000e-01 : f32
    %432 = vector.broadcast %cst_204 : f32 to vector<16x16xf32>
    %433 = arith.mulf %432, %431 : vector<16x16xf32>
    %cst_205 = arith.constant dense<0.000000e+00> : vector<16x16xf32>
    %434 = tpu.matmul %424, %433, %cst_205 {dimension_numbers = #tpu.dot_dimension_numbers<[1], [1], [0], [0], [0, 0, 1, 0], [], []>} : vector<16x16xf32>, vector<16x16xf32>, vector<16x16xf32> -> vector<16x16xf32>
    %435 = arith.mulf %434, %268 : vector<16x16xf32>
    %436 = vector.extract_strided_slice %280 {offsets = [0, 24], sizes = [16, 8], strides = [1, 1]} : vector<16x32xf32> to vector<16x8xf32>
    %cst_206 = arith.constant dense<0.000000e+00> : vector<16x8xf32>
    %437 = tpu.matmul %435, %436, %cst_206 {dimension_numbers = #tpu.dot_dimension_numbers<[1], [0], [0], [1], [0, 0, 1, 1], [], []>} : vector<16x16xf32>, vector<16x8xf32>, vector<16x8xf32> -> vector<16x8xf32>
    %cst_207 = arith.constant dense<0.000000e+00> : vector<16xf32>
    %438 = vector.multi_reduction <add>, %435, %cst_207 [1] : vector<16x16xf32> to vector<16xf32>
    %439 = vector.shape_cast %438 : vector<16xf32> to vector<16x1xf32>
    %cst_208 = arith.constant 9.99999997E-7 : f32
    %440 = vector.broadcast %cst_208 : f32 to vector<16x1xf32>
    %441 = arith.addf %439, %440 : vector<16x1xf32>
    %442 = vector.broadcast %441 : vector<16x1xf32> to vector<16x8xf32>
    %443 = arith.divf %437, %442 : vector<16x8xf32>
    %444 = vector.extract_strided_slice %288 {offsets = [24, 0], sizes = [8, 32], strides = [1, 1]} : vector<32x32xf32> to vector<8x32xf32>
    %cst_209 = arith.constant dense<0.000000e+00> : vector<16x32xf32>
    %445 = tpu.matmul %443, %444, %cst_209 {dimension_numbers = #tpu.dot_dimension_numbers<[1], [0], [0], [1], [0, 0, 1, 1], [], []>} : vector<16x8xf32>, vector<8x32xf32>, vector<16x32xf32> -> vector<16x32xf32>
    %446 = arith.addf %407, %445 : vector<16x32xf32>
    %447 = arith.addf %267, %446 : vector<16x32xf32>
    %cst_210 = arith.constant dense<0.000000e+00> : vector<16x32xf32>
    %448 = tpu.matmul %3, %447, %cst_210 {dimension_numbers = #tpu.dot_dimension_numbers<[1], [0], [0], [1], [0, 0, 1, 1], [], []>} : vector<16x16xf32>, vector<16x32xf32>, vector<16x32xf32> -> vector<16x32xf32>
    %449 = arith.subf %447, %448 : vector<16x32xf32>
    %c0_211 = arith.constant 0 : index
    %c0_212 = arith.constant 0 : index
    %450 = vector.load %arg35[%c0_211, %c0_212] : memref<32x64xf32, #tpu.memory_space<vmem>>, vector<32x64xf32>
    %cst_213 = arith.constant dense<0.000000e+00> : vector<16x64xf32>
    %451 = tpu.matmul %449, %450, %cst_213 {dimension_numbers = #tpu.dot_dimension_numbers<[1], [0], [0], [1], [0, 0, 1, 1], [], []>} : vector<16x32xf32>, vector<32x64xf32>, vector<16x64xf32> -> vector<16x64xf32>
    %452 = arith.mulf %451, %451 : vector<16x64xf32>
    %453 = arith.mulf %451, %452 : vector<16x64xf32>
    %cst_214 = arith.constant 4.471500e-02 : f32
    %454 = vector.broadcast %cst_214 : f32 to vector<16x64xf32>
    %455 = arith.mulf %454, %453 : vector<16x64xf32>
    %456 = arith.addf %451, %455 : vector<16x64xf32>
    %cst_215 = arith.constant 0.797884583 : f32
    %457 = vector.broadcast %cst_215 : f32 to vector<16x64xf32>
    %458 = arith.mulf %457, %456 : vector<16x64xf32>
    %459 = math.tanh %458 : vector<16x64xf32>
    %cst_216 = arith.constant 1.000000e+00 : f32
    %460 = vector.broadcast %cst_216 : f32 to vector<16x64xf32>
    %461 = arith.addf %460, %459 : vector<16x64xf32>
    %cst_217 = arith.constant 5.000000e-01 : f32
    %462 = vector.broadcast %cst_217 : f32 to vector<16x64xf32>
    %463 = arith.mulf %462, %461 : vector<16x64xf32>
    %464 = arith.mulf %451, %463 : vector<16x64xf32>
    %c0_218 = arith.constant 0 : index
    %c0_219 = arith.constant 0 : index
    %465 = vector.load %arg36[%c0_218, %c0_219] : memref<64x32xf32, #tpu.memory_space<vmem>>, vector<64x32xf32>
    %cst_220 = arith.constant dense<0.000000e+00> : vector<16x32xf32>
    %466 = tpu.matmul %464, %465, %cst_220 {dimension_numbers = #tpu.dot_dimension_numbers<[1], [0], [0], [1], [0, 0, 1, 1], [], []>} : vector<16x64xf32>, vector<64x32xf32>, vector<16x32xf32> -> vector<16x32xf32>
    %467 = arith.addf %449, %466 : vector<16x32xf32>
    %cst_221 = arith.constant dense<0.000000e+00> : vector<16x32xf32>
    %468 = tpu.matmul %3, %467, %cst_221 {dimension_numbers = #tpu.dot_dimension_numbers<[1], [0], [0], [1], [0, 0, 1, 1], [], []>} : vector<16x16xf32>, vector<16x32xf32>, vector<16x32xf32> -> vector<16x32xf32>
    %469 = arith.subf %467, %468 : vector<16x32xf32>
    %c0_222 = arith.constant 0 : index
    %c0_223 = arith.constant 0 : index
    %470 = vector.load %arg41[%c0_222, %c0_223] : memref<1x32xf32, #tpu.memory_space<vmem>>, vector<1x32xf32>
    %c0_224 = arith.constant 0 : index
    %c0_225 = arith.constant 0 : index
    %471 = vector.load %arg42[%c0_224, %c0_225] : memref<1x32xf32, #tpu.memory_space<vmem>>, vector<1x32xf32>
    %c0_226 = arith.constant 0 : index
    %c0_227 = arith.constant 0 : index
    %472 = vector.load %arg6[%c0_226, %c0_227] : memref<16x16xf32, #tpu.memory_space<vmem>>, vector<16x16xf32>
    %cst_228 = arith.constant dense<0.000000e+00> : vector<16xf32>
    %473 = vector.multi_reduction <add>, %469, %cst_228 [1] : vector<16x32xf32> to vector<16xf32>
    %474 = vector.shape_cast %473 : vector<16xf32> to vector<16x1xf32>
    %cst_229 = arith.constant 3.200000e+01 : f32
    %475 = vector.broadcast %cst_229 : f32 to vector<16x1xf32>
    %476 = arith.divf %474, %475 : vector<16x1xf32>
    %477 = vector.broadcast %476 : vector<16x1xf32> to vector<16x32xf32>
    %478 = arith.subf %469, %477 : vector<16x32xf32>
    %479 = arith.mulf %478, %478 : vector<16x32xf32>
    %cst_230 = arith.constant dense<0.000000e+00> : vector<16xf32>
    %480 = vector.multi_reduction <add>, %479, %cst_230 [1] : vector<16x32xf32> to vector<16xf32>
    %481 = vector.shape_cast %480 : vector<16xf32> to vector<16x1xf32>
    %cst_231 = arith.constant 3.200000e+01 : f32
    %482 = vector.broadcast %cst_231 : f32 to vector<16x1xf32>
    %483 = arith.divf %481, %482 : vector<16x1xf32>
    %484 = vector.broadcast %476 : vector<16x1xf32> to vector<16x32xf32>
    %485 = arith.subf %469, %484 : vector<16x32xf32>
    %cst_232 = arith.constant 9.99999974E-6 : f32
    %486 = vector.broadcast %cst_232 : f32 to vector<16x1xf32>
    %487 = arith.addf %483, %486 : vector<16x1xf32>
    %488 = math.rsqrt %487 : vector<16x1xf32>
    %489 = vector.broadcast %488 : vector<16x1xf32> to vector<16x32xf32>
    %490 = arith.mulf %485, %489 : vector<16x32xf32>
    %491 = vector.broadcast %470 : vector<1x32xf32> to vector<16x32xf32>
    %492 = arith.mulf %490, %491 : vector<16x32xf32>
    %493 = vector.broadcast %471 : vector<1x32xf32> to vector<16x32xf32>
    %494 = arith.addf %492, %493 : vector<16x32xf32>
    %cst_233 = arith.constant dense<0.000000e+00> : vector<16x32xf32>
    %495 = tpu.matmul %472, %494, %cst_233 {dimension_numbers = #tpu.dot_dimension_numbers<[1], [0], [0], [1], [0, 0, 1, 1], [], []>} : vector<16x16xf32>, vector<16x32xf32>, vector<16x32xf32> -> vector<16x32xf32>
    %496 = arith.subf %494, %495 : vector<16x32xf32>
    %cst_234 = arith.constant dense<0.000000e+00> : vector<32x4xf32>
    %497 = tpu.matmul %2, %6, %cst_234 {dimension_numbers = #tpu.dot_dimension_numbers<[1], [0], [0], [1], [0, 0, 1, 1], [], []>} : vector<32x32xf32>, vector<32x4xf32>, vector<32x4xf32> -> vector<32x4xf32>
    %c0_235 = arith.constant 0 : index
    %c0_236 = arith.constant 0 : index
    %498 = vector.load %arg11[%c0_235, %c0_236] : memref<32x32xf32, #tpu.memory_space<vmem>>, vector<32x32xf32>
    %499 = arith.subf %6, %497 : vector<32x4xf32>
    %cst_237 = arith.constant dense<0.000000e+00> : vector<32x4xf32>
    %500 = tpu.matmul %498, %499, %cst_237 {dimension_numbers = #tpu.dot_dimension_numbers<[1], [0], [0], [1], [0, 0, 1, 1], [], []>} : vector<32x32xf32>, vector<32x4xf32>, vector<32x4xf32> -> vector<32x4xf32>
    %c0_238 = arith.constant 0 : index
    %c0_239 = arith.constant 0 : index
    %501 = vector.load %arg11[%c0_238, %c0_239] : memref<32x32xf32, #tpu.memory_space<vmem>>, vector<32x32xf32>
    %cst_240 = arith.constant dense<0.000000e+00> : vector<32x4xf32>
    %502 = tpu.matmul %501, %497, %cst_240 {dimension_numbers = #tpu.dot_dimension_numbers<[1], [0], [0], [1], [0, 0, 1, 1], [], []>} : vector<32x32xf32>, vector<32x4xf32>, vector<32x4xf32> -> vector<32x4xf32>
    %c0_241 = arith.constant 0 : index
    %c0_242 = arith.constant 0 : index
    %503 = vector.load %arg12[%c0_241, %c0_242] : memref<32x32xf32, #tpu.memory_space<vmem>>, vector<32x32xf32>
    %cst_243 = arith.constant dense<0.000000e+00> : vector<32x4xf32>
    %504 = tpu.matmul %503, %6, %cst_243 {dimension_numbers = #tpu.dot_dimension_numbers<[1], [0], [0], [1], [0, 0, 1, 1], [], []>} : vector<32x32xf32>, vector<32x4xf32>, vector<32x4xf32> -> vector<32x4xf32>
    %505 = arith.addf %502, %504 : vector<32x4xf32>
    %cst_244 = arith.constant dense<0.000000e+00> : vector<32x4xf32>
    %506 = tpu.matmul %0, %500, %cst_244 {dimension_numbers = #tpu.dot_dimension_numbers<[1], [0], [0], [1], [0, 0, 1, 1], [], []>} : vector<32x32xf32>, vector<32x4xf32>, vector<32x4xf32> -> vector<32x4xf32>
    %c0_245 = arith.constant 0 : index
    %c0_246 = arith.constant 0 : index
    %c0_247 = arith.constant 0 : index
    %507 = vector.load %arg21[%c0_245, %c0_246, %c0_247] : memref<3x4x32xf32, #tpu.memory_space<vmem>>, vector<1x4x32xf32>
    %508 = vector.shape_cast %507 : vector<1x4x32xf32> to vector<4x32xf32>
    %cst_248 = arith.constant dense<0.000000e+00> : vector<32x32xf32>
    %509 = tpu.matmul %506, %508, %cst_248 {dimension_numbers = #tpu.dot_dimension_numbers<[1], [0], [0], [1], [0, 0, 1, 1], [], []>} : vector<32x4xf32>, vector<4x32xf32>, vector<32x32xf32> -> vector<32x32xf32>
    %c1_249 = arith.constant 1 : index
    %c0_250 = arith.constant 0 : index
    %c0_251 = arith.constant 0 : index
    %510 = vector.load %arg21[%c1_249, %c0_250, %c0_251] : memref<3x4x32xf32, #tpu.memory_space<vmem>>, vector<1x4x32xf32>
    %511 = vector.shape_cast %510 : vector<1x4x32xf32> to vector<4x32xf32>
    %cst_252 = arith.constant dense<0.000000e+00> : vector<32x32xf32>
    %512 = tpu.matmul %500, %511, %cst_252 {dimension_numbers = #tpu.dot_dimension_numbers<[1], [0], [0], [1], [0, 0, 1, 1], [], []>} : vector<32x4xf32>, vector<4x32xf32>, vector<32x32xf32> -> vector<32x32xf32>
    %513 = arith.addf %509, %512 : vector<32x32xf32>
    %cst_253 = arith.constant dense<0.000000e+00> : vector<32x4xf32>
    %514 = tpu.matmul %1, %500, %cst_253 {dimension_numbers = #tpu.dot_dimension_numbers<[1], [0], [0], [1], [0, 0, 1, 1], [], []>} : vector<32x32xf32>, vector<32x4xf32>, vector<32x4xf32> -> vector<32x4xf32>
    %c2_254 = arith.constant 2 : index
    %c0_255 = arith.constant 0 : index
    %c0_256 = arith.constant 0 : index
    %515 = vector.load %arg21[%c2_254, %c0_255, %c0_256] : memref<3x4x32xf32, #tpu.memory_space<vmem>>, vector<1x4x32xf32>
    %516 = vector.shape_cast %515 : vector<1x4x32xf32> to vector<4x32xf32>
    %cst_257 = arith.constant dense<0.000000e+00> : vector<32x32xf32>
    %517 = tpu.matmul %514, %516, %cst_257 {dimension_numbers = #tpu.dot_dimension_numbers<[1], [0], [0], [1], [0, 0, 1, 1], [], []>} : vector<32x4xf32>, vector<4x32xf32>, vector<32x32xf32> -> vector<32x32xf32>
    %518 = arith.addf %513, %517 : vector<32x32xf32>
    %c0_258 = arith.constant 0 : index
    %c0_259 = arith.constant 0 : index
    %519 = vector.load %arg2[%c0_258, %c0_259] : memref<32x4xf32, #tpu.memory_space<vmem>>, vector<32x4xf32>
    %c0_260 = arith.constant 0 : index
    %c0_261 = arith.constant 0 : index
    %520 = vector.load %arg22[%c0_260, %c0_261] : memref<4x32xf32, #tpu.memory_space<vmem>>, vector<4x32xf32>
    %cst_262 = arith.constant dense<0.000000e+00> : vector<32x32xf32>
    %521 = tpu.matmul %519, %520, %cst_262 {dimension_numbers = #tpu.dot_dimension_numbers<[1], [0], [0], [1], [0, 0, 1, 1], [], []>} : vector<32x4xf32>, vector<4x32xf32>, vector<32x32xf32> -> vector<32x32xf32>
    %522 = arith.addf %518, %521 : vector<32x32xf32>
    %523 = arith.addf %522, %5 : vector<32x32xf32>
    %c0_263 = arith.constant 0 : index
    %c0_264 = arith.constant 0 : index
    %524 = vector.load %arg17[%c0_263, %c0_264] : memref<32x32xf32, #tpu.memory_space<vmem>>, vector<32x32xf32>
    %c0_265 = arith.constant 0 : index
    %c0_266 = arith.constant 0 : index
    %525 = vector.load %arg43[%c0_265, %c0_266] : memref<32x96xf32, #tpu.memory_space<vmem>>, vector<32x96xf32>
    %cst_267 = arith.constant dense<0.000000e+00> : vector<32x96xf32>
    %526 = tpu.matmul %523, %525, %cst_267 {dimension_numbers = #tpu.dot_dimension_numbers<[1], [0], [0], [1], [0, 0, 1, 1], [], []>} : vector<32x32xf32>, vector<32x96xf32>, vector<32x96xf32> -> vector<32x96xf32>
    %c0_268 = arith.constant 0 : index
    %c0_269 = arith.constant 0 : index
    %527 = vector.load %arg44[%c0_268, %c0_269] : memref<1x96xf32, #tpu.memory_space<vmem>>, vector<1x96xf32>
    %528 = vector.broadcast %527 : vector<1x96xf32> to vector<32x96xf32>
    %529 = arith.addf %526, %528 : vector<32x96xf32>
    %530 = vector.extract_strided_slice %529 {offsets = [0, 0], sizes = [32, 32], strides = [1, 1]} : vector<32x96xf32> to vector<32x32xf32>
    %cst_270 = arith.constant 0.594603539 : f32
    %531 = vector.broadcast %cst_270 : f32 to vector<32x32xf32>
    %532 = arith.mulf %530, %531 : vector<32x32xf32>
    %533 = vector.extract_strided_slice %529 {offsets = [0, 32], sizes = [32, 32], strides = [1, 1]} : vector<32x96xf32> to vector<32x32xf32>
    %cst_271 = arith.constant 0.594603539 : f32
    %534 = vector.broadcast %cst_271 : f32 to vector<32x32xf32>
    %535 = arith.mulf %533, %534 : vector<32x32xf32>
    %536 = vector.extract_strided_slice %529 {offsets = [0, 64], sizes = [32, 32], strides = [1, 1]} : vector<32x96xf32> to vector<32x32xf32>
    %c0_272 = arith.constant 0 : index
    %c0_273 = arith.constant 0 : index
    %537 = vector.load %arg45[%c0_272, %c0_273] : memref<32x64xf32, #tpu.memory_space<vmem>>, vector<32x64xf32>
    %cst_274 = arith.constant dense<0.000000e+00> : vector<32x64xf32>
    %538 = tpu.matmul %532, %537, %cst_274 {dimension_numbers = #tpu.dot_dimension_numbers<[1], [0], [0], [1], [0, 0, 1, 1], [], []>} : vector<32x32xf32>, vector<32x64xf32>, vector<32x64xf32> -> vector<32x64xf32>
    %cst_275 = arith.constant dense<0.000000e+00> : vector<32x64xf32>
    %539 = tpu.matmul %535, %537, %cst_275 {dimension_numbers = #tpu.dot_dimension_numbers<[1], [0], [0], [1], [0, 0, 1, 1], [], []>} : vector<32x32xf32>, vector<32x64xf32>, vector<32x64xf32> -> vector<32x64xf32>
    %540 = arith.mulf %532, %532 : vector<32x32xf32>
    %cst_276 = arith.constant dense<0.000000e+00> : vector<32x64xf32>
    %541 = tpu.matmul %540, %4, %cst_276 {dimension_numbers = #tpu.dot_dimension_numbers<[1], [0], [0], [1], [0, 0, 1, 1], [], []>} : vector<32x32xf32>, vector<32x64xf32>, vector<32x64xf32> -> vector<32x64xf32>
    %542 = arith.mulf %535, %535 : vector<32x32xf32>
    %cst_277 = arith.constant dense<0.000000e+00> : vector<32x64xf32>
    %543 = tpu.matmul %542, %4, %cst_277 {dimension_numbers = #tpu.dot_dimension_numbers<[1], [0], [0], [1], [0, 0, 1, 1], [], []>} : vector<32x32xf32>, vector<32x64xf32>, vector<32x64xf32> -> vector<32x64xf32>
    %c0_278 = arith.constant 0 : index
    %c0_279 = arith.constant 0 : index
    %544 = vector.load %arg46[%c0_278, %c0_279] : memref<32x32xf32, #tpu.memory_space<vmem>>, vector<32x32xf32>
    %c0_280 = arith.constant 0 : index
    %c0_281 = arith.constant 0 : index
    %545 = vector.load %arg47[%c0_280, %c0_281] : memref<1x32xf32, #tpu.memory_space<vmem>>, vector<1x32xf32>
    %546 = vector.extract_strided_slice %538 {offsets = [0, 0], sizes = [32, 16], strides = [1, 1]} : vector<32x64xf32> to vector<32x16xf32>
    %547 = vector.extract_strided_slice %539 {offsets = [0, 0], sizes = [32, 16], strides = [1, 1]} : vector<32x64xf32> to vector<32x16xf32>
    %cst_282 = arith.constant dense<0xFF800000> : vector<32xf32>
    %548 = vector.multi_reduction <maximumf>, %546, %cst_282 [1] : vector<32x16xf32> to vector<32xf32>
    %549 = vector.shape_cast %548 : vector<32xf32> to vector<32x1xf32>
    %cst_283 = arith.constant dense<0xFF800000> : vector<32xf32>
    %550 = vector.multi_reduction <maximumf>, %547, %cst_283 [1] : vector<32x16xf32> to vector<32xf32>
    %551 = vector.shape_cast %550 : vector<32xf32> to vector<32x1xf32>
    %cst_284 = arith.constant dense<0xFF800000> : vector<1xf32>
    %552 = vector.multi_reduction <maximumf>, %551, %cst_284 [0] : vector<32x1xf32> to vector<1xf32>
    %553 = vector.shape_cast %552 : vector<1xf32> to vector<1x1xf32>
    %554 = vector.extract_strided_slice %541 {offsets = [0, 0], sizes = [32, 16], strides = [1, 1]} : vector<32x64xf32> to vector<32x16xf32>
    %555 = arith.subf %546, %554 : vector<32x16xf32>
    %556 = vector.broadcast %549 : vector<32x1xf32> to vector<32x16xf32>
    %557 = arith.subf %555, %556 : vector<32x16xf32>
    %558 = math.exp %557 : vector<32x16xf32>
    %cst_285 = arith.constant 9.99999974E-5 : f32
    %559 = vector.broadcast %cst_285 : f32 to vector<32x16xf32>
    %560 = arith.addf %558, %559 : vector<32x16xf32>
    %cst_286 = arith.constant 2.500000e-01 : f32
    %561 = vector.broadcast %cst_286 : f32 to vector<32x16xf32>
    %562 = arith.mulf %561, %560 : vector<32x16xf32>
    %563 = vector.extract_strided_slice %543 {offsets = [0, 0], sizes = [32, 16], strides = [1, 1]} : vector<32x64xf32> to vector<32x16xf32>
    %564 = arith.subf %547, %563 : vector<32x16xf32>
    %565 = vector.broadcast %553 : vector<1x1xf32> to vector<32x16xf32>
    %566 = arith.subf %564, %565 : vector<32x16xf32>
    %567 = math.exp %566 : vector<32x16xf32>
    %cst_287 = arith.constant 9.99999974E-5 : f32
    %568 = vector.broadcast %cst_287 : f32 to vector<32x16xf32>
    %569 = arith.addf %567, %568 : vector<32x16xf32>
    %cst_288 = arith.constant 2.500000e-01 : f32
    %570 = vector.broadcast %cst_288 : f32 to vector<32x16xf32>
    %571 = arith.mulf %570, %569 : vector<32x16xf32>
    %cst_289 = arith.constant dense<0.000000e+00> : vector<32x32xf32>
    %572 = tpu.matmul %562, %571, %cst_289 {dimension_numbers = #tpu.dot_dimension_numbers<[1], [1], [0], [0], [0, 0, 1, 0], [], []>} : vector<32x16xf32>, vector<32x16xf32>, vector<32x32xf32> -> vector<32x32xf32>
    %573 = arith.mulf %572, %524 : vector<32x32xf32>
    %574 = vector.extract_strided_slice %536 {offsets = [0, 0], sizes = [32, 8], strides = [1, 1]} : vector<32x32xf32> to vector<32x8xf32>
    %cst_290 = arith.constant dense<0.000000e+00> : vector<32x8xf32>
    %575 = tpu.matmul %573, %574, %cst_290 {dimension_numbers = #tpu.dot_dimension_numbers<[1], [0], [0], [1], [0, 0, 1, 1], [], []>} : vector<32x32xf32>, vector<32x8xf32>, vector<32x8xf32> -> vector<32x8xf32>
    %cst_291 = arith.constant dense<0.000000e+00> : vector<32xf32>
    %576 = vector.multi_reduction <add>, %573, %cst_291 [1] : vector<32x32xf32> to vector<32xf32>
    %577 = vector.shape_cast %576 : vector<32xf32> to vector<32x1xf32>
    %cst_292 = arith.constant 9.99999997E-7 : f32
    %578 = vector.broadcast %cst_292 : f32 to vector<32x1xf32>
    %579 = arith.addf %577, %578 : vector<32x1xf32>
    %580 = vector.broadcast %579 : vector<32x1xf32> to vector<32x8xf32>
    %581 = arith.divf %575, %580 : vector<32x8xf32>
    %582 = vector.extract_strided_slice %544 {offsets = [0, 0], sizes = [8, 32], strides = [1, 1]} : vector<32x32xf32> to vector<8x32xf32>
    %cst_293 = arith.constant dense<0.000000e+00> : vector<32x32xf32>
    %583 = tpu.matmul %581, %582, %cst_293 {dimension_numbers = #tpu.dot_dimension_numbers<[1], [0], [0], [1], [0, 0, 1, 1], [], []>} : vector<32x8xf32>, vector<8x32xf32>, vector<32x32xf32> -> vector<32x32xf32>
    %584 = vector.broadcast %545 : vector<1x32xf32> to vector<32x32xf32>
    %585 = arith.addf %584, %583 : vector<32x32xf32>
    %586 = vector.extract_strided_slice %538 {offsets = [0, 16], sizes = [32, 16], strides = [1, 1]} : vector<32x64xf32> to vector<32x16xf32>
    %587 = vector.extract_strided_slice %539 {offsets = [0, 16], sizes = [32, 16], strides = [1, 1]} : vector<32x64xf32> to vector<32x16xf32>
    %cst_294 = arith.constant dense<0xFF800000> : vector<32xf32>
    %588 = vector.multi_reduction <maximumf>, %586, %cst_294 [1] : vector<32x16xf32> to vector<32xf32>
    %589 = vector.shape_cast %588 : vector<32xf32> to vector<32x1xf32>
    %cst_295 = arith.constant dense<0xFF800000> : vector<32xf32>
    %590 = vector.multi_reduction <maximumf>, %587, %cst_295 [1] : vector<32x16xf32> to vector<32xf32>
    %591 = vector.shape_cast %590 : vector<32xf32> to vector<32x1xf32>
    %cst_296 = arith.constant dense<0xFF800000> : vector<1xf32>
    %592 = vector.multi_reduction <maximumf>, %591, %cst_296 [0] : vector<32x1xf32> to vector<1xf32>
    %593 = vector.shape_cast %592 : vector<1xf32> to vector<1x1xf32>
    %594 = vector.extract_strided_slice %541 {offsets = [0, 16], sizes = [32, 16], strides = [1, 1]} : vector<32x64xf32> to vector<32x16xf32>
    %595 = arith.subf %586, %594 : vector<32x16xf32>
    %596 = vector.broadcast %589 : vector<32x1xf32> to vector<32x16xf32>
    %597 = arith.subf %595, %596 : vector<32x16xf32>
    %598 = math.exp %597 : vector<32x16xf32>
    %cst_297 = arith.constant 9.99999974E-5 : f32
    %599 = vector.broadcast %cst_297 : f32 to vector<32x16xf32>
    %600 = arith.addf %598, %599 : vector<32x16xf32>
    %cst_298 = arith.constant 2.500000e-01 : f32
    %601 = vector.broadcast %cst_298 : f32 to vector<32x16xf32>
    %602 = arith.mulf %601, %600 : vector<32x16xf32>
    %603 = vector.extract_strided_slice %543 {offsets = [0, 16], sizes = [32, 16], strides = [1, 1]} : vector<32x64xf32> to vector<32x16xf32>
    %604 = arith.subf %587, %603 : vector<32x16xf32>
    %605 = vector.broadcast %593 : vector<1x1xf32> to vector<32x16xf32>
    %606 = arith.subf %604, %605 : vector<32x16xf32>
    %607 = math.exp %606 : vector<32x16xf32>
    %cst_299 = arith.constant 9.99999974E-5 : f32
    %608 = vector.broadcast %cst_299 : f32 to vector<32x16xf32>
    %609 = arith.addf %607, %608 : vector<32x16xf32>
    %cst_300 = arith.constant 2.500000e-01 : f32
    %610 = vector.broadcast %cst_300 : f32 to vector<32x16xf32>
    %611 = arith.mulf %610, %609 : vector<32x16xf32>
    %cst_301 = arith.constant dense<0.000000e+00> : vector<32x32xf32>
    %612 = tpu.matmul %602, %611, %cst_301 {dimension_numbers = #tpu.dot_dimension_numbers<[1], [1], [0], [0], [0, 0, 1, 0], [], []>} : vector<32x16xf32>, vector<32x16xf32>, vector<32x32xf32> -> vector<32x32xf32>
    %613 = arith.mulf %612, %524 : vector<32x32xf32>
    %614 = vector.extract_strided_slice %536 {offsets = [0, 8], sizes = [32, 8], strides = [1, 1]} : vector<32x32xf32> to vector<32x8xf32>
    %cst_302 = arith.constant dense<0.000000e+00> : vector<32x8xf32>
    %615 = tpu.matmul %613, %614, %cst_302 {dimension_numbers = #tpu.dot_dimension_numbers<[1], [0], [0], [1], [0, 0, 1, 1], [], []>} : vector<32x32xf32>, vector<32x8xf32>, vector<32x8xf32> -> vector<32x8xf32>
    %cst_303 = arith.constant dense<0.000000e+00> : vector<32xf32>
    %616 = vector.multi_reduction <add>, %613, %cst_303 [1] : vector<32x32xf32> to vector<32xf32>
    %617 = vector.shape_cast %616 : vector<32xf32> to vector<32x1xf32>
    %cst_304 = arith.constant 9.99999997E-7 : f32
    %618 = vector.broadcast %cst_304 : f32 to vector<32x1xf32>
    %619 = arith.addf %617, %618 : vector<32x1xf32>
    %620 = vector.broadcast %619 : vector<32x1xf32> to vector<32x8xf32>
    %621 = arith.divf %615, %620 : vector<32x8xf32>
    %622 = vector.extract_strided_slice %544 {offsets = [8, 0], sizes = [8, 32], strides = [1, 1]} : vector<32x32xf32> to vector<8x32xf32>
    %cst_305 = arith.constant dense<0.000000e+00> : vector<32x32xf32>
    %623 = tpu.matmul %621, %622, %cst_305 {dimension_numbers = #tpu.dot_dimension_numbers<[1], [0], [0], [1], [0, 0, 1, 1], [], []>} : vector<32x8xf32>, vector<8x32xf32>, vector<32x32xf32> -> vector<32x32xf32>
    %624 = arith.addf %585, %623 : vector<32x32xf32>
    %625 = vector.extract_strided_slice %538 {offsets = [0, 32], sizes = [32, 16], strides = [1, 1]} : vector<32x64xf32> to vector<32x16xf32>
    %626 = vector.extract_strided_slice %539 {offsets = [0, 32], sizes = [32, 16], strides = [1, 1]} : vector<32x64xf32> to vector<32x16xf32>
    %cst_306 = arith.constant dense<0xFF800000> : vector<32xf32>
    %627 = vector.multi_reduction <maximumf>, %625, %cst_306 [1] : vector<32x16xf32> to vector<32xf32>
    %628 = vector.shape_cast %627 : vector<32xf32> to vector<32x1xf32>
    %cst_307 = arith.constant dense<0xFF800000> : vector<32xf32>
    %629 = vector.multi_reduction <maximumf>, %626, %cst_307 [1] : vector<32x16xf32> to vector<32xf32>
    %630 = vector.shape_cast %629 : vector<32xf32> to vector<32x1xf32>
    %cst_308 = arith.constant dense<0xFF800000> : vector<1xf32>
    %631 = vector.multi_reduction <maximumf>, %630, %cst_308 [0] : vector<32x1xf32> to vector<1xf32>
    %632 = vector.shape_cast %631 : vector<1xf32> to vector<1x1xf32>
    %633 = vector.extract_strided_slice %541 {offsets = [0, 32], sizes = [32, 16], strides = [1, 1]} : vector<32x64xf32> to vector<32x16xf32>
    %634 = arith.subf %625, %633 : vector<32x16xf32>
    %635 = vector.broadcast %628 : vector<32x1xf32> to vector<32x16xf32>
    %636 = arith.subf %634, %635 : vector<32x16xf32>
    %637 = math.exp %636 : vector<32x16xf32>
    %cst_309 = arith.constant 9.99999974E-5 : f32
    %638 = vector.broadcast %cst_309 : f32 to vector<32x16xf32>
    %639 = arith.addf %637, %638 : vector<32x16xf32>
    %cst_310 = arith.constant 2.500000e-01 : f32
    %640 = vector.broadcast %cst_310 : f32 to vector<32x16xf32>
    %641 = arith.mulf %640, %639 : vector<32x16xf32>
    %642 = vector.extract_strided_slice %543 {offsets = [0, 32], sizes = [32, 16], strides = [1, 1]} : vector<32x64xf32> to vector<32x16xf32>
    %643 = arith.subf %626, %642 : vector<32x16xf32>
    %644 = vector.broadcast %632 : vector<1x1xf32> to vector<32x16xf32>
    %645 = arith.subf %643, %644 : vector<32x16xf32>
    %646 = math.exp %645 : vector<32x16xf32>
    %cst_311 = arith.constant 9.99999974E-5 : f32
    %647 = vector.broadcast %cst_311 : f32 to vector<32x16xf32>
    %648 = arith.addf %646, %647 : vector<32x16xf32>
    %cst_312 = arith.constant 2.500000e-01 : f32
    %649 = vector.broadcast %cst_312 : f32 to vector<32x16xf32>
    %650 = arith.mulf %649, %648 : vector<32x16xf32>
    %cst_313 = arith.constant dense<0.000000e+00> : vector<32x32xf32>
    %651 = tpu.matmul %641, %650, %cst_313 {dimension_numbers = #tpu.dot_dimension_numbers<[1], [1], [0], [0], [0, 0, 1, 0], [], []>} : vector<32x16xf32>, vector<32x16xf32>, vector<32x32xf32> -> vector<32x32xf32>
    %652 = arith.mulf %651, %524 : vector<32x32xf32>
    %653 = vector.extract_strided_slice %536 {offsets = [0, 16], sizes = [32, 8], strides = [1, 1]} : vector<32x32xf32> to vector<32x8xf32>
    %cst_314 = arith.constant dense<0.000000e+00> : vector<32x8xf32>
    %654 = tpu.matmul %652, %653, %cst_314 {dimension_numbers = #tpu.dot_dimension_numbers<[1], [0], [0], [1], [0, 0, 1, 1], [], []>} : vector<32x32xf32>, vector<32x8xf32>, vector<32x8xf32> -> vector<32x8xf32>
    %cst_315 = arith.constant dense<0.000000e+00> : vector<32xf32>
    %655 = vector.multi_reduction <add>, %652, %cst_315 [1] : vector<32x32xf32> to vector<32xf32>
    %656 = vector.shape_cast %655 : vector<32xf32> to vector<32x1xf32>
    %cst_316 = arith.constant 9.99999997E-7 : f32
    %657 = vector.broadcast %cst_316 : f32 to vector<32x1xf32>
    %658 = arith.addf %656, %657 : vector<32x1xf32>
    %659 = vector.broadcast %658 : vector<32x1xf32> to vector<32x8xf32>
    %660 = arith.divf %654, %659 : vector<32x8xf32>
    %661 = vector.extract_strided_slice %544 {offsets = [16, 0], sizes = [8, 32], strides = [1, 1]} : vector<32x32xf32> to vector<8x32xf32>
    %cst_317 = arith.constant dense<0.000000e+00> : vector<32x32xf32>
    %662 = tpu.matmul %660, %661, %cst_317 {dimension_numbers = #tpu.dot_dimension_numbers<[1], [0], [0], [1], [0, 0, 1, 1], [], []>} : vector<32x8xf32>, vector<8x32xf32>, vector<32x32xf32> -> vector<32x32xf32>
    %663 = arith.addf %624, %662 : vector<32x32xf32>
    %664 = vector.extract_strided_slice %538 {offsets = [0, 48], sizes = [32, 16], strides = [1, 1]} : vector<32x64xf32> to vector<32x16xf32>
    %665 = vector.extract_strided_slice %539 {offsets = [0, 48], sizes = [32, 16], strides = [1, 1]} : vector<32x64xf32> to vector<32x16xf32>
    %cst_318 = arith.constant dense<0xFF800000> : vector<32xf32>
    %666 = vector.multi_reduction <maximumf>, %664, %cst_318 [1] : vector<32x16xf32> to vector<32xf32>
    %667 = vector.shape_cast %666 : vector<32xf32> to vector<32x1xf32>
    %cst_319 = arith.constant dense<0xFF800000> : vector<32xf32>
    %668 = vector.multi_reduction <maximumf>, %665, %cst_319 [1] : vector<32x16xf32> to vector<32xf32>
    %669 = vector.shape_cast %668 : vector<32xf32> to vector<32x1xf32>
    %cst_320 = arith.constant dense<0xFF800000> : vector<1xf32>
    %670 = vector.multi_reduction <maximumf>, %669, %cst_320 [0] : vector<32x1xf32> to vector<1xf32>
    %671 = vector.shape_cast %670 : vector<1xf32> to vector<1x1xf32>
    %672 = vector.extract_strided_slice %541 {offsets = [0, 48], sizes = [32, 16], strides = [1, 1]} : vector<32x64xf32> to vector<32x16xf32>
    %673 = arith.subf %664, %672 : vector<32x16xf32>
    %674 = vector.broadcast %667 : vector<32x1xf32> to vector<32x16xf32>
    %675 = arith.subf %673, %674 : vector<32x16xf32>
    %676 = math.exp %675 : vector<32x16xf32>
    %cst_321 = arith.constant 9.99999974E-5 : f32
    %677 = vector.broadcast %cst_321 : f32 to vector<32x16xf32>
    %678 = arith.addf %676, %677 : vector<32x16xf32>
    %cst_322 = arith.constant 2.500000e-01 : f32
    %679 = vector.broadcast %cst_322 : f32 to vector<32x16xf32>
    %680 = arith.mulf %679, %678 : vector<32x16xf32>
    %681 = vector.extract_strided_slice %543 {offsets = [0, 48], sizes = [32, 16], strides = [1, 1]} : vector<32x64xf32> to vector<32x16xf32>
    %682 = arith.subf %665, %681 : vector<32x16xf32>
    %683 = vector.broadcast %671 : vector<1x1xf32> to vector<32x16xf32>
    %684 = arith.subf %682, %683 : vector<32x16xf32>
    %685 = math.exp %684 : vector<32x16xf32>
    %cst_323 = arith.constant 9.99999974E-5 : f32
    %686 = vector.broadcast %cst_323 : f32 to vector<32x16xf32>
    %687 = arith.addf %685, %686 : vector<32x16xf32>
    %cst_324 = arith.constant 2.500000e-01 : f32
    %688 = vector.broadcast %cst_324 : f32 to vector<32x16xf32>
    %689 = arith.mulf %688, %687 : vector<32x16xf32>
    %cst_325 = arith.constant dense<0.000000e+00> : vector<32x32xf32>
    %690 = tpu.matmul %680, %689, %cst_325 {dimension_numbers = #tpu.dot_dimension_numbers<[1], [1], [0], [0], [0, 0, 1, 0], [], []>} : vector<32x16xf32>, vector<32x16xf32>, vector<32x32xf32> -> vector<32x32xf32>
    %691 = arith.mulf %690, %524 : vector<32x32xf32>
    %692 = vector.extract_strided_slice %536 {offsets = [0, 24], sizes = [32, 8], strides = [1, 1]} : vector<32x32xf32> to vector<32x8xf32>
    %cst_326 = arith.constant dense<0.000000e+00> : vector<32x8xf32>
    %693 = tpu.matmul %691, %692, %cst_326 {dimension_numbers = #tpu.dot_dimension_numbers<[1], [0], [0], [1], [0, 0, 1, 1], [], []>} : vector<32x32xf32>, vector<32x8xf32>, vector<32x8xf32> -> vector<32x8xf32>
    %cst_327 = arith.constant dense<0.000000e+00> : vector<32xf32>
    %694 = vector.multi_reduction <add>, %691, %cst_327 [1] : vector<32x32xf32> to vector<32xf32>
    %695 = vector.shape_cast %694 : vector<32xf32> to vector<32x1xf32>
    %cst_328 = arith.constant 9.99999997E-7 : f32
    %696 = vector.broadcast %cst_328 : f32 to vector<32x1xf32>
    %697 = arith.addf %695, %696 : vector<32x1xf32>
    %698 = vector.broadcast %697 : vector<32x1xf32> to vector<32x8xf32>
    %699 = arith.divf %693, %698 : vector<32x8xf32>
    %700 = vector.extract_strided_slice %544 {offsets = [24, 0], sizes = [8, 32], strides = [1, 1]} : vector<32x32xf32> to vector<8x32xf32>
    %cst_329 = arith.constant dense<0.000000e+00> : vector<32x32xf32>
    %701 = tpu.matmul %699, %700, %cst_329 {dimension_numbers = #tpu.dot_dimension_numbers<[1], [0], [0], [1], [0, 0, 1, 1], [], []>} : vector<32x8xf32>, vector<8x32xf32>, vector<32x32xf32> -> vector<32x32xf32>
    %702 = arith.addf %663, %701 : vector<32x32xf32>
    %703 = arith.addf %523, %702 : vector<32x32xf32>
    %cst_330 = arith.constant dense<0.000000e+00> : vector<32x32xf32>
    %704 = tpu.matmul %2, %703, %cst_330 {dimension_numbers = #tpu.dot_dimension_numbers<[1], [0], [0], [1], [0, 0, 1, 1], [], []>} : vector<32x32xf32>, vector<32x32xf32>, vector<32x32xf32> -> vector<32x32xf32>
    %705 = arith.subf %703, %704 : vector<32x32xf32>
    %c0_331 = arith.constant 0 : index
    %c0_332 = arith.constant 0 : index
    %706 = vector.load %arg18[%c0_331, %c0_332] : memref<32x16xf32, #tpu.memory_space<vmem>>, vector<32x16xf32>
    %c0_333 = arith.constant 0 : index
    %c0_334 = arith.constant 0 : index
    %707 = vector.load %arg48[%c0_333, %c0_334] : memref<32x32xf32, #tpu.memory_space<vmem>>, vector<32x32xf32>
    %cst_335 = arith.constant dense<0.000000e+00> : vector<32x32xf32>
    %708 = tpu.matmul %705, %707, %cst_335 {dimension_numbers = #tpu.dot_dimension_numbers<[1], [0], [0], [1], [0, 0, 1, 1], [], []>} : vector<32x32xf32>, vector<32x32xf32>, vector<32x32xf32> -> vector<32x32xf32>
    %c0_336 = arith.constant 0 : index
    %c0_337 = arith.constant 0 : index
    %709 = vector.load %arg49[%c0_336, %c0_337] : memref<1x32xf32, #tpu.memory_space<vmem>>, vector<1x32xf32>
    %710 = vector.broadcast %709 : vector<1x32xf32> to vector<32x32xf32>
    %711 = arith.addf %708, %710 : vector<32x32xf32>
    %c0_338 = arith.constant 0 : index
    %c0_339 = arith.constant 0 : index
    %712 = vector.load %arg50[%c0_338, %c0_339] : memref<32x64xf32, #tpu.memory_space<vmem>>, vector<32x64xf32>
    %cst_340 = arith.constant dense<0.000000e+00> : vector<16x64xf32>
    %713 = tpu.matmul %496, %712, %cst_340 {dimension_numbers = #tpu.dot_dimension_numbers<[1], [0], [0], [1], [0, 0, 1, 1], [], []>} : vector<16x32xf32>, vector<32x64xf32>, vector<16x64xf32> -> vector<16x64xf32>
    %c0_341 = arith.constant 0 : index
    %c0_342 = arith.constant 0 : index
    %714 = vector.load %arg51[%c0_341, %c0_342] : memref<1x64xf32, #tpu.memory_space<vmem>>, vector<1x64xf32>
    %715 = vector.broadcast %714 : vector<1x64xf32> to vector<16x64xf32>
    %716 = arith.addf %713, %715 : vector<16x64xf32>
    %c0_343 = arith.constant 0 : index
    %c0_344 = arith.constant 0 : index
    %717 = vector.load %arg52[%c0_343, %c0_344] : memref<32x32xf32, #tpu.memory_space<vmem>>, vector<32x32xf32>
    %c0_345 = arith.constant 0 : index
    %c0_346 = arith.constant 0 : index
    %718 = vector.load %arg53[%c0_345, %c0_346] : memref<1x32xf32, #tpu.memory_space<vmem>>, vector<1x32xf32>
    %719 = vector.extract_strided_slice %711 {offsets = [0, 0], sizes = [32, 8], strides = [1, 1]} : vector<32x32xf32> to vector<32x8xf32>
    %720 = vector.extract_strided_slice %716 {offsets = [0, 0], sizes = [16, 8], strides = [1, 1]} : vector<16x64xf32> to vector<16x8xf32>
    %721 = vector.extract_strided_slice %716 {offsets = [0, 32], sizes = [16, 8], strides = [1, 1]} : vector<16x64xf32> to vector<16x8xf32>
    %cst_347 = arith.constant dense<0.000000e+00> : vector<32x16xf32>
    %722 = tpu.matmul %719, %720, %cst_347 {dimension_numbers = #tpu.dot_dimension_numbers<[1], [1], [0], [0], [0, 0, 1, 0], [], []>} : vector<32x8xf32>, vector<16x8xf32>, vector<32x16xf32> -> vector<32x16xf32>
    %cst_348 = arith.constant 0.353553385 : f32
    %723 = vector.broadcast %cst_348 : f32 to vector<32x16xf32>
    %724 = arith.mulf %722, %723 : vector<32x16xf32>
    %725 = arith.addf %724, %706 : vector<32x16xf32>
    %cst_349 = arith.constant dense<0xFF800000> : vector<32xf32>
    %726 = vector.multi_reduction <maximumf>, %725, %cst_349 [1] : vector<32x16xf32> to vector<32xf32>
    %727 = vector.shape_cast %726 : vector<32xf32> to vector<32x1xf32>
    %728 = vector.broadcast %727 : vector<32x1xf32> to vector<32x16xf32>
    %729 = arith.subf %725, %728 : vector<32x16xf32>
    %730 = math.exp %729 : vector<32x16xf32>
    %cst_350 = arith.constant dense<0.000000e+00> : vector<32xf32>
    %731 = vector.multi_reduction <add>, %730, %cst_350 [1] : vector<32x16xf32> to vector<32xf32>
    %732 = vector.shape_cast %731 : vector<32xf32> to vector<32x1xf32>
    %733 = vector.broadcast %732 : vector<32x1xf32> to vector<32x16xf32>
    %734 = arith.divf %730, %733 : vector<32x16xf32>
    %cst_351 = arith.constant dense<0.000000e+00> : vector<32x8xf32>
    %735 = tpu.matmul %734, %721, %cst_351 {dimension_numbers = #tpu.dot_dimension_numbers<[1], [0], [0], [1], [0, 0, 1, 1], [], []>} : vector<32x16xf32>, vector<16x8xf32>, vector<32x8xf32> -> vector<32x8xf32>
    %736 = vector.extract_strided_slice %717 {offsets = [0, 0], sizes = [8, 32], strides = [1, 1]} : vector<32x32xf32> to vector<8x32xf32>
    %cst_352 = arith.constant dense<0.000000e+00> : vector<32x32xf32>
    %737 = tpu.matmul %735, %736, %cst_352 {dimension_numbers = #tpu.dot_dimension_numbers<[1], [0], [0], [1], [0, 0, 1, 1], [], []>} : vector<32x8xf32>, vector<8x32xf32>, vector<32x32xf32> -> vector<32x32xf32>
    %738 = vector.broadcast %718 : vector<1x32xf32> to vector<32x32xf32>
    %739 = arith.addf %738, %737 : vector<32x32xf32>
    %740 = vector.extract_strided_slice %711 {offsets = [0, 8], sizes = [32, 8], strides = [1, 1]} : vector<32x32xf32> to vector<32x8xf32>
    %741 = vector.extract_strided_slice %716 {offsets = [0, 8], sizes = [16, 8], strides = [1, 1]} : vector<16x64xf32> to vector<16x8xf32>
    %742 = vector.extract_strided_slice %716 {offsets = [0, 40], sizes = [16, 8], strides = [1, 1]} : vector<16x64xf32> to vector<16x8xf32>
    %cst_353 = arith.constant dense<0.000000e+00> : vector<32x16xf32>
    %743 = tpu.matmul %740, %741, %cst_353 {dimension_numbers = #tpu.dot_dimension_numbers<[1], [1], [0], [0], [0, 0, 1, 0], [], []>} : vector<32x8xf32>, vector<16x8xf32>, vector<32x16xf32> -> vector<32x16xf32>
    %cst_354 = arith.constant 0.353553385 : f32
    %744 = vector.broadcast %cst_354 : f32 to vector<32x16xf32>
    %745 = arith.mulf %743, %744 : vector<32x16xf32>
    %746 = arith.addf %745, %706 : vector<32x16xf32>
    %cst_355 = arith.constant dense<0xFF800000> : vector<32xf32>
    %747 = vector.multi_reduction <maximumf>, %746, %cst_355 [1] : vector<32x16xf32> to vector<32xf32>
    %748 = vector.shape_cast %747 : vector<32xf32> to vector<32x1xf32>
    %749 = vector.broadcast %748 : vector<32x1xf32> to vector<32x16xf32>
    %750 = arith.subf %746, %749 : vector<32x16xf32>
    %751 = math.exp %750 : vector<32x16xf32>
    %cst_356 = arith.constant dense<0.000000e+00> : vector<32xf32>
    %752 = vector.multi_reduction <add>, %751, %cst_356 [1] : vector<32x16xf32> to vector<32xf32>
    %753 = vector.shape_cast %752 : vector<32xf32> to vector<32x1xf32>
    %754 = vector.broadcast %753 : vector<32x1xf32> to vector<32x16xf32>
    %755 = arith.divf %751, %754 : vector<32x16xf32>
    %cst_357 = arith.constant dense<0.000000e+00> : vector<32x8xf32>
    %756 = tpu.matmul %755, %742, %cst_357 {dimension_numbers = #tpu.dot_dimension_numbers<[1], [0], [0], [1], [0, 0, 1, 1], [], []>} : vector<32x16xf32>, vector<16x8xf32>, vector<32x8xf32> -> vector<32x8xf32>
    %757 = vector.extract_strided_slice %717 {offsets = [8, 0], sizes = [8, 32], strides = [1, 1]} : vector<32x32xf32> to vector<8x32xf32>
    %cst_358 = arith.constant dense<0.000000e+00> : vector<32x32xf32>
    %758 = tpu.matmul %756, %757, %cst_358 {dimension_numbers = #tpu.dot_dimension_numbers<[1], [0], [0], [1], [0, 0, 1, 1], [], []>} : vector<32x8xf32>, vector<8x32xf32>, vector<32x32xf32> -> vector<32x32xf32>
    %759 = arith.addf %739, %758 : vector<32x32xf32>
    %760 = vector.extract_strided_slice %711 {offsets = [0, 16], sizes = [32, 8], strides = [1, 1]} : vector<32x32xf32> to vector<32x8xf32>
    %761 = vector.extract_strided_slice %716 {offsets = [0, 16], sizes = [16, 8], strides = [1, 1]} : vector<16x64xf32> to vector<16x8xf32>
    %762 = vector.extract_strided_slice %716 {offsets = [0, 48], sizes = [16, 8], strides = [1, 1]} : vector<16x64xf32> to vector<16x8xf32>
    %cst_359 = arith.constant dense<0.000000e+00> : vector<32x16xf32>
    %763 = tpu.matmul %760, %761, %cst_359 {dimension_numbers = #tpu.dot_dimension_numbers<[1], [1], [0], [0], [0, 0, 1, 0], [], []>} : vector<32x8xf32>, vector<16x8xf32>, vector<32x16xf32> -> vector<32x16xf32>
    %cst_360 = arith.constant 0.353553385 : f32
    %764 = vector.broadcast %cst_360 : f32 to vector<32x16xf32>
    %765 = arith.mulf %763, %764 : vector<32x16xf32>
    %766 = arith.addf %765, %706 : vector<32x16xf32>
    %cst_361 = arith.constant dense<0xFF800000> : vector<32xf32>
    %767 = vector.multi_reduction <maximumf>, %766, %cst_361 [1] : vector<32x16xf32> to vector<32xf32>
    %768 = vector.shape_cast %767 : vector<32xf32> to vector<32x1xf32>
    %769 = vector.broadcast %768 : vector<32x1xf32> to vector<32x16xf32>
    %770 = arith.subf %766, %769 : vector<32x16xf32>
    %771 = math.exp %770 : vector<32x16xf32>
    %cst_362 = arith.constant dense<0.000000e+00> : vector<32xf32>
    %772 = vector.multi_reduction <add>, %771, %cst_362 [1] : vector<32x16xf32> to vector<32xf32>
    %773 = vector.shape_cast %772 : vector<32xf32> to vector<32x1xf32>
    %774 = vector.broadcast %773 : vector<32x1xf32> to vector<32x16xf32>
    %775 = arith.divf %771, %774 : vector<32x16xf32>
    %cst_363 = arith.constant dense<0.000000e+00> : vector<32x8xf32>
    %776 = tpu.matmul %775, %762, %cst_363 {dimension_numbers = #tpu.dot_dimension_numbers<[1], [0], [0], [1], [0, 0, 1, 1], [], []>} : vector<32x16xf32>, vector<16x8xf32>, vector<32x8xf32> -> vector<32x8xf32>
    %777 = vector.extract_strided_slice %717 {offsets = [16, 0], sizes = [8, 32], strides = [1, 1]} : vector<32x32xf32> to vector<8x32xf32>
    %cst_364 = arith.constant dense<0.000000e+00> : vector<32x32xf32>
    %778 = tpu.matmul %776, %777, %cst_364 {dimension_numbers = #tpu.dot_dimension_numbers<[1], [0], [0], [1], [0, 0, 1, 1], [], []>} : vector<32x8xf32>, vector<8x32xf32>, vector<32x32xf32> -> vector<32x32xf32>
    %779 = arith.addf %759, %778 : vector<32x32xf32>
    %780 = vector.extract_strided_slice %711 {offsets = [0, 24], sizes = [32, 8], strides = [1, 1]} : vector<32x32xf32> to vector<32x8xf32>
    %781 = vector.extract_strided_slice %716 {offsets = [0, 24], sizes = [16, 8], strides = [1, 1]} : vector<16x64xf32> to vector<16x8xf32>
    %782 = vector.extract_strided_slice %716 {offsets = [0, 56], sizes = [16, 8], strides = [1, 1]} : vector<16x64xf32> to vector<16x8xf32>
    %cst_365 = arith.constant dense<0.000000e+00> : vector<32x16xf32>
    %783 = tpu.matmul %780, %781, %cst_365 {dimension_numbers = #tpu.dot_dimension_numbers<[1], [1], [0], [0], [0, 0, 1, 0], [], []>} : vector<32x8xf32>, vector<16x8xf32>, vector<32x16xf32> -> vector<32x16xf32>
    %cst_366 = arith.constant 0.353553385 : f32
    %784 = vector.broadcast %cst_366 : f32 to vector<32x16xf32>
    %785 = arith.mulf %783, %784 : vector<32x16xf32>
    %786 = arith.addf %785, %706 : vector<32x16xf32>
    %cst_367 = arith.constant dense<0xFF800000> : vector<32xf32>
    %787 = vector.multi_reduction <maximumf>, %786, %cst_367 [1] : vector<32x16xf32> to vector<32xf32>
    %788 = vector.shape_cast %787 : vector<32xf32> to vector<32x1xf32>
    %789 = vector.broadcast %788 : vector<32x1xf32> to vector<32x16xf32>
    %790 = arith.subf %786, %789 : vector<32x16xf32>
    %791 = math.exp %790 : vector<32x16xf32>
    %cst_368 = arith.constant dense<0.000000e+00> : vector<32xf32>
    %792 = vector.multi_reduction <add>, %791, %cst_368 [1] : vector<32x16xf32> to vector<32xf32>
    %793 = vector.shape_cast %792 : vector<32xf32> to vector<32x1xf32>
    %794 = vector.broadcast %793 : vector<32x1xf32> to vector<32x16xf32>
    %795 = arith.divf %791, %794 : vector<32x16xf32>
    %cst_369 = arith.constant dense<0.000000e+00> : vector<32x8xf32>
    %796 = tpu.matmul %795, %782, %cst_369 {dimension_numbers = #tpu.dot_dimension_numbers<[1], [0], [0], [1], [0, 0, 1, 1], [], []>} : vector<32x16xf32>, vector<16x8xf32>, vector<32x8xf32> -> vector<32x8xf32>
    %797 = vector.extract_strided_slice %717 {offsets = [24, 0], sizes = [8, 32], strides = [1, 1]} : vector<32x32xf32> to vector<8x32xf32>
    %cst_370 = arith.constant dense<0.000000e+00> : vector<32x32xf32>
    %798 = tpu.matmul %796, %797, %cst_370 {dimension_numbers = #tpu.dot_dimension_numbers<[1], [0], [0], [1], [0, 0, 1, 1], [], []>} : vector<32x8xf32>, vector<8x32xf32>, vector<32x32xf32> -> vector<32x32xf32>
    %799 = arith.addf %779, %798 : vector<32x32xf32>
    %800 = arith.addf %705, %799 : vector<32x32xf32>
    %cst_371 = arith.constant dense<0.000000e+00> : vector<32x32xf32>
    %801 = tpu.matmul %2, %800, %cst_371 {dimension_numbers = #tpu.dot_dimension_numbers<[1], [0], [0], [1], [0, 0, 1, 1], [], []>} : vector<32x32xf32>, vector<32x32xf32>, vector<32x32xf32> -> vector<32x32xf32>
    %802 = arith.subf %800, %801 : vector<32x32xf32>
    %c0_372 = arith.constant 0 : index
    %c0_373 = arith.constant 0 : index
    %803 = vector.load %arg54[%c0_372, %c0_373] : memref<32x64xf32, #tpu.memory_space<vmem>>, vector<32x64xf32>
    %cst_374 = arith.constant dense<0.000000e+00> : vector<32x64xf32>
    %804 = tpu.matmul %802, %803, %cst_374 {dimension_numbers = #tpu.dot_dimension_numbers<[1], [0], [0], [1], [0, 0, 1, 1], [], []>} : vector<32x32xf32>, vector<32x64xf32>, vector<32x64xf32> -> vector<32x64xf32>
    %805 = arith.mulf %804, %804 : vector<32x64xf32>
    %806 = arith.mulf %804, %805 : vector<32x64xf32>
    %cst_375 = arith.constant 4.471500e-02 : f32
    %807 = vector.broadcast %cst_375 : f32 to vector<32x64xf32>
    %808 = arith.mulf %807, %806 : vector<32x64xf32>
    %809 = arith.addf %804, %808 : vector<32x64xf32>
    %cst_376 = arith.constant 0.797884583 : f32
    %810 = vector.broadcast %cst_376 : f32 to vector<32x64xf32>
    %811 = arith.mulf %810, %809 : vector<32x64xf32>
    %812 = math.tanh %811 : vector<32x64xf32>
    %cst_377 = arith.constant 1.000000e+00 : f32
    %813 = vector.broadcast %cst_377 : f32 to vector<32x64xf32>
    %814 = arith.addf %813, %812 : vector<32x64xf32>
    %cst_378 = arith.constant 5.000000e-01 : f32
    %815 = vector.broadcast %cst_378 : f32 to vector<32x64xf32>
    %816 = arith.mulf %815, %814 : vector<32x64xf32>
    %817 = arith.mulf %804, %816 : vector<32x64xf32>
    %c0_379 = arith.constant 0 : index
    %c0_380 = arith.constant 0 : index
    %818 = vector.load %arg55[%c0_379, %c0_380] : memref<64x32xf32, #tpu.memory_space<vmem>>, vector<64x32xf32>
    %cst_381 = arith.constant dense<0.000000e+00> : vector<32x32xf32>
    %819 = tpu.matmul %817, %818, %cst_381 {dimension_numbers = #tpu.dot_dimension_numbers<[1], [0], [0], [1], [0, 0, 1, 1], [], []>} : vector<32x64xf32>, vector<64x32xf32>, vector<32x32xf32> -> vector<32x32xf32>
    %820 = arith.addf %802, %819 : vector<32x32xf32>
    %cst_382 = arith.constant dense<0.000000e+00> : vector<32x32xf32>
    %821 = tpu.matmul %2, %820, %cst_382 {dimension_numbers = #tpu.dot_dimension_numbers<[1], [0], [0], [1], [0, 0, 1, 1], [], []>} : vector<32x32xf32>, vector<32x32xf32>, vector<32x32xf32> -> vector<32x32xf32>
    %822 = arith.subf %820, %821 : vector<32x32xf32>
    %823 = arith.addf %704, %801 : vector<32x32xf32>
    %824 = arith.addf %823, %821 : vector<32x32xf32>
    %cst_383 = arith.constant dense<0.000000e+00> : vector<32x32xf32>
    %825 = tpu.matmul %0, %824, %cst_383 {dimension_numbers = #tpu.dot_dimension_numbers<[1], [0], [0], [1], [0, 0, 1, 1], [], []>} : vector<32x32xf32>, vector<32x32xf32>, vector<32x32xf32> -> vector<32x32xf32>
    %c0_384 = arith.constant 0 : index
    %c0_385 = arith.constant 0 : index
    %c0_386 = arith.constant 0 : index
    %826 = vector.load %arg56[%c0_384, %c0_385, %c0_386] : memref<3x32x4xf32, #tpu.memory_space<vmem>>, vector<1x32x4xf32>
    %827 = vector.shape_cast %826 : vector<1x32x4xf32> to vector<32x4xf32>
    %cst_387 = arith.constant dense<0.000000e+00> : vector<32x4xf32>
    %828 = tpu.matmul %825, %827, %cst_387 {dimension_numbers = #tpu.dot_dimension_numbers<[1], [0], [0], [1], [0, 0, 1, 1], [], []>} : vector<32x32xf32>, vector<32x4xf32>, vector<32x4xf32> -> vector<32x4xf32>
    %c1_388 = arith.constant 1 : index
    %c0_389 = arith.constant 0 : index
    %c0_390 = arith.constant 0 : index
    %829 = vector.load %arg56[%c1_388, %c0_389, %c0_390] : memref<3x32x4xf32, #tpu.memory_space<vmem>>, vector<1x32x4xf32>
    %830 = vector.shape_cast %829 : vector<1x32x4xf32> to vector<32x4xf32>
    %cst_391 = arith.constant dense<0.000000e+00> : vector<32x4xf32>
    %831 = tpu.matmul %824, %830, %cst_391 {dimension_numbers = #tpu.dot_dimension_numbers<[1], [0], [0], [1], [0, 0, 1, 1], [], []>} : vector<32x32xf32>, vector<32x4xf32>, vector<32x4xf32> -> vector<32x4xf32>
    %832 = arith.addf %828, %831 : vector<32x4xf32>
    %cst_392 = arith.constant dense<0.000000e+00> : vector<32x32xf32>
    %833 = tpu.matmul %1, %824, %cst_392 {dimension_numbers = #tpu.dot_dimension_numbers<[1], [0], [0], [1], [0, 0, 1, 1], [], []>} : vector<32x32xf32>, vector<32x32xf32>, vector<32x32xf32> -> vector<32x32xf32>
    %c2_393 = arith.constant 2 : index
    %c0_394 = arith.constant 0 : index
    %c0_395 = arith.constant 0 : index
    %834 = vector.load %arg56[%c2_393, %c0_394, %c0_395] : memref<3x32x4xf32, #tpu.memory_space<vmem>>, vector<1x32x4xf32>
    %835 = vector.shape_cast %834 : vector<1x32x4xf32> to vector<32x4xf32>
    %cst_396 = arith.constant dense<0.000000e+00> : vector<32x4xf32>
    %836 = tpu.matmul %833, %835, %cst_396 {dimension_numbers = #tpu.dot_dimension_numbers<[1], [0], [0], [1], [0, 0, 1, 1], [], []>} : vector<32x32xf32>, vector<32x4xf32>, vector<32x4xf32> -> vector<32x4xf32>
    %837 = arith.addf %832, %836 : vector<32x4xf32>
    %838 = arith.addf %505, %837 : vector<32x4xf32>
    %c0_397 = arith.constant 0 : index
    %c0_398 = arith.constant 0 : index
    %839 = vector.load %arg57[%c0_397, %c0_398] : memref<1x32xf32, #tpu.memory_space<vmem>>, vector<1x32xf32>
    %c0_399 = arith.constant 0 : index
    %c0_400 = arith.constant 0 : index
    %840 = vector.load %arg58[%c0_399, %c0_400] : memref<1x32xf32, #tpu.memory_space<vmem>>, vector<1x32xf32>
    %c0_401 = arith.constant 0 : index
    %c0_402 = arith.constant 0 : index
    %841 = vector.load %arg7[%c0_401, %c0_402] : memref<32x32xf32, #tpu.memory_space<vmem>>, vector<32x32xf32>
    %cst_403 = arith.constant dense<0.000000e+00> : vector<32xf32>
    %842 = vector.multi_reduction <add>, %822, %cst_403 [1] : vector<32x32xf32> to vector<32xf32>
    %843 = vector.shape_cast %842 : vector<32xf32> to vector<32x1xf32>
    %cst_404 = arith.constant 3.200000e+01 : f32
    %844 = vector.broadcast %cst_404 : f32 to vector<32x1xf32>
    %845 = arith.divf %843, %844 : vector<32x1xf32>
    %846 = vector.broadcast %845 : vector<32x1xf32> to vector<32x32xf32>
    %847 = arith.subf %822, %846 : vector<32x32xf32>
    %848 = arith.mulf %847, %847 : vector<32x32xf32>
    %cst_405 = arith.constant dense<0.000000e+00> : vector<32xf32>
    %849 = vector.multi_reduction <add>, %848, %cst_405 [1] : vector<32x32xf32> to vector<32xf32>
    %850 = vector.shape_cast %849 : vector<32xf32> to vector<32x1xf32>
    %cst_406 = arith.constant 3.200000e+01 : f32
    %851 = vector.broadcast %cst_406 : f32 to vector<32x1xf32>
    %852 = arith.divf %850, %851 : vector<32x1xf32>
    %853 = vector.broadcast %845 : vector<32x1xf32> to vector<32x32xf32>
    %854 = arith.subf %822, %853 : vector<32x32xf32>
    %cst_407 = arith.constant 9.99999974E-6 : f32
    %855 = vector.broadcast %cst_407 : f32 to vector<32x1xf32>
    %856 = arith.addf %852, %855 : vector<32x1xf32>
    %857 = math.rsqrt %856 : vector<32x1xf32>
    %858 = vector.broadcast %857 : vector<32x1xf32> to vector<32x32xf32>
    %859 = arith.mulf %854, %858 : vector<32x32xf32>
    %860 = vector.broadcast %839 : vector<1x32xf32> to vector<32x32xf32>
    %861 = arith.mulf %859, %860 : vector<32x32xf32>
    %862 = vector.broadcast %840 : vector<1x32xf32> to vector<32x32xf32>
    %863 = arith.addf %861, %862 : vector<32x32xf32>
    %cst_408 = arith.constant dense<0.000000e+00> : vector<32x32xf32>
    %864 = tpu.matmul %841, %863, %cst_408 {dimension_numbers = #tpu.dot_dimension_numbers<[1], [0], [0], [1], [0, 0, 1, 1], [], []>} : vector<32x32xf32>, vector<32x32xf32>, vector<32x32xf32> -> vector<32x32xf32>
    %865 = arith.subf %863, %864 : vector<32x32xf32>
    %c0_409 = arith.constant 0 : index
    %c0_410 = arith.constant 0 : index
    %866 = vector.load %arg59[%c0_409, %c0_410] : memref<32x4xf32, #tpu.memory_space<vmem>>, vector<32x4xf32>
    %cst_411 = arith.constant dense<0.000000e+00> : vector<32x4xf32>
    %867 = tpu.matmul %865, %866, %cst_411 {dimension_numbers = #tpu.dot_dimension_numbers<[1], [0], [0], [1], [0, 0, 1, 1], [], []>} : vector<32x32xf32>, vector<32x4xf32>, vector<32x4xf32> -> vector<32x4xf32>
    %c0_412 = arith.constant 0 : index
    %c0_413 = arith.constant 0 : index
    %868 = vector.load %arg60[%c0_412, %c0_413] : memref<1x4xf32, #tpu.memory_space<vmem>>, vector<1x4xf32>
    %869 = vector.broadcast %868 : vector<1x4xf32> to vector<32x4xf32>
    %870 = arith.addf %867, %869 : vector<32x4xf32>
    %c0_414 = arith.constant 0 : index
    %c0_415 = arith.constant 0 : index
    %871 = vector.load %arg13[%c0_414, %c0_415] : memref<16x32xf32, #tpu.memory_space<vmem>>, vector<16x32xf32>
    %872 = arith.addf %838, %870 : vector<32x4xf32>
    %cst_416 = arith.constant dense<0.000000e+00> : vector<16x4xf32>
    %873 = tpu.matmul %871, %872, %cst_416 {dimension_numbers = #tpu.dot_dimension_numbers<[1], [0], [0], [1], [0, 0, 1, 1], [], []>} : vector<16x32xf32>, vector<32x4xf32>, vector<16x4xf32> -> vector<16x4xf32>
    %c0_417 = arith.constant 0 : index
    %c0_418 = arith.constant 0 : index
    %874 = vector.load %arg61[%c0_417, %c0_418] : memref<16x4xf32, #tpu.memory_space<vmem>>, vector<16x4xf32>
    tpu.vector_store %arg61[%c0_417, %c0_418], %873 {strides = array<i32>} : memref<16x4xf32, #tpu.memory_space<vmem>>, vector<16x4xf32>,
    return
  }
}

</mosaic_0001>

<bundles_post_ra>
// kernel: model_forward.1
= control target key start
LH: loop header
LB: loop body
LE: loop exit
PB: predicated region body
PF: predicated region fallthrough
CT: control target
= control target key end

     0   :  { %s18124_s6 = smov 1   ;;  %s18125_s10 = smov 2   ;;  %s20446_s0 = inlined_call_operand.smem [shape: u32[62], index: -1, kind: input, shape index: {}] }
   0x1   :  { %s18239_s5 = sld [smem:[%s20446_s0]]   ;;  %s18126_s14 = smov 3  }
   0x2   :  { %s18244_s9 = sld [smem:[%s20446_s0 + %s18124_s6]]   ;;  %s18127_s18 = smov 4  }
   0x3   :  { %s18249_s13 = sld [smem:[%s20446_s0 + %s18125_s10]]   ;;  %s18128_s22 = smov 5  }
   0x4   :  { %s18254_s17 = sld [smem:[%s20446_s0 + %s18126_s14]]   ;;  %s18129_s26 = smov 6  }
   0x5   :  { %s18259_s21 = sld [smem:[%s20446_s0 + %s18127_s18]]   ;;  %s18130_s30 = smov 7  }
   0x6   :  { %s18264_s25 = sld [smem:[%s20446_s0 + %s18128_s22]]   ;;  %s18131_s4 = smov 8  }
   0x7   :  { %20489 = sst [smem:[#allocation68_spill]] %s18239_s5  ;;  %s18132_s10 = smov 9  }
   0x8   :  { %20490 = sst [smem:[#allocation69_spill]] %s18244_s9  ;;  %s18133_s15 = smov 10  }
   0x9   :  { %20491 = sst [smem:[#allocation70_spill]] %s18249_s13  ;;  %s18134_s20 = smov 11  }
   0xa   :  { %20492 = sst [smem:[#allocation71_spill]] %s18254_s17  ;;  %s18136_s1 = smov 13  }
   0xb   :  { %s18269_s29 = sld [smem:[%s20446_s0 + %s18129_s26]]   ;;  %s18135_s26 = smov 12  }
   0xc   :  { %20493 = sst [smem:[#allocation72_spill]] %s18264_s25  ;;  %s18137_s7 = smov 14  }
   0xd   :  { %s18274_s3 = sld [smem:[%s20446_s0 + %s18130_s30]]   ;;  %s18139_s22 = smov 16  }
   0xe   :  { %s18279_s8 = sld [smem:[%s20446_s0 + %s18131_s4]]   ;;  %s18140_s28 = smov 17  }
   0xf   :  { %s18284_s14 = sld [smem:[%s20446_s0 + %s18132_s10]]  }
  0x10   :  { %s18289_s19 = sld [smem:[%s20446_s0 + %s18133_s15]]   ;;  %s18138_s15 = smov 15  }
  0x11   :  { %s18294_s24 = sld [smem:[%s20446_s0 + %s18134_s20]]  }
  0x12   :  { %s18299_s30 = sld [smem:[%s20446_s0 + %s18135_s26]]  }
  0x13   :  { %20494 = sst [smem:[#allocation73_spill]] %s18274_s3 }
  0x14   :  { %s18304_s6 = sld [smem:[%s20446_s0 + %s18136_s1]]  }
  0x15   :  { %20495 = sst [smem:[#allocation74_spill]] %s18284_s14 }
  0x16   :  { %20496 = sst [smem:[#allocation75_spill]] %s18289_s19 }
  0x17   :  { %s18309_s12 = sld [smem:[%s20446_s0 + %s18137_s7]]   ;;  %s18141_s7 = smov 18  }
  0x18   :  { %20497 = sst [smem:[#allocation76_spill]] %s18299_s30 }
  0x19   :  { %s18314_s20 = sld [smem:[%s20446_s0 + %s18138_s15]]   ;;  %s18142_s15 = smov 19  }
  0x1a   :  { %20498 = sst [smem:[#allocation77_spill]] %s18304_s6 }
  0x1b   :  { %s18319_s27 = sld [smem:[%s20446_s0 + %s18139_s22]]   ;;  %s18143_s22 = smov 20  }
  0x1c   :  { %s18324_s4 = sld [smem:[%s20446_s0 + %s18140_s28]]   ;;  %s18144_s28 = smov 21  }
  0x1d   :  { %20499 = sst [smem:[#allocation78_spill]] %s18309_s12 }
  0x1e   :  { %s18329_s13 = sld [smem:[%s20446_s0 + %s18141_s7]]   ;;  %s18145_s7 = smov 22  }
  0x1f   :  { %20500 = sst [smem:[#allocation79_spill]] %s18314_s20 }
  0x20   :  { %s18334_s30 = sld [smem:[%s20446_s0 + %s18142_s15]]   ;;  %s18146_s15 = smov 23  }
  0x21   :  { %20501 = sst [smem:[#allocation80_spill]] %s18319_s27 }
  0x22   :  { %20502 = sst [smem:[#allocation81_spill]] %s18324_s4 }
  0x23   :  { %s18339_s27 = sld [smem:[%s20446_s0 + %s18143_s22]]   ;;  %s18147_s22 = smov 24  }
  0x24   :  { %20503 = sst [smem:[#allocation82_spill]] %s18329_s13 }
  0x25   :  { %s18344_s4 = sld [smem:[%s20446_s0 + %s18144_s28]]   ;;  %s18148_s28 = smov 25  }
  0x26   :  { %s18349_s13 = sld [smem:[%s20446_s0 + %s18145_s7]]   ;;  %s18149_s7 = smov 26  }
  0x27   :  { %s18354_s19 = sld [smem:[%s20446_s0 + %s18146_s15]]   ;;  %s18150_s15 = smov 27  }
  0x28   :  { %s18359_s20 = sld [smem:[%s20446_s0 + %s18147_s22]]   ;;  %s18151_s22 = smov 28  }
  0x29   :  { %20504 = sst [smem:[#allocation83_spill]] %s18339_s27 }
  0x2a   :  { %s18364_s12 = sld [smem:[%s20446_s0 + %s18148_s28]]   ;;  %s18152_s28 = smov 29  }
  0x2b   :  { %s18369_s9 = sld [smem:[%s20446_s0 + %s18149_s7]]   ;;  %s18153_s7 = smov 30  }
  0x2c   :  { %20505 = sst [smem:[#allocation84_spill]] %s18349_s13 }
  0x2d   :  { %20506 = sst [smem:[#allocation85_spill]] %s18354_s19 }
  0x2e   :  { %s18374_s19 = sld [smem:[%s20446_s0 + %s18150_s15]]   ;;  %s18154_s15 = smov 31  }
  0x2f   :  { %s18379_s5 = sld [smem:[%s20446_s0 + %s18151_s22]]   ;;  %s18155_s22 = smov 32  }
  0x30   :  { %20507 = sst [smem:[#allocation86_spill]] %s18364_s12 }
  0x31   :  { %20508 = sst [smem:[#allocation87_spill]] %s18369_s9 }
  0x32   :  { %s18384_s12 = sld [smem:[%s20446_s0 + %s18152_s28]]   ;;  %s18156_s28 = smov 33  }
  0x33   :  { %s18389_s9 = sld [smem:[%s20446_s0 + %s18153_s7]]   ;;  %s18157_s7 = smov 34  }
  0x34   :  { %20509 = sst [smem:[#allocation88_spill]] %s18374_s19 }
  0x35   :  { %20510 = sst [smem:[#allocation89_spill]] %s18379_s5 }
  0x36   :  { %s18394_s19 = sld [smem:[%s20446_s0 + %s18154_s15]]   ;;  %s18158_s15 = smov 35  }
  0x37   :  { %s18399_s5 = sld [smem:[%s20446_s0 + %s18155_s22]]   ;;  %s18159_s22 = smov 36  }
  0x38   :  { %20511 = sst [smem:[#allocation90_spill]] %s18384_s12 }
  0x39   :  { %20512 = sst [smem:[#allocation91_spill]] %s18389_s9 }
  0x3a   :  { %s18404_s12 = sld [smem:[%s20446_s0 + %s18156_s28]]   ;;  %s18160_s28 = smov 37  }
  0x3b   :  { %s18409_s9 = sld [smem:[%s20446_s0 + %s18157_s7]]   ;;  %s18161_s7 = smov 38  }
  0x3c   :  { %s18414_s13 = sld [smem:[%s20446_s0 + %s18158_s15]]   ;;  %s18162_s15 = smov 39  }
  0x3d   :  { %20513 = sst [smem:[#allocation92_spill]] %s18399_s5 }
  0x3e   :  { %s18419_s5 = sld [smem:[%s20446_s0 + %s18159_s22]]   ;;  %s18163_s22 = smov 40  }
  0x40   :  { %20514 = sst [smem:[#allocation93_spill]] %s18404_s12 }
  0x41   :  { %20515 = sst [smem:[#allocation94_spill]] %s18409_s9 }
  0x42   :  { %20516 = sst [smem:[#allocation95_spill]] %s18414_s13 }
  0x43   :  { %s18424_s12 = sld [smem:[%s20446_s0 + %s18160_s28]]   ;;  %s18164_s28 = smov 41  }
  0x44   :  { %20517 = sst [smem:[#allocation96_spill]] %s18419_s5 }
  0x45   :  { %s18429_s9 = sld [smem:[%s20446_s0 + %s18161_s7]]   ;;  %s18165_s7 = smov 42  }
  0x46   :  { %s18434_s13 = sld [smem:[%s20446_s0 + %s18162_s15]]   ;;  %s18166_s15 = smov 43  }
  0x47   :  { %s18439_s5 = sld [smem:[%s20446_s0 + %s18163_s22]]   ;;  %s18167_s22 = smov 44  }
  0x48   :  { %s18449_s27 = sld [smem:[%s20446_s0 + %s18165_s7]]   ;;  %s18169_s7 = smov 46  }
  0x49   :  { %20518 = sst [smem:[#allocation97_spill]] %s18424_s12 }
  0x4a   :  { %s18444_s12 = sld [smem:[%s20446_s0 + %s18164_s28]]   ;;  %s18168_s28 = smov 45  }
  0x4b   :  { %s18459_s6 = sld [smem:[%s20446_s0 + %s18167_s22]]   ;;  %s18171_s22 = smov 48  }
  0x4c   :  { %20519 = sst [smem:[#allocation98_spill]] %s18434_s13 }
  0x4d   :  { %s18454_s13 = sld [smem:[%s20446_s0 + %s18166_s15]]   ;;  %s18170_s15 = smov 47  }
  0x4e   :  { %20521 = sst [smem:[#allocation100_spill]] %s18449_s27 }
  0x4f   :  { %s18469_s27 = sld [smem:[%s20446_s0 + %s18169_s7]]   ;;  %s18173_s7 = smov 50  }
  0x50   :  { %20520 = sst [smem:[#allocation99_spill]] %s18444_s12 }
  0x51   :  { %20523 = sst [smem:[#allocation102_spill]] %s18459_s6 }
  0x52   :  { %s18464_s12 = sld [smem:[%s20446_s0 + %s18168_s28]]   ;;  %s18172_s28 = smov 49  }
  0x53   :  { %20522 = sst [smem:[#allocation101_spill]] %s18454_s13 }
  0x54   :  { %s18474_s13 = sld [smem:[%s20446_s0 + %s18170_s15]]   ;;  %s18174_s15 = smov 51  }
  0x55   :  { %20525 = sst [smem:[#allocation104_spill]] %s18469_s27 }
  0x56   :  { %s18479_s6 = sld [smem:[%s20446_s0 + %s18171_s22]]   ;;  %s18175_s22 = smov 52  }
  0x57   :  { %s18489_s27 = sld [smem:[%s20446_s0 + %s18173_s7]]   ;;  %s18177_s7 = smov 54  }
  0x58   :  { %20524 = sst [smem:[#allocation103_spill]] %s18464_s12 }
  0x59   :  { %s18484_s12 = sld [smem:[%s20446_s0 + %s18172_s28]]   ;;  %s18176_s28 = smov 53  }
  0x5a   :  { %s18494_s14 = sld [smem:[%s20446_s0 + %s18174_s15]]   ;;  %s18178_s15 = smov 55  }
  0x5b   :  { %s18504_s3 = sld [smem:[%s20446_s0 + %s18176_s28]]   ;;  %s18180_s28 = smov 57  }
  0x5c   :  { %20526 = sst [smem:[#allocation105_spill]] %s18479_s6 }
  0x5d   :  { %20527 = sst [smem:[#allocation106_spill]] %s18489_s27 }
  0x5e   :  { %s18499_s6 = sld [smem:[%s20446_s0 + %s18175_s22]]   ;;  %s18179_s22 = smov 56  }
  0x5f   :  { %s18509_s27 = sld [smem:[%s20446_s0 + %s18177_s7]]   ;;  %s18181_s7 = smov 58  }
  0x60   :  { %s18514_s25 = sld [smem:[%s20446_s0 + %s18178_s15]]   ;;  %s18182_s15 = smov 59  }
  0x61   :  { %s18524_s17 = sld [smem:[%s20446_s0 + %s18180_s28]]   ;;  %s18184_s28 = smov 61  }
  0x64   :  { %20528 = sst [smem:[#allocation107_spill]] %s18499_s6 }
  0x65   :  { %20529 = sst [smem:[#allocation108_spill]] %s18509_s27 }
  0x66   :  { %20530 = sst [smem:[#allocation109_spill]] %s18514_s25 }
  0x67   :  { %s18519_s6 = sld [smem:[%s20446_s0 + %s18179_s22]]   ;;  %s18183_s22 = smov 60  }
  0x68   :  { %20532 = sst [smem:[#allocation111_spill]] %s18524_s17 }
  0x69   :  { %s18529_s27 = sld [smem:[%s20446_s0 + %s18181_s7]]  }
  0x6a   :  { %s18534_s25 = sld [smem:[%s20446_s0 + %s18182_s15]]  }
  0x6b   :  { %s18544_s17 = sld [smem:[%s20446_s0 + %s18184_s28]]  }
  0x6d   :  { %20531 = sst [smem:[#allocation110_spill]] %s18519_s6 }
  0x6e   :  { %s18539_s6 = sld [smem:[%s20446_s0 + %s18183_s22]]  }
  0x6f   :  { %128 = vsyncpa [#allocation3], 0 }
  0x70   :  { %129 = vsyncpa [#allocation5], 0 }
  0x71   :  { %130 = vsyncpa [#allocation8], 0 }
  0x72   :  { %131 = vsyncpa [#allocation11], 0 }
  0x73   :  { %132 = vsyncpa [#allocation14], 0 }
  0x74   :  { %133 = vsyncpa [#allocation17], 0 }
  0x75   :  { %134 = vsyncpa [#allocation20], 0 }
  0x76   :  { %135 = vsyncpa [#allocation23], 0 }
  0x77   :  { %136 = vsyncpa [#allocation26], 0 }
  0x78   :  { %137 = vsyncpa [#allocation29], 0 }
  0x79   :  { %138 = vsyncpa [#allocation32], 0 }
  0x7a   :  { %139 = vsyncpa [#allocation35], 0 }
  0x7b   :  { %140 = vsyncpa [#allocation38], 0 }
  0x7c   :  { %141 = vsyncpa [#allocation41], 0 }
  0x7d   :  { %142 = vsyncpa [#allocation44], 0 }
  0x7e   :  { %143 = vsyncpa [#allocation47], 0 }
  0x7f   :  { %144 = vsyncpa [#allocation50], 0  ;;  %s18185_s0 = smov [#allocation4]   ;;  %s18186_s10 = smov [#allocation7]  }
  0x80   :  { %s168_s7 = sshll.u32 %s18185_s0, 4  ;;  %s192_s11 = sshll.u32 %s18186_s10, 4  ;;  %s169_s7 = int_to_ptr.vmem [resolvable:$true] %s168_s7  ;;  %s18546_s11 = int_to_ptr.vmem [resolvable:$true] %s192_s11 }
  0x81   :  { %s17386_s15 = scalar_lea.hbm %s18259_s21, 512 }
  0x82   :  { %p17387_p0 = scmp.ne.s32.totalorder %s18259_s21, %s17386_s15  ;;  %p17390_p1 = scmp.lt.u32.totalorder %s17386_s15, %s18259_s21 }
  0x84   :  { %p17392_p2 = pnand %p17390_p1, %p17387_p0 }
  0x86   :  { %17395 = shalt.err (!%p17392_p2)
}
  0x87   :  { %s17396_s16 = scalar_lea.vmem %s169_s7, 512  ;;  %p17401_p4 = scmp.lt.s32.totalorder %s169_s7, %s169_s7 }
  0x88   :  { %p17397_p3 = scmp.ne.s32.totalorder %s169_s7, %s17396_s16  ;;  %p17402_p5 = scmp.lt.s32.totalorder %s17396_s16, %s17396_s16 }
  0x8a   :  { %p17403_p6 = por %p17402_p5, %p17401_p4 }
  0x8c   :  { %p17404_p7 = pnand %p17403_p6, %p17397_p3 }
  0x8e   :  { %17407 = shalt.err (!%p17404_p7)
}
  0x8f   :  { %s18187_s18 = smov 128   ;;  %s18188_s22 = smov 8  }
  0x90   :  { %174 = dma.hbm_to_vmem [thread:$0]  %s18259_s21, 512, %s169_s7, [#allocation5], %s18187_s18, %s18187_s18, %s18188_s22  }
  0x91   :  { %s17408_s23 = scalar_lea.hbm %s18269_s29, 256 }
  0x92   :  { %p17409_p8 = scmp.ne.s32.totalorder %s18269_s29, %s17408_s23  ;;  %p17412_p9 = scmp.lt.u32.totalorder %s17408_s23, %s18269_s29 }
  0x94   :  { %p17414_p10 = pnand %p17412_p9, %p17409_p8 }
  0x96   :  { %17417 = shalt.err (!%p17414_p10)
}
  0x97   :  { %s17418_s26 = scalar_lea.vmem %s18546_s11, 256  ;;  %p17423_p12 = scmp.lt.s32.totalorder %s18546_s11, %s18546_s11 }
  0x98   :  { %p17419_p11 = scmp.ne.s32.totalorder %s18546_s11, %s17418_s26  ;;  %p17424_p13 = scmp.lt.s32.totalorder %s17418_s26, %s17418_s26 }
  0x9a   :  { %p17425_p0 = por %p17424_p13, %p17423_p12 }
  0x9c   :  { %p17426_p1 = pnand %p17425_p0, %p17419_p11 }
  0x9e   :  { %17429 = shalt.err (!%p17426_p1)
}
  0x9f   :  { %198 = dma.hbm_to_vmem [thread:$0]  %s18269_s29, 256, %s18546_s11, [#allocation8], %s18187_s18, %s18187_s18, %s18188_s22  }
  0xa0   :  { %s18189_s21 = smov [#allocation10]   ;;  %s18190_s1 = smov [#allocation13]  }
  0xa1   :  { %s216_s28 = sshll.u32 %s18189_s21, 4  ;;  %s242_s2 = sshll.u32 %s18190_s1, 4  ;;  %s217_s28 = int_to_ptr.vmem [resolvable:$true] %s216_s28  ;;  %s18567_s2 = int_to_ptr.vmem [resolvable:$true] %s242_s2 }
  0xa2   :  { %s17430_s0 = scalar_lea.hbm %s18279_s8, 512 }
  0xa3   :  { %p17431_p2 = scmp.ne.s32.totalorder %s18279_s8, %s17430_s0  ;;  %p17434_p3 = scmp.lt.u32.totalorder %s17430_s0, %s18279_s8 }
  0xa5   :  { %p17436_p4 = pnand %p17434_p3, %p17431_p2 }
  0xa7   :  { %17439 = shalt.err (!%p17436_p4)
}
  0xa8   :  { %s17440_s7 = scalar_lea.vmem %s217_s28, 512  ;;  %p17445_p6 = scmp.lt.s32.totalorder %s217_s28, %s217_s28 }
  0xa9   :  { %p17441_p5 = scmp.ne.s32.totalorder %s217_s28, %s17440_s7  ;;  %p17446_p7 = scmp.lt.s32.totalorder %s17440_s7, %s17440_s7 }
  0xab   :  { %p17447_p8 = por %p17446_p7, %p17445_p6 }
  0xad   :  { %p17448_p9 = pnand %p17447_p8, %p17441_p5 }
  0xaf   :  { %17451 = shalt.err (!%p17448_p9)
}
  0xb0   :  { %222 = dma.hbm_to_vmem [thread:$0]  %s18279_s8, 512, %s217_s28, [#allocation11], %s18187_s18, %s18187_s18, %s18188_s22  }
  0xb1   :  { %s17452_s29 = scalar_lea.hbm %s18294_s24, 512 }
  0xb2   :  { %p17453_p10 = scmp.ne.s32.totalorder %s18294_s24, %s17452_s29  ;;  %p17456_p11 = scmp.lt.u32.totalorder %s17452_s29, %s18294_s24 }
  0xb4   :  { %p17458_p12 = pnand %p17456_p11, %p17453_p10 }
  0xb6   :  { %17461 = shalt.err (!%p17458_p12)
}
  0xb7   :  { %s17462_s10 = scalar_lea.vmem %s18567_s2, 512  ;;  %p17467_p0 = scmp.lt.s32.totalorder %s18567_s2, %s18567_s2 }
  0xb8   :  { %p17463_p13 = scmp.ne.s32.totalorder %s18567_s2, %s17462_s10  ;;  %p17468_p1 = scmp.lt.s32.totalorder %s17462_s10, %s17462_s10 }
  0xba   :  { %p17469_p2 = por %p17468_p1, %p17467_p0 }
  0xbc   :  { %p17470_p3 = pnand %p17469_p2, %p17463_p13 }
  0xbe   :  { %17473 = shalt.err (!%p17470_p3)
}
  0xbf   :  { %248 = dma.hbm_to_vmem [thread:$0]  %s18294_s24, 512, %s18567_s2, [#allocation14], %s18187_s18, %s18187_s18, %s18188_s22  }
  0xc0   :  { %s18191_s8 = smov [#allocation16]   ;;  %s17474_s15 = scalar_lea.hbm %s18334_s30, 192 }
  0xc1   :  { %s278_s11 = sshll.u32 %s18191_s8, 4  ;;  %p17475_p4 = scmp.ne.s32.totalorder %s18334_s30, %s17474_s15  ;;  %s279_s11 = int_to_ptr.vmem [resolvable:$true] %s278_s11 }
  0xc2   :  { %p17478_p5 = scmp.lt.u32.totalorder %s17474_s15, %s18334_s30 }
  0xc4   :  { %p17480_p6 = pnand %p17478_p5, %p17475_p4 }
  0xc6   :  { %17483 = shalt.err (!%p17480_p6)
}
  0xc7   :  { %s17484_s16 = scalar_lea.vmem %s279_s11, 192  ;;  %p17489_p8 = scmp.lt.s32.totalorder %s279_s11, %s279_s11 }
  0xc8   :  { %p17485_p7 = scmp.ne.s32.totalorder %s279_s11, %s17484_s16  ;;  %p17490_p9 = scmp.lt.s32.totalorder %s17484_s16, %s17484_s16 }
  0xca   :  { %p17491_p10 = por %p17490_p9, %p17489_p8 }
  0xcc   :  { %p17492_p11 = pnand %p17491_p10, %p17485_p7 }
  0xce   :  { %17495 = shalt.err (!%p17492_p11)
}
  0xcf   :  { %s18192_s23 = smov 64   ;;  %s18193_s24 = smov 4  }
  0xd0   :  { %284 = dma.hbm_to_vmem [thread:$0]  %s18334_s30, 192, %s279_s11, [#allocation17], %s18192_s23, %s18192_s23, %s18193_s24  }
  0xd1   :  { %s18194_s26 = smov [#allocation19]   ;;  %s18195_s28 = smov [#allocation22]  }
  0xd2   :  { %s300_s21 = sshll.u32 %s18194_s26, 4  ;;  %s325_s1 = sshll.u32 %s18195_s28, 4  ;;  %s301_s21 = int_to_ptr.vmem [resolvable:$true] %s300_s21  ;;  %s326_s1 = int_to_ptr.vmem [resolvable:$true] %s325_s1 }
  0xd3   :  { %s17496_s2 = scalar_lea.hbm %s18344_s4, 192 }
  0xd4   :  { %p17497_p12 = scmp.ne.s32.totalorder %s18344_s4, %s17496_s2  ;;  %p17500_p13 = scmp.lt.u32.totalorder %s17496_s2, %s18344_s4 }
  0xd6   :  { %p17502_p0 = pnand %p17500_p13, %p17497_p12 }
  0xd8   :  { %17505 = shalt.err (!%p17502_p0)
}
  0xd9   :  { %s17506_s0 = scalar_lea.vmem %s301_s21, 192  ;;  %p17511_p2 = scmp.lt.s32.totalorder %s301_s21, %s301_s21 }
  0xda   :  { %p17507_p1 = scmp.ne.s32.totalorder %s301_s21, %s17506_s0  ;;  %p17512_p3 = scmp.lt.s32.totalorder %s17506_s0, %s17506_s0 }
  0xdc   :  { %p17513_p4 = por %p17512_p3, %p17511_p2 }
  0xde   :  { %p17514_p5 = pnand %p17513_p4, %p17507_p1 }
  0xe0   :  { %17517 = shalt.err (!%p17514_p5)
}
  0xe1   :  { %306 = dma.hbm_to_vmem [thread:$0]  %s18344_s4, 192, %s301_s21, [#allocation20], %s18192_s23, %s18192_s23, %s18193_s24  }
  0xe2   :  { %s17518_s30 = scalar_lea.hbm %s18359_s20, 16 }
  0xe3   :  { %p17519_p6 = scmp.ne.s32.totalorder %s18359_s20, %s17518_s30  ;;  %p17522_p7 = scmp.lt.u32.totalorder %s17518_s30, %s18359_s20 }
  0xe5   :  { %p17524_p8 = pnand %p17522_p7, %p17519_p6 }
  0xe7   :  { %17527 = shalt.err (!%p17524_p8)
}
  0xe8   :  { %s17528_s7 = scalar_lea.vmem %s326_s1, 16  ;;  %s17532_s29 = scalar_lea.vmem %s326_s1, 32 }
  0xe9   :  { %p17529_p9 = scmp.ne.s32.totalorder %s326_s1, %s17528_s7  ;;  %p17533_p10 = scmp.lt.s32.totalorder %s326_s1, %s326_s1 }
  0xea   :  { %p17534_p11 = scmp.lt.s32.totalorder %s17532_s29, %s17528_s7 }
  0xec   :  { %p17535_p12 = por %p17534_p11, %p17533_p10 }
  0xee   :  { %p17536_p13 = pnand %p17535_p12, %p17529_p9 }
  0xf0   :  { %17539 = shalt.err (!%p17536_p13)
}
  0xf1   :  { %328 = dma.hbm_to_vmem [thread:$0]  %s18359_s20, 16, %s326_s1, [#allocation23]  }
  0xf2   :  { %s18196_s4 = smov [#allocation25]   ;;  %s18197_s8 = smov [#allocation28]  }
  0xf3   :  { %s355_s10 = sshll.u32 %s18196_s4, 4  ;;  %s385_s11 = sshll.u32 %s18197_s8, 4  ;;  %s356_s10 = int_to_ptr.vmem [resolvable:$true] %s355_s10  ;;  %s386_s11 = int_to_ptr.vmem [resolvable:$true] %s385_s11 }
  0xf4   :  { %s17540_s15 = scalar_lea.hbm %s18394_s19, 16 }
  0xf5   :  { %p17541_p0 = scmp.ne.s32.totalorder %s18394_s19, %s17540_s15  ;;  %p17544_p1 = scmp.lt.u32.totalorder %s17540_s15, %s18394_s19 }
  0xf7   :  { %p17546_p2 = pnand %p17544_p1, %p17541_p0 }
  0xf9   :  { %17549 = shalt.err (!%p17546_p2)
}
  0xfa   :  { %s17550_s16 = scalar_lea.vmem %s356_s10, 16  ;;  %s17554_s24 = scalar_lea.vmem %s356_s10, 32 }
  0xfb   :  { %p17551_p3 = scmp.ne.s32.totalorder %s356_s10, %s17550_s16  ;;  %p17555_p4 = scmp.lt.s32.totalorder %s356_s10, %s356_s10 }
  0xfc   :  { %p17556_p5 = scmp.lt.s32.totalorder %s17554_s24, %s17550_s16 }
  0xfe   :  { %p17557_p6 = por %p17556_p5, %p17555_p4 }
 0x100   :  { %p17558_p7 = pnand %p17557_p6, %p17551_p3 }
 0x102   :  { %17561 = shalt.err (!%p17558_p7)
}
 0x103   :  { %358 = dma.hbm_to_vmem [thread:$0]  %s18394_s19, 16, %s356_s10, [#allocation26]  }
 0x104   :  { %s17562_s20 = scalar_lea.hbm %s18429_s9, 16 }
 0x105   :  { %p17563_p8 = scmp.ne.s32.totalorder %s18429_s9, %s17562_s20  ;;  %p17566_p9 = scmp.lt.u32.totalorder %s17562_s20, %s18429_s9 }
 0x107   :  { %p17568_p10 = pnand %p17566_p9, %p17563_p8 }
 0x109   :  { %17571 = shalt.err (!%p17568_p10)
}
 0x10a   :  { %s17572_s26 = scalar_lea.vmem %s386_s11, 16  ;;  %s17576_s21 = scalar_lea.vmem %s386_s11, 32 }
 0x10b   :  { %p17573_p11 = scmp.ne.s32.totalorder %s386_s11, %s17572_s26  ;;  %p17577_p12 = scmp.lt.s32.totalorder %s386_s11, %s386_s11 }
 0x10c   :  { %p17578_p13 = scmp.lt.s32.totalorder %s17576_s21, %s17572_s26 }
 0x10e   :  { %p17579_p0 = por %p17578_p13, %p17577_p12 }
 0x110   :  { %p17580_p1 = pnand %p17579_p0, %p17573_p11 }
 0x112   :  { %17583 = shalt.err (!%p17580_p1)
}
 0x113   :  { %388 = dma.hbm_to_vmem [thread:$0]  %s18429_s9, 16, %s386_s11, [#allocation29]  }
 0x114   :  { %s18198_s19 = smov [#allocation31]   ;;  %s18199_s1 = smov [#allocation34]  }
 0x115   :  { %s405_s28 = sshll.u32 %s18198_s19, 4  ;;  %s435_s2 = sshll.u32 %s18199_s1, 4  ;;  %s406_s28 = int_to_ptr.vmem [resolvable:$true] %s405_s28  ;;  %s436_s2 = int_to_ptr.vmem [resolvable:$true] %s435_s2 }
 0x116   :  { %s17584_s0 = scalar_lea.hbm %s18439_s5, 16 }
 0x117   :  { %p17585_p2 = scmp.ne.s32.totalorder %s18439_s5, %s17584_s0  ;;  %p17588_p3 = scmp.lt.u32.totalorder %s17584_s0, %s18439_s5 }
 0x119   :  { %p17590_p4 = pnand %p17588_p3, %p17585_p2 }
 0x11b   :  { %17593 = shalt.err (!%p17590_p4)
}
 0x11c   :  { %s17594_s30 = scalar_lea.vmem %s406_s28, 16  ;;  %s17598_s7 = scalar_lea.vmem %s406_s28, 32 }
 0x11d   :  { %p17595_p5 = scmp.ne.s32.totalorder %s406_s28, %s17594_s30  ;;  %p17599_p6 = scmp.lt.s32.totalorder %s406_s28, %s406_s28 }
 0x11e   :  { %p17600_p7 = scmp.lt.s32.totalorder %s17598_s7, %s17594_s30 }
 0x120   :  { %p17601_p8 = por %p17600_p7, %p17599_p6 }
 0x122   :  { %p17602_p9 = pnand %p17601_p8, %p17595_p5 }
 0x124   :  { %17605 = shalt.err (!%p17602_p9)
}
 0x125   :  { %408 = dma.hbm_to_vmem [thread:$0]  %s18439_s5, 16, %s406_s28, [#allocation32]  }
 0x126   :  { %s17606_s9 = scalar_lea.hbm %s18474_s13, 16 }
 0x127   :  { %p17607_p10 = scmp.ne.s32.totalorder %s18474_s13, %s17606_s9  ;;  %p17610_p11 = scmp.lt.u32.totalorder %s17606_s9, %s18474_s13 }
 0x129   :  { %p17612_p12 = pnand %p17610_p11, %p17607_p10 }
 0x12b   :  { %17615 = shalt.err (!%p17612_p12)
}
 0x12c   :  { %s17616_s29 = scalar_lea.vmem %s436_s2, 16  ;;  %s17620_s4 = scalar_lea.vmem %s436_s2, 32 }
 0x12d   :  { %p17617_p13 = scmp.ne.s32.totalorder %s436_s2, %s17616_s29  ;;  %p17621_p0 = scmp.lt.s32.totalorder %s436_s2, %s436_s2 }
 0x12e   :  { %p17622_p1 = scmp.lt.s32.totalorder %s17620_s4, %s17616_s29 }
 0x130   :  { %p17623_p2 = por %p17622_p1, %p17621_p0 }
 0x132   :  { %p17624_p3 = pnand %p17623_p2, %p17617_p13 }
 0x134   :  { %17627 = shalt.err (!%p17624_p3)
}
 0x135   :  { %438 = dma.hbm_to_vmem [thread:$0]  %s18474_s13, 16, %s436_s2, [#allocation35]  }
 0x136   :  { %s18200_s5 = smov [#allocation37]   ;;  %s18201_s8 = smov [#allocation40]  }
 0x137   :  { %s457_s10 = sshll.u32 %s18200_s5, 4  ;;  %s479_s11 = sshll.u32 %s18201_s8, 4  ;;  %s458_s10 = int_to_ptr.vmem [resolvable:$true] %s457_s10  ;;  %s480_s11 = int_to_ptr.vmem [resolvable:$true] %s479_s11 }
 0x138   :  { %s17628_s15 = scalar_lea.hbm %s18484_s12, 16 }
 0x139   :  { %p17629_p4 = scmp.ne.s32.totalorder %s18484_s12, %s17628_s15  ;;  %p17632_p5 = scmp.lt.u32.totalorder %s17628_s15, %s18484_s12 }
 0x13b   :  { %p17634_p6 = pnand %p17632_p5, %p17629_p4 }
 0x13d   :  { %17637 = shalt.err (!%p17634_p6)
}
 0x13e   :  { %s17638_s16 = scalar_lea.vmem %s458_s10, 16  ;;  %s17642_s24 = scalar_lea.vmem %s458_s10, 32 }
 0x13f   :  { %p17639_p7 = scmp.ne.s32.totalorder %s458_s10, %s17638_s16  ;;  %p17643_p8 = scmp.lt.s32.totalorder %s458_s10, %s458_s10 }
 0x140   :  { %p17644_p9 = scmp.lt.s32.totalorder %s17642_s24, %s17638_s16 }
 0x142   :  { %p17645_p10 = por %p17644_p9, %p17643_p8 }
 0x144   :  { %p17646_p11 = pnand %p17645_p10, %p17639_p7 }
 0x146   :  { %17649 = shalt.err (!%p17646_p11)
}
 0x147   :  { %460 = dma.hbm_to_vmem [thread:$0]  %s18484_s12, 16, %s458_s10, [#allocation38]  }
 0x148   :  { %s17650_s13 = scalar_lea.hbm %s18494_s14, 16 }
 0x149   :  { %p17651_p12 = scmp.ne.s32.totalorder %s18494_s14, %s17650_s13  ;;  %p17654_p13 = scmp.lt.u32.totalorder %s17650_s13, %s18494_s14 }
 0x14b   :  { %p17656_p0 = pnand %p17654_p13, %p17651_p12 }
 0x14d   :  { %17659 = shalt.err (!%p17656_p0)
}
 0x14e   :  { %s17660_s20 = scalar_lea.vmem %s480_s11, 16  ;;  %s17664_s26 = scalar_lea.vmem %s480_s11, 32 }
 0x14f   :  { %p17661_p1 = scmp.ne.s32.totalorder %s480_s11, %s17660_s20  ;;  %p17665_p2 = scmp.lt.s32.totalorder %s480_s11, %s480_s11 }
 0x150   :  { %p17666_p3 = scmp.lt.s32.totalorder %s17664_s26, %s17660_s20 }
 0x152   :  { %p17667_p4 = por %p17666_p3, %p17665_p2 }
 0x154   :  { %p17668_p5 = pnand %p17667_p4, %p17661_p1 }
 0x156   :  { %17671 = shalt.err (!%p17668_p5)
}
 0x157   :  { %482 = dma.hbm_to_vmem [thread:$0]  %s18494_s14, 16, %s480_s11, [#allocation41]  }
 0x158   :  { %s18202_s12 = smov [#allocation43]   ;;  %s18203_s19 = smov [#allocation46]  }
 0x159   :  { %s501_s21 = sshll.u32 %s18202_s12, 4  ;;  %s527_s28 = sshll.u32 %s18203_s19, 4  ;;  %s502_s21 = int_to_ptr.vmem [resolvable:$true] %s501_s21  ;;  %s528_s28 = int_to_ptr.vmem [resolvable:$true] %s527_s28 }
 0x15a   :  { %s17672_s1 = scalar_lea.hbm %s18504_s3, 16 }
 0x15b   :  { %p17673_p6 = scmp.ne.s32.totalorder %s18504_s3, %s17672_s1  ;;  %p17676_p7 = scmp.lt.u32.totalorder %s17672_s1, %s18504_s3 }
 0x15d   :  { %p17678_p8 = pnand %p17676_p7, %p17673_p6 }
 0x15f   :  { %17681 = shalt.err (!%p17678_p8)
}
 0x160   :  { %s17682_s2 = scalar_lea.vmem %s502_s21, 16  ;;  %s17686_s0 = scalar_lea.vmem %s502_s21, 32 }
 0x161   :  { %p17683_p9 = scmp.ne.s32.totalorder %s502_s21, %s17682_s2  ;;  %p17687_p10 = scmp.lt.s32.totalorder %s502_s21, %s502_s21 }
 0x162   :  { %p17688_p11 = scmp.lt.s32.totalorder %s17686_s0, %s17682_s2 }
 0x164   :  { %p17689_p12 = por %p17688_p11, %p17687_p10 }
 0x166   :  { %p17690_p13 = pnand %p17689_p12, %p17683_p9 }
 0x168   :  { %17693 = shalt.err (!%p17690_p13)
}
 0x169   :  { %s20533_s14 = sld [smem:[#allocation111_spill]] }
 0x16a   :  { %504 = dma.hbm_to_vmem [thread:$0]  %s18504_s3, 16, %s502_s21, [#allocation44]  }
 0x16f   :  { %s17694_s30 = scalar_lea.hbm %s20533_s14, 16 }
 0x170   :  { %p17695_p0 = scmp.ne.s32.totalorder %s20533_s14, %s17694_s30  ;;  %p17698_p1 = scmp.lt.u32.totalorder %s17694_s30, %s20533_s14 }
 0x172   :  { %p17700_p2 = pnand %p17698_p1, %p17695_p0 }
 0x174   :  { %17703 = shalt.err (!%p17700_p2)
}
 0x175   :  { %s17704_s7 = scalar_lea.vmem %s528_s28, 16  ;;  %s17708_s9 = scalar_lea.vmem %s528_s28, 32 }
 0x176   :  { %p17705_p3 = scmp.ne.s32.totalorder %s528_s28, %s17704_s7  ;;  %p17709_p4 = scmp.lt.s32.totalorder %s528_s28, %s528_s28 }
 0x177   :  { %p17710_p5 = scmp.lt.s32.totalorder %s17708_s9, %s17704_s7 }
 0x179   :  { %p17711_p6 = por %p17710_p5, %p17709_p4 }
 0x17b   :  { %p17712_p7 = pnand %p17711_p6, %p17705_p3 }
 0x17d   :  { %17715 = shalt.err (!%p17712_p7)
}
 0x17e   :  { %s20534_s29 = sld [smem:[#allocation71_spill]]  ;;  %s18204_s3 = smov [#allocation2]  }
 0x17f   :  { %530 = dma.hbm_to_vmem [thread:$0]  %s20533_s14, 16, %s528_s28, [#allocation47]  }
 0x180   :  { %s156_s4 = sshll.u32 %s18204_s3, 4  ;;  %s18205_s5 = smov [#allocation6]   ;;  %s157_s4 = int_to_ptr.vmem [resolvable:$true] %s156_s4 }
 0x181   :  { %s180_s10 = sshll.u32 %s18205_s5, 4  ;;  %s181_s10 = int_to_ptr.vmem [resolvable:$true] %s180_s10 }
 0x184   :  { %s17716_s8 = scalar_lea.hbm %s20534_s29, 512 }
 0x185   :  { %p17717_p8 = scmp.ne.s32.totalorder %s20534_s29, %s17716_s8  ;;  %p17720_p9 = scmp.lt.u32.totalorder %s17716_s8, %s20534_s29 }
 0x187   :  { %p17722_p10 = pnand %p17720_p9, %p17717_p8 }
 0x189   :  { %17725 = shalt.err (!%p17722_p10)
}
 0x18a   :  { %s17726_s11 = scalar_lea.vmem %s157_s4, 512  ;;  %p17731_p12 = scmp.lt.s32.totalorder %s157_s4, %s157_s4 }
 0x18b   :  { %p17727_p11 = scmp.ne.s32.totalorder %s157_s4, %s17726_s11  ;;  %p17732_p13 = scmp.lt.s32.totalorder %s17726_s11, %s17726_s11 }
 0x18d   :  { %p17733_p0 = por %p17732_p13, %p17731_p12 }
 0x18f   :  { %p17734_p1 = pnand %p17733_p0, %p17727_p11 }
 0x191   :  { %17737 = shalt.err (!%p17734_p1)
}
 0x192   :  { %s20535_s15 = sld [smem:[#allocation72_spill]] }
 0x193   :  { %162 = dma.hbm_to_vmem [thread:$0]  %s20534_s29, 512, %s157_s4, [#allocation3], %s18187_s18, %s18187_s18, %s18188_s22  }
 0x198   :  { %s17738_s16 = scalar_lea.hbm %s20535_s15, 256 }
 0x199   :  { %p17739_p2 = scmp.ne.s32.totalorder %s20535_s15, %s17738_s16  ;;  %p17742_p3 = scmp.lt.u32.totalorder %s17738_s16, %s20535_s15 }
 0x19b   :  { %p17744_p4 = pnand %p17742_p3, %p17739_p2 }
 0x19d   :  { %17747 = shalt.err (!%p17744_p4)
}
 0x19e   :  { %s17748_s24 = scalar_lea.vmem %s181_s10, 256  ;;  %p17753_p6 = scmp.lt.s32.totalorder %s181_s10, %s181_s10 }
 0x19f   :  { %p17749_p5 = scmp.ne.s32.totalorder %s181_s10, %s17748_s24  ;;  %p17754_p7 = scmp.lt.s32.totalorder %s17748_s24, %s17748_s24 }
 0x1a1   :  { %p17755_p8 = por %p17754_p7, %p17753_p6 }
 0x1a3   :  { %p17756_p9 = pnand %p17755_p8, %p17749_p5 }
 0x1a5   :  { %17759 = shalt.err (!%p17756_p9)
}
 0x1a6   :  { %s20536_s13 = sld [smem:[#allocation73_spill]]  ;;  %s18206_s20 = smov [#allocation9]  }
 0x1a7   :  { %186 = dma.hbm_to_vmem [thread:$0]  %s20535_s15, 256, %s181_s10, [#allocation5], %s18187_s18, %s18187_s18, %s18188_s22  }
 0x1a8   :  { %s204_s26 = sshll.u32 %s18206_s20, 4  ;;  %s18207_s12 = smov [#allocation12]   ;;  %s205_s26 = int_to_ptr.vmem [resolvable:$true] %s204_s26 }
 0x1a9   :  { %s228_s21 = sshll.u32 %s18207_s12, 4  ;;  %s229_s21 = int_to_ptr.vmem [resolvable:$true] %s228_s21 }
 0x1ac   :  { %s17760_s19 = scalar_lea.hbm %s20536_s13, 512 }
 0x1ad   :  { %p17761_p10 = scmp.ne.s32.totalorder %s20536_s13, %s17760_s19  ;;  %p17764_p11 = scmp.lt.u32.totalorder %s17760_s19, %s20536_s13 }
 0x1af   :  { %p17766_p12 = pnand %p17764_p11, %p17761_p10 }
 0x1b1   :  { %17769 = shalt.err (!%p17766_p12)
}
 0x1b2   :  { %s17770_s28 = scalar_lea.vmem %s205_s26, 512  ;;  %p17775_p0 = scmp.lt.s32.totalorder %s205_s26, %s205_s26 }
 0x1b3   :  { %p17771_p13 = scmp.ne.s32.totalorder %s205_s26, %s17770_s28  ;;  %p17776_p1 = scmp.lt.s32.totalorder %s17770_s28, %s17770_s28 }
 0x1b5   :  { %p17777_p2 = por %p17776_p1, %p17775_p0 }
 0x1b7   :  { %p17778_p3 = pnand %p17777_p2, %p17771_p13 }
 0x1b9   :  { %17781 = shalt.err (!%p17778_p3)
}
 0x1ba   :  { %s20537_s1 = sld [smem:[#allocation74_spill]] }
 0x1bb   :  { %210 = dma.hbm_to_vmem [thread:$0]  %s20536_s13, 512, %s205_s26, [#allocation8], %s18187_s18, %s18187_s18, %s18188_s22  }
 0x1c0   :  { %s17782_s2 = scalar_lea.hbm %s20537_s1, 512 }
 0x1c1   :  { %p17783_p4 = scmp.ne.s32.totalorder %s20537_s1, %s17782_s2  ;;  %p17786_p5 = scmp.lt.u32.totalorder %s17782_s2, %s20537_s1 }
 0x1c3   :  { %p17788_p6 = pnand %p17786_p5, %p17783_p4 }
 0x1c5   :  { %17791 = shalt.err (!%p17788_p6)
}
 0x1c6   :  { %s17792_s0 = scalar_lea.vmem %s229_s21, 512  ;;  %p17797_p8 = scmp.lt.s32.totalorder %s229_s21, %s229_s21 }
 0x1c7   :  { %p17793_p7 = scmp.ne.s32.totalorder %s229_s21, %s17792_s0  ;;  %p17798_p9 = scmp.lt.s32.totalorder %s17792_s0, %s17792_s0 }
 0x1c9   :  { %p17799_p10 = por %p17798_p9, %p17797_p8 }
 0x1cb   :  { %p17800_p11 = pnand %p17799_p10, %p17793_p7 }
 0x1cd   :  { %17803 = shalt.err (!%p17800_p11)
}
 0x1ce   :  { %s20538_s14 = sld [smem:[#allocation77_spill]]  ;;  %s18208_s30 = smov [#allocation15]  }
 0x1cf   :  { %234 = dma.hbm_to_vmem [thread:$0]  %s20537_s1, 512, %s229_s21, [#allocation11], %s18187_s18, %s18187_s18, %s18188_s22  }
 0x1d0   :  { %s256_s7 = sshll.u32 %s18208_s30, 4  ;;  %s18209_s9 = smov [#allocation18]   ;;  %s257_s7 = int_to_ptr.vmem [resolvable:$true] %s256_s7 }
 0x1d1   :  { %s291_s29 = sshll.u32 %s18209_s9, 4  ;;  %s292_s29 = int_to_ptr.vmem [resolvable:$true] %s291_s29 }
 0x1d4   :  { %s17804_s3 = scalar_lea.hbm %s20538_s14, 256 }
 0x1d5   :  { %p17805_p12 = scmp.ne.s32.totalorder %s20538_s14, %s17804_s3  ;;  %p17808_p13 = scmp.lt.u32.totalorder %s17804_s3, %s20538_s14 }
 0x1d7   :  { %p17810_p0 = pnand %p17808_p13, %p17805_p12 }
 0x1d9   :  { %17813 = shalt.err (!%p17810_p0)
}
 0x1da   :  { %s17814_s4 = scalar_lea.vmem %s257_s7, 256  ;;  %p17819_p2 = scmp.lt.s32.totalorder %s257_s7, %s257_s7 }
 0x1db   :  { %p17815_p1 = scmp.ne.s32.totalorder %s257_s7, %s17814_s4  ;;  %p17820_p3 = scmp.lt.s32.totalorder %s17814_s4, %s17814_s4 }
 0x1dd   :  { %p17821_p4 = por %p17820_p3, %p17819_p2 }
 0x1df   :  { %p17822_p5 = pnand %p17821_p4, %p17815_p1 }
 0x1e1   :  { %17825 = shalt.err (!%p17822_p5)
}
 0x1e2   :  { %s20539_s5 = sld [smem:[#allocation83_spill]] }
 0x1e3   :  { %262 = dma.hbm_to_vmem [thread:$0]  %s20538_s14, 256, %s257_s7, [#allocation14], %s18187_s18, %s18187_s18, %s18188_s22  }
 0x1e8   :  { %s17826_s10 = scalar_lea.hbm %s20539_s5, 64 }
 0x1e9   :  { %p17827_p6 = scmp.ne.s32.totalorder %s20539_s5, %s17826_s10  ;;  %p17830_p7 = scmp.lt.u32.totalorder %s17826_s10, %s20539_s5 }
 0x1eb   :  { %p17832_p8 = pnand %p17830_p7, %p17827_p6 }
 0x1ed   :  { %17835 = shalt.err (!%p17832_p8)
}
 0x1ee   :  { %s17836_s8 = scalar_lea.vmem %s292_s29, 64  ;;  %p17841_p10 = scmp.lt.s32.totalorder %s292_s29, %s292_s29 }
 0x1ef   :  { %p17837_p9 = scmp.ne.s32.totalorder %s292_s29, %s17836_s8  ;;  %p17842_p11 = scmp.lt.s32.totalorder %s17836_s8, %s17836_s8 }
 0x1f1   :  { %p17843_p12 = por %p17842_p11, %p17841_p10 }
 0x1f3   :  { %p17844_p13 = pnand %p17843_p12, %p17837_p9 }
 0x1f5   :  { %17847 = shalt.err (!%p17844_p13)
}
 0x1f6   :  { %s20540_s11 = sld [smem:[#allocation84_spill]]  ;;  %s18210_s15 = smov [#allocation21]  }
 0x1f7   :  { %294 = dma.hbm_to_vmem [thread:$0]  %s20539_s5, 64, %s292_s29, [#allocation17]  }
 0x1f8   :  { %s313_s16 = sshll.u32 %s18210_s15, 4  ;;  %s18211_s24 = smov [#allocation24]   ;;  %s314_s16 = int_to_ptr.vmem [resolvable:$true] %s313_s16 }
 0x1f9   :  { %s339_s13 = sshll.u32 %s18211_s24, 4  ;;  %s340_s13 = int_to_ptr.vmem [resolvable:$true] %s339_s13 }
 0x1fc   :  { %s17848_s20 = scalar_lea.hbm %s20540_s11, 64 }
 0x1fd   :  { %p17849_p0 = scmp.ne.s32.totalorder %s20540_s11, %s17848_s20  ;;  %p17852_p1 = scmp.lt.u32.totalorder %s17848_s20, %s20540_s11 }
 0x1ff   :  { %p17854_p2 = pnand %p17852_p1, %p17849_p0 }
 0x201   :  { %17857 = shalt.err (!%p17854_p2)
}
 0x202   :  { %s17858_s26 = scalar_lea.vmem %s314_s16, 64  ;;  %p17863_p4 = scmp.lt.s32.totalorder %s314_s16, %s314_s16 }
 0x203   :  { %p17859_p3 = scmp.ne.s32.totalorder %s314_s16, %s17858_s26  ;;  %p17864_p5 = scmp.lt.s32.totalorder %s17858_s26, %s17858_s26 }
 0x205   :  { %p17865_p6 = por %p17864_p5, %p17863_p4 }
 0x207   :  { %p17866_p7 = pnand %p17865_p6, %p17859_p3 }
 0x209   :  { %17869 = shalt.err (!%p17866_p7)
}
 0x20a   :  { %s20541_s12 = sld [smem:[#allocation88_spill]] }
 0x20b   :  { %316 = dma.hbm_to_vmem [thread:$0]  %s20540_s11, 64, %s314_s16, [#allocation20]  }
 0x210   :  { %s17870_s21 = scalar_lea.hbm %s20541_s12, 16 }
 0x211   :  { %p17871_p8 = scmp.ne.s32.totalorder %s20541_s12, %s17870_s21  ;;  %p17874_p9 = scmp.lt.u32.totalorder %s17870_s21, %s20541_s12 }
 0x213   :  { %p17876_p10 = pnand %p17874_p9, %p17871_p8 }
 0x215   :  { %17879 = shalt.err (!%p17876_p10)
}
 0x216   :  { %s17880_s19 = scalar_lea.vmem %s340_s13, 16  ;;  %s17884_s28 = scalar_lea.vmem %s340_s13, 32 }
 0x217   :  { %p17881_p11 = scmp.ne.s32.totalorder %s340_s13, %s17880_s19  ;;  %p17885_p12 = scmp.lt.s32.totalorder %s340_s13, %s340_s13 }
 0x218   :  { %p17886_p13 = scmp.lt.s32.totalorder %s17884_s28, %s17880_s19 }
 0x21a   :  { %p17887_p0 = por %p17886_p13, %p17885_p12 }
 0x21c   :  { %p17888_p1 = pnand %p17887_p0, %p17881_p11 }
 0x21e   :  { %17891 = shalt.err (!%p17888_p1)
}
 0x21f   :  { %s20542_s1 = sld [smem:[#allocation94_spill]]  ;;  %s18212_s2 = smov [#allocation27]  }
 0x220   :  { %342 = dma.hbm_to_vmem [thread:$0]  %s20541_s12, 16, %s340_s13, [#allocation23]  }
 0x221   :  { %s369_s0 = sshll.u32 %s18212_s2, 4  ;;  %s18213_s14 = smov [#allocation30]   ;;  %s370_s0 = int_to_ptr.vmem [resolvable:$true] %s369_s0 }
 0x222   :  { %s395_s30 = sshll.u32 %s18213_s14, 4  ;;  %s396_s30 = int_to_ptr.vmem [resolvable:$true] %s395_s30 }
 0x225   :  { %s17892_s7 = scalar_lea.hbm %s20542_s1, 16 }
 0x226   :  { %p17893_p2 = scmp.ne.s32.totalorder %s20542_s1, %s17892_s7  ;;  %p17896_p3 = scmp.lt.u32.totalorder %s17892_s7, %s20542_s1 }
 0x228   :  { %p17898_p4 = pnand %p17896_p3, %p17893_p2 }
 0x22a   :  { %17901 = shalt.err (!%p17898_p4)
}
 0x22b   :  { %s17902_s9 = scalar_lea.vmem %s370_s0, 16  ;;  %s17906_s29 = scalar_lea.vmem %s370_s0, 32 }
 0x22c   :  { %p17903_p5 = scmp.ne.s32.totalorder %s370_s0, %s17902_s9  ;;  %p17907_p6 = scmp.lt.s32.totalorder %s370_s0, %s370_s0 }
 0x22d   :  { %p17908_p7 = scmp.lt.s32.totalorder %s17906_s29, %s17902_s9 }
 0x22f   :  { %p17909_p8 = por %p17908_p7, %p17907_p6 }
 0x231   :  { %p17910_p9 = pnand %p17909_p8, %p17903_p5 }
 0x233   :  { %17913 = shalt.err (!%p17910_p9)
}
 0x234   :  { %s20543_s3 = sld [smem:[#allocation98_spill]] }
 0x235   :  { %372 = dma.hbm_to_vmem [thread:$0]  %s20542_s1, 16, %s370_s0, [#allocation26]  }
 0x23a   :  { %s17914_s4 = scalar_lea.hbm %s20543_s3, 16 }
 0x23b   :  { %p17915_p10 = scmp.ne.s32.totalorder %s20543_s3, %s17914_s4  ;;  %p17918_p11 = scmp.lt.u32.totalorder %s17914_s4, %s20543_s3 }
 0x23d   :  { %p17920_p12 = pnand %p17918_p11, %p17915_p10 }
 0x23f   :  { %17923 = shalt.err (!%p17920_p12)
}
 0x240   :  { %s17924_s5 = scalar_lea.vmem %s396_s30, 16  ;;  %s17928_s10 = scalar_lea.vmem %s396_s30, 32 }
 0x241   :  { %p17925_p13 = scmp.ne.s32.totalorder %s396_s30, %s17924_s5  ;;  %p17929_p0 = scmp.lt.s32.totalorder %s396_s30, %s396_s30 }
 0x242   :  { %p17930_p1 = scmp.lt.s32.totalorder %s17928_s10, %s17924_s5 }
 0x244   :  { %p17931_p2 = por %p17930_p1, %p17929_p0 }
 0x246   :  { %p17932_p3 = pnand %p17931_p2, %p17925_p13 }
 0x248   :  { %17935 = shalt.err (!%p17932_p3)
}
 0x249   :  { %s20544_s8 = sld [smem:[#allocation102_spill]]  ;;  %s18214_s11 = smov [#allocation33]  }
 0x24a   :  { %398 = dma.hbm_to_vmem [thread:$0]  %s20543_s3, 16, %s396_s30, [#allocation29]  }
 0x24b   :  { %s421_s15 = sshll.u32 %s18214_s11, 4  ;;  %s18215_s16 = smov [#allocation36]   ;;  %s422_s15 = int_to_ptr.vmem [resolvable:$true] %s421_s15 }
 0x24c   :  { %s444_s24 = sshll.u32 %s18215_s16, 4  ;;  %s445_s24 = int_to_ptr.vmem [resolvable:$true] %s444_s24 }
 0x24f   :  { %s17936_s13 = scalar_lea.hbm %s20544_s8, 16 }
 0x250   :  { %p17937_p4 = scmp.ne.s32.totalorder %s20544_s8, %s17936_s13  ;;  %p17940_p5 = scmp.lt.u32.totalorder %s17936_s13, %s20544_s8 }
 0x252   :  { %p17942_p6 = pnand %p17940_p5, %p17937_p4 }
 0x254   :  { %17945 = shalt.err (!%p17942_p6)
}
 0x255   :  { %s17946_s20 = scalar_lea.vmem %s422_s15, 16  ;;  %s17950_s26 = scalar_lea.vmem %s422_s15, 32 }
 0x256   :  { %p17947_p7 = scmp.ne.s32.totalorder %s422_s15, %s17946_s20  ;;  %p17951_p8 = scmp.lt.s32.totalorder %s422_s15, %s422_s15 }
 0x257   :  { %p17952_p9 = scmp.lt.s32.totalorder %s17950_s26, %s17946_s20 }
 0x259   :  { %p17953_p10 = por %p17952_p9, %p17951_p8 }
 0x25b   :  { %p17954_p11 = pnand %p17953_p10, %p17947_p7 }
 0x25d   :  { %17957 = shalt.err (!%p17954_p11)
}
 0x25e   :  { %s20545_s12 = sld [smem:[#allocation105_spill]] }
 0x25f   :  { %424 = dma.hbm_to_vmem [thread:$0]  %s20544_s8, 16, %s422_s15, [#allocation32]  }
 0x264   :  { %s17958_s21 = scalar_lea.hbm %s20545_s12, 512 }
 0x265   :  { %p17959_p12 = scmp.ne.s32.totalorder %s20545_s12, %s17958_s21  ;;  %p17962_p13 = scmp.lt.u32.totalorder %s17958_s21, %s20545_s12 }
 0x267   :  { %p17964_p0 = pnand %p17962_p13, %p17959_p12 }
 0x269   :  { %17967 = shalt.err (!%p17964_p0)
}
 0x26a   :  { %s17968_s19 = scalar_lea.vmem %s445_s24, 512  ;;  %p17973_p2 = scmp.lt.s32.totalorder %s445_s24, %s445_s24 }
 0x26b   :  { %p17969_p1 = scmp.ne.s32.totalorder %s445_s24, %s17968_s19  ;;  %p17974_p3 = scmp.lt.s32.totalorder %s17968_s19, %s17968_s19 }
 0x26d   :  { %p17975_p4 = por %p17974_p3, %p17973_p2 }
 0x26f   :  { %p17976_p5 = pnand %p17975_p4, %p17969_p1 }
 0x271   :  { %17979 = shalt.err (!%p17976_p5)
}
 0x272   :  { %s20546_s28 = sld [smem:[#allocation106_spill]]  ;;  %s18216_s1 = smov [#allocation39]  }
 0x273   :  { %450 = dma.hbm_to_vmem [thread:$0]  %s20545_s12, 512, %s445_s24, [#allocation35], %s18187_s18, %s18187_s18, %s18188_s22  }
 0x274   :  { %s466_s2 = sshll.u32 %s18216_s1, 4  ;;  %s18217_s0 = smov [#allocation42]   ;;  %s467_s2 = int_to_ptr.vmem [resolvable:$true] %s466_s2 }
 0x275   :  { %s488_s14 = sshll.u32 %s18217_s0, 4  ;;  %s489_s14 = int_to_ptr.vmem [resolvable:$true] %s488_s14 }
 0x278   :  { %s17980_s30 = scalar_lea.hbm %s20546_s28, 512 }
 0x279   :  { %p17981_p6 = scmp.ne.s32.totalorder %s20546_s28, %s17980_s30  ;;  %p17984_p7 = scmp.lt.u32.totalorder %s17980_s30, %s20546_s28 }
 0x27b   :  { %p17986_p8 = pnand %p17984_p7, %p17981_p6 }
 0x27d   :  { %17989 = shalt.err (!%p17986_p8)
}
 0x27e   :  { %s17990_s7 = scalar_lea.vmem %s467_s2, 512  ;;  %p17995_p10 = scmp.lt.s32.totalorder %s467_s2, %s467_s2 }
 0x27f   :  { %p17991_p9 = scmp.ne.s32.totalorder %s467_s2, %s17990_s7  ;;  %p17996_p11 = scmp.lt.s32.totalorder %s17990_s7, %s17990_s7 }
 0x281   :  { %p17997_p12 = por %p17996_p11, %p17995_p10 }
 0x283   :  { %p17998_p13 = pnand %p17997_p12, %p17991_p9 }
 0x285   :  { %18001 = shalt.err (!%p17998_p13)
}
 0x286   :  { %s20547_s9 = sld [smem:[#allocation107_spill]] }
 0x287   :  { %472 = dma.hbm_to_vmem [thread:$0]  %s20546_s28, 512, %s467_s2, [#allocation38], %s18187_s18, %s18187_s18, %s18188_s22  }
 0x28c   :  { %s18002_s29 = scalar_lea.hbm %s20547_s9, 512 }
 0x28d   :  { %p18003_p0 = scmp.ne.s32.totalorder %s20547_s9, %s18002_s29  ;;  %p18006_p1 = scmp.lt.u32.totalorder %s18002_s29, %s20547_s9 }
 0x28f   :  { %p18008_p2 = pnand %p18006_p1, %p18003_p0 }
 0x291   :  { %18011 = shalt.err (!%p18008_p2)
}
 0x292   :  { %s18012_s3 = scalar_lea.vmem %s489_s14, 512  ;;  %p18017_p4 = scmp.lt.s32.totalorder %s489_s14, %s489_s14 }
 0x293   :  { %p18013_p3 = scmp.ne.s32.totalorder %s489_s14, %s18012_s3  ;;  %p18018_p5 = scmp.lt.s32.totalorder %s18012_s3, %s18012_s3 }
 0x295   :  { %p18019_p6 = por %p18018_p5, %p18017_p4 }
 0x297   :  { %p18020_p7 = pnand %p18019_p6, %p18013_p3 }
 0x299   :  { %18023 = shalt.err (!%p18020_p7)
}
 0x29a   :  { %s20548_s4 = sld [smem:[#allocation108_spill]]  ;;  %s18218_s5 = smov [#allocation45]  }
 0x29b   :  { %494 = dma.hbm_to_vmem [thread:$0]  %s20547_s9, 512, %s489_s14, [#allocation41], %s18187_s18, %s18187_s18, %s18188_s22  }
 0x29c   :  { %s510_s10 = sshll.u32 %s18218_s5, 4  ;;  %s18219_s8 = smov [#allocation48]   ;;  %s511_s10 = int_to_ptr.vmem [resolvable:$true] %s510_s10 }
 0x29d   :  { %s537_s11 = sshll.u32 %s18219_s8, 4  ;;  %s538_s11 = int_to_ptr.vmem [resolvable:$true] %s537_s11 }
 0x2a0   :  { %s18024_s15 = scalar_lea.hbm %s20548_s4, 512 }
 0x2a1   :  { %p18025_p8 = scmp.ne.s32.totalorder %s20548_s4, %s18024_s15  ;;  %p18028_p9 = scmp.lt.u32.totalorder %s18024_s15, %s20548_s4 }
 0x2a3   :  { %p18030_p10 = pnand %p18028_p9, %p18025_p8 }
 0x2a5   :  { %18033 = shalt.err (!%p18030_p10)
}
 0x2a6   :  { %s18034_s16 = scalar_lea.vmem %s511_s10, 512  ;;  %p18039_p12 = scmp.lt.s32.totalorder %s511_s10, %s511_s10 }
 0x2a7   :  { %p18035_p11 = scmp.ne.s32.totalorder %s511_s10, %s18034_s16  ;;  %p18040_p13 = scmp.lt.s32.totalorder %s18034_s16, %s18034_s16 }
 0x2a9   :  { %p18041_p0 = por %p18040_p13, %p18039_p12 }
 0x2ab   :  { %p18042_p1 = pnand %p18041_p0, %p18035_p11 }
 0x2ad   :  { %18045 = shalt.err (!%p18042_p1)
}
 0x2ae   :  { %516 = dma.hbm_to_vmem [thread:$0]  %s20548_s4, 512, %s511_s10, [#allocation44], %s18187_s18, %s18187_s18, %s18188_s22  }
 0x2af   :  { %s18046_s24 = scalar_lea.hbm %s18529_s27, 16 }
 0x2b0   :  { %p18047_p2 = scmp.ne.s32.totalorder %s18529_s27, %s18046_s24  ;;  %p18050_p3 = scmp.lt.u32.totalorder %s18046_s24, %s18529_s27 }
 0x2b2   :  { %p18052_p4 = pnand %p18050_p3, %p18047_p2 }
 0x2b4   :  { %18055 = shalt.err (!%p18052_p4)
}
 0x2b5   :  { %s18056_s13 = scalar_lea.vmem %s538_s11, 16  ;;  %s18060_s20 = scalar_lea.vmem %s538_s11, 32 }
 0x2b6   :  { %p18057_p5 = scmp.ne.s32.totalorder %s538_s11, %s18056_s13  ;;  %p18061_p6 = scmp.lt.s32.totalorder %s538_s11, %s538_s11 }
 0x2b7   :  { %p18062_p7 = scmp.lt.s32.totalorder %s18060_s20, %s18056_s13 }
 0x2b9   :  { %p18063_p8 = por %p18062_p7, %p18061_p6 }
 0x2bb   :  { %p18064_p9 = pnand %p18063_p8, %p18057_p5 }
 0x2bd   :  { %18067 = shalt.err (!%p18064_p9)
}
 0x2be   :  { %540 = dma.hbm_to_vmem [thread:$0]  %s18529_s27, 16, %s538_s11, [#allocation47]  }
 0x2bf   :  { %s18220_s18 = smov [#allocation49]   ;;  %s18068_s26 = scalar_lea.hbm %s18539_s6, 16 }
 0x2c0   :  { %s549_s22 = sshll.u32 %s18220_s18, 4  ;;  %p18069_p10 = scmp.ne.s32.totalorder %s18539_s6, %s18068_s26  ;;  %s550_s22 = int_to_ptr.vmem [resolvable:$true] %s549_s22 }
 0x2c1   :  { %p18072_p11 = scmp.lt.u32.totalorder %s18068_s26, %s18539_s6 }
 0x2c3   :  { %p18074_p12 = pnand %p18072_p11, %p18069_p10 }
 0x2c5   :  { %18077 = shalt.err (!%p18074_p12)
}
 0x2c6   :  { %s18078_s12 = scalar_lea.vmem %s550_s22, 16  ;;  %s18082_s21 = scalar_lea.vmem %s550_s22, 32 }
 0x2c7   :  { %p18079_p13 = scmp.ne.s32.totalorder %s550_s22, %s18078_s12  ;;  %p18083_p0 = scmp.lt.s32.totalorder %s550_s22, %s550_s22 }
 0x2c8   :  { %p18084_p1 = scmp.lt.s32.totalorder %s18082_s21, %s18078_s12 }
 0x2ca   :  { %p18085_p2 = por %p18084_p1, %p18083_p0 }
 0x2cc   :  { %p18086_p3 = pnand %p18085_p2, %p18079_p13 }
 0x2ce   :  { %18089 = shalt.err (!%p18086_p3)
}
 0x2cf   :  { %552 = dma.hbm_to_vmem [thread:$0]  %s18539_s6, 16, %s550_s22, [#allocation50]  }
 0x2d0   :  { %18090 = dma.done.wait [#allocation3], 512  }
 0x2d1   :  { %18091 = vsyncadd [#allocation3], 4294966784 }
 0x2d2   :  { %18092 = dma.done.wait [#allocation5], 768  }
 0x2d3   :  { %18093 = vsyncadd [#allocation5], 4294966528 }
 0x2d4   :  { %18094 = dma.done.wait [#allocation8], 768  }
 0x2d5   :  { %18095 = vsyncadd [#allocation8], 4294966528 }
 0x2d6   :  { %18096 = dma.done.wait [#allocation11], 1024  }
 0x2d7   :  { %18097 = vsyncadd [#allocation11], 4294966272 }
 0x2d8   :  { %18098 = dma.done.wait [#allocation14], 768  }
 0x2d9   :  { %18099 = vsyncadd [#allocation14], 4294966528 }
 0x2da   :  { %18100 = dma.done.wait [#allocation17], 256  }
 0x2db   :  { %18101 = vsyncadd [#allocation17], 4294967040 }
 0x2dc   :  { %18102 = dma.done.wait [#allocation20], 256  }
 0x2dd   :  { %18103 = vsyncadd [#allocation20], 4294967040 }
 0x2de   :  { %18104 = dma.done.wait [#allocation23], 32  }
 0x2df   :  { %18105 = vsyncadd [#allocation23], 4294967264 }
 0x2e0   :  { %18106 = dma.done.wait [#allocation26], 32  }
 0x2e1   :  { %18107 = vsyncadd [#allocation26], 4294967264 }
 0x2e2   :  { %18108 = dma.done.wait [#allocation29], 32  }
 0x2e3   :  { %18109 = vsyncadd [#allocation29], 4294967264 }
 0x2e4   :  { %18110 = dma.done.wait [#allocation32], 32  }
 0x2e5   :  { %18111 = vsyncadd [#allocation32], 4294967264 }
 0x2e6   :  { %18112 = dma.done.wait [#allocation35], 528  }
 0x2e7   :  { %18113 = vsyncadd [#allocation35], 4294966768 }
 0x2e8   :  { %18114 = dma.done.wait [#allocation38], 528  }
 0x2e9   :  { %18115 = vsyncadd [#allocation38], 4294966768 }
 0x2ea   :  { %18116 = dma.done.wait [#allocation41], 528  }
 0x2eb   :  { %18117 = vsyncadd [#allocation41], 4294966768 }
 0x2ec   :  { %18118 = dma.done.wait [#allocation44], 528  }
 0x2ed   :  { %18119 = vsyncadd [#allocation44], 4294966768 }
 0x2ee   :  { %18120 = dma.done.wait [#allocation47], 32  }
 0x2ef   :  { %18121 = vsyncadd [#allocation47], 4294967264 }
 0x2f0   :  { %18122 = dma.done.wait [#allocation50], 16  }
 0x2f1   :  { %18123 = vsyncadd [#allocation50], 4294967280  ;;  %s20549_s6 = sld [smem:[#allocation68_spill]]  ;;  %vm675_vm0 = vcmask 261120   ;;  %v649_v5 = vld [vmem:[#allocation10] sm:$0xff]  ;;  %vm789_vm1 = vcmask 1043456  }
 0x2f2   :  { %14608 = vmatprep.mubr.msk.f32.mxu0 %vm675_vm0, %v649_v5  ;;  %v775_v7 = vld [vmem:[#allocation16 + $0x4] sm:$0xf]  ;;  %v650_v8 = vld [vmem:[#allocation10 + $0x8] sm:$0xff]  ;;  %v652_v10 = vld [vmem:[#allocation10 + $0x18] sm:$0xff]  ;;  %vm776_vm2 = vcmask 31744   ;;  %s20550_s27 = sld [smem:[#allocation85_spill]] }
 0x2f3   :  { %v651_v9 = vld [vmem:[#allocation10 + $0x10] sm:$0xff]  ;;  %v653_v11 = vld [vmem:[#allocation12] sm:$0xff]  ;;  %v654_v12 = vld [vmem:[#allocation12 + $0x8] sm:$0xff]  ;;  %s20551_s19 = sld [smem:[#allocation69_spill]]  ;;  %s20552_s28 = sld [smem:[#allocation86_spill]]  ;;  %vm1819_vm3 = vcmask 130048  }
 0x2f4   :  { %v655_v13 = vld [vmem:[#allocation12 + $0x10] sm:$0xff]  ;;  %v656_v14 = vld [vmem:[#allocation12 + $0x18] sm:$0xff]  ;;  %v667_v45 = vld [vmem:[#allocation2] sm:$0xff]  ;;  %s20553_s1 = sld [smem:[#allocation78_spill]]  ;;  %s18221_s2 = smov 96   ;;  %vm2259_vm4 = vcmask 261248  }
 0x2f5   :  { %v773_v15 = vld [vmem:[#allocation16] sm:$0xf]  ;;  %v1076_v16 = vld [vmem:[#allocation16 + $0x8] sm:$0xf]  ;;  %v1185_v22 = vld [vmem:[#allocation18] sm:$0xf] }
 0x2f6   :  { %14622 = vmatprep.subr.msk.mxu1 %vm789_vm1, %v773_v15  ;;  %v668_v47 = vld [vmem:[#allocation2 + $0x8] sm:$0xff]  ;;  %v669_v53 = vld [vmem:[#allocation2 + $0x10] sm:$0xff]  ;;  %v670_v55 = vld [vmem:[#allocation2 + $0x18] sm:$0xff]  ;;  %s18222_s0 = smov 112   ;;  %vm2696_vm6 = vcmask 392448   ;;  %s20556_s14 = sld [smem:[#allocation87_spill]] }
 0x2f7   :  { %v671_v0 = vld [vmem:[%s20549_s6] sm:$0xff]  ;;  %v672_v1 = vld [vmem:[%s20549_s6 + $0x8] sm:$0xff]  ;;  %v673_v2 = vld [vmem:[%s20549_s6 + $0x10] sm:$0xff]  ;;  %14623 = vmatpush3.msk.msra.mxu1 %vm789_vm1, %v773_v15  ;;  %s18223_s30 = smov 56   ;;  %s20557_s7 = sld [smem:[#allocation79_spill]]  ;;  %vm3133_vm7 = vcmask 523648  }
 0x2f8   :  { %v18734_v3 = vpack.c.bf16 %v672_v1, %v671_v0  ;;  %v674_v4 = vld [vmem:[%s20549_s6 + $0x18] sm:$0xff]  ;;  %14644 = vmatprep.subr.msk.mxu1 %vm789_vm1, %v1076_v16  ;;  %v1298_v17 = vld [vmem:[%s20550_s27] sm:$0xff]  ;;  %v1299_v18 = vld [vmem:[%s20550_s27 + $0x8] sm:$0xff]  ;;  %s18224_s9 = smov 48   ;;  %vm2151_vm8 = vcmask 64512   ;;  %s18225_s29 = smov 80  }
 0x2f9   :  { %v18737_v6 = vpack.c.bf16 %v674_v4, %v673_v2  ;;  %v15893_v19 = vpack.c.bf16 %v1299_v18, %v1298_v17  ;;  %v1181_v33 = vld [vmem:[%s20551_s19] sm:$0xff]  ;;  %v1182_v34 = vld [vmem:[%s20551_s19 + $0x8] sm:$0xff]  ;;  %v1183_v35 = vld [vmem:[%s20551_s19 + $0x10] sm:$0xff]  ;;  %s18226_s3 = smov 40   ;;  %s20558_s4 = sld [smem:[#allocation89_spill]]  ;;  %vm3820_vm9 = vcmask 523264  }
 0x2fa   :  { %15878 = vmatprep.subr.bf16.mxu0 %v18734_v3  ;;  %v1184_v36 = vld [vmem:[%s20551_s19 + $0x18] sm:$0xff]  ;;  %v1300_v37 = vld [vmem:[%s20550_s27 + $0x10] sm:$0xff]  ;;  %v1410_v40 = vld [vmem:[%s20552_s28] sm:$0xff]  ;;  %s20559_s5 = sld [smem:[#allocation90_spill]]  ;;  %s20560_s10 = sld [smem:[#allocation97_spill]] }
 0x2fb   :  { %15880 = vmatpush3.bf16.msra.mxu0 %v18734_v3  ;;  %v1301_v38 = vld [vmem:[%s20550_s27 + $0x18] sm:$0xff]  ;;  %v1411_v41 = vld [vmem:[%s20552_s28 + $0x8] sm:$0xff]  ;;  %v1412_v59 = vld [vmem:[%s20552_s28 + $0x10] sm:$0xff]  ;;  %s20561_s8 = sld [smem:[#allocation75_spill]]  ;;  %s20563_s15 = sld [smem:[#allocation92_spill]] }
 0x2fc   :  { %15882 = vmatprep.subr.bf16.mxu0 %v18737_v6  ;;  %v15897_v39 = vpack.c.bf16 %v1301_v38, %v1300_v37  ;;  %v15901_v42 = vpack.c.bf16 %v1411_v41, %v1410_v40  ;;  %v1413_v60 = vld [vmem:[%s20552_s28 + $0x18] sm:$0xff]  ;;  %v663_v62 = vld [vmem:[%s20553_s1] sm:$0xff]  ;;  %v664_v63 = vld [vmem:[%s20553_s1 + $0x8] sm:$0xff]  ;;  %s20562_s11 = sld [smem:[#allocation91_spill]]  ;;  %s20564_s16 = sld [smem:[#allocation93_spill]] }
 0x2fd   :  { %v15905_v61 = vpack.c.bf16 %v1413_v60, %v1412_v59  ;;  %vm18950_vm5 = vmpackc.low %vm1819_vm3, %vm1819_vm3  ;;  %s20565_s24 = sld [smem:[#allocation80_spill]]  ;;  %s20566_s13 = sld [smem:[#allocation95_spill]] }
 0x2fe   :  { %s20567_s20 = sld [smem:[#allocation96_spill]]  ;;  %s20568_s18 = sld [smem:[#allocation99_spill]]  ;;  %vm20058_vm14 = vmpackc.low %vm2151_vm8, %vm2151_vm8 }
 0x2ff   :  { %15884 = vmatpush3.bf16.msra.mxu0 %v18737_v6  ;;  %s20569_s22 = sld [smem:[#allocation100_spill]]  ;;  %s20571_s12 = sld [smem:[#allocation101_spill]] }
 0x300   :  { %14614 = vmatprep.subr.msk.mxu0 %vm789_vm1, %v775_v7  ;;  %s20570_s26 = sld [smem:[#allocation76_spill]]  ;;  %s20572_s21 = sld [smem:[#allocation70_spill]] }
 0x301   :  { %s20575_s27 = sld [smem:[#allocation81_spill]]  ;;  %s18227_s19 = smov 120  }
 0x302   :  { %14609 = vmatmul.mubr.msk.f32.vlgmr.msra.gmra.mrb[0].mxu0 %vm675_vm0, %v650_v8  ;;  %v665_v8 = vld [vmem:[%s20553_s1 + $0x10] sm:$0xff]  ;;  %s20578_s28 = sld [smem:[#allocation82_spill]] }
 0x303   :  { %14611 = vmatprep.mubr.msk.f32.mxu0 %vm675_vm0, %v651_v9  ;;  %14615 = vmatpush3.msk.msra.mxu0 %vm789_vm1, %v775_v7  ;;  %v666_v9 = vld [vmem:[%s20553_s1 + $0x18] sm:$0xff]  ;;  %s18228_s1 = smov 104  }
 0x304   :  { %15886 = vmatprep.subr.bf16.mxu0 %v18734_v3 }
 0x306   :  { %14612 = vmatmul.mubr.msk.f32.gmra.mrb[2].mxu0 %vm675_vm0, %v652_v10 }
 0x307   :  { %14616 = vmatprep.mubr.msk.f32.mxu0 %vm776_vm2, %v671_v0  ;;  %v18809_v0 = vpack.c.bf16 %v664_v63, %v663_v62 }
 0x30a   :  { %14617 = vmatmul.mubr.msk.f32.vlgmr.msra.gmra.mrb[4].mxu0 %vm776_vm2, %v672_v1  ;;  %v13405_v1 = vld [vmem:[#allocation22] ss:$0 sm:$0xff] }
 0x30b   :  { %15888 = vmatpush3.bf16.msra.mxu0 %v18734_v3  ;;  %14619 = vmatprep.mubr.msk.f32.mxu0 %vm776_vm2, %v673_v2 }
 0x30c   :  { %15890 = vmatprep.subr.bf16.mxu0 %v18737_v6 }
 0x30e   :  { %14620 = vmatmul.mubr.msk.f32.gmra.mrb[6].mxu0 %vm776_vm2, %v674_v4 }
 0x30f   :  { %15892 = vmatpush3.bf16.msra.mxu0 %v18737_v6  ;;  %14638 = vmatprep.mubr.msk.f32.mxu0 %vm675_vm0, %v653_v11 }
 0x310   :  { %15894 = vmatprep.subr.bf16.mxu0 %v15893_v19 }
 0x312   :  { %14639 = vmatmul.mubr.msk.f32.vlgmr.msra.gmra.mrb[8].mxu0 %vm675_vm0, %v654_v12 }
 0x313   :  { %14641 = vmatprep.mubr.msk.f32.mxu0 %vm675_vm0, %v655_v13  ;;  %15896 = vmatpush3.bf16.msra.mxu0 %v15893_v19 }
 0x314   :  { %15898 = vmatprep.subr.bf16.mxu0 %v15897_v39 }
 0x316   :  { %14642 = vmatmul.mubr.msk.f32.gmra.mrb[10].mxu0 %vm675_vm0, %v656_v14 }
 0x317   :  { %15900 = vmatpush3.bf16.msra.mxu0 %v15897_v39 }
 0x318   :  { %15902 = vmatprep.subr.bf16.mxu0 %v15901_v42 }
 0x3d5   :  { %v14610_v20 = vpop.f32.mrb[0].mxu0 }
 0x3d6   :  { %v754_v21 = vpop.f32.mrb[1].mxu0 }
 0x3d7   :  { %14624 = vmatprep.mubr.msk.f32.mxu1 %vm776_vm2, %v754_v21 }
 0x3d8   :  { %14625 = vmatmul.mubr.msk.f32.vlgmr.msra.gmra.mrb[0].mxu1 %vm776_vm2, %v14610_v20 }
 0x3d9   :  { %v14613_v23 = vpop.f32.mrb[2].mxu0  ;;  %14645 = vmatpush3.msk.msra.mxu1 %vm789_vm1, %v1076_v16  ;;  %v18817_v16 = vpack.c.bf16 %v666_v9, %v665_v8 }
 0x3da   :  { %v764_v24 = vpop.f32.mrb[3].mxu0  ;;  %14652 = vmatprep.subr.msk.mxu1 %vm789_vm1, %v1185_v22 }
 0x3db   :  { %14627 = vmatprep.mubr.msk.f32.mxu1 %vm776_vm2, %v764_v24 }
 0x3dc   :  { %14628 = vmatmul.mubr.msk.f32.gmra.mrb[2].mxu1 %vm776_vm2, %v14613_v23 }
 0x3dd   :  { %v14618_v25 = vpop.f32.mrb[4].mxu0 }
 0x3de   :  { %v859_v26 = vpop.f32.mrb[5].mxu0 }
 0x3e1   :  { %v14621_v27 = vpop.f32.mrb[6].mxu0 }
 0x3e2   :  { %v869_v28 = vpop.f32.mrb[7].mxu0 }
 0x3e5   :  { %v14640_v29 = vpop.f32.mrb[8].mxu0 }
 0x3e6   :  { %v1056_v30 = vpop.f32.mrb[9].mxu0 }
 0x3e7   :  { %14646 = vmatprep.mubr.msk.f32.mxu1 %vm776_vm2, %v1056_v30 }
 0x3e8   :  { %14647 = vmatmul.mubr.msk.f32.vlgmr.msra.gmra.mrb[0].mxu1 %vm776_vm2, %v14640_v29 }
 0x3e9   :  { %v14643_v31 = vpop.f32.mrb[10].mxu0  ;;  %14653 = vmatpush3.msk.msra.mxu1 %vm789_vm1, %v1185_v22 }
 0x3ea   :  { %v1066_v32 = vpop.f32.mrb[11].mxu0  ;;  %15910 = vmatprep.subr.bf16.mxu1 %v15901_v42 }
 0x3eb   :  { %14649 = vmatprep.mubr.msk.f32.mxu1 %vm776_vm2, %v1066_v32 }
 0x3ec   :  { %14650 = vmatmul.mubr.msk.f32.gmra.mrb[2].mxu1 %vm776_vm2, %v14643_v31 }
 0x3ed   :  { %14654 = vmatprep.mubr.msk.f32.mxu1 %vm776_vm2, %v1181_v33 }
 0x3f0   :  { %14655 = vmatmul.mubr.msk.f32.vlgmr.msra.gmra.mrb[0].mxu1 %vm776_vm2, %v1182_v34 }
 0x3f1   :  { %14657 = vmatprep.mubr.msk.f32.mxu1 %vm776_vm2, %v1183_v35  ;;  %15912 = vmatpush3.bf16.msra.mxu1 %v15901_v42 }
 0x3f2   :  { %15914 = vmatprep.subr.bf16.mxu1 %v15905_v61 }
 0x3f4   :  { %14658 = vmatmul.mubr.msk.f32.gmra.mrb[2].mxu1 %vm776_vm2, %v1184_v36 }
 0x3f5   :  { %15916 = vmatpush3.bf16.msra.mxu1 %v15905_v61 }
 0x3f6   :  { %15926 = vmatprep.subr.bf16.mxu1 %v18809_v0 }
 0x4c3   :  { %v14656_v43 = vpop.f32.mrb[0].mxu1 }
 0x4c4   :  { %v16569_v44 = vadd.f32 %v14656_v43, %v14618_v25  ;;  %v1267_v46 = vpop.f32.mrb[1].mxu1 }
 0x4c5   :  { %v16570_v48 = vadd.f32 %v1267_v46, %v859_v26 }
 0x4c6   :  { %v18791_v51 = vadd.f32 %v16569_v44, %v668_v47 }
 0x4c7   :  { %v18789_v49 = vadd.f32 %v16570_v48, %v667_v45  ;;  %v14659_v50 = vpop.f32.mrb[2].mxu1 }
 0x4c8   :  { %v16571_v52 = vadd.f32 %v14659_v50, %v14621_v27  ;;  %v1277_v54 = vpop.f32.mrb[3].mxu1 }
 0x4c9   :  { %v16572_v56 = vadd.f32 %v1277_v54, %v869_v28  ;;  %14668 = vmatprep.mubr.msk.f32.mxu0 %vm675_vm0, %v18789_v49 }
 0x4ca   :  { %14669 = vmatmul.mubr.msk.f32.vlgmr.msra.gmra.mrb[12].mxu0 %vm675_vm0, %v18791_v51  ;;  %v18799_v58 = vadd.f32 %v16571_v52, %v670_v55 }
 0x4cb   :  { %v18797_v57 = vadd.f32 %v16572_v56, %v669_v53  ;;  %15904 = vmatpush3.bf16.msra.mxu0 %v15901_v42 }
 0x4cc   :  { %15906 = vmatprep.subr.bf16.mxu0 %v15905_v61 }
 0x4cd   :  { %14671 = vmatprep.mubr.msk.f32.mxu0 %vm675_vm0, %v18797_v57 }
 0x4ce   :  { %14672 = vmatmul.mubr.msk.f32.gmra.mrb[14].mxu0 %vm675_vm0, %v18799_v58 }
 0x4cf   :  { %15908 = vmatpush3.bf16.msra.mxu0 %v15905_v61 }
 0x4d0   :  { %15918 = vmatprep.subr.bf16.mxu0 %v18809_v0 }
 0x59d   :  { %v14670_v2 = vpop.f32.mrb[12].mxu0 }
 0x59e   :  { %v1393_v4 = vadd.f32 %v14670_v2, %v13405_v1  ;;  %v1387_v5 = vpop.f32.mrb[13].mxu0 }
 0x59f   :  { %v1388_v7 = vadd.f32 %v13405_v1, %v1387_v5 }
 0x5a0   :  { %v1407_v13 = vmul.f32 0.59460354, %v1393_v4 }
 0x5a1   :  { %v14673_v10 = vpop.f32.mrb[14].mxu0  ;;  %v1406_v11 = vmul.f32 0.59460354, %v1388_v7  ;;  %v18815_v12 = vpack.i.bf16 %v1393_v4, %v1388_v7 }
 0x5a2   :  { %v1403_v14 = vadd.f32 %v14673_v10, %v13405_v1  ;;  %v1397_v15 = vpop.f32.mrb[15].mxu0  ;;  %v1613_v22 = vmul.f32 %v1407_v13, %v1407_v13 }
 0x5a3   :  { %v1398_v17 = vadd.f32 %v13405_v1, %v1397_v15  ;;  %1511 = vrot.lane.b32.xlu0 %v1406_v11, %s18221_s2  ;;  %14682 = vmatprep.mubr.msk.f32.mxu0 %vm675_vm0, %v1406_v11  ;;  %v1612_v21 = vmul.f32 %v1406_v11, %v1406_v11 }
 0x5a4   :  { %14683 = vmatmul.mubr.msk.f32.vlgmr.msra.gmra.mrb[16].mxu0 %vm675_vm0, %v1407_v13  ;;  %v1409_v20 = vmul.f32 0.59460354, %v1403_v14 }
 0x5a5   :  { %15920 = vmatpush3.bf16.msra.mxu0 %v18809_v0  ;;  %v1408_v18 = vmul.f32 0.59460354, %v1398_v17  ;;  %v18823_v19 = vpack.i.bf16 %v1403_v14, %v1398_v17 }
 0x5a6   :  { %15922 = vmatprep.subr.bf16.mxu0 %v18817_v16  ;;  %v1615_v24 = vmul.f32 %v1409_v20, %v1409_v20 }
 0x5a7   :  { %1513 = vrot.lane.b32.xlu0 %v1407_v13, %s18221_s2  ;;  %1515 = vrot.lane.b32.xlu1 %v1408_v18, %s18221_s2  ;;  %v1614_v23 = vmul.f32 %v1408_v18, %v1408_v18 }
 0x5a8   :  { %14685 = vmatprep.mubr.msk.f32.mxu0 %vm675_vm0, %v1408_v18 }
 0x5a9   :  { %14686 = vmatmul.mubr.msk.f32.gmra.mrb[18].mxu0 %vm675_vm0, %v1409_v20 }
 0x5aa   :  { %15924 = vmatpush3.bf16.msra.mxu0 %v18817_v16  ;;  %14710 = vmatprep.mubr.msk.f32.mxu0 %vm675_vm0, %v1612_v21 }
 0x5ab   :  { %1713 = vrot.lane.b32.xlu0 %v1612_v21, %s18221_s2  ;;  %1517 = vrot.lane.b32.xlu1 %v1409_v20, %s18221_s2 }
 0x5ad   :  { %14711 = vmatmul.mubr.msk.f32.vlgmr.msra.gmra.mrb[20].mxu0 %vm675_vm0, %v1613_v22 }
 0x5ae   :  { %14713 = vmatprep.mubr.msk.f32.mxu0 %vm675_vm0, %v1614_v23 }
 0x5af   :  { %1715 = vrot.lane.b32.xlu1 %v1613_v22, %s18221_s2  ;;  %1717 = vrot.lane.b32.xlu0 %v1614_v23, %s18221_s2 }
 0x5b1   :  { %14714 = vmatmul.mubr.msk.f32.gmra.mrb[22].mxu0 %vm675_vm0, %v1615_v24 }
 0x5b3   :  { %1719 = vrot.lane.b32.xlu1 %v1615_v24, %s18221_s2 }
 0x615   :  { %v1512_v25 = vpop.permute.xlu0 %1511 }
 0x616   :  { %14696 = vmatprep.mubr.msk.f32.mxu1 %vm675_vm0, %v1512_v25 }
 0x619   :  { %v1514_v26 = vpop.permute.xlu0 %1513  ;;  %v1516_v27 = vpop.permute.xlu1 %1515 }
 0x61a   :  { %14697 = vmatmul.mubr.msk.f32.vlgmr.msra.gmra.mrb[4].mxu1 %vm675_vm0, %v1514_v26 }
 0x61b   :  { %14699 = vmatprep.mubr.msk.f32.mxu1 %vm675_vm0, %v1516_v27  ;;  %15928 = vmatpush3.bf16.msra.mxu1 %v18809_v0 }
 0x61c   :  { %15930 = vmatprep.subr.bf16.mxu1 %v18817_v16 }
 0x61d   :  { %v1714_v28 = vpop.permute.xlu0 %1713  ;;  %v1518_v29 = vpop.permute.xlu1 %1517 }
 0x61e   :  { %14700 = vmatmul.mubr.msk.f32.gmra.mrb[6].mxu1 %vm675_vm0, %v1518_v29 }
 0x61f   :  { %15932 = vmatpush3.bf16.msra.mxu1 %v18817_v16  ;;  %14724 = vmatprep.mubr.msk.f32.mxu1 %vm675_vm0, %v1714_v28 }
 0x621   :  { %v1716_v30 = vpop.permute.xlu1 %1715  ;;  %v1718_v31 = vpop.permute.xlu0 %1717 }
 0x622   :  { %14725 = vmatmul.mubr.msk.f32.vlgmr.msra.gmra.mrb[8].mxu1 %vm675_vm0, %v1716_v30 }
 0x623   :  { %14727 = vmatprep.mubr.msk.f32.mxu1 %vm675_vm0, %v1718_v31 }
 0x625   :  { %v1720_v32 = vpop.permute.xlu1 %1719 }
 0x626   :  { %14728 = vmatmul.mubr.msk.f32.gmra.mrb[10].mxu1 %vm675_vm0, %v1720_v32 }
 0x677   :  { %v18851_v33 = vpop.f32.mrb[16].mxu0 }
 0x678   :  { %v18853_v34 = vpop.f32.mrb[17].mxu0  ;;  %v1823_v7 = vsel %vm1819_vm3, %v18851_v33, -inf  ;;  %v2263_v15 = vsel %vm2259_vm4, %v18851_v33, -inf }
 0x679   :  { %v1820_v53 = vsel %vm1819_vm3, %v18853_v34, -inf  ;;  %v2260_v10 = vsel %vm2259_vm4, %v18853_v34, -inf }
 0x67c   :  { %v18855_v35 = vpop.f32.mrb[18].mxu0 }
 0x67d   :  { %v18857_v36 = vpop.f32.mrb[19].mxu0  ;;  %v1829_v9 = vsel %vm1819_vm3, %v18855_v35, -inf  ;;  %v2269_v17 = vsel %vm2259_vm4, %v18855_v35, -inf }
 0x67e   :  { %v1826_v60 = vsel %vm1819_vm3, %v18857_v36, -inf  ;;  %v2266_v13 = vsel %vm2259_vm4, %v18857_v36, -inf }
 0x680   :  { %v14712_v37 = vpop.f32.mrb[20].mxu0 }
 0x681   :  { %v18860_v38 = vsub.f32 %v18851_v33, %v14712_v37  ;;  %v1694_v39 = vpop.f32.mrb[21].mxu0 }
 0x682   :  { %v18863_v40 = vsub.f32 %v18853_v34, %v1694_v39 }
 0x684   :  { %v14715_v41 = vpop.f32.mrb[22].mxu0 }
 0x685   :  { %v18866_v42 = vsub.f32 %v18855_v35, %v14715_v41  ;;  %v1704_v43 = vpop.f32.mrb[23].mxu0 }
 0x686   :  { %v18869_v44 = vsub.f32 %v18857_v36, %v1704_v43 }
 0x6ed   :  { %v18871_v45 = vpop.f32.mrb[4].mxu1 }
 0x6ee   :  { %v18873_v46 = vpop.f32.mrb[5].mxu1  ;;  %v1835_v47 = vsel %vm1819_vm3, %v18871_v45, -inf  ;;  %v2275_v11 = vsel %vm2259_vm4, %v18871_v45, -inf }
 0x6ef   :  { %1836 = vmax.xlane.f32.xlu1 %v1835_v47  ;;  %v1832_v48 = vsel %vm1819_vm3, %v18873_v46, -inf  ;;  %v2272_v4 = vsel %vm2259_vm4, %v18873_v46, -inf }
 0x6f0   :  { %1833 = vmax.xlane.f32.xlu0 %v1832_v48 }
 0x6f1   :  { %v18879_v50 = vpop.f32.mrb[6].mxu1 }
 0x6f2   :  { %v18881_v52 = vpop.f32.mrb[7].mxu1  ;;  %v1841_v62 = vsel %vm1819_vm3, %v18879_v50, -inf  ;;  %v2281_v14 = vsel %vm2259_vm4, %v18879_v50, -inf }
 0x6f3   :  { %1821 = vmax.xlane.f32.xlu1 %v1820_v53  ;;  %v1838_v54 = vsel %vm1819_vm3, %v18881_v52, -inf  ;;  %v2278_v8 = vsel %vm2259_vm4, %v18881_v52, -inf }
 0x6f4   :  { %1839 = vmax.xlane.f32.xlu0 %v1838_v54 }
 0x6f5   :  { %v14726_v55 = vpop.f32.mrb[8].mxu1 }
 0x6f6   :  { %v18888_v56 = vsub.f32 %v18871_v45, %v14726_v55  ;;  %v1795_v59 = vpop.f32.mrb[9].mxu1 }
 0x6f7   :  { %v18893_v61 = vsub.f32 %v18873_v46, %v1795_v59  ;;  %1827 = vmax.xlane.f32.xlu1 %v1826_v60 }
 0x6f8   :  { %1842 = vmax.xlane.f32.xlu0 %v1841_v62 }
 0x6f9   :  { %v14729_v63 = vpop.f32.mrb[10].mxu1 }
 0x6fa   :  { %v18898_v1 = vsub.f32 %v18879_v50, %v14729_v63  ;;  %v1805_v2 = vpop.f32.mrb[11].mxu1 }
 0x6fb   :  { %v18903_v5 = vsub.f32 %v18881_v52, %v1805_v2  ;;  %2273 = vmax.xlane.f32.xlu1 %v2272_v4 }
 0x6fc   :  { %1824 = vmax.xlane.f32.xlu0 %v1823_v7 }
 0x6ff   :  { %2279 = vmax.xlane.f32.xlu1 %v2278_v8 }
 0x700   :  { %1830 = vmax.xlane.f32.xlu0 %v1829_v9 }
 0x703   :  { %2261 = vmax.xlane.f32.xlu1 %v2260_v10 }
 0x704   :  { %2276 = vmax.xlane.f32.xlu0 %v2275_v11 }
 0x707   :  { %2267 = vmax.xlane.f32.xlu1 %v2266_v13 }
 0x708   :  { %2282 = vmax.xlane.f32.xlu0 %v2281_v14 }
 0x70c   :  { %2264 = vmax.xlane.f32.xlu0 %v2263_v15 }
 0x710   :  { %2270 = vmax.xlane.f32.xlu0 %v2269_v17 }
 0x718   :  { %16789 = vrot.lane.b32.xlu1 %v18815_v12, %s18192_s23 }
 0x71c   :  { %16799 = vrot.lane.b32.xlu1 %v18823_v19, %s18192_s23 }
 0x77c   :  { %v1837_v18 = vpop.xlane.xlu1 %1836 }
 0x77d   :  { %v1834_v20 = vpop.xlane.xlu0 %1833 }
 0x77e   :  { %v1844_v27 = vmax.f32 %v1834_v20, %v1837_v18 }
 0x780   :  { %v1822_v21 = vpop.xlane.xlu1 %1821 }
 0x781   :  { %v1857_v22 = vsub.f32 %v18863_v40, %v1822_v21  ;;  %v1840_v23 = vpop.xlane.xlu0 %1839 }
 0x783   :  { %v1861_v24 = vmul.f32 1.442695, %v1857_v22 }
 0x784   :  { %v1828_v25 = vpop.xlane.xlu1 %1827 }
 0x785   :  { %16998 = vpow2.f32 %v1861_v24  ;;  %v1843_v26 = vpop.xlane.xlu0 %1842 }
 0x786   :  { %v1845_v28 = vmax.f32 %v1840_v23, %v1843_v26  ;;  %v1859_v26 = vsub.f32 %v18869_v44, %v1828_v25 }
 0x788   :  { %v1846_v29 = vmax.f32 %v1844_v27, %v1845_v28  ;;  %v2274_v30 = vpop.xlane.xlu1 %2273 }
 0x789   :  { %v1825_v31 = vpop.xlane.xlu0 %1824 }
 0x78a   :  { %v1847_v32 = vrot.slane %v1846_v29, 4 }
 0x78c   :  { %v1848_v37 = vmax.f32 %v1846_v29, %v1847_v32  ;;  %v2280_v39 = vpop.xlane.xlu1 %2279  ;;  %v1858_v29 = vsub.f32 %v18860_v38, %v1825_v31 }
 0x78d   :  { %v1831_v41 = vpop.xlane.xlu0 %1830 }
 0x78e   :  { %v1849_v43 = vrot.slane %v1848_v37, 2  ;;  %v1863_v25 = vmul.f32 1.442695, %v1858_v29 }
 0x78f   :  { %v16999_v47 = vpop.eup %16998 }
 0x790   :  { %v1869_v48 = vadd.f32 0.0001, %v16999_v47  ;;  %v1850_v53 = vmax.f32 %v1848_v37, %v1849_v43  ;;  %v18928_v54 = vpop.xlane.xlu1 %2261  ;;  %v1860_v43 = vsub.f32 %v18866_v42, %v1831_v41 }
 0x791   :  { %v2277_v55 = vpop.xlane.xlu0 %2276 }
 0x792   :  { %v1873_v59 = vmul.f32 0.25, %v1869_v48  ;;  %v1851_v60 = vrot.slane %v1850_v53, 1  ;;  %v2284_v4 = vmax.f32 %v2274_v30, %v2277_v55  ;;  %v1865_v48 = vmul.f32 1.442695, %v1859_v26 }
 0x794   :  { %v1852_v62 = vmax.f32 %v1850_v53, %v1851_v60  ;;  %v18930_v63 = vpop.xlane.xlu1 %2267  ;;  %14738 = vmatprep.mubr.msk.f32.mxu0 %vm1819_vm3, %v1873_v59  ;;  %v1867_v60 = vmul.f32 1.442695, %v1860_v43 }
 0x795   :  { %v2283_v2 = vpop.xlane.xlu0 %2282 }
 0x796   :  { %v2285_v7 = vmax.f32 %v2280_v39, %v2283_v2  ;;  %v1881_v8 = vsub.f32 %v18893_v61, %v1852_v62  ;;  %v1882_v9 = vsub.f32 %v18888_v56, %v1852_v62  ;;  %v1883_v10 = vsub.f32 %v18903_v5, %v1852_v62 }
 0x797   :  { %v1884_v11 = vsub.f32 %v18898_v1, %v1852_v62 }
 0x798   :  { %v2286_v13 = vmax.f32 %v2284_v4, %v2285_v7  ;;  %v16790_v14 = vpop.permute.xlu1 %16789  ;;  %v1885_v15 = vmul.f32 1.442695, %v1881_v8  ;;  %v1887_v17 = vmul.f32 1.442695, %v1882_v9  ;;  %v1889_v22 = vmul.f32 1.442695, %v1883_v10 }
 0x799   :  { %v16792_v18 = vunpack.i.h.bf16 %v16790_v14  ;;  %v16791_v20 = vunpack.i.l.bf16 %v16790_v14  ;;  %v1891_v24 = vmul.f32 1.442695, %v1884_v11  ;;  %v2265_v30 = vpop.xlane.xlu0 %2264  ;;  %v2293_v7 = vsub.f32 %v18863_v40, %v18928_v54 }
 0x79a   :  { %v2287_v21 = vrot.slane %v2286_v13, 4  ;;  %17000 = vpow2.f32 %v1885_v15  ;;  %v2294_v55 = vsub.f32 %v18860_v38, %v2265_v30 }
 0x79b   :  { %v15945_v23 = vpack.c.bf16 %v16792_v18, %v16791_v20  ;;  %17002 = vpow2.f32 %v1887_v17 }
 0x79c   :  { %v2288_v27 = vmax.f32 %v2286_v13, %v2287_v21  ;;  %v16800_v28 = vpop.permute.xlu1 %16799  ;;  %17004 = vpow2.f32 %v1889_v22  ;;  %v2299_v2 = vmul.f32 1.442695, %v2294_v55 }
 0x79d   :  { %v16802_v32 = vunpack.i.h.bf16 %v16800_v28  ;;  %v16801_v37 = vunpack.i.l.bf16 %v16800_v28  ;;  %15946 = vmatprep.subr.bf16.mxu1 %v15945_v23  ;;  %17006 = vpow2.f32 %v1891_v24  ;;  %v2271_v9 = vpop.xlane.xlu0 %2270 }
 0x79e   :  { %v2289_v39 = vrot.slane %v2288_v27, 2  ;;  %15948 = vmatpush3.bf16.msra.mxu1 %v15945_v23  ;;  %17008 = vpow2.f32 %v1865_v48  ;;  %v2296_v23 = vsub.f32 %v18866_v42, %v2271_v9 }
 0x79f   :  { %v15949_v47 = vpack.c.bf16 %v16802_v32, %v16801_v37  ;;  %17010 = vpow2.f32 %v1863_v25  ;;  %v2297_v37 = vmul.f32 1.442695, %v2293_v7 }
 0x7a0   :  { %v2290_v53 = vmax.f32 %v2288_v27, %v2289_v39  ;;  %17012 = vpow2.f32 %v1867_v60  ;;  %v2295_v39 = vsub.f32 %v18869_v44, %v18930_v63 }
 0x7a1   :  { %15950 = vmatprep.subr.bf16.mxu1 %v15949_v47  ;;  %17014 = vpow2.f32 %v2299_v2 }
 0x7a2   :  { %v2291_v59 = vrot.slane %v2290_v53, 1  ;;  %15952 = vmatpush3.bf16.msra.mxu1 %v15949_v47  ;;  %v2303_v47 = vmul.f32 1.442695, %v2296_v23  ;;  %v2301_v55 = vmul.f32 1.442695, %v2295_v39 }
 0x7a4   :  { %v17001_v31 = vpop.eup %17000  ;;  %v2292_v62 = vmax.f32 %v2290_v53, %v2291_v59 }
 0x7a5   :  { %v17003_v4 = vpop.eup %17002  ;;  %v1893_v41 = vadd.f32 0.0001, %v17001_v31 }
 0x7a6   :  { %v17005_v8 = vpop.eup %17004  ;;  %v1894_v10 = vadd.f32 0.0001, %v17003_v4  ;;  %v2315_v11 = vsub.f32 %v18903_v5, %v2292_v62  ;;  %v2316_v13 = vsub.f32 %v18898_v1, %v2292_v62  ;;  %v2313_v14 = vsub.f32 %v18893_v61, %v2292_v62 }
 0x7a7   :  { %v17007_v15 = vpop.eup %17006  ;;  %v1897_v17 = vmul.f32 0.25, %v1893_v41  ;;  %v1895_v18 = vadd.f32 0.0001, %v17005_v8  ;;  %v2314_v20 = vsub.f32 %v18888_v56, %v2292_v62 }
 0x7a8   :  { %v1898_v21 = vmul.f32 0.25, %v1894_v10  ;;  %v1896_v22 = vadd.f32 0.0001, %v17007_v15  ;;  %v2321_v54 = vmul.f32 1.442695, %v2315_v11  ;;  %v17009_v48 = vpop.eup %17008 }
 0x7a9   :  { %v1899_v26 = vmul.f32 0.25, %v1895_v18  ;;  %v2323_v27 = vmul.f32 1.442695, %v2316_v13  ;;  %v2317_v28 = vmul.f32 1.442695, %v2313_v14  ;;  %v17011_v53 = vpop.eup %17010 }
 0x7aa   :  { %v15933_v29 = vpack.c.bf16 %v1898_v21, %v1897_v17  ;;  %v1900_v30 = vmul.f32 0.25, %v1896_v22  ;;  %17016 = vpow2.f32 %v2321_v54  ;;  %v2319_v32 = vmul.f32 1.442695, %v2314_v20  ;;  %v17013_v25 = vpop.eup %17012 }
 0x7ab   :  { %17018 = vpow2.f32 %v2323_v27  ;;  %v17015_v63 = vpop.eup %17014  ;;  %v1870_v31 = vadd.f32 0.0001, %v17011_v53  ;;  %v1871_v41 = vadd.f32 0.0001, %v17009_v48  ;;  %v1872_v17 = vadd.f32 0.0001, %v17013_v25 }
 0x7ac   :  { %15935 = vmatprep.subr.msk.bf16.mxu0 %vm18950_vm5, %v15933_v29  ;;  %v15939_v43 = vpack.c.bf16 %v1900_v30, %v1899_v26  ;;  %17020 = vpow2.f32 %v2317_v28  ;;  %v2306_v21 = vadd.f32 0.0001, %v17015_v63  ;;  %v2712_v48 = vsel %vm2696_vm6, %v18871_v45, -inf }
 0x7ad   :  { %15938 = vmatpush3.bf16.xpose.msk.msra.mxu0 %vm18950_vm5, %v15933_v29  ;;  %17022 = vpow2.f32 %v2319_v32  ;;  %v1874_v14 = vmul.f32 0.25, %v1870_v31  ;;  %v1875_v54 = vmul.f32 0.25, %v1871_v41  ;;  %v1876_v28 = vmul.f32 0.25, %v1872_v17  ;;  %v18992_v31 = vld [vmem:[%s20556_s14] sm:$0xff] }
 0x7ae   :  { %15941 = vmatprep.subr.msk.bf16.mxu0 %vm18950_vm5, %v15939_v43  ;;  %17024 = vpow2.f32 %v2297_v37  ;;  %v2310_v29 = vmul.f32 0.25, %v2306_v21  ;;  %v2715_v53 = vsel %vm2696_vm6, %v18881_v52, -inf  ;;  %v2718_v25 = vsel %vm2696_vm6, %v18879_v50, -inf  ;;  %14758 = vmatprep.subr.mxu1 %v18992_v31 }
 0x7af   :  { %17026 = vpow2.f32 %v2303_v47  ;;  %v2709_v47 = vsel %vm2696_vm6, %v18873_v46, -inf  ;;  %v2703_v63 = vsel %vm2696_vm6, %v18857_v36, -inf }
 0x7b0   :  { %17028 = vpow2.f32 %v2301_v55  ;;  %v2697_v55 = vsel %vm2696_vm6, %v18853_v34, -inf }
 0x7b4   :  { %v17017_v59 = vpop.eup %17016 }
 0x7b5   :  { %v17019_v60 = vpop.eup %17018  ;;  %15944 = vmatpush3.bf16.xpose.msk.msra.mxu0 %vm18950_vm5, %v15939_v43  ;;  %v2327_v62 = vadd.f32 0.0001, %v17017_v59  ;;  %v2700_v59 = vsel %vm2696_vm6, %v18851_v33, -inf }
 0x7b6   :  { %v17021_v2 = vpop.eup %17020  ;;  %v2328_v4 = vadd.f32 0.0001, %v17019_v60  ;;  %v2706_v60 = vsel %vm2696_vm6, %v18855_v35, -inf }
 0x7b7   :  { %v17023_v7 = vpop.eup %17022  ;;  %v2331_v8 = vmul.f32 0.25, %v2327_v62  ;;  %v2325_v9 = vadd.f32 0.0001, %v17021_v2 }
 0x7b8   :  { %v2332_v10 = vmul.f32 0.25, %v2328_v4  ;;  %v2326_v11 = vadd.f32 0.0001, %v17023_v7  ;;  %v17025_v13 = vpop.eup %17024 }
 0x7b9   :  { %v2329_v15 = vmul.f32 0.25, %v2325_v9  ;;  %v17027_v22 = vpop.eup %17026  ;;  %v2305_v26 = vadd.f32 0.0001, %v17025_v13 }
 0x7ba   :  { %v16803_v18 = vpack.i.bf16 %v2332_v10, %v2331_v8  ;;  %v2330_v20 = vmul.f32 0.25, %v2326_v11  ;;  %v17029_v27 = vpop.eup %17028  ;;  %v2308_v30 = vadd.f32 0.0001, %v17027_v22 }
 0x7bb   :  { %v2309_v32 = vmul.f32 0.25, %v2305_v26  ;;  %v2307_v37 = vadd.f32 0.0001, %v17029_v27 }
 0x7bc   :  { %16804 = vrot.lane.b32.xlu1 %v16803_v18, %s18222_s0  ;;  %v16793_v23 = vpack.i.bf16 %v2330_v20, %v2329_v15  ;;  %14739 = vmatmul.mubr.msk.f32.vlgmr.msra.gmra.mrb[24].mxu0 %vm1819_vm3, %v1874_v14  ;;  %v2312_v39 = vmul.f32 0.25, %v2308_v30 }
 0x7bd   :  { %14741 = vmatprep.mubr.msk.f32.mxu0 %vm1819_vm3, %v1875_v54  ;;  %v2311_v43 = vmul.f32 0.25, %v2307_v37 }
 0x7be   :  { %16794 = vrot.lane.b32.xlu0 %v16793_v23, %s18222_s0 }
 0x7c0   :  { %2339 = vrot.lane.b32.xlu1 %v2310_v29, %s18222_s0  ;;  %14742 = vmatmul.mubr.msk.f32.gmra.mrb[26].mxu0 %vm1819_vm3, %v1876_v28 }
 0x7c2   :  { %2337 = vrot.lane.b32.xlu0 %v2309_v32, %s18222_s0 }
 0x7c4   :  { %2343 = vrot.lane.b32.xlu1 %v2312_v39, %s18222_s0 }
 0x7c6   :  { %2341 = vrot.lane.b32.xlu0 %v2311_v43, %s18222_s0 }
 0x7e5   :  { %2710 = vmax.xlane.f32.xlu0 %v2709_v47  ;;  %v19008_v47 = vld [vmem:[%s20557_s7 + $0x8] sm:$0xff] }
 0x7e8   :  { %2713 = vmax.xlane.f32.xlu1 %v2712_v48 }
 0x7e9   :  { %2716 = vmax.xlane.f32.xlu0 %v2715_v53  ;;  %v19012_v53 = vld [vmem:[%s20557_s7] sm:$0xff] }
 0x7ec   :  { %2698 = vmax.xlane.f32.xlu1 %v2697_v55 }
 0x7ed   :  { %2719 = vmax.xlane.f32.xlu0 %v2718_v25 }
 0x7f0   :  { %2704 = vmax.xlane.f32.xlu1 %v2703_v63 }
 0x7f1   :  { %2701 = vmax.xlane.f32.xlu0 %v2700_v59 }
 0x7f5   :  { %2707 = vmax.xlane.f32.xlu0 %v2706_v60 }
 0x801   :  { %16809 = vrot.lane.b32.xlu1 %v18815_v12, %s18223_s30 }
 0x82e   :  { %v16805_v62 = vpop.permute.xlu1 %16804 }
 0x82f   :  { %v16807_v41 = vunpack.i.h.bf16 %v16805_v62  ;;  %v16806_v8 = vunpack.i.l.bf16 %v16805_v62 }
 0x830   :  { %v16795_v2 = vpop.permute.xlu0 %16794 }
 0x831   :  { %v16797_v4 = vunpack.i.h.bf16 %v16795_v2  ;;  %v16796_v7 = vunpack.i.l.bf16 %v16795_v2  ;;  %v15959_v11 = vpack.c.bf16 %v16807_v41, %v16806_v8  ;;  %v19022_v8 = vld [vmem:[%s20557_s7 + $0x10] sm:$0xff] }
 0x832   :  { %v2340_v13 = vpop.permute.xlu1 %2339 }
 0x833   :  { %v15953_v9 = vpack.c.bf16 %v16797_v4, %v16796_v7  ;;  %v19018_v4 = vld [vmem:[%s20557_s7 + $0x18] sm:$0xff] }
 0x834   :  { %v2338_v10 = vpop.permute.xlu0 %2337 }
 0x835   :  { %15955 = vmatprep.subr.msk.bf16.mxu0 %vm18950_vm5, %v15953_v9  ;;  %14774 = vmatprep.mubr.msk.f32.mxu0 %vm1819_vm3, %v2338_v10 }
 0x836   :  { %15958 = vmatpush3.bf16.xpose.msk.msra.mxu0 %vm18950_vm5, %v15953_v9  ;;  %v2344_v15 = vpop.permute.xlu1 %2343 }
 0x837   :  { %15961 = vmatprep.subr.msk.bf16.mxu0 %vm18950_vm5, %v15959_v11 }
 0x838   :  { %v2342_v14 = vpop.permute.xlu0 %2341 }
 0x83e   :  { %15964 = vmatpush3.bf16.xpose.msk.msra.mxu0 %vm18950_vm5, %v15959_v11 }
 0x845   :  { %14775 = vmatmul.mubr.msk.f32.vlgmr.msra.gmra.mrb[28].mxu0 %vm1819_vm3, %v2340_v13 }
 0x846   :  { %14777 = vmatprep.mubr.msk.f32.mxu0 %vm1819_vm3, %v2342_v14 }
 0x849   :  { %14778 = vmatmul.mubr.msk.f32.gmra.mrb[30].mxu0 %vm1819_vm3, %v2344_v15 }
 0x872   :  { %v2711_v17 = vpop.xlane.xlu0 %2710 }
 0x875   :  { %v2714_v20 = vpop.xlane.xlu1 %2713 }
 0x876   :  { %v2717_v18 = vpop.xlane.xlu0 %2716  ;;  %v2721_v22 = vmax.f32 %v2711_v17, %v2714_v20 }
 0x879   :  { %v2699_v28 = vpop.xlane.xlu1 %2698 }
 0x87a   :  { %v2720_v21 = vpop.xlane.xlu0 %2719 }
 0x87b   :  { %v2722_v54 = vmax.f32 %v2717_v18, %v2720_v21  ;;  %v2730_v18 = vsub.f32 %v18863_v40, %v2699_v28 }
 0x87d   :  { %v2723_v23 = vmax.f32 %v2721_v22, %v2722_v54  ;;  %v2705_v37 = vpop.xlane.xlu1 %2704  ;;  %v2734_v21 = vmul.f32 1.442695, %v2730_v18 }
 0x87e   :  { %v2732_v22 = vsub.f32 %v18869_v44, %v2705_v37 }
 0x87f   :  { %v2724_v26 = vrot.slane %v2723_v23, 4 }
 0x880   :  { %v2738_v54 = vmul.f32 1.442695, %v2732_v22 }
 0x881   :  { %v2725_v27 = vmax.f32 %v2723_v23, %v2724_v26  ;;  %v16810_v43 = vpop.permute.xlu1 %16809 }
 0x882   :  { %v16812_v63 = vunpack.i.h.bf16 %v16810_v43  ;;  %v16811_v59 = vunpack.i.l.bf16 %v16810_v43 }
 0x883   :  { %v2726_v29 = vrot.slane %v2725_v27, 2 }
 0x884   :  { %v19028_v15 = vpack.c.bf16 %v16812_v63, %v16811_v59 }
 0x885   :  { %v2727_v30 = vmax.f32 %v2725_v27, %v2726_v29 }
 0x887   :  { %v2728_v32 = vrot.slane %v2727_v30, 1 }
 0x889   :  { %v2729_v39 = vmax.f32 %v2727_v30, %v2728_v32 }
 0x88b   :  { %v2750_v48 = vsub.f32 %v18893_v61, %v2729_v39  ;;  %v2751_v55 = vsub.f32 %v18888_v56, %v2729_v39  ;;  %v2752_v63 = vsub.f32 %v18903_v5, %v2729_v39  ;;  %v2753_v59 = vsub.f32 %v18898_v1, %v2729_v39 }
 0x88d   :  { %v2754_v7 = vmul.f32 1.442695, %v2750_v48  ;;  %v2756_v9 = vmul.f32 1.442695, %v2751_v55 }
 0x88f   :  { %v14740_v25 = vpop.f32.mrb[24].mxu0  ;;  %17030 = vpow2.f32 %v2754_v7 }
 0x890   :  { %v2011_v60 = vmul.f32 %v14740_v25, %v19008_v47  ;;  %v1991_v62 = vpop.f32.mrb[25].mxu0  ;;  %17032 = vpow2.f32 %v2756_v9 }
 0x891   :  { %v2010_v2 = vmul.f32 %v1991_v62, %v19012_v53  ;;  %17034 = vpow2.f32 %v2734_v21  ;;  %v2758_v62 = vmul.f32 1.442695, %v2752_v63  ;;  %v3146_v21 = vsel %vm3133_vm7, %v18873_v46, -inf }
 0x892   :  { %v2130_v41 = vsel %vm675_vm0, %v2011_v60, 0.0  ;;  %17036 = vpow2.f32 %v2738_v54  ;;  %v3137_v46 = vsel %vm3133_vm7, %v18851_v33, -inf }
 0x893   :  { %14752 = vmatprep.mubr.msk.f32.mxu1 %vm675_vm0, %v2010_v2  ;;  %2131 = vadd.xlane.f32.xlu0 %v2130_v41  ;;  %v14743_v10 = vpop.f32.mrb[26].mxu0  ;;  %v2127_v11 = vsel %vm675_vm0, %v2010_v2, 0.0  ;;  %v2760_v2 = vmul.f32 1.442695, %v2753_v59  ;;  %17038 = vpow2.f32 %v2758_v62 }
 0x894   :  { %v2013_v13 = vmul.f32 %v14743_v10, %v19018_v4  ;;  %2128 = vadd.xlane.f32.xlu1 %v2127_v11  ;;  %v2001_v14 = vpop.f32.mrb[27].mxu0  ;;  %14753 = vmatmul.mubr.msk.f32.vlgmr.msra.gmra.mrb[12].mxu1 %vm675_vm0, %v2011_v60  ;;  %v2702_v60 = vpop.xlane.xlu0 %2701 }
 0x895   :  { %v2012_v17 = vmul.f32 %v2001_v14, %v19022_v8  ;;  %14759 = vmatpush3.msra.mxu1 %v18992_v31  ;;  %v2731_v7 = vsub.f32 %v18860_v38, %v2702_v60  ;;  %17040 = vpow2.f32 %v2760_v2 }
 0x896   :  { %15966 = vmatprep.subr.bf16.mxu1 %v19028_v15  ;;  %v2136_v20 = vsel %vm675_vm0, %v2013_v13, 0.0 }
 0x897   :  { %2137 = vadd.xlane.f32.xlu0 %v2136_v20  ;;  %14755 = vmatprep.mubr.msk.f32.mxu1 %vm675_vm0, %v2012_v17  ;;  %v2736_v9 = vmul.f32 1.442695, %v2731_v7  ;;  %v2133_v11 = vsel %vm675_vm0, %v2012_v17, 0.0 }
 0x898   :  { %14756 = vmatmul.mubr.msk.f32.gmra.mrb[14].mxu1 %vm675_vm0, %v2013_v13  ;;  %v2708_v41 = vpop.xlane.xlu0 %2707 }
 0x899   :  { %v17031_v23 = vpop.eup %17030  ;;  %v2733_v10 = vsub.f32 %v18866_v42, %v2708_v41  ;;  %17042 = vpow2.f32 %v2736_v9 }
 0x89a   :  { %v17033_v31 = vpop.eup %17032  ;;  %v2762_v26 = vadd.f32 0.0001, %v17031_v23 }
 0x89b   :  { %v2763_v27 = vadd.f32 0.0001, %v17033_v31  ;;  %v17035_v30 = vpop.eup %17034  ;;  %v2740_v13 = vmul.f32 1.442695, %v2733_v10  ;;  %v3152_v31 = vsel %vm3133_vm7, %v18881_v52, -inf  ;;  %v3143_v52 = vsel %vm3133_vm7, %v18855_v35, -inf }
 0x89c   :  { %v2766_v28 = vmul.f32 0.25, %v2762_v26  ;;  %v2742_v43 = vadd.f32 0.0001, %v17035_v30  ;;  %v17037_v48 = vpop.eup %17036 }
 0x89d   :  { %v2767_v29 = vmul.f32 0.25, %v2763_v27  ;;  %v2744_v37 = vadd.f32 0.0001, %v17037_v48  ;;  %v17039_v14 = vpop.eup %17038  ;;  %17044 = vpow2.f32 %v2740_v13  ;;  %v3140_v48 = vsel %vm3133_vm7, %v18857_v36, -inf }
 0x89e   :  { %v2746_v55 = vmul.f32 0.25, %v2742_v43  ;;  %v2764_v39 = vadd.f32 0.0001, %v17039_v14  ;;  %v3149_v43 = vsel %vm3133_vm7, %v18871_v45, -inf }
 0x89f   :  { %v16813_v32 = vpack.i.bf16 %v2767_v29, %v2766_v28  ;;  %v2748_v25 = vmul.f32 0.25, %v2744_v37  ;;  %v17041_v18 = vpop.eup %17040  ;;  %v3155_v28 = vsel %vm3133_vm7, %v18879_v50, -inf  ;;  %v3134_v50 = vsel %vm3133_vm7, %v18853_v34, -inf }
 0x8a0   :  { %v2765_v20 = vadd.f32 0.0001, %v17041_v18  ;;  %v2768_v22 = vmul.f32 0.25, %v2764_v39 }
 0x8a2   :  { %v2769_v54 = vmul.f32 0.25, %v2765_v20 }
 0x8a3   :  { %v17043_v23 = vpop.eup %17042 }
 0x8a4   :  { %v16823_v17 = vpack.i.bf16 %v2769_v54, %v2768_v22  ;;  %v2743_v26 = vadd.f32 0.0001, %v17043_v23 }
 0x8a5   :  { %16819 = vrot.lane.b32.xlu1 %v18823_v19, %s18223_s30 }
 0x8a6   :  { %v2747_v29 = vmul.f32 0.25, %v2743_v26 }
 0x8a7   :  { %v17045_v27 = vpop.eup %17044 }
 0x8a8   :  { %v2745_v30 = vadd.f32 0.0001, %v17045_v27 }
 0x8ad   :  { %16814 = vrot.lane.b32.xlu0 %v16813_v32, %s18221_s2  ;;  %v2749_v32 = vmul.f32 0.25, %v2745_v30 }
 0x8b1   :  { %2774 = vrot.lane.b32.xlu0 %v2746_v55, %s18221_s2 }
 0x8b5   :  { %2778 = vrot.lane.b32.xlu0 %v2748_v25, %s18221_s2 }
 0x8c9   :  { %2134 = vadd.xlane.f32.xlu1 %v2133_v11 }
 0x8d4   :  { %3147 = vmax.xlane.f32.xlu0 %v3146_v21 }
 0x8d8   :  { %3153 = vmax.xlane.f32.xlu0 %v3152_v31 }
 0x8da   :  { %16824 = vrot.lane.b32.xlu1 %v16823_v17, %s18221_s2 }
 0x8dc   :  { %3156 = vmax.xlane.f32.xlu0 %v3155_v28 }
 0x8de   :  { %2776 = vrot.lane.b32.xlu1 %v2747_v29, %s18221_s2 }
 0x8e0   :  { %3138 = vmax.xlane.f32.xlu0 %v3137_v46 }
 0x8e2   :  { %2780 = vrot.lane.b32.xlu1 %v2749_v32, %s18221_s2 }
 0x8e4   :  { %3144 = vmax.xlane.f32.xlu0 %v3143_v52 }
 0x906   :  { %3150 = vmax.xlane.f32.xlu1 %v3149_v43 }
 0x90a   :  { %3135 = vmax.xlane.f32.xlu1 %v3134_v50 }
 0x90e   :  { %3141 = vmax.xlane.f32.xlu1 %v3140_v48 }
 0x918   :  { %v14776_v33 = vpop.f32.mrb[28].mxu0 }
 0x919   :  { %v19068_v55 = vmul.f32 %v14776_v33, %v19008_v47  ;;  %v2439_v37 = vpop.f32.mrb[29].mxu0 }
 0x91a   :  { %v2458_v9 = vmul.f32 %v2439_v37, %v19012_v53 }
 0x91b   :  { %v2574_v35 = vsel %vm675_vm0, %v19068_v55, 0.0 }
 0x91c   :  { %2575 = vadd.xlane.f32.xlu0 %v2574_v35  ;;  %v14779_v25 = vpop.f32.mrb[30].mxu0  ;;  %v2571_v10 = vsel %vm675_vm0, %v2458_v9, 0.0 }
 0x91d   :  { %v19073_v45 = vmul.f32 %v14779_v25, %v19018_v4  ;;  %v19075_v63 = vpop.f32.mrb[31].mxu0 }
 0x91f   :  { %v2580_v34 = vsel %vm675_vm0, %v19073_v45, 0.0  ;;  %16829 = vrot.lane.b32.xlu1 %v18815_v12, %s18224_s9 }
 0x920   :  { %2581 = vadd.xlane.f32.xlu0 %v2580_v34  ;;  %v2132_v36 = vpop.xlane.xlu0 %2131 }
 0x921   :  { %v2129_v11 = vpop.xlane.xlu1 %2128  ;;  %v2140_v20 = vadd.f32 1e-06, %v2132_v36 }
 0x922   :  { %v2139_v18 = vadd.f32 1e-06, %v2129_v11 }
 0x924   :  { %v2138_v59 = vpop.xlane.xlu0 %2137  ;;  %17046 = vrcp.f32 %v2139_v18 }
 0x925   :  { %v16820_v13 = vpop.permute.xlu1 %16819  ;;  %17048 = vrcp.f32 %v2140_v20  ;;  %v2142_v31 = vadd.f32 1e-06, %v2138_v59  ;;  %v1815_v59 = vld [vmem:[%s20556_s14 + $0x8] sm:$0xff] }
 0x926   :  { %v16822_v29 = vunpack.i.h.bf16 %v16820_v13  ;;  %v16821_v30 = vunpack.i.l.bf16 %v16820_v13 }
 0x928   :  { %v16815_v60 = vpop.permute.xlu0 %16814  ;;  %v15969_v35 = vpack.c.bf16 %v16822_v29, %v16821_v30 }
 0x929   :  { %v16817_v62 = vunpack.i.h.bf16 %v16815_v60  ;;  %v16816_v2 = vunpack.i.l.bf16 %v16815_v60  ;;  %v2460_v60 = vmul.f32 %v19075_v63, %v19022_v8 }
 0x92b   :  { %v15973_v7 = vpack.c.bf16 %v16817_v62, %v16816_v2 }
 0x92c   :  { %v2775_v41 = vpop.permute.xlu0 %2774 }
 0x92d   :  { %15975 = vmatprep.subr.msk.bf16.mxu0 %vm18950_vm5, %v15973_v7  ;;  %14810 = vmatprep.mubr.msk.f32.mxu0 %vm1819_vm3, %v2775_v41 }
 0x92e   :  { %15978 = vmatpush3.bf16.xpose.msk.msra.mxu0 %vm18950_vm5, %v15973_v7  ;;  %v17047_v28 = vpop.eup %17046 }
 0x92f   :  { %v17049_v32 = vpop.eup %17048 }
 0x930   :  { %v2779_v26 = vpop.permute.xlu0 %2778 }
 0x943   :  { %2572 = vadd.xlane.f32.xlu1 %v2571_v10 }
 0x954   :  { %16839 = vrot.lane.b32.xlu1 %v18823_v19, %s18224_s9 }
 0x956   :  { %v2135_v14 = vpop.xlane.xlu1 %2134 }
 0x957   :  { %v2141_v23 = vadd.f32 1e-06, %v2135_v14 }
 0x959   :  { %17050 = vrcp.f32 %v2141_v23 }
 0x95a   :  { %v16825_v39 = vpop.permute.xlu1 %16824  ;;  %17052 = vrcp.f32 %v2142_v31 }
 0x95b   :  { %v16827_v21 = vunpack.i.h.bf16 %v16825_v39  ;;  %v16826_v22 = vunpack.i.l.bf16 %v16825_v39 }
 0x95d   :  { %v15979_v54 = vpack.c.bf16 %v16827_v21, %v16826_v22 }
 0x95e   :  { %v2777_v17 = vpop.permute.xlu1 %2776 }
 0x95f   :  { %15981 = vmatprep.subr.msk.bf16.mxu0 %vm18950_vm5, %v15979_v54 }
 0x960   :  { %15984 = vmatpush3.bf16.xpose.msk.msra.mxu0 %vm18950_vm5, %v15979_v54 }
 0x961   :  { %v3148_v62 = vpop.xlane.xlu0 %3147 }
 0x962   :  { %v2781_v43 = vpop.permute.xlu1 %2780 }
 0x963   :  { %v17051_v33 = vpop.eup %17050 }
 0x964   :  { %v17053_v25 = vpop.eup %17052 }
 0x965   :  { %v3154_v2 = vpop.xlane.xlu0 %3153 }
 0x967   :  { %v14754_v27 = vpop.f32.mrb[12].mxu1  ;;  %14811 = vmatmul.mubr.msk.f32.vlgmr.msra.gmra.mrb[32].mxu0 %vm1819_vm3, %v2777_v17 }
 0x968   :  { %v2108_v46 = vpop.f32.mrb[13].mxu1  ;;  %14813 = vmatprep.mubr.msk.f32.mxu0 %vm1819_vm3, %v2779_v26  ;;  %v2146_v50 = vmul.f32 %v17049_v32, %v14754_v27 }
 0x969   :  { %v2144_v52 = vmul.f32 %v17047_v28, %v2108_v46  ;;  %v3157_v7 = vpop.xlane.xlu0 %3156 }
 0x96b   :  { %v14757_v48 = vpop.f32.mrb[14].mxu1  ;;  %14760 = vmatprep.mubr.msk.f32.mxu1 %vm2151_vm8, %v2144_v52  ;;  %14814 = vmatmul.mubr.msk.f32.gmra.mrb[34].mxu0 %vm1819_vm3, %v2781_v43 }
 0x96c   :  { %v2118_v37 = vpop.f32.mrb[15].mxu1  ;;  %14761 = vmatmul.mubr.msk.f32.vlgmr.msra.gmra.mrb[16].mxu1 %vm2151_vm8, %v2146_v50  ;;  %v2150_v36 = vmul.f32 %v17053_v25, %v14757_v48 }
 0x96d   :  { %v2148_v34 = vmul.f32 %v17051_v33, %v2118_v37  ;;  %15968 = vmatpush3.bf16.msra.mxu1 %v19028_v15  ;;  %v2577_v15 = vsel %vm675_vm0, %v2460_v60, 0.0  ;;  %v3139_v18 = vpop.xlane.xlu0 %3138 }
 0x96e   :  { %15970 = vmatprep.subr.bf16.mxu1 %v15969_v35  ;;  %v3168_v21 = vsub.f32 %v18860_v38, %v3139_v18 }
 0x96f   :  { %14763 = vmatprep.mubr.msk.f32.mxu1 %vm2151_vm8, %v2148_v34 }
 0x970   :  { %14764 = vmatmul.mubr.msk.f32.gmra.mrb[18].mxu1 %vm2151_vm8, %v2150_v36  ;;  %v3173_v26 = vmul.f32 1.442695, %v3168_v21 }
 0x971   :  { %15972 = vmatpush3.bf16.msra.mxu1 %v15969_v35  ;;  %14788 = vmatprep.mubr.msk.f32.mxu1 %vm675_vm0, %v2458_v9  ;;  %v3159_v9 = vmax.f32 %v3154_v2, %v3157_v7  ;;  %v3145_v27 = vpop.xlane.xlu0 %3144 }
 0x972   :  { %14794 = vmatprep.subr.mxu1 %v1815_v59  ;;  %17054 = vpow2.f32 %v3173_v26  ;;  %v3170_v50 = vsub.f32 %v18866_v42, %v3145_v27 }
 0x974   :  { %14789 = vmatmul.mubr.msk.f32.vlgmr.msra.gmra.mrb[20].mxu1 %vm675_vm0, %v19068_v55 }
 0x975   :  { %14791 = vmatprep.mubr.msk.f32.mxu1 %vm675_vm0, %v2460_v60  ;;  %14795 = vmatpush3.msra.mxu1 %v1815_v59 }
 0x978   :  { %2578 = vadd.xlane.f32.xlu1 %v2577_v15  ;;  %14792 = vmatmul.mubr.msk.f32.gmra.mrb[22].mxu1 %vm675_vm0, %v19073_v45 }
 0x993   :  { %v3151_v41 = vpop.xlane.xlu1 %3150 }
 0x994   :  { %v3158_v10 = vmax.f32 %v3148_v62, %v3151_v41 }
 0x996   :  { %v3160_v11 = vmax.f32 %v3158_v10, %v3159_v9 }
 0x997   :  { %v3136_v63 = vpop.xlane.xlu1 %3135 }
 0x998   :  { %v3161_v13 = vrot.slane %v3160_v11, 4  ;;  %v3167_v38 = vsub.f32 %v18863_v40, %v3136_v63 }
 0x99a   :  { %v3162_v14 = vmax.f32 %v3160_v11, %v3161_v13  ;;  %v3171_v33 = vmul.f32 1.442695, %v3167_v38 }
 0x99b   :  { %v3142_v55 = vpop.xlane.xlu1 %3141 }
 0x99c   :  { %v3163_v39 = vrot.slane %v3162_v14, 2  ;;  %v3169_v37 = vsub.f32 %v18869_v44, %v3142_v55 }
 0x99e   :  { %v3164_v20 = vmax.f32 %v3162_v14, %v3163_v39 }
 0x99f   :  { %v16830_v22 = vpop.permute.xlu1 %16829 }
 0x9a0   :  { %v3165_v54 = vrot.slane %v3164_v20, 1  ;;  %v16832_v23 = vunpack.i.h.bf16 %v16830_v22  ;;  %v16831_v45 = vunpack.i.l.bf16 %v16830_v22 }
 0x9a2   :  { %v3166_v31 = vmax.f32 %v3164_v20, %v3165_v54  ;;  %v19113_v17 = vpack.c.bf16 %v16832_v23, %v16831_v45 }
 0x9a4   :  { %15986 = vmatprep.subr.bf16.mxu1 %v19113_v17  ;;  %v3189_v28 = vsub.f32 %v18903_v5, %v3166_v31  ;;  %v3190_v29 = vsub.f32 %v18898_v1, %v3166_v31  ;;  %v3187_v30 = vsub.f32 %v18893_v61, %v3166_v31  ;;  %v3188_v46 = vsub.f32 %v18888_v56, %v3166_v31  ;;  %v17055_v56 = vpop.eup %17054 }
 0x9a5   :  { %v3177_v1 = vmul.f32 1.442695, %v3170_v50  ;;  %v3175_v61 = vmul.f32 1.442695, %v3169_v37  ;;  %v3180_v41 = vadd.f32 0.0001, %v17055_v56 }
 0x9a6   :  { %v3195_v32 = vmul.f32 1.442695, %v3189_v28  ;;  %v3197_v52 = vmul.f32 1.442695, %v3190_v29  ;;  %v3191_v43 = vmul.f32 1.442695, %v3187_v30 }
 0x9a7   :  { %v3193_v48 = vmul.f32 1.442695, %v3188_v46  ;;  %v3184_v13 = vmul.f32 0.25, %v3180_v41 }
 0x9a8   :  { %17056 = vpow2.f32 %v3195_v32 }
 0x9a9   :  { %17058 = vpow2.f32 %v3197_v52  ;;  %v2576_v22 = vpop.xlane.xlu0 %2575 }
 0x9aa   :  { %17060 = vpow2.f32 %v3191_v43  ;;  %v2584_v50 = vadd.f32 1e-06, %v2576_v22 }
 0x9ab   :  { %17062 = vpow2.f32 %v3193_v48 }
 0x9ac   :  { %17064 = vpow2.f32 %v3171_v33 }
 0x9ad   :  { %17066 = vpow2.f32 %v3177_v1  ;;  %v2582_v45 = vpop.xlane.xlu0 %2581 }
 0x9ae   :  { %17068 = vpow2.f32 %v3175_v61 }
 0x9b2   :  { %v17057_v40 = vpop.eup %17056 }
 0x9b3   :  { %v17059_v5 = vpop.eup %17058  ;;  %v3201_v35 = vadd.f32 0.0001, %v17057_v40 }
 0x9b4   :  { %v17061_v25 = vpop.eup %17060  ;;  %v3202_v34 = vadd.f32 0.0001, %v17059_v5  ;;  %v2586_v5 = vadd.f32 1e-06, %v2582_v45 }
 0x9b5   :  { %v17063_v42 = vpop.eup %17062  ;;  %v3205_v36 = vmul.f32 0.25, %v3201_v35  ;;  %v3199_v59 = vadd.f32 0.0001, %v17061_v25 }
 0x9b6   :  { %v3206_v60 = vmul.f32 0.25, %v3202_v34  ;;  %v3200_v15 = vadd.f32 0.0001, %v17063_v42  ;;  %v17065_v44 = vpop.eup %17064 }
 0x9b7   :  { %v3203_v62 = vmul.f32 0.25, %v3199_v59  ;;  %v17067_v9 = vpop.eup %17066  ;;  %v3179_v11 = vadd.f32 0.0001, %v17065_v44 }
 0x9b8   :  { %v16843_v2 = vpack.i.bf16 %v3206_v60, %v3205_v36  ;;  %v3204_v7 = vmul.f32 0.25, %v3200_v15  ;;  %v17069_v63 = vpop.eup %17068  ;;  %v3182_v14 = vadd.f32 0.0001, %v17067_v9 }
 0x9b9   :  { %v3183_v55 = vmul.f32 0.25, %v3179_v11  ;;  %v3181_v18 = vadd.f32 0.0001, %v17069_v63 }
 0x9ba   :  { %16844 = vrot.lane.b32.xlu1 %v16843_v2, %s18225_s29  ;;  %v16833_v10 = vpack.i.bf16 %v3204_v7, %v3203_v62  ;;  %v3186_v39 = vmul.f32 0.25, %v3182_v14 }
 0x9bb   :  { %v3185_v20 = vmul.f32 0.25, %v3181_v18 }
 0x9bc   :  { %16834 = vrot.lane.b32.xlu0 %v16833_v10, %s18225_s29 }
 0x9be   :  { %3213 = vrot.lane.b32.xlu1 %v3184_v13, %s18225_s29 }
 0x9c0   :  { %3211 = vrot.lane.b32.xlu0 %v3183_v55, %s18225_s29 }
 0x9c2   :  { %3217 = vrot.lane.b32.xlu1 %v3186_v39, %s18225_s29 }
 0x9c4   :  { %3215 = vrot.lane.b32.xlu0 %v3185_v20, %s18225_s29 }
 0x9d0   :  { %v2573_v21 = vpop.xlane.xlu1 %2572 }
 0x9d1   :  { %v2583_v52 = vadd.f32 1e-06, %v2573_v21  ;;  %v1816_v21 = vld [vmem:[%s20556_s14 + $0x10] sm:$0xff] }
 0x9d3   :  { %17070 = vrcp.f32 %v2583_v52 }
 0x9d4   :  { %v16840_v54 = vpop.permute.xlu1 %16839  ;;  %17072 = vrcp.f32 %v2584_v50 }
 0x9d5   :  { %v16842_v2 = vunpack.i.h.bf16 %v16840_v54  ;;  %v16841_v7 = vunpack.i.l.bf16 %v16840_v54 }
 0x9d7   :  { %v15989_v55 = vpack.c.bf16 %v16842_v2, %v16841_v7 }
 0x9dd   :  { %v17071_v62 = vpop.eup %17070 }
 0x9de   :  { %v17073_v9 = vpop.eup %17072 }
 0xa05   :  { %v2579_v23 = vpop.xlane.xlu1 %2578 }
 0xa06   :  { %v2585_v61 = vadd.f32 1e-06, %v2579_v23 }
 0xa08   :  { %17074 = vrcp.f32 %v2585_v61 }
 0xa09   :  { %17076 = vrcp.f32 %v2586_v5 }
 0xa12   :  { %v17075_v13 = vpop.eup %17074 }
 0xa13   :  { %v17077_v18 = vpop.eup %17076 }
 0xa2c   :  { %v16845_v31 = vpop.permute.xlu1 %16844 }
 0xa2d   :  { %v16847_v29 = vunpack.i.h.bf16 %v16845_v31  ;;  %v16846_v30 = vunpack.i.l.bf16 %v16845_v31 }
 0xa2e   :  { %v16835_v26 = vpop.permute.xlu0 %16834 }
 0xa2f   :  { %v16837_v27 = vunpack.i.h.bf16 %v16835_v26  ;;  %v16836_v28 = vunpack.i.l.bf16 %v16835_v26  ;;  %v15999_v32 = vpack.c.bf16 %v16847_v29, %v16846_v30 }
 0xa30   :  { %v3214_v34 = vpop.permute.xlu1 %3213 }
 0xa31   :  { %v15993_v46 = vpack.c.bf16 %v16837_v27, %v16836_v28 }
 0xa32   :  { %v3212_v38 = vpop.permute.xlu0 %3211 }
 0xa33   :  { %15995 = vmatprep.subr.msk.bf16.mxu0 %vm18950_vm5, %v15993_v46  ;;  %14846 = vmatprep.mubr.msk.f32.mxu0 %vm1819_vm3, %v3212_v38 }
 0xa34   :  { %15998 = vmatpush3.bf16.xpose.msk.msra.mxu0 %vm18950_vm5, %v15993_v46  ;;  %v3218_v60 = vpop.permute.xlu1 %3217 }
 0xa35   :  { %16001 = vmatprep.subr.msk.bf16.mxu0 %vm18950_vm5, %v15999_v32 }
 0xa36   :  { %v3216_v59 = vpop.permute.xlu0 %3215 }
 0xa3a   :  { %v14812_v43 = vpop.f32.mrb[32].mxu0 }
 0xa3b   :  { %v2896_v48 = vmul.f32 %v14812_v43, %v19008_v47  ;;  %v2876_v33 = vpop.f32.mrb[33].mxu0 }
 0xa3c   :  { %16004 = vmatpush3.bf16.xpose.msk.msra.mxu0 %vm18950_vm5, %v15999_v32  ;;  %v2895_v37 = vmul.f32 %v2876_v33, %v19012_v53 }
 0xa3d   :  { %v3011_v1 = vsel %vm675_vm0, %v2896_v48, 0.0 }
 0xa3e   :  { %3012 = vadd.xlane.f32.xlu1 %v3011_v1  ;;  %v14815_v56 = vpop.f32.mrb[34].mxu0  ;;  %v3008_v40 = vsel %vm675_vm0, %v2895_v37, 0.0 }
 0xa3f   :  { %v2898_v35 = vmul.f32 %v14815_v56, %v19018_v4  ;;  %3009 = vadd.xlane.f32.xlu0 %v3008_v40  ;;  %v2886_v25 = vpop.f32.mrb[35].mxu0 }
 0xa40   :  { %v2897_v36 = vmul.f32 %v2886_v25, %v19022_v8 }
 0xa41   :  { %v3017_v42 = vsel %vm675_vm0, %v2898_v35, 0.0 }
 0xa42   :  { %v3014_v15 = vsel %vm675_vm0, %v2897_v36, 0.0 }
 0xa43   :  { %14847 = vmatmul.mubr.msk.f32.vlgmr.msra.gmra.mrb[36].mxu0 %vm1819_vm3, %v3214_v34  ;;  %3018 = vadd.xlane.f32.xlu0 %v3017_v42 }
 0xa44   :  { %14849 = vmatprep.mubr.msk.f32.mxu0 %vm1819_vm3, %v3216_v59 }
 0xa47   :  { %14850 = vmatmul.mubr.msk.f32.gmra.mrb[38].mxu0 %vm1819_vm3, %v3218_v60  ;;  %3015 = vadd.xlane.f32.xlu0 %v3014_v15  ;;  %v14790_v44 = vpop.f32.mrb[20].mxu1 }
 0xa48   :  { %v2552_v41 = vpop.f32.mrb[21].mxu1  ;;  %v2590_v11 = vmul.f32 %v17073_v9, %v14790_v44 }
 0xa49   :  { %v2588_v10 = vmul.f32 %v17071_v62, %v2552_v41  ;;  %v1817_v62 = vld [vmem:[%s20556_s14 + $0x18] sm:$0xff]  ;;  %s20579_s14 = sld [smem:[#allocation109_spill]] }
 0xa4b   :  { %v14793_v63 = vpop.f32.mrb[22].mxu1  ;;  %14796 = vmatprep.mubr.msk.f32.mxu1 %vm2151_vm8, %v2588_v10 }
 0xa4c   :  { %v2562_v14 = vpop.f32.mrb[23].mxu1  ;;  %14797 = vmatmul.mubr.msk.f32.vlgmr.msra.gmra.mrb[16].mxu1 %vm2151_vm8, %v2590_v11  ;;  %v2594_v20 = vmul.f32 %v17077_v18, %v14793_v63 }
 0xa4d   :  { %v2592_v39 = vmul.f32 %v17075_v13, %v2562_v14  ;;  %15988 = vmatpush3.bf16.msra.mxu1 %v19113_v17 }
 0xa4e   :  { %15990 = vmatprep.subr.bf16.mxu1 %v15989_v55 }
 0xa4f   :  { %16849 = vrot.lane.b32.xlu1 %v18815_v12, %s18226_s3  ;;  %14799 = vmatprep.mubr.msk.f32.mxu1 %vm2151_vm8, %v2592_v39 }
 0xa50   :  { %14800 = vmatmul.mubr.msk.f32.gmra.mrb[18].mxu1 %vm2151_vm8, %v2594_v20 }
 0xa51   :  { %15992 = vmatpush3.bf16.msra.mxu1 %v15989_v55  ;;  %14824 = vmatprep.mubr.msk.f32.mxu1 %vm675_vm0, %v2895_v37 }
 0xa52   :  { %14830 = vmatprep.subr.mxu1 %v1816_v21 }
 0xa54   :  { %14825 = vmatmul.mubr.msk.f32.vlgmr.msra.gmra.mrb[24].mxu1 %vm675_vm0, %v2896_v48 }
 0xa55   :  { %14827 = vmatprep.mubr.msk.f32.mxu1 %vm675_vm0, %v2897_v36  ;;  %14831 = vmatpush3.msra.mxu1 %v1816_v21 }
 0xa58   :  { %14828 = vmatmul.mubr.msk.f32.gmra.mrb[26].mxu1 %vm675_vm0, %v2898_v35 }
 0xa5d   :  { %16854 = vrot.lane.b32.xlu0 %v18823_v19, %s18226_s3 }
 0xacb   :  { %v3013_v12 = vpop.xlane.xlu1 %3012 }
 0xacc   :  { %v3010_v45 = vpop.xlane.xlu0 %3009  ;;  %v3021_v32 = vadd.f32 1e-06, %v3013_v12 }
 0xacd   :  { %v3020_v46 = vadd.f32 1e-06, %v3010_v45 }
 0xacf   :  { %v16850_v17 = vpop.permute.xlu1 %16849  ;;  %17078 = vrcp.f32 %v3020_v46 }
 0xad0   :  { %v16852_v22 = vunpack.i.h.bf16 %v16850_v17  ;;  %v16851_v54 = vunpack.i.l.bf16 %v16850_v17  ;;  %v3019_v31 = vpop.xlane.xlu0 %3018  ;;  %17080 = vrcp.f32 %v3021_v32 }
 0xad1   :  { %v3023_v37 = vadd.f32 1e-06, %v3019_v31  ;;  %v657_v31 = vld [vmem:[#allocation4] sm:$0xff] }
 0xad2   :  { %v16005_v23 = vpack.c.bf16 %v16852_v22, %v16851_v54  ;;  %14882 = vmatprep.mubr.msk.f32.mxu0 %vm675_vm0, %v657_v31 }
 0xad4   :  { %16006 = vmatprep.subr.bf16.mxu1 %v16005_v23  ;;  %v3016_v52 = vpop.xlane.xlu0 %3015 }
 0xad5   :  { %v3022_v33 = vadd.f32 1e-06, %v3016_v52 }
 0xad7   :  { %17082 = vrcp.f32 %v3022_v33 }
 0xad8   :  { %17084 = vrcp.f32 %v3023_v37  ;;  %v16855_v1 = vpop.permute.xlu0 %16854 }
 0xad9   :  { %v17079_v56 = vpop.eup %17078  ;;  %v16856_v40 = vunpack.i.l.bf16 %v16855_v1 }
 0xada   :  { %v17081_v35 = vpop.eup %17080 }
 0xae1   :  { %v17083_v42 = vpop.eup %17082 }
 0xae2   :  { %v17085_v60 = vpop.eup %17084 }
 0xb16   :  { %v14848_v26 = vpop.f32.mrb[36].mxu0 }
 0xb17   :  { %v3333_v27 = vmul.f32 %v14848_v26, %v19008_v47  ;;  %v3313_v28 = vpop.f32.mrb[37].mxu0  ;;  %v3675_v26 = vld [vmem:[%s20558_s4] sm:$0xff] }
 0xb18   :  { %v3332_v29 = vmul.f32 %v3313_v28, %v19012_v53 }
 0xb19   :  { %v3448_v30 = vsel %vm675_vm0, %v3333_v27, 0.0 }
 0xb1a   :  { %v14851_v38 = vpop.f32.mrb[38].mxu0  ;;  %3449 = vadd.xlane.f32.xlu0 %v3448_v30  ;;  %v3445_v19 = vsel %vm675_vm0, %v3332_v29, 0.0 }
 0xb1b   :  { %v3335_v43 = vmul.f32 %v14851_v38, %v19018_v4  ;;  %3446 = vadd.xlane.f32.xlu1 %v3445_v19  ;;  %v3323_v50 = vpop.f32.mrb[39].mxu0  ;;  %v16857_v4 = vunpack.i.h.bf16 %v16855_v1 }
 0xb1c   :  { %v3334_v48 = vmul.f32 %v3323_v50, %v19022_v8 }
 0xb1d   :  { %v3454_v47 = vsel %vm675_vm0, %v3335_v43, 0.0  ;;  %v16009_v59 = vpack.c.bf16 %v16857_v4, %v16856_v40 }
 0xb1e   :  { %3455 = vadd.xlane.f32.xlu0 %v3454_v47  ;;  %v3451_v53 = vsel %vm675_vm0, %v3334_v48, 0.0 }
 0xb1f   :  { %3452 = vadd.xlane.f32.xlu1 %v3451_v53 }
 0xb27   :  { %v14826_v61 = vpop.f32.mrb[24].mxu1 }
 0xb28   :  { %v2989_v5 = vpop.f32.mrb[25].mxu1  ;;  %v3027_v25 = vmul.f32 %v17081_v35, %v14826_v61  ;;  %v19191_v61 = vld [vmem:[#allocation4 + $0x8] sm:$0xff] }
 0xb29   :  { %v3025_v8 = vmul.f32 %v17079_v56, %v2989_v5 }
 0xb2b   :  { %v14829_v34 = vpop.f32.mrb[26].mxu1  ;;  %14832 = vmatprep.mubr.msk.f32.mxu1 %vm2151_vm8, %v3025_v8 }
 0xb2c   :  { %v2999_v36 = vpop.f32.mrb[27].mxu1  ;;  %14833 = vmatmul.mubr.msk.f32.vlgmr.msra.gmra.mrb[16].mxu1 %vm2151_vm8, %v3027_v25  ;;  %v3031_v44 = vmul.f32 %v17085_v60, %v14829_v34 }
 0xb2d   :  { %v3029_v15 = vmul.f32 %v17083_v42, %v2999_v36  ;;  %16008 = vmatpush3.bf16.msra.mxu1 %v16005_v23  ;;  %v3812_v36 = vld [vmem:[%s20559_s5] sm:$0xff] }
 0xb2e   :  { %16010 = vmatprep.subr.bf16.mxu1 %v16009_v59 }
 0xb2f   :  { %14835 = vmatprep.mubr.msk.f32.mxu1 %vm2151_vm8, %v3029_v15  ;;  %v3814_v15 = vld [vmem:[%s20559_s5 + $0x10] sm:$0xff] }
 0xb30   :  { %14836 = vmatmul.mubr.msk.f32.gmra.mrb[18].mxu1 %vm2151_vm8, %v3031_v44  ;;  %v3815_v44 = vld [vmem:[%s20559_s5 + $0x18] sm:$0xff] }
 0xb31   :  { %16012 = vmatpush3.bf16.msra.mxu1 %v16009_v59  ;;  %14860 = vmatprep.mubr.msk.f32.mxu1 %vm675_vm0, %v3332_v29  ;;  %v13442_v29 = vld [vmem:[#allocation24] ss:$0 sm:$0xff]  ;;  %v3813_v59 = vld [vmem:[%s20559_s5 + $0x8] sm:$0xff] }
 0xb32   :  { %14866 = vmatprep.subr.mxu1 %v1817_v62  ;;  %v16029_v60 = vpack.c.bf16 %v3813_v59, %v3812_v36  ;;  %v13511_v36 = vld [vmem:[%s20560_s10 + $0x20] sm:$0xff]  ;;  %v13512_v59 = vld [vmem:[%s20560_s10 + $0x28] sm:$0xff] }
 0xb34   :  { %14861 = vmatmul.mubr.msk.f32.vlgmr.msra.gmra.mrb[28].mxu1 %vm675_vm0, %v3333_v27  ;;  %v3676_v27 = vld [vmem:[%s20558_s4 + $0x8] sm:$0xff] }
 0xb35   :  { %14863 = vmatprep.mubr.msk.f32.mxu1 %vm675_vm0, %v3334_v48  ;;  %14867 = vmatpush3.msra.mxu1 %v1817_v62  ;;  %v16021_v28 = vpack.c.bf16 %v3676_v27, %v3675_v26  ;;  %v16033_v62 = vpack.c.bf16 %v3815_v44, %v3814_v15 }
 0xb37   :  { %16022 = vmatprep.subr.bf16.mxu1 %v16021_v28 }
 0xb38   :  { %14864 = vmatmul.mubr.msk.f32.gmra.mrb[30].mxu1 %vm675_vm0, %v3335_v43 }
 0xba7   :  { %v3450_v7 = vpop.xlane.xlu0 %3449 }
 0xba8   :  { %v3447_v2 = vpop.xlane.xlu1 %3446  ;;  %v3458_v9 = vadd.f32 1e-06, %v3450_v7  ;;  %v3817_v7 = vld [vmem:[%s20559_s5 + $0x28] sm:$0xff] }
 0xba9   :  { %v3457_v41 = vadd.f32 1e-06, %v3447_v2  ;;  %v3816_v2 = vld [vmem:[%s20559_s5 + $0x20] sm:$0xff] }
 0xbab   :  { %v3456_v11 = vpop.xlane.xlu0 %3455  ;;  %17086 = vrcp.f32 %v3457_v41  ;;  %v16037_v41 = vpack.c.bf16 %v3817_v7, %v3816_v2 }
 0xbac   :  { %v3453_v10 = vpop.xlane.xlu1 %3452  ;;  %17088 = vrcp.f32 %v3458_v9  ;;  %v3460_v13 = vadd.f32 1e-06, %v3456_v11  ;;  %v3818_v9 = vld [vmem:[%s20559_s5 + $0x30] sm:$0xff] }
 0xbad   :  { %v3459_v63 = vadd.f32 1e-06, %v3453_v10  ;;  %v3819_v10 = vld [vmem:[%s20559_s5 + $0x38] sm:$0xff] }
 0xbae   :  { %v16041_v11 = vpack.c.bf16 %v3819_v10, %v3818_v9 }
 0xbaf   :  { %17090 = vrcp.f32 %v3459_v63 }
 0xbb0   :  { %17092 = vrcp.f32 %v3460_v13 }
 0xbb5   :  { %v17087_v55 = vpop.eup %17086 }
 0xbb6   :  { %v17089_v39 = vpop.eup %17088 }
 0xbb9   :  { %v17091_v17 = vpop.eup %17090 }
 0xbba   :  { %v17093_v54 = vpop.eup %17092 }
 0xc07   :  { %v14862_v14 = vpop.f32.mrb[28].mxu1 }
 0xc08   :  { %v3426_v18 = vpop.f32.mrb[29].mxu1  ;;  %v3464_v21 = vmul.f32 %v17089_v39, %v14862_v14 }
 0xc09   :  { %v3462_v20 = vmul.f32 %v17087_v55, %v3426_v18 }
 0xc0b   :  { %v14865_v12 = vpop.f32.mrb[30].mxu1  ;;  %14868 = vmatprep.mubr.msk.f32.mxu1 %vm2151_vm8, %v3462_v20 }
 0xc0c   :  { %v3436_v22 = vpop.f32.mrb[31].mxu1  ;;  %14869 = vmatmul.mubr.msk.f32.vlgmr.msra.gmra.mrb[16].mxu1 %vm2151_vm8, %v3464_v21  ;;  %v3468_v45 = vmul.f32 %v17093_v54, %v14865_v12 }
 0xc0d   :  { %v3466_v23 = vmul.f32 %v17091_v17, %v3436_v22  ;;  %16024 = vmatpush3.bf16.msra.mxu1 %v16021_v28 }
 0xc0f   :  { %14871 = vmatprep.mubr.msk.f32.mxu1 %vm2151_vm8, %v3466_v23 }
 0xc10   :  { %14872 = vmatmul.mubr.msk.f32.gmra.mrb[18].mxu1 %vm2151_vm8, %v3468_v45 }
 0xcdf   :  { %v14870_v30 = vpop.f32.mrb[16].mxu1 }
 0xce0   :  { %v16573_v46 = vadd.f32 %v14870_v30, %v13442_v29  ;;  %v3547_v38 = vpop.f32.mrb[17].mxu1 }
 0xce1   :  { %v16574_v19 = vadd.f32 %v13442_v29, %v3547_v38 }
 0xce2   :  { %v3571_v32 = vadd.f32 %v16573_v46, %v18791_v51  ;;  %v19193_v51 = vld [vmem:[#allocation4 + $0x10] sm:$0xff] }
 0xce3   :  { %v3570_v52 = vadd.f32 %v16574_v19, %v18789_v49  ;;  %v14873_v43 = vpop.f32.mrb[18].mxu1  ;;  %v19199_v49 = vld [vmem:[#allocation4 + $0x18] sm:$0xff] }
 0xce4   :  { %v16575_v50 = vadd.f32 %v14873_v43, %v13442_v29  ;;  %v3557_v48 = vpop.f32.mrb[19].mxu1 }
 0xce5   :  { %v16576_v47 = vadd.f32 %v13442_v29, %v3557_v48  ;;  %v16013_v33 = vpack.c.bf16 %v3571_v32, %v3570_v52 }
 0xce6   :  { %v3573_v53 = vadd.f32 %v16575_v50, %v18799_v58  ;;  %v3678_v58 = vld [vmem:[%s20558_s4 + $0x18] sm:$0xff] }
 0xce7   :  { %v3572_v37 = vadd.f32 %v16576_v47, %v18797_v57  ;;  %16014 = vmatprep.subr.bf16.mxu0 %v16013_v33  ;;  %v3677_v57 = vld [vmem:[%s20558_s4 + $0x10] sm:$0xff] }
 0xce8   :  { %16016 = vmatpush3.bf16.msra.mxu0 %v16013_v33  ;;  %v16025_v56 = vpack.c.bf16 %v3678_v58, %v3677_v57 }
 0xce9   :  { %v16017_v1 = vpack.c.bf16 %v3573_v53, %v3572_v37 }
 0xcea   :  { %16026 = vmatprep.subr.bf16.mxu1 %v16025_v56 }
 0xceb   :  { %16018 = vmatprep.subr.bf16.mxu0 %v16017_v1  ;;  %16028 = vmatpush3.bf16.msra.mxu1 %v16025_v56 }
 0xcec   :  { %16020 = vmatpush3.bf16.msra.mxu0 %v16017_v1 }
 0xced   :  { %16030 = vmatprep.subr.bf16.mxu0 %v16029_v60 }
 0xcef   :  { %14883 = vmatmul.mubr.msk.f32.vlgmr.msra.gmra.mrb[40].mxu0 %vm675_vm0, %v19191_v61 }
 0xcf0   :  { %14885 = vmatprep.mubr.msk.f32.mxu0 %vm675_vm0, %v19193_v51  ;;  %16032 = vmatpush3.bf16.msra.mxu0 %v16029_v60  ;;  %v16061_v60 = vpack.c.bf16 %v13512_v59, %v13511_v36 }
 0xcf1   :  { %16034 = vmatprep.subr.bf16.mxu0 %v16033_v62 }
 0xcf3   :  { %14886 = vmatmul.mubr.msk.f32.gmra.mrb[42].mxu0 %vm675_vm0, %v19199_v49 }
 0xcf4   :  { %16036 = vmatpush3.bf16.msra.mxu0 %v16033_v62 }
 0xcf5   :  { %16038 = vmatprep.subr.bf16.mxu0 %v16037_v41 }
 0xcf8   :  { %16040 = vmatpush3.bf16.msra.mxu0 %v16037_v41 }
 0xcf9   :  { %16042 = vmatprep.subr.bf16.mxu0 %v16041_v11 }
 0xcfc   :  { %16044 = vmatpush3.bf16.msra.mxu0 %v16041_v11 }
 0xcfd   :  { %16062 = vmatprep.subr.bf16.mxu0 %v16061_v60 }
 0xdc2   :  { %v14884_v4 = vpop.f32.mrb[40].mxu0 }
 0xdc3   :  { %v3652_v40 = vpop.f32.mrb[41].mxu0  ;;  %v19207_v35 = vsub.f32 %v3571_v32, %v14884_v4 }
 0xdc4   :  { %v19205_v5 = vsub.f32 %v3570_v52, %v3652_v40 }
 0xdc6   :  { %v14887_v8 = vpop.f32.mrb[42].mxu0  ;;  %14896 = vmatprep.mubr.msk.f32.mxu1 %vm675_vm0, %v19205_v5 }
 0xdc7   :  { %v3662_v25 = vpop.f32.mrb[43].mxu0  ;;  %14897 = vmatmul.mubr.msk.f32.vlgmr.msra.gmra.mrb[32].mxu1 %vm675_vm0, %v19207_v35  ;;  %v19215_v42 = vsub.f32 %v3573_v53, %v14887_v8 }
 0xdc8   :  { %v19213_v34 = vsub.f32 %v3572_v37, %v3662_v25 }
 0xdca   :  { %14899 = vmatprep.mubr.msk.f32.mxu1 %vm675_vm0, %v19213_v34 }
 0xdcb   :  { %14900 = vmatmul.mubr.msk.f32.gmra.mrb[34].mxu1 %vm675_vm0, %v19215_v42 }
 0xdcc   :  { %14932 = vmatprep.mubr.msk.f32.mxu1 %vm675_vm0, %v657_v31 }
 0xe9a   :  { %v14898_v63 = vpop.f32.mrb[32].mxu1 }
 0xe9b   :  { %v3777_v13 = vmul.f32 %v14898_v63, %v14898_v63  ;;  %v3757_v14 = vpop.f32.mrb[33].mxu1 }
 0xe9c   :  { %v3776_v55 = vmul.f32 %v3757_v14, %v3757_v14 }
 0xe9d   :  { %v3781_v18 = vmul.f32 %v14898_v63, %v3777_v13  ;;  %v4096_v13 = vld [vmem:[%s20560_s10] sm:$0xff] }
 0xe9e   :  { %v3780_v39 = vmul.f32 %v3776_v55, %v3757_v14  ;;  %v14901_v20 = vpop.f32.mrb[34].mxu1 }
 0xe9f   :  { %v3785_v21 = vmul.f32 0.044715, %v3781_v18  ;;  %v3779_v12 = vmul.f32 %v14901_v20, %v14901_v20  ;;  %v3767_v17 = vpop.f32.mrb[35].mxu1  ;;  %v4098_v18 = vld [vmem:[%s20560_s10 + $0x10] sm:$0xff] }
 0xea0   :  { %v3784_v22 = vmul.f32 0.044715, %v3780_v39  ;;  %v3778_v54 = vmul.f32 %v3767_v17, %v3767_v17  ;;  %v4099_v39 = vld [vmem:[%s20560_s10 + $0x18] sm:$0xff] }
 0xea1   :  { %v3789_v23 = vadd.f32 %v14898_v63, %v3785_v21  ;;  %v3783_v45 = vmul.f32 %v14901_v20, %v3779_v12  ;;  %v16073_v12 = vpack.c.bf16 %v4099_v39, %v4098_v18 }
 0xea2   :  { %v3788_v31 = vadd.f32 %v3784_v22, %v3757_v14  ;;  %v3782_v26 = vmul.f32 %v3778_v54, %v3767_v17 }
 0xea3   :  { %v3793_v27 = vmul.f32 0.7978846, %v3789_v23  ;;  %v3787_v28 = vmul.f32 0.044715, %v3783_v45 }
 0xea4   :  { %v3792_v29 = vmul.f32 0.7978846, %v3788_v31  ;;  %v3786_v30 = vmul.f32 0.044715, %v3782_v26  ;;  %v17343_v31 = vld [vmem:[#allocation10 + $0x8] sm:$0xff]  ;;  %v17344_v26 = vld [vmem:[#allocation10 + $0x10] sm:$0xff] }
 0xea5   :  { %17094 = vtanh.f32 %v3793_v27  ;;  %v3791_v46 = vadd.f32 %v14901_v20, %v3787_v28  ;;  %v17345_v27 = vld [vmem:[#allocation10 + $0x18] sm:$0xff]  ;;  %v17346_v28 = vld [vmem:[#allocation12] sm:$0xff] }
 0xea6   :  { %17096 = vtanh.f32 %v3792_v29  ;;  %v3790_v38 = vadd.f32 %v3786_v30, %v3767_v17  ;;  %v17347_v29 = vld [vmem:[#allocation12 + $0x8] sm:$0xff]  ;;  %v17348_v30 = vld [vmem:[#allocation12 + $0x10] sm:$0xff] }
 0xea7   :  { %v3795_v19 = vmul.f32 0.7978846, %v3791_v46  ;;  %v17349_v46 = vld [vmem:[#allocation12 + $0x18] sm:$0xff] }
 0xea8   :  { %v3794_v32 = vmul.f32 0.7978846, %v3790_v38  ;;  %v13527_v38 = vld [vmem:[%s20560_s10 + $0x40] sm:$0xff] }
 0xea9   :  { %17098 = vtanh.f32 %v3795_v19  ;;  %v13528_v19 = vld [vmem:[%s20560_s10 + $0x48] sm:$0xff] }
 0xeaa   :  { %17100 = vtanh.f32 %v3794_v32  ;;  %v16085_v32 = vpack.c.bf16 %v13528_v19, %v13527_v38  ;;  %v13544_v38 = vld [vmem:[%s20561_s8 + $0x10] sm:$0xff]  ;;  %v13545_v19 = vld [vmem:[%s20561_s8 + $0x18] sm:$0xff] }
 0xeaf   :  { %v17095_v52 = vpop.eup %17094 }
 0xeb0   :  { %v17097_v43 = vpop.eup %17096  ;;  %v3801_v50 = vadd.f32 1.0, %v17095_v52  ;;  %v13529_v52 = vld [vmem:[%s20560_s10 + $0x50] sm:$0xff] }
 0xeb1   :  { %v3800_v48 = vadd.f32 1.0, %v17097_v43  ;;  %v13530_v43 = vld [vmem:[%s20560_s10 + $0x58] sm:$0xff] }
 0xeb2   :  { %v3805_v47 = vmul.f32 0.5, %v3801_v50 }
 0xeb3   :  { %v17099_v33 = vpop.eup %17098  ;;  %v3804_v53 = vmul.f32 0.5, %v3800_v48 }
 0xeb4   :  { %v17101_v37 = vpop.eup %17100  ;;  %v3803_v1 = vadd.f32 1.0, %v17099_v33  ;;  %v3809_v56 = vmul.f32 %v14898_v63, %v3805_v47  ;;  %v16089_v47 = vpack.c.bf16 %v13530_v43, %v13529_v52  ;;  %v4805_v52 = vld [vmem:[%s20562_s11 + $0x8] sm:$0xff] }
 0xeb5   :  { %v3808_v57 = vmul.f32 %v3804_v53, %v3757_v14  ;;  %v3802_v58 = vadd.f32 1.0, %v17101_v37  ;;  %v4097_v14 = vld [vmem:[%s20560_s10 + $0x8] sm:$0xff] }
 0xeb6   :  { %v3807_v4 = vmul.f32 0.5, %v3803_v1  ;;  %v16069_v55 = vpack.c.bf16 %v4097_v14, %v4096_v13 }
 0xeb7   :  { %v3806_v40 = vmul.f32 0.5, %v3802_v58  ;;  %14918 = vmatprep.mubr.msk.f32.mxu0 %vm3820_vm9, %v3808_v57 }
 0xeb8   :  { %14919 = vmatmul.mubr.msk.f32.vlgmr.msra.gmra.mrb[44].mxu0 %vm3820_vm9, %v3809_v56  ;;  %v3811_v25 = vmul.f32 %v14901_v20, %v3807_v4  ;;  %v4547_v56 = vld [vmem:[%s20561_s8] sm:$0xff] }
 0xeb9   :  { %v3810_v8 = vmul.f32 %v3806_v40, %v3767_v17  ;;  %16064 = vmatpush3.bf16.msra.mxu0 %v16061_v60  ;;  %v13548_v4 = vld [vmem:[%s20561_s8 + $0x20] sm:$0xff]  ;;  %v13535_v40 = vld [vmem:[#allocation28] ss:$0 sm:$0xff]  ;;  %v13537_v60 = vld [vmem:[#allocation31] ss:$0 sm:$0xff] }
 0xebb   :  { %14921 = vmatprep.mubr.msk.f32.mxu0 %vm3820_vm9, %v3810_v8 }
 0xebc   :  { %14922 = vmatmul.mubr.msk.f32.gmra.mrb[46].mxu0 %vm3820_vm9, %v3811_v25  ;;  %v13536_v25 = vld [vmem:[#allocation30] ss:$0 sm:$0xff] }
 0xf8b   :  { %v14920_v15 = vpop.f32.mrb[44].mxu0 }
 0xf8c   :  { %v3919_v44 = vadd.f32 %v14920_v15, %v19207_v35  ;;  %v3899_v62 = vpop.f32.mrb[45].mxu0  ;;  %v13513_v35 = vld [vmem:[%s20560_s10 + $0x30] sm:$0xff] }
 0xf8d   :  { %v3918_v2 = vadd.f32 %v3899_v62, %v19205_v5  ;;  %v17342_v5 = vld [vmem:[#allocation10] sm:$0xff] }
 0xf8f   :  { %v16045_v7 = vpack.c.bf16 %v3919_v44, %v3918_v2  ;;  %v14923_v41 = vpop.f32.mrb[46].mxu0 }
 0xf90   :  { %v3921_v9 = vadd.f32 %v14923_v41, %v19215_v42  ;;  %v3909_v10 = vpop.f32.mrb[47].mxu0 }
 0xf91   :  { %v3920_v11 = vadd.f32 %v3909_v10, %v19213_v34  ;;  %16046 = vmatprep.subr.bf16.mxu1 %v16045_v7  ;;  %v13514_v34 = vld [vmem:[%s20560_s10 + $0x38] sm:$0xff] }
 0xf92   :  { %16048 = vmatpush3.bf16.msra.mxu1 %v16045_v7  ;;  %v16065_v42 = vpack.c.bf16 %v13514_v34, %v13513_v35 }
 0xf93   :  { %v16049_v63 = vpack.c.bf16 %v3921_v9, %v3920_v11 }
 0xf94   :  { %16066 = vmatprep.subr.bf16.mxu0 %v16065_v42 }
 0xf95   :  { %16050 = vmatprep.subr.bf16.mxu1 %v16049_v63  ;;  %16068 = vmatpush3.bf16.msra.mxu0 %v16065_v42 }
 0xf96   :  { %16052 = vmatpush3.bf16.msra.mxu1 %v16049_v63  ;;  %16070 = vmatprep.subr.bf16.mxu0 %v16069_v55 }
 0xf99   :  { %14933 = vmatmul.mubr.msk.f32.vlgmr.msra.gmra.mrb[36].mxu1 %vm675_vm0, %v19191_v61 }
 0xf9a   :  { %14935 = vmatprep.mubr.msk.f32.mxu1 %vm675_vm0, %v19193_v51 }
 0xf9d   :  { %14936 = vmatmul.mubr.msk.f32.gmra.mrb[38].mxu1 %vm675_vm0, %v19199_v49 }
 0xf9e   :  { %14946 = vmatprep.mubr.msk.f32.mxu1 %vm675_vm0, %v17342_v5 }
0x106c   :  { %v14934_v61 = vpop.f32.mrb[36].mxu1 }
0x106d   :  { %v4008_v20 = vsub.f32 %v3919_v44, %v14934_v61  ;;  %v3988_v51 = vpop.f32.mrb[37].mxu1 }
0x106e   :  { %v4007_v21 = vsub.f32 %v3918_v2, %v3988_v51 }
0x1070   :  { %v16053_v49 = vpack.c.bf16 %v4008_v20, %v4007_v21  ;;  %v14937_v17 = vpop.f32.mrb[38].mxu1  ;;  %14960 = vmatprep.mubr.msk.f32.mxu0 %vm675_vm0, %v4007_v21 }
0x1071   :  { %v4010_v22 = vsub.f32 %v3921_v9, %v14937_v17  ;;  %v3998_v54 = vpop.f32.mrb[39].mxu1  ;;  %14961 = vmatmul.mubr.msk.f32.vlgmr.msra.gmra.mrb[48].mxu0 %vm675_vm0, %v4008_v20 }
0x1072   :  { %v4009_v23 = vsub.f32 %v3920_v11, %v3998_v54  ;;  %16054 = vmatprep.subr.bf16.mxu1 %v16053_v49  ;;  %16072 = vmatpush3.bf16.msra.mxu0 %v16069_v55 }
0x1073   :  { %16056 = vmatpush3.bf16.msra.mxu1 %v16053_v49  ;;  %16074 = vmatprep.subr.bf16.mxu0 %v16073_v12 }
0x1074   :  { %v16057_v45 = vpack.c.bf16 %v4010_v22, %v4009_v23  ;;  %14963 = vmatprep.mubr.msk.f32.mxu0 %vm675_vm0, %v4009_v23 }
0x1075   :  { %14964 = vmatmul.mubr.msk.f32.gmra.mrb[50].mxu0 %vm675_vm0, %v4010_v22 }
0x1076   :  { %16058 = vmatprep.subr.bf16.mxu1 %v16057_v45  ;;  %16076 = vmatpush3.bf16.msra.mxu0 %v16073_v12 }
0x1077   :  { %16060 = vmatpush3.bf16.msra.mxu1 %v16057_v45  ;;  %16086 = vmatprep.subr.bf16.mxu0 %v16085_v32 }
0x1078   :  { %16078 = vmatprep.subr.bf16.mxu1 %v16053_v49 }
0x107a   :  { %14947 = vmatmul.mubr.msk.f32.vlgmr.msra.gmra.mrb[40].mxu1 %vm675_vm0, %v17343_v31 }
0x107b   :  { %16080 = vmatpush3.bf16.msra.mxu1 %v16053_v49  ;;  %14949 = vmatprep.mubr.msk.f32.mxu1 %vm675_vm0, %v17344_v26 }
0x107c   :  { %16082 = vmatprep.subr.bf16.mxu1 %v16057_v45 }
0x107e   :  { %14950 = vmatmul.mubr.msk.f32.gmra.mrb[42].mxu1 %vm675_vm0, %v17345_v27 }
0x107f   :  { %16084 = vmatpush3.bf16.msra.mxu1 %v16057_v45  ;;  %14988 = vmatprep.mubr.msk.f32.mxu1 %vm675_vm0, %v17346_v28 }
0x1082   :  { %14989 = vmatmul.mubr.msk.f32.vlgmr.msra.gmra.mrb[44].mxu1 %vm675_vm0, %v17347_v29 }
0x1083   :  { %14991 = vmatprep.mubr.msk.f32.mxu1 %vm675_vm0, %v17348_v30  ;;  %v4548_v30 = vld [vmem:[%s20561_s8 + $0x8] sm:$0xff] }
0x1086   :  { %14992 = vmatmul.mubr.msk.f32.gmra.mrb[46].mxu1 %vm675_vm0, %v17349_v46  ;;  %v13549_v46 = vld [vmem:[%s20561_s8 + $0x28] sm:$0xff] }
0x1087   :  { %15016 = vmatprep.mubr.msk.f32.mxu1 %vm675_vm0, %v4547_v56 }
0x114d   :  { %v14948_v50 = vpop.f32.mrb[40].mxu1 }
0x114e   :  { %v4077_v48 = vpop.f32.mrb[41].mxu1 }
0x114f   :  { %14974 = vmatprep.mubr.msk.f32.mxu0 %vm675_vm0, %v4077_v48  ;;  %v4807_v48 = vld [vmem:[%s20562_s11 + $0x18] sm:$0xff] }
0x1150   :  { %14975 = vmatmul.mubr.msk.f32.vlgmr.msra.gmra.mrb[48].mxu0 %vm675_vm0, %v14948_v50  ;;  %v4806_v50 = vld [vmem:[%s20562_s11 + $0x10] sm:$0xff] }
0x1151   :  { %v14951_v33 = vpop.f32.mrb[42].mxu1  ;;  %16088 = vmatpush3.bf16.msra.mxu0 %v16085_v32  ;;  %v4804_v32 = vld [vmem:[%s20562_s11] sm:$0xff] }
0x1152   :  { %v4087_v53 = vpop.f32.mrb[43].mxu1  ;;  %16090 = vmatprep.subr.bf16.mxu0 %v16089_v47  ;;  %v16117_v43 = vpack.c.bf16 %v4805_v52, %v4804_v32 }
0x1153   :  { %14977 = vmatprep.mubr.msk.f32.mxu0 %vm675_vm0, %v4087_v53  ;;  %v4899_v53 = vld [vmem:[%s20563_s15 + $0x8] sm:$0xff] }
0x1154   :  { %14978 = vmatmul.mubr.msk.f32.gmra.mrb[50].mxu0 %vm675_vm0, %v14951_v33  ;;  %v4898_v33 = vld [vmem:[%s20563_s15] sm:$0xff] }
0x1155   :  { %v14990_v37 = vpop.f32.mrb[44].mxu1  ;;  %16092 = vmatpush3.bf16.msra.mxu0 %v16089_v47  ;;  %v16121_v47 = vpack.c.bf16 %v4807_v48, %v4806_v50 }
0x1156   :  { %v4365_v1 = vpop.f32.mrb[45].mxu1 }
0x1157   :  { %15002 = vmatprep.mubr.msk.f32.mxu0 %vm675_vm0, %v4365_v1 }
0x1158   :  { %15003 = vmatmul.mubr.msk.f32.vlgmr.msra.gmra.mrb[48].mxu0 %vm675_vm0, %v14990_v37  ;;  %v16125_v37 = vpack.c.bf16 %v4899_v53, %v4898_v33 }
0x1159   :  { %v14993_v57 = vpop.f32.mrb[46].mxu1 }
0x115a   :  { %v4375_v58 = vpop.f32.mrb[47].mxu1 }
0x115b   :  { %15005 = vmatprep.mubr.msk.f32.mxu0 %vm675_vm0, %v4375_v58 }
0x115c   :  { %15006 = vmatmul.mubr.msk.f32.gmra.mrb[50].mxu0 %vm675_vm0, %v14993_v57 }
0x115d   :  { %15038 = vmatprep.mubr.msk.f32.mxu0 %vm675_vm0, %v13548_v4 }
0x122b   :  { %v15004_v8 = vpop.f32.mrb[48].mxu0 }
0x122c   :  { %v4498_v36 = vadd.f32 %v15004_v8, %v13535_v40  ;;  %v4467_v59 = vpop.f32.mrb[49].mxu0 }
0x122d   :  { %v4497_v15 = vadd.f32 %v13535_v40, %v4467_v59 }
0x122e   :  { %v4509_v44 = vmul.f32 %v13536_v25, %v4498_v36 }
0x122f   :  { %v4508_v62 = vmul.f32 %v13536_v25, %v4497_v15  ;;  %v15007_v2 = vpop.f32.mrb[50].mxu0  ;;  %v4901_v15 = vld [vmem:[%s20563_s15 + $0x18] sm:$0xff] }
0x1230   :  { %v4520_v7 = vadd.f32 %v13537_v60, %v4509_v44  ;;  %v4500_v41 = vadd.f32 %v15007_v2, %v13535_v40  ;;  %v4477_v9 = vpop.f32.mrb[51].mxu0 }
0x1231   :  { %v4519_v10 = vadd.f32 %v13537_v60, %v4508_v62  ;;  %v4499_v11 = vadd.f32 %v13535_v40, %v4477_v9  ;;  %v13552_v62 = vld [vmem:[#allocation25] ss:$0 sm:$0xff] }
0x1232   :  { %v4528_v63 = vmin.f32 %v4520_v7, 0.0  ;;  %v4511_v5 = vmul.f32 %v13536_v25, %v4500_v41  ;;  %vm4524_vm10 = vcmp.gt.f32.partialorder %v4520_v7, 0.0 }
0x1233   :  { %v4527_v35 = vmin.f32 %v4519_v10, 0.0  ;;  %v4510_v34 = vmul.f32 %v13536_v25, %v4499_v11  ;;  %vm4523_vm11 = vcmp.gt.f32.partialorder %v4519_v10, 0.0 }
0x1234   :  { %v4533_v42 = vmul.f32 1.442695, %v4528_v63  ;;  %v4522_v13 = vadd.f32 %v13537_v60, %v4511_v5 }
0x1235   :  { %v4531_v14 = vmul.f32 1.442695, %v4527_v35  ;;  %v4521_v55 = vadd.f32 %v13537_v60, %v4510_v34  ;;  %v4900_v60 = vld [vmem:[%s20563_s15 + $0x10] sm:$0xff] }
0x1236   :  { %17102 = vpow2.f32 %v4533_v42  ;;  %v4530_v61 = vmin.f32 %v4522_v13, 0.0  ;;  %vm4526_vm12 = vcmp.gt.f32.partialorder %v4522_v13, 0.0  ;;  %v16129_v44 = vpack.c.bf16 %v4901_v15, %v4900_v60 }
0x1237   :  { %17104 = vpow2.f32 %v4531_v14  ;;  %v4529_v18 = vmin.f32 %v4521_v55, 0.0  ;;  %vm4525_vm13 = vcmp.gt.f32.partialorder %v4521_v55, 0.0 }
0x1238   :  { %v4537_v39 = vmul.f32 1.442695, %v4530_v61 }
0x1239   :  { %v4535_v20 = vmul.f32 1.442695, %v4529_v18 }
0x123a   :  { %17106 = vpow2.f32 %v4537_v39 }
0x123b   :  { %17108 = vpow2.f32 %v4535_v20 }
0x1240   :  { %v17103_v51 = vpop.eup %17102 }
0x1241   :  { %v17105_v21 = vpop.eup %17104  ;;  %v13539_v12 = vadd.f32 -1.0, %v17103_v51 }
0x1242   :  { %v13538_v49 = vadd.f32 -1.0, %v17105_v21 }
0x1243   :  { %v4544_v17 = vsel %vm4524_vm10, %v4520_v7, %v13539_v12 }
0x1244   :  { %v17107_v22 = vpop.eup %17106  ;;  %v4543_v54 = vsel %vm4523_vm11, %v4519_v10, %v13538_v49 }
0x1245   :  { %v17109_v23 = vpop.eup %17108  ;;  %v16093_v45 = vpack.c.bf16 %v4544_v17, %v4543_v54  ;;  %v13541_v31 = vadd.f32 -1.0, %v17107_v22 }
0x1246   :  { %v13540_v26 = vadd.f32 -1.0, %v17109_v23 }
0x1247   :  { %v4546_v27 = vsel %vm4526_vm12, %v4522_v13, %v13541_v31  ;;  %16094 = vmatprep.subr.bf16.mxu1 %v16093_v45  ;;  %16110 = vmatprep.subr.bf16.mxu0 %v16093_v45 }
0x1248   :  { %v4545_v28 = vsel %vm4525_vm13, %v4521_v55, %v13540_v26  ;;  %16096 = vmatpush3.bf16.msra.mxu1 %v16093_v45  ;;  %16112 = vmatpush3.bf16.msra.mxu0 %v16093_v45 }
0x1249   :  { %v16097_v29 = vpack.c.bf16 %v4546_v27, %v4545_v28 }
0x124b   :  { %16098 = vmatprep.subr.bf16.mxu1 %v16097_v29  ;;  %16114 = vmatprep.subr.bf16.mxu0 %v16097_v29 }
0x124c   :  { %16100 = vmatpush3.bf16.msra.mxu1 %v16097_v29  ;;  %16116 = vmatpush3.bf16.msra.mxu0 %v16097_v29 }
0x124d   :  { %16102 = vmatprep.subr.bf16.mxu1 %v16093_v45  ;;  %16126 = vmatprep.subr.bf16.mxu0 %v16125_v37 }
0x124f   :  { %15017 = vmatmul.mubr.msk.f32.vlgmr.msra.gmra.mrb[48].mxu1 %vm675_vm0, %v4548_v30  ;;  %15039 = vmatmul.mubr.msk.f32.vlgmr.msra.gmra.mrb[52].mxu0 %vm675_vm0, %v13549_v46 }
0x1250   :  { %16104 = vmatpush3.bf16.msra.mxu1 %v16093_v45  ;;  %15027 = vmatprep.mubr.msk.f32.mxu1 %vm675_vm0, %v13544_v38 }
0x1251   :  { %16106 = vmatprep.subr.bf16.mxu1 %v16097_v29  ;;  %16128 = vmatpush3.bf16.msra.mxu0 %v16125_v37 }
0x1252   :  { %16130 = vmatprep.subr.bf16.mxu0 %v16129_v44 }
0x1254   :  { %16108 = vmatpush3.bf16.msra.mxu1 %v16097_v29 }
0x1255   :  { %16118 = vmatprep.subr.bf16.mxu1 %v16117_v43  ;;  %16132 = vmatpush3.bf16.msra.mxu0 %v16129_v44 }
0x1256   :  { %16142 = vmatprep.subr.bf16.mxu0 %v18809_v0 }
0x1257   :  { %15028 = vmatmul.mubr.msk.f32.vlgmr.msra.gmra.mrb[50].mxu1 %vm675_vm0, %v13545_v19 }
0x1258   :  { %16120 = vmatpush3.bf16.msra.mxu1 %v16117_v43 }
0x1259   :  { %16122 = vmatprep.subr.bf16.mxu1 %v16121_v47 }
0x125c   :  { %16124 = vmatpush3.bf16.msra.mxu1 %v16121_v47 }
0x125d   :  { %16134 = vmatprep.subr.bf16.mxu1 %v16125_v37 }
0x1322   :  { %v15018_v1 = vpop.f32.mrb[48].mxu1  ;;  %v15040_v57 = vpop.f32.mrb[52].mxu0 }
0x1323   :  { %v4621_v58 = vpop.f32.mrb[49].mxu1  ;;  %v4791_v56 = vpop.f32.mrb[53].mxu0 }
0x132a   :  { %v15029_v4 = vpop.f32.mrb[50].mxu1 }
0x132b   :  { %v4715_v40 = vmax.f32 %v15018_v1, %v15029_v4  ;;  %v4705_v8 = vpop.f32.mrb[51].mxu1 }
0x132c   :  { %v4714_v25 = vmax.f32 %v4621_v58, %v4705_v8 }
0x132d   :  { %v19294_v36 = vmax.f32 %v4715_v40, %v15040_v57 }
0x132e   :  { %v19296_v59 = vmax.f32 %v4714_v25, %v4791_v56 }
0x1330   :  { %15049 = vmatprep.mubr.msk.f32.mxu1 %vm675_vm0, %v19296_v59 }
0x1331   :  { %15050 = vmatmul.mubr.msk.f32.vlgmr.msra.gmra.mrb[52].mxu1 %vm675_vm0, %v19294_v36 }
0x1332   :  { %16136 = vmatpush3.bf16.msra.mxu1 %v16125_v37 }
0x1333   :  { %16138 = vmatprep.subr.bf16.mxu1 %v16129_v44 }
0x1336   :  { %16140 = vmatpush3.bf16.msra.mxu1 %v16129_v44 }
0x1337   :  { %16150 = vmatprep.subr.bf16.mxu1 %v18809_v0 }
0x1404   :  { %v15051_v2 = vpop.f32.mrb[52].mxu1 }
0x1405   :  { %v4893_v7 = vadd.f32 %v15051_v2, %v13552_v62  ;;  %v4887_v41 = vpop.f32.mrb[53].mxu1 }
0x1406   :  { %v4888_v9 = vadd.f32 %v13552_v62, %v4887_v41 }
0x1407   :  { %v4897_v10 = vmul.f32 0.59460354, %v4893_v7 }
0x1408   :  { %v4896_v11 = vmul.f32 0.59460354, %v4888_v9  ;;  %v19306_v63 = vpack.i.bf16 %v4893_v7, %v4888_v9 }
0x1409   :  { %4985 = vrot.lane.b32.xlu0 %v4897_v10, %s18221_s2  ;;  %v5067_v35 = vmul.f32 %v4897_v10, %v4897_v10 }
0x140a   :  { %4983 = vrot.lane.b32.xlu1 %v4896_v11, %s18221_s2  ;;  %15060 = vmatprep.mubr.msk.f32.mxu0 %vm675_vm0, %v4896_v11  ;;  %v5066_v5 = vmul.f32 %v4896_v11, %v4896_v11 }
0x140b   :  { %15061 = vmatmul.mubr.msk.f32.vlgmr.msra.gmra.mrb[54].mxu0 %vm675_vm0, %v4897_v10 }
0x140c   :  { %16144 = vmatpush3.bf16.msra.mxu0 %v18809_v0  ;;  %15082 = vmatprep.mubr.msk.f32.mxu0 %vm675_vm0, %v5066_v5 }
0x140d   :  { %16146 = vmatprep.subr.bf16.mxu0 %v18817_v16 }
0x140e   :  { %5149 = vrot.lane.b32.xlu1 %v5066_v5, %s18221_s2 }
0x1410   :  { %16148 = vmatpush3.bf16.msra.mxu0 %v18817_v16 }
0x1412   :  { %5151 = vrot.lane.b32.xlu1 %v5067_v35, %s18221_s2 }
0x1413   :  { %15083 = vmatmul.mubr.msk.f32.vlgmr.msra.gmra.mrb[56].mxu0 %vm675_vm0, %v5067_v35 }
0x147b   :  { %v4986_v42 = vpop.permute.xlu0 %4985 }
0x147c   :  { %v4984_v34 = vpop.permute.xlu1 %4983 }
0x147d   :  { %15071 = vmatprep.mubr.msk.f32.mxu1 %vm675_vm0, %v4984_v34 }
0x147e   :  { %15072 = vmatmul.mubr.msk.f32.vlgmr.msra.gmra.mrb[54].mxu1 %vm675_vm0, %v4986_v42 }
0x147f   :  { %16152 = vmatpush3.bf16.msra.mxu1 %v18809_v0 }
0x1480   :  { %v5150_v13 = vpop.permute.xlu1 %5149  ;;  %16154 = vmatprep.subr.bf16.mxu1 %v18817_v16 }
0x1481   :  { %15093 = vmatprep.mubr.msk.f32.mxu1 %vm675_vm0, %v5150_v13 }
0x1483   :  { %16156 = vmatpush3.bf16.msra.mxu1 %v18817_v16 }
0x1484   :  { %v5152_v14 = vpop.permute.xlu1 %5151 }
0x1486   :  { %15094 = vmatmul.mubr.msk.f32.vlgmr.msra.gmra.mrb[56].mxu1 %vm675_vm0, %v5152_v14 }
0x14de   :  { %v19326_v55 = vpop.f32.mrb[54].mxu0 }
0x14df   :  { %v19328_v61 = vpop.f32.mrb[55].mxu0  ;;  %v5240_v28 = vsel %vm1819_vm3, %v19326_v55, -inf  ;;  %v5562_v30 = vsel %vm2259_vm4, %v19326_v55, -inf }
0x14e0   :  { %v5237_v54 = vsel %vm1819_vm3, %v19328_v61, -inf  ;;  %v5559_v26 = vsel %vm2259_vm4, %v19328_v61, -inf }
0x14e6   :  { %v15084_v18 = vpop.f32.mrb[56].mxu0 }
0x14e7   :  { %v19331_v39 = vsub.f32 %v19326_v55, %v15084_v18  ;;  %v5140_v20 = vpop.f32.mrb[57].mxu0 }
0x14e8   :  { %v19334_v51 = vsub.f32 %v19328_v61, %v5140_v20 }
0x1551   :  { %v19336_v21 = vpop.f32.mrb[54].mxu1 }
0x1552   :  { %v19338_v12 = vpop.f32.mrb[55].mxu1  ;;  %v5246_v49 = vsel %vm1819_vm3, %v19336_v21, -inf  ;;  %v5568_v29 = vsel %vm2259_vm4, %v19336_v21, -inf }
0x1553   :  { %5247 = vmax.xlane.f32.xlu1 %v5246_v49  ;;  %v5243_v17 = vsel %vm1819_vm3, %v19338_v12, -inf  ;;  %v5565_v22 = vsel %vm2259_vm4, %v19338_v12, -inf }
0x1554   :  { %5244 = vmax.xlane.f32.xlu0 %v5243_v17 }
0x1557   :  { %5566 = vmax.xlane.f32.xlu1 %v5565_v22 }
0x1558   :  { %5238 = vmax.xlane.f32.xlu0 %v5237_v54 }
0x1559   :  { %v15095_v23 = vpop.f32.mrb[56].mxu1 }
0x155a   :  { %v19349_v45 = vsub.f32 %v19336_v21, %v15095_v23  ;;  %v5223_v31 = vpop.f32.mrb[57].mxu1 }
0x155b   :  { %v19354_v27 = vsub.f32 %v19338_v12, %v5223_v31  ;;  %5560 = vmax.xlane.f32.xlu1 %v5559_v26 }
0x155c   :  { %5241 = vmax.xlane.f32.xlu0 %v5240_v28 }
0x1560   :  { %5569 = vmax.xlane.f32.xlu0 %v5568_v29 }
0x1564   :  { %5563 = vmax.xlane.f32.xlu0 %v5562_v30 }
0x156c   :  { %16859 = vrot.lane.b32.xlu1 %v19306_v63, %s18192_s23 }
0x15e0   :  { %v5248_v46 = vpop.xlane.xlu1 %5247 }
0x15e1   :  { %v5245_v38 = vpop.xlane.xlu0 %5244 }
0x15e2   :  { %v5249_v19 = vmax.f32 %v5245_v38, %v5248_v46 }
0x15e4   :  { %v5250_v32 = vrot.slane %v5249_v19, 4  ;;  %v5567_v52 = vpop.xlane.xlu1 %5566 }
0x15e5   :  { %v5239_v43 = vpop.xlane.xlu0 %5238 }
0x15e6   :  { %v5251_v50 = vmax.f32 %v5249_v19, %v5250_v32  ;;  %v5258_v48 = vsub.f32 %v19334_v51, %v5239_v43 }
0x15e8   :  { %v5252_v47 = vrot.slane %v5251_v50, 2  ;;  %v5260_v33 = vmul.f32 1.442695, %v5258_v48  ;;  %v5561_v53 = vpop.xlane.xlu1 %5560 }
0x15e9   :  { %v5578_v37 = vsub.f32 %v19334_v51, %v5561_v53  ;;  %v5242_v1 = vpop.xlane.xlu0 %5241 }
0x15ea   :  { %v5253_v57 = vmax.f32 %v5251_v50, %v5252_v47  ;;  %17110 = vpow2.f32 %v5260_v33  ;;  %v5259_v35 = vsub.f32 %v19331_v39, %v5242_v1 }
0x15eb   :  { %v5580_v58 = vmul.f32 1.442695, %v5578_v37 }
0x15ec   :  { %v5254_v56 = vrot.slane %v5253_v57, 1  ;;  %v16860_v4 = vpop.permute.xlu1 %16859  ;;  %v5262_v17 = vmul.f32 1.442695, %v5259_v35 }
0x15ed   :  { %17112 = vpow2.f32 %v5580_v58  ;;  %v16862_v40 = vunpack.i.h.bf16 %v16860_v4  ;;  %v16861_v8 = vunpack.i.l.bf16 %v16860_v4  ;;  %v5570_v25 = vpop.xlane.xlu0 %5569 }
0x15ee   :  { %v5255_v60 = vmax.f32 %v5253_v57, %v5254_v56  ;;  %v5571_v15 = vmax.f32 %v5567_v52, %v5570_v25 }
0x15ef   :  { %v16163_v44 = vpack.c.bf16 %v16862_v40, %v16861_v8 }
0x15f0   :  { %v5270_v62 = vsub.f32 %v19354_v27, %v5255_v60  ;;  %v5271_v2 = vsub.f32 %v19349_v45, %v5255_v60  ;;  %v5572_v7 = vrot.slane %v5571_v15, 4  ;;  %v5886_v60 = vsel %vm2696_vm6, %v19336_v21, -inf }
0x15f1   :  { %16164 = vmatprep.subr.bf16.mxu1 %v16163_v44  ;;  %v5564_v41 = vpop.xlane.xlu0 %5563 }
0x15f2   :  { %v5272_v9 = vmul.f32 1.442695, %v5270_v62  ;;  %v5274_v10 = vmul.f32 1.442695, %v5271_v2  ;;  %v5573_v11 = vmax.f32 %v5571_v15, %v5572_v7  ;;  %v5579_v5 = vsub.f32 %v19331_v39, %v5564_v41  ;;  %16166 = vmatpush3.bf16.msra.mxu1 %v16163_v44  ;;  %v5232_v2 = vld [vmem:[%s20564_s16] sm:$0xff] }
0x15f3   :  { %v5883_v15 = vsel %vm2696_vm6, %v19338_v12, -inf  ;;  %v5877_v44 = vsel %vm2696_vm6, %v19328_v61, -inf  ;;  %v5880_v62 = vsel %vm2696_vm6, %v19326_v55, -inf  ;;  %15110 = vmatprep.subr.mxu1 %v5232_v2 }
0x15f4   :  { %v17111_v34 = vpop.eup %17110  ;;  %17114 = vpow2.f32 %v5272_v9  ;;  %v5574_v42 = vrot.slane %v5573_v11, 2  ;;  %v5582_v13 = vmul.f32 1.442695, %v5579_v5 }
0x15f5   :  { %17116 = vpow2.f32 %v5274_v10  ;;  %v5264_v14 = vadd.f32 0.0001, %v17111_v34 }
0x15f6   :  { %v5575_v18 = vmax.f32 %v5573_v11, %v5574_v42  ;;  %17118 = vpow2.f32 %v5582_v13 }
0x15f7   :  { %v17113_v20 = vpop.eup %17112  ;;  %v5266_v49 = vmul.f32 0.25, %v5264_v14  ;;  %17120 = vpow2.f32 %v5262_v17 }
0x15f8   :  { %v5576_v22 = vrot.slane %v5575_v18, 1  ;;  %v5584_v54 = vadd.f32 0.0001, %v17113_v20 }
0x15f9   :  { %15100 = vmatprep.mubr.msk.f32.mxu0 %vm1819_vm3, %v5266_v49 }
0x15fa   :  { %v5577_v23 = vmax.f32 %v5575_v18, %v5576_v22  ;;  %v5586_v31 = vmul.f32 0.25, %v5584_v54 }
0x15fc   :  { %v5588_v26 = vsub.f32 %v19354_v27, %v5577_v23  ;;  %v5589_v28 = vsub.f32 %v19349_v45, %v5577_v23  ;;  %5600 = vrot.lane.b32.xlu1 %v5586_v31, %s18222_s0 }
0x15fe   :  { %v17115_v29 = vpop.eup %17114  ;;  %v5590_v30 = vmul.f32 1.442695, %v5588_v26  ;;  %v5592_v46 = vmul.f32 1.442695, %v5589_v28 }
0x15ff   :  { %v17117_v38 = vpop.eup %17116  ;;  %v5276_v19 = vadd.f32 0.0001, %v17115_v29 }
0x1600   :  { %v17119_v32 = vpop.eup %17118  ;;  %v5277_v52 = vadd.f32 0.0001, %v17117_v38  ;;  %17122 = vpow2.f32 %v5590_v30 }
0x1601   :  { %v5278_v43 = vmul.f32 0.25, %v5276_v19  ;;  %v5585_v50 = vadd.f32 0.0001, %v17119_v32  ;;  %17124 = vpow2.f32 %v5592_v46  ;;  %v17121_v53 = vpop.eup %17120  ;;  %v19402_v46 = vld [vmem:[%s20565_s24 + $0x8] sm:$0xff]  ;;  %v19406_v32 = vld [vmem:[%s20565_s24] sm:$0xff] }
0x1602   :  { %v5279_v48 = vmul.f32 0.25, %v5277_v52  ;;  %v5265_v37 = vadd.f32 0.0001, %v17121_v53 }
0x1603   :  { %v5587_v47 = vmul.f32 0.25, %v5585_v50 }
0x1604   :  { %v16157_v33 = vpack.c.bf16 %v5279_v48, %v5278_v43  ;;  %v5267_v56 = vmul.f32 0.25, %v5265_v37 }
0x1605   :  { %5602 = vrot.lane.b32.xlu1 %v5587_v47, %s18222_s0 }
0x1606   :  { %16159 = vmatprep.subr.msk.bf16.mxu0 %vm18950_vm5, %v16157_v33 }
0x1607   :  { %16162 = vmatpush3.bf16.xpose.msk.msra.mxu0 %vm18950_vm5, %v16157_v33 }
0x160a   :  { %v17123_v1 = vpop.eup %17122 }
0x160b   :  { %v17125_v57 = vpop.eup %17124  ;;  %v5594_v58 = vadd.f32 0.0001, %v17123_v1 }
0x160c   :  { %v5595_v4 = vadd.f32 0.0001, %v17125_v57 }
0x160d   :  { %v5596_v40 = vmul.f32 0.25, %v5594_v58 }
0x160e   :  { %15101 = vmatmul.mubr.msk.f32.vlgmr.msra.gmra.mrb[58].mxu0 %vm1819_vm3, %v5267_v56  ;;  %v5597_v8 = vmul.f32 0.25, %v5595_v4 }
0x1610   :  { %v16863_v25 = vpack.i.bf16 %v5597_v8, %v5596_v40 }
0x1612   :  { %16864 = vrot.lane.b32.xlu0 %v16863_v25, %s18222_s0 }
0x1629   :  { %5887 = vmax.xlane.f32.xlu1 %v5886_v60 }
0x1631   :  { %5884 = vmax.xlane.f32.xlu0 %v5883_v15 }
0x1635   :  { %5878 = vmax.xlane.f32.xlu0 %v5877_v44 }
0x1639   :  { %5881 = vmax.xlane.f32.xlu0 %v5880_v62 }
0x163a   :  { %16869 = vrot.lane.b32.xlu1 %v19306_v63, %s18223_s30 }
0x166e   :  { %v5601_v7 = vpop.permute.xlu1 %5600 }
0x166f   :  { %15119 = vmatprep.mubr.msk.f32.mxu0 %vm1819_vm3, %v5601_v7 }
0x1677   :  { %v5603_v5 = vpop.permute.xlu1 %5602 }
0x1684   :  { %v16865_v41 = vpop.permute.xlu0 %16864 }
0x1685   :  { %v16867_v9 = vunpack.i.h.bf16 %v16865_v41  ;;  %v16866_v10 = vunpack.i.l.bf16 %v16865_v41 }
0x1687   :  { %v16167_v11 = vpack.c.bf16 %v16867_v9, %v16866_v10  ;;  %v6195_v10 = vsel %vm3133_vm7, %v19328_v61, -inf }
0x1689   :  { %16169 = vmatprep.subr.msk.bf16.mxu0 %vm18950_vm5, %v16167_v11 }
0x168a   :  { %16172 = vmatpush3.bf16.xpose.msk.msra.mxu0 %vm18950_vm5, %v16167_v11  ;;  %v6204_v11 = vsel %vm3133_vm7, %v19336_v21, -inf }
0x1691   :  { %15120 = vmatmul.mubr.msk.f32.vlgmr.msra.gmra.mrb[60].mxu0 %vm1819_vm3, %v5603_v5  ;;  %v6198_v5 = vsel %vm3133_vm7, %v19326_v55, -inf }
0x16b6   :  { %v5888_v35 = vpop.xlane.xlu1 %5887 }
0x16ba   :  { %v16870_v29 = vpop.permute.xlu1 %16869 }
0x16bb   :  { %v16872_v43 = vunpack.i.h.bf16 %v16870_v29  ;;  %v16871_v50 = vunpack.i.l.bf16 %v16870_v29 }
0x16bd   :  { %v19414_v57 = vpack.c.bf16 %v16872_v43, %v16871_v50 }
0x16be   :  { %v5885_v34 = vpop.xlane.xlu0 %5884 }
0x16bf   :  { %v5889_v42 = vmax.f32 %v5885_v34, %v5888_v35 }
0x16c1   :  { %v5890_v13 = vrot.slane %v5889_v42, 4 }
0x16c2   :  { %v5879_v22 = vpop.xlane.xlu0 %5878 }
0x16c3   :  { %v5891_v14 = vmax.f32 %v5889_v42, %v5890_v13  ;;  %v5896_v54 = vsub.f32 %v19334_v51, %v5879_v22 }
0x16c5   :  { %v5892_v18 = vrot.slane %v5891_v14, 2  ;;  %v5898_v28 = vmul.f32 1.442695, %v5896_v54 }
0x16c6   :  { %v5882_v26 = vpop.xlane.xlu0 %5881 }
0x16c7   :  { %v5893_v20 = vmax.f32 %v5891_v14, %v5892_v18  ;;  %v5897_v19 = vsub.f32 %v19331_v39, %v5882_v26  ;;  %17126 = vpow2.f32 %v5898_v28 }
0x16c9   :  { %v5894_v49 = vrot.slane %v5893_v20, 1  ;;  %v5900_v53 = vmul.f32 1.442695, %v5897_v19 }
0x16cb   :  { %v5895_v17 = vmax.f32 %v5893_v20, %v5894_v49 }
0x16cd   :  { %v5906_v23 = vsub.f32 %v19354_v27, %v5895_v17  ;;  %v5907_v31 = vsub.f32 %v19349_v45, %v5895_v17 }
0x16cf   :  { %v5908_v30 = vmul.f32 1.442695, %v5906_v23  ;;  %v5910_v38 = vmul.f32 1.442695, %v5907_v31 }
0x16d1   :  { %17128 = vpow2.f32 %v5908_v30  ;;  %v17127_v58 = vpop.eup %17126 }
0x16d2   :  { %17130 = vpow2.f32 %v5910_v38  ;;  %v5902_v40 = vadd.f32 0.0001, %v17127_v58 }
0x16d3   :  { %17132 = vpow2.f32 %v5900_v53 }
0x16d4   :  { %v5904_v15 = vmul.f32 0.25, %v5902_v40 }
0x16db   :  { %v17129_v56 = vpop.eup %17128 }
0x16dc   :  { %v17131_v4 = vpop.eup %17130  ;;  %v5912_v8 = vadd.f32 0.0001, %v17129_v56 }
0x16dd   :  { %v5913_v25 = vadd.f32 0.0001, %v17131_v4  ;;  %v17133_v60 = vpop.eup %17132 }
0x16de   :  { %v5903_v44 = vadd.f32 0.0001, %v17133_v60  ;;  %v5914_v62 = vmul.f32 0.25, %v5912_v8 }
0x16df   :  { %v5915_v7 = vmul.f32 0.25, %v5913_v25 }
0x16e0   :  { %v5905_v41 = vmul.f32 0.25, %v5903_v44 }
0x16e1   :  { %v15102_v52 = vpop.f32.mrb[58].mxu0  ;;  %v16873_v9 = vpack.i.bf16 %v5915_v7, %v5914_v62 }
0x16e2   :  { %v5368_v48 = vmul.f32 %v15102_v52, %v19402_v46  ;;  %v5358_v47 = vpop.f32.mrb[59].mxu0 }
0x16e3   :  { %v5367_v33 = vmul.f32 %v5358_v47, %v19406_v32 }
0x16e4   :  { %v5461_v37 = vsel %vm1819_vm3, %v5368_v48, 0.0 }
0x16e5   :  { %5462 = vadd.xlane.f32.xlu0 %v5461_v37  ;;  %15107 = vmatprep.mubr.msk.f32.mxu1 %vm1819_vm3, %v5367_v33  ;;  %v5458_v1 = vsel %vm1819_vm3, %v5367_v33, 0.0 }
0x16e6   :  { %5459 = vadd.xlane.f32.xlu1 %v5458_v1  ;;  %15108 = vmatmul.mubr.msk.f32.vlgmr.msra.gmra.mrb[58].mxu1 %vm1819_vm3, %v5368_v48 }
0x16e7   :  { %15111 = vmatpush3.msra.mxu1 %v5232_v2  ;;  %v6201_v2 = vsel %vm3133_vm7, %v19338_v12, -inf }
0x16e8   :  { %16174 = vmatprep.subr.bf16.mxu1 %v19414_v57 }
0x16f7   :  { %5918 = vrot.lane.b32.xlu1 %v5904_v15, %s18221_s2 }
0x16fb   :  { %16874 = vrot.lane.b32.xlu0 %v16873_v9, %s18221_s2  ;;  %5920 = vrot.lane.b32.xlu1 %v5905_v41, %s18221_s2  ;;  %v5233_v41 = vld [vmem:[%s20564_s16 + $0x8] sm:$0xff] }
0x171a   :  { %6202 = vmax.xlane.f32.xlu0 %v6201_v2 }
0x171e   :  { %6196 = vmax.xlane.f32.xlu0 %v6195_v10 }
0x171f   :  { %6205 = vmax.xlane.f32.xlu1 %v6204_v11 }
0x1722   :  { %6199 = vmax.xlane.f32.xlu0 %v6198_v5 }
0x1730   :  { %16879 = vrot.lane.b32.xlu1 %v19306_v63, %s18224_s9 }
0x1764   :  { %v15121_v35 = vpop.f32.mrb[60].mxu0 }
0x1765   :  { %v19431_v34 = vmul.f32 %v15121_v35, %v19402_v46  ;;  %v5684_v12 = vpop.f32.mrb[61].mxu0 }
0x1766   :  { %v19434_v42 = vmul.f32 %v5684_v12, %v19406_v32 }
0x1767   :  { %v5785_v61 = vsel %vm1819_vm3, %v19431_v34, 0.0 }
0x1768   :  { %5786 = vadd.xlane.f32.xlu0 %v5785_v61  ;;  %v5782_v21 = vsel %vm1819_vm3, %v19434_v42, 0.0 }
0x1769   :  { %5783 = vadd.xlane.f32.xlu1 %v5782_v21 }
0x1772   :  { %v5463_v55 = vpop.xlane.xlu0 %5462 }
0x1773   :  { %v5460_v13 = vpop.xlane.xlu1 %5459  ;;  %v5465_v29 = vadd.f32 1e-06, %v5463_v55 }
0x1774   :  { %v5464_v23 = vadd.f32 1e-06, %v5460_v13 }
0x1776   :  { %v16875_v14 = vpop.permute.xlu0 %16874  ;;  %17134 = vrcp.f32 %v5464_v23 }
0x1777   :  { %v16877_v18 = vunpack.i.h.bf16 %v16875_v14  ;;  %v16876_v20 = vunpack.i.l.bf16 %v16875_v14  ;;  %v5919_v49 = vpop.permute.xlu1 %5918 }
0x1778   :  { %15138 = vmatprep.mubr.msk.f32.mxu0 %vm1819_vm3, %v5919_v49 }
0x1779   :  { %v16177_v17 = vpack.c.bf16 %v16877_v18, %v16876_v20 }
0x177b   :  { %16179 = vmatprep.subr.msk.bf16.mxu0 %vm18950_vm5, %v16177_v17  ;;  %v5921_v22 = vpop.permute.xlu1 %5920 }
0x177c   :  { %16182 = vmatpush3.bf16.xpose.msk.msra.mxu0 %vm18950_vm5, %v16177_v17 }
0x1780   :  { %v17135_v37 = vpop.eup %17134 }
0x1783   :  { %15139 = vmatmul.mubr.msk.f32.vlgmr.msra.gmra.mrb[62].mxu0 %vm1819_vm3, %v5921_v22 }
0x17a7   :  { %v6203_v54 = vpop.xlane.xlu0 %6202 }
0x17ab   :  { %v6197_v31 = vpop.xlane.xlu0 %6196 }
0x17ac   :  { %v6214_v26 = vsub.f32 %v19334_v51, %v6197_v31  ;;  %v6206_v28 = vpop.xlane.xlu1 %6205 }
0x17ad   :  { %v6207_v30 = vmax.f32 %v6203_v54, %v6206_v28 }
0x17ae   :  { %v6216_v38 = vmul.f32 1.442695, %v6214_v26 }
0x17af   :  { %v6208_v19 = vrot.slane %v6207_v30, 4  ;;  %v6200_v52 = vpop.xlane.xlu0 %6199 }
0x17b0   :  { %17136 = vpow2.f32 %v6216_v38  ;;  %v6215_v43 = vsub.f32 %v19331_v39, %v6200_v52  ;;  %v16880_v39 = vpop.permute.xlu1 %16879 }
0x17b1   :  { %17138 = vrcp.f32 %v5465_v29  ;;  %v6209_v50 = vmax.f32 %v6207_v30, %v6208_v19  ;;  %v16882_v2 = vunpack.i.h.bf16 %v16880_v39  ;;  %v16881_v10 = vunpack.i.l.bf16 %v16880_v39 }
0x17b2   :  { %v6218_v48 = vmul.f32 1.442695, %v6215_v43 }
0x17b3   :  { %v6210_v47 = vrot.slane %v6209_v50, 2 }
0x17b4   :  { %17140 = vpow2.f32 %v6218_v48 }
0x17b5   :  { %v6211_v33 = vmax.f32 %v6209_v50, %v6210_v47  ;;  %v5234_v47 = vld [vmem:[%s20564_s16 + $0x10] sm:$0xff] }
0x17b7   :  { %v6212_v53 = vrot.slane %v6211_v33, 1 }
0x17b9   :  { %v6213_v51 = vmax.f32 %v6211_v33, %v6212_v53  ;;  %v15109_v1 = vpop.f32.mrb[58].mxu1 }
0x17ba   :  { %v17137_v58 = vpop.eup %17136  ;;  %v5449_v56 = vpop.f32.mrb[59].mxu1 }
0x17bb   :  { %v17139_v4 = vpop.eup %17138  ;;  %v6220_v40 = vadd.f32 0.0001, %v17137_v58  ;;  %v6224_v8 = vsub.f32 %v19354_v27, %v6213_v51  ;;  %v6225_v25 = vsub.f32 %v19349_v45, %v6213_v51  ;;  %v5467_v60 = vmul.f32 %v17135_v37, %v5449_v56 }
0x17bc   :  { %v5469_v15 = vmul.f32 %v17139_v4, %v15109_v1  ;;  %v16183_v27 = vpack.c.bf16 %v16882_v2, %v16881_v10 }
0x17bd   :  { %v6222_v44 = vmul.f32 0.25, %v6220_v40  ;;  %v6226_v62 = vmul.f32 1.442695, %v6224_v8  ;;  %v6228_v7 = vmul.f32 1.442695, %v6225_v25  ;;  %15112 = vmatprep.mubr.msk.f32.mxu1 %vm2151_vm8, %v5467_v60 }
0x17be   :  { %v17141_v9 = vpop.eup %17140  ;;  %15113 = vmatmul.mubr.msk.f32.vlgmr.msra.gmra.mrb[60].mxu1 %vm2151_vm8, %v5469_v15 }
0x17bf   :  { %17142 = vpow2.f32 %v6226_v62  ;;  %v6221_v11 = vadd.f32 0.0001, %v17141_v9  ;;  %16176 = vmatpush3.bf16.msra.mxu1 %v19414_v57  ;;  %6236 = vrot.lane.b32.xlu1 %v6222_v44, %s18225_s29 }
0x17c0   :  { %17144 = vpow2.f32 %v6228_v7  ;;  %15126 = vmatprep.mubr.msk.f32.mxu1 %vm1819_vm3, %v19434_v42  ;;  %15129 = vmatprep.subr.mxu1 %v5233_v41 }
0x17c1   :  { %v6223_v45 = vmul.f32 0.25, %v6221_v11 }
0x17c2   :  { %15127 = vmatmul.mubr.msk.f32.vlgmr.msra.gmra.mrb[62].mxu1 %vm1819_vm3, %v19431_v34 }
0x17c3   :  { %15130 = vmatpush3.msra.mxu1 %v5233_v41  ;;  %6238 = vrot.lane.b32.xlu1 %v6223_v45, %s18225_s29 }
0x17c4   :  { %16184 = vmatprep.subr.bf16.mxu1 %v16183_v27 }
0x17c9   :  { %v17143_v5 = vpop.eup %17142 }
0x17ca   :  { %v17145_v35 = vpop.eup %17144  ;;  %v6230_v12 = vadd.f32 0.0001, %v17143_v5 }
0x17cb   :  { %v6231_v57 = vadd.f32 0.0001, %v17145_v35 }
0x17cc   :  { %v6232_v61 = vmul.f32 0.25, %v6230_v12 }
0x17cd   :  { %v6233_v21 = vmul.f32 0.25, %v6231_v57 }
0x17cf   :  { %v16883_v55 = vpack.i.bf16 %v6233_v21, %v6232_v61  ;;  %v661_v61 = vld [vmem:[#allocation6] sm:$0xff] }
0x17d0   :  { %v6598_v21 = vld [vmem:[%s20566_s13] sm:$0xff] }
0x17d1   :  { %16884 = vrot.lane.b32.xlu0 %v16883_v55, %s18225_s29  ;;  %v6599_v55 = vld [vmem:[%s20566_s13 + $0x8] sm:$0xff] }
0x17f5   :  { %v5787_v14 = vpop.xlane.xlu0 %5786 }
0x17f6   :  { %v5784_v42 = vpop.xlane.xlu1 %5783  ;;  %v5789_v30 = vadd.f32 1e-06, %v5787_v14 }
0x17f7   :  { %v5788_v29 = vadd.f32 1e-06, %v5784_v42  ;;  %v16201_v42 = vpack.c.bf16 %v6599_v55, %v6598_v21 }
0x17f9   :  { %17146 = vrcp.f32 %v5788_v29 }
0x17fa   :  { %17148 = vrcp.f32 %v5789_v30  ;;  %v6701_v30 = vld [vmem:[%s20567_s20] sm:$0xff] }
0x1803   :  { %v17147_v19 = vpop.eup %17146 }
0x1804   :  { %v17149_v43 = vpop.eup %17148 }
0x1831   :  { %v6237_v13 = vpop.permute.xlu1 %6236 }
0x1832   :  { %15157 = vmatprep.mubr.msk.f32.mxu0 %vm1819_vm3, %v6237_v13  ;;  %v13571_v13 = vld [vmem:[#allocation27] ss:$0 sm:$0xff] }
0x1835   :  { %v6239_v17 = vpop.permute.xlu1 %6238 }
0x1843   :  { %v16885_v34 = vpop.permute.xlu0 %16884 }
0x1844   :  { %v16887_v18 = vunpack.i.h.bf16 %v16885_v34  ;;  %v16886_v20 = vunpack.i.l.bf16 %v16885_v34 }
0x1846   :  { %v16187_v49 = vpack.c.bf16 %v16887_v18, %v16886_v20 }
0x1848   :  { %16189 = vmatprep.subr.msk.bf16.mxu0 %vm18950_vm5, %v16187_v49 }
0x1849   :  { %16192 = vmatpush3.bf16.xpose.msk.msra.mxu0 %vm18950_vm5, %v16187_v49 }
0x1850   :  { %15158 = vmatmul.mubr.msk.f32.vlgmr.msra.gmra.mrb[64].mxu0 %vm1819_vm3, %v6239_v17 }
0x1851   :  { %15176 = vmatprep.mubr.msk.f32.mxu0 %vm1819_vm3, %v661_v61 }
0x1856   :  { %v15140_v22 = vpop.f32.mrb[62].mxu0 }
0x1857   :  { %v6012_v54 = vmul.f32 %v15140_v22, %v19402_v46  ;;  %v6002_v23 = vpop.f32.mrb[63].mxu0 }
0x1858   :  { %v6011_v31 = vmul.f32 %v6002_v23, %v19406_v32  ;;  %v6600_v23 = vld [vmem:[%s20566_s13 + $0x10] sm:$0xff] }
0x1859   :  { %v6103_v26 = vsel %vm1819_vm3, %v6012_v54, 0.0 }
0x185a   :  { %6104 = vadd.xlane.f32.xlu1 %v6103_v26  ;;  %v6100_v28 = vsel %vm1819_vm3, %v6011_v31, 0.0 }
0x185b   :  { %6101 = vadd.xlane.f32.xlu0 %v6100_v28 }
0x1871   :  { %16889 = vrot.lane.b32.xlu0 %v19306_v63, %s18226_s3 }
0x1895   :  { %v15128_v38 = vpop.f32.mrb[62].mxu1 }
0x1896   :  { %v5773_v52 = vpop.f32.mrb[63].mxu1  ;;  %v5793_v48 = vmul.f32 %v17149_v43, %v15128_v38  ;;  %v6702_v38 = vld [vmem:[%s20567_s20 + $0x8] sm:$0xff]  ;;  %v6704_v43 = vld [vmem:[%s20567_s20 + $0x18] sm:$0xff] }
0x1897   :  { %v5791_v50 = vmul.f32 %v17147_v19, %v5773_v52  ;;  %v16209_v19 = vpack.c.bf16 %v6702_v38, %v6701_v30  ;;  %v6703_v52 = vld [vmem:[%s20567_s20 + $0x10] sm:$0xff] }
0x1899   :  { %15131 = vmatprep.mubr.msk.f32.mxu1 %vm2151_vm8, %v5791_v50  ;;  %v16213_v50 = vpack.c.bf16 %v6704_v43, %v6703_v52  ;;  %v13604_v52 = vld [vmem:[%s20568_s18] ss:$0 sm:$0xff] }
0x189a   :  { %15132 = vmatmul.mubr.msk.f32.vlgmr.msra.gmra.mrb[60].mxu1 %vm2151_vm8, %v5793_v48  ;;  %v6705_v48 = vld [vmem:[%s20567_s20 + $0x20] sm:$0xff] }
0x189b   :  { %16186 = vmatpush3.bf16.msra.mxu1 %v16183_v27  ;;  %15145 = vmatprep.mubr.msk.f32.mxu1 %vm1819_vm3, %v6011_v31  ;;  %v6601_v31 = vld [vmem:[%s20566_s13 + $0x18] sm:$0xff] }
0x189c   :  { %15148 = vmatprep.subr.mxu1 %v5234_v47  ;;  %v16205_v26 = vpack.c.bf16 %v6601_v31, %v6600_v23  ;;  %v6871_v31 = vld [vmem:[#allocation7] sm:$0xff] }
0x189e   :  { %15146 = vmatmul.mubr.msk.f32.vlgmr.msra.gmra.mrb[64].mxu1 %vm1819_vm3, %v6012_v54  ;;  %v19494_v54 = vld [vmem:[#allocation6 + $0x8] sm:$0xff] }
0x189f   :  { %15149 = vmatpush3.msra.mxu1 %v5234_v47  ;;  %v6706_v47 = vld [vmem:[%s20567_s20 + $0x28] sm:$0xff] }
0x18e7   :  { %v6105_v25 = vpop.xlane.xlu1 %6104 }
0x18e8   :  { %v6102_v63 = vpop.xlane.xlu0 %6101  ;;  %v6107_v60 = vadd.f32 1e-06, %v6105_v25 }
0x18e9   :  { %v6106_v39 = vadd.f32 1e-06, %v6102_v63  ;;  %v16217_v63 = vpack.c.bf16 %v6706_v47, %v6705_v48  ;;  %v13605_v47 = vld [vmem:[%s20569_s22] ss:$0 sm:$0xff] }
0x18eb   :  { %17150 = vrcp.f32 %v6106_v39 }
0x18ec   :  { %v16890_v33 = vpop.permute.xlu0 %16889  ;;  %17152 = vrcp.f32 %v6107_v60 }
0x18ed   :  { %v16892_v53 = vunpack.i.h.bf16 %v16890_v33  ;;  %v16891_v37 = vunpack.i.l.bf16 %v16890_v33  ;;  %v6707_v33 = vld [vmem:[%s20567_s20 + $0x30] sm:$0xff] }
0x18ef   :  { %v16193_v51 = vpack.c.bf16 %v16892_v53, %v16891_v37  ;;  %v6708_v53 = vld [vmem:[%s20567_s20 + $0x38] sm:$0xff] }
0x18f0   :  { %v16221_v37 = vpack.c.bf16 %v6708_v53, %v6707_v33 }
0x18f1   :  { %16194 = vmatprep.subr.bf16.mxu1 %v16193_v51 }
0x18f5   :  { %v17151_v44 = vpop.eup %17150 }
0x18f6   :  { %v17153_v7 = vpop.eup %17152 }
0x1923   :  { %v15159_v1 = vpop.f32.mrb[64].mxu0 }
0x1924   :  { %v6320_v58 = vpop.f32.mrb[65].mxu0  ;;  %v6330_v4 = vmul.f32 %v15159_v1, %v19402_v46  ;;  %v5235_v46 = vld [vmem:[%s20564_s16 + $0x18] sm:$0xff] }
0x1925   :  { %v6329_v56 = vmul.f32 %v6320_v58, %v19406_v32 }
0x1926   :  { %v6421_v8 = vsel %vm1819_vm3, %v6330_v4, 0.0 }
0x1927   :  { %v6418_v40 = vsel %vm1819_vm3, %v6329_v56, 0.0 }
0x1928   :  { %6419 = vadd.xlane.f32.xlu1 %v6418_v40 }
0x192c   :  { %6422 = vadd.xlane.f32.xlu1 %v6421_v8 }
0x1971   :  { %v15147_v15 = vpop.f32.mrb[64].mxu1 }
0x1972   :  { %v6091_v62 = vpop.f32.mrb[65].mxu1  ;;  %v6111_v32 = vmul.f32 %v17153_v7, %v15147_v15 }
0x1973   :  { %v6109_v41 = vmul.f32 %v17151_v44, %v6091_v62 }
0x1975   :  { %15150 = vmatprep.mubr.msk.f32.mxu1 %vm2151_vm8, %v6109_v41 }
0x1976   :  { %15151 = vmatmul.mubr.msk.f32.vlgmr.msra.gmra.mrb[60].mxu1 %vm2151_vm8, %v6111_v32 }
0x1977   :  { %16196 = vmatpush3.bf16.msra.mxu1 %v16193_v51  ;;  %15164 = vmatprep.mubr.msk.f32.mxu1 %vm1819_vm3, %v6329_v56 }
0x1978   :  { %15167 = vmatprep.subr.mxu1 %v5235_v46 }
0x197a   :  { %15165 = vmatmul.mubr.msk.f32.vlgmr.msra.gmra.mrb[66].mxu1 %vm1819_vm3, %v6330_v4 }
0x197b   :  { %15168 = vmatpush3.msra.mxu1 %v5235_v46 }
0x197c   :  { %16202 = vmatprep.subr.bf16.mxu1 %v16201_v42 }
0x19b5   :  { %v6420_v9 = vpop.xlane.xlu1 %6419 }
0x19b6   :  { %v6424_v10 = vadd.f32 1e-06, %v6420_v9 }
0x19b8   :  { %17154 = vrcp.f32 %v6424_v10 }
0x19b9   :  { %v6423_v2 = vpop.xlane.xlu1 %6422 }
0x19ba   :  { %v6425_v11 = vadd.f32 1e-06, %v6423_v2 }
0x19bc   :  { %17156 = vrcp.f32 %v6425_v11 }
0x19c2   :  { %v17155_v27 = vpop.eup %17154 }
0x19c6   :  { %v17157_v35 = vpop.eup %17156 }
0x1a4d   :  { %v15166_v45 = vpop.f32.mrb[66].mxu1 }
0x1a4e   :  { %v6409_v5 = vpop.f32.mrb[67].mxu1  ;;  %v6429_v57 = vmul.f32 %v17157_v35, %v15166_v45 }
0x1a4f   :  { %v6427_v12 = vmul.f32 %v17155_v27, %v6409_v5 }
0x1a51   :  { %15169 = vmatprep.mubr.msk.f32.mxu1 %vm2151_vm8, %v6427_v12 }
0x1a52   :  { %15170 = vmatmul.mubr.msk.f32.vlgmr.msra.gmra.mrb[60].mxu1 %vm2151_vm8, %v6429_v57 }
0x1a53   :  { %16204 = vmatpush3.bf16.msra.mxu1 %v16201_v42 }
0x1a54   :  { %16206 = vmatprep.subr.bf16.mxu1 %v16205_v26 }
0x1a57   :  { %16208 = vmatpush3.bf16.msra.mxu1 %v16205_v26 }
0x1b25   :  { %v15171_v14 = vpop.f32.mrb[60].mxu1 }
0x1b26   :  { %v16577_v34 = vadd.f32 %v15171_v14, %v13571_v13  ;;  %v6502_v18 = vpop.f32.mrb[61].mxu1 }
0x1b27   :  { %v16578_v20 = vadd.f32 %v13571_v13, %v6502_v18 }
0x1b28   :  { %v6514_v49 = vadd.f32 %v16577_v34, %v19294_v36 }
0x1b29   :  { %v6513_v17 = vadd.f32 %v16578_v20, %v19296_v59 }
0x1b2b   :  { %v16197_v22 = vpack.c.bf16 %v6514_v49, %v6513_v17 }
0x1b2d   :  { %16198 = vmatprep.subr.bf16.mxu0 %v16197_v22 }
0x1b2e   :  { %16200 = vmatpush3.bf16.msra.mxu0 %v16197_v22 }
0x1b2f   :  { %16210 = vmatprep.subr.bf16.mxu0 %v16209_v19 }
0x1b31   :  { %15177 = vmatmul.mubr.msk.f32.vlgmr.msra.gmra.mrb[66].mxu0 %vm1819_vm3, %v19494_v54 }
0x1b32   :  { %16212 = vmatpush3.bf16.msra.mxu0 %v16209_v19 }
0x1b33   :  { %16214 = vmatprep.subr.bf16.mxu0 %v16213_v50 }
0x1b36   :  { %16216 = vmatpush3.bf16.msra.mxu0 %v16213_v50 }
0x1b37   :  { %16218 = vmatprep.subr.bf16.mxu0 %v16217_v63 }
0x1b3a   :  { %16220 = vmatpush3.bf16.msra.mxu0 %v16217_v63 }
0x1b3b   :  { %16222 = vmatprep.subr.bf16.mxu0 %v16221_v37 }
0x1b3e   :  { %16224 = vmatpush3.bf16.msra.mxu0 %v16221_v37 }
0x1c04   :  { %v15178_v36 = vpop.f32.mrb[66].mxu0 }
0x1c05   :  { %v6587_v28 = vpop.f32.mrb[67].mxu0  ;;  %v6597_v29 = vsub.f32 %v6514_v49, %v15178_v36 }
0x1c06   :  { %v6596_v59 = vsub.f32 %v6513_v17, %v6587_v28 }
0x1c08   :  { %15187 = vmatprep.mubr.msk.f32.mxu1 %vm675_vm0, %v6596_v59 }
0x1c09   :  { %15188 = vmatmul.mubr.msk.f32.vlgmr.msra.gmra.mrb[68].mxu1 %vm675_vm0, %v6597_v29 }
0x1c0a   :  { %15213 = vmatprep.mubr.msk.f32.mxu1 %vm1819_vm3, %v661_v61 }
0x1cdc   :  { %v15189_v51 = vpop.f32.mrb[68].mxu1 }
0x1cdd   :  { %v6684_v1 = vmul.f32 %v15189_v51, %v15189_v51  ;;  %v6674_v58 = vpop.f32.mrb[69].mxu1 }
0x1cde   :  { %v6683_v56 = vmul.f32 %v6674_v58, %v6674_v58 }
0x1cdf   :  { %v6686_v4 = vmul.f32 %v15189_v51, %v6684_v1  ;;  %v17350_v1 = vld [vmem:[#allocation4] sm:$0xff] }
0x1ce0   :  { %v6685_v40 = vmul.f32 %v6683_v56, %v6674_v58  ;;  %v17352_v56 = vld [vmem:[#allocation4 + $0x10] sm:$0xff] }
0x1ce1   :  { %v6688_v8 = vmul.f32 0.044715, %v6686_v4  ;;  %v17353_v4 = vld [vmem:[#allocation4 + $0x18] sm:$0xff] }
0x1ce2   :  { %v6687_v25 = vmul.f32 0.044715, %v6685_v40  ;;  %v7189_v40 = vld [vmem:[%s20570_s26] sm:$0xff] }
0x1ce3   :  { %v6690_v39 = vadd.f32 %v15189_v51, %v6688_v8  ;;  %v7190_v8 = vld [vmem:[%s20570_s26 + $0x8] sm:$0xff] }
0x1ce4   :  { %v6689_v60 = vadd.f32 %v6687_v25, %v6674_v58  ;;  %v7084_v25 = vld [vmem:[#allocation13] sm:$0xff] }
0x1ce5   :  { %v6692_v15 = vmul.f32 0.7978846, %v6690_v39 }
0x1ce6   :  { %v6691_v44 = vmul.f32 0.7978846, %v6689_v60 }
0x1ce7   :  { %17158 = vtanh.f32 %v6692_v15  ;;  %v17354_v15 = vld [vmem:[%s20549_s6 + $0x8] sm:$0xff] }
0x1ce8   :  { %17160 = vtanh.f32 %v6691_v44 }
0x1cf1   :  { %v17159_v62 = vpop.eup %17158 }
0x1cf2   :  { %v17161_v7 = vpop.eup %17160  ;;  %v6696_v41 = vadd.f32 1.0, %v17159_v62 }
0x1cf3   :  { %v6695_v32 = vadd.f32 1.0, %v17161_v7 }
0x1cf4   :  { %v6698_v46 = vmul.f32 0.5, %v6696_v41 }
0x1cf5   :  { %v6697_v9 = vmul.f32 0.5, %v6695_v32 }
0x1cf6   :  { %v6700_v10 = vmul.f32 %v15189_v51, %v6698_v46  ;;  %v6872_v51 = vld [vmem:[#allocation7 + $0x8] sm:$0xff] }
0x1cf7   :  { %v6699_v2 = vmul.f32 %v6697_v9, %v6674_v58  ;;  %v17351_v58 = vld [vmem:[#allocation4 + $0x8] sm:$0xff]  ;;  %v17356_v9 = vld [vmem:[%s20549_s6 + $0x18] sm:$0xff] }
0x1cf9   :  { %15206 = vmatprep.mubr.msk.f32.mxu0 %vm3820_vm9, %v6699_v2 }
0x1cfa   :  { %15207 = vmatmul.mubr.msk.f32.vlgmr.msra.gmra.mrb[68].mxu0 %vm3820_vm9, %v6700_v10 }
0x1cfb   :  { %15245 = vmatprep.mubr.msk.f32.mxu0 %vm675_vm0, %v7084_v25 }
0x1dcd   :  { %v15208_v11 = vpop.f32.mrb[68].mxu0 }
0x1dce   :  { %v6791_v45 = vadd.f32 %v15208_v11, %v6597_v29  ;;  %v6781_v27 = vpop.f32.mrb[69].mxu0  ;;  %v17357_v11 = vld [vmem:[%s20549_s6 + $0x10] sm:$0xff] }
0x1dcf   :  { %v6790_v5 = vadd.f32 %v6781_v27, %v6596_v59 }
0x1dd1   :  { %v16225_v35 = vpack.c.bf16 %v6791_v45, %v6790_v5 }
0x1dd3   :  { %16226 = vmatprep.subr.bf16.mxu1 %v16225_v35 }
0x1dd4   :  { %16228 = vmatpush3.bf16.msra.mxu1 %v16225_v35  ;;  %v7085_v35 = vld [vmem:[#allocation13 + $0x8] sm:$0xff] }
0x1dd7   :  { %15214 = vmatmul.mubr.msk.f32.vlgmr.msra.gmra.mrb[70].mxu1 %vm1819_vm3, %v19494_v54 }
0x1dd8   :  { %15220 = vmatprep.mubr.msk.f32.mxu1 %vm1819_vm3, %v6871_v31  ;;  %v17362_v31 = vld [vmem:[#allocation10 + $0x10] sm:$0xff] }
0x1eaa   :  { %v15215_v12 = vpop.f32.mrb[70].mxu1 }
0x1eab   :  { %v6858_v57 = vpop.f32.mrb[71].mxu1  ;;  %v6868_v21 = vsub.f32 %v6791_v45, %v15215_v12  ;;  %v7086_v12 = vld [vmem:[#allocation13 + $0x10] sm:$0xff] }
0x1eac   :  { %v6867_v61 = vsub.f32 %v6790_v5, %v6858_v57  ;;  %v7087_v57 = vld [vmem:[#allocation13 + $0x18] sm:$0xff] }
0x1ead   :  { %v6876_v42 = vsel %vm675_vm0, %v6868_v21, 0.0 }
0x1eae   :  { %v6873_v55 = vsel %vm675_vm0, %v6867_v61, 0.0 }
0x1eaf   :  { %6874 = vadd.xlane.f32.xlu1 %v6873_v55  ;;  %v7192_v55 = vld [vmem:[%s20570_s26 + $0x18] sm:$0xff] }
0x1eb3   :  { %6877 = vadd.xlane.f32.xlu1 %v6876_v42  ;;  %v17359_v42 = vld [vmem:[#allocation12] sm:$0xff] }
0x1f3c   :  { %v6875_v13 = vpop.xlane.xlu1 %6874 }
0x1f3d   :  { %v6880_v14 = vmul.f32 0.03125, %v6875_v13 }
0x1f3f   :  { %v6882_v34 = vsub.f32 %v6867_v61, %v6880_v14  ;;  %v17358_v61 = vld [vmem:[#allocation10] sm:$0xff] }
0x1f40   :  { %v6878_v18 = vpop.xlane.xlu1 %6877 }
0x1f41   :  { %v6881_v20 = vmul.f32 0.03125, %v6878_v18  ;;  %v6884_v49 = vmul.f32 %v6882_v34, %v6882_v34 }
0x1f43   :  { %v6883_v17 = vsub.f32 %v6868_v21, %v6881_v20  ;;  %v6886_v22 = vsel %vm675_vm0, %v6884_v49, 0.0  ;;  %v7191_v21 = vld [vmem:[%s20570_s26 + $0x10] sm:$0xff] }
0x1f44   :  { %6887 = vadd.xlane.f32.xlu1 %v6886_v22  ;;  %v7460_v22 = vld [vmem:[#allocation19] sm:$0xf] }
0x1f45   :  { %v6885_v54 = vmul.f32 %v6883_v17, %v6883_v17 }
0x1f47   :  { %v6889_v23 = vsel %vm675_vm0, %v6885_v54, 0.0  ;;  %v17360_v54 = vld [vmem:[#allocation10 + $0x8] sm:$0xff] }
0x1f48   :  { %6890 = vadd.xlane.f32.xlu0 %v6889_v23  ;;  %v17361_v23 = vld [vmem:[#allocation12 + $0x8] sm:$0xff] }
0x1fd1   :  { %v6888_v26 = vpop.xlane.xlu1 %6887 }
0x1fd2   :  { %v6892_v36 = vmul.f32 0.03125, %v6888_v26  ;;  %v17363_v26 = vld [vmem:[#allocation12 + $0x10] sm:$0xff] }
0x1fd4   :  { %v6894_v28 = vadd.f32 1e-05, %v6892_v36  ;;  %v17364_v36 = vld [vmem:[#allocation10 + $0x18] sm:$0xff] }
0x1fd5   :  { %v6891_v59 = vpop.xlane.xlu0 %6890 }
0x1fd6   :  { %17162 = vrsqrt.f32 %v6894_v28  ;;  %v6893_v29 = vmul.f32 0.03125, %v6891_v59  ;;  %v17365_v28 = vld [vmem:[#allocation12 + $0x18] sm:$0xff]  ;;  %v7749_v59 = vld [vmem:[#allocation19 + $0x8] sm:$0xf] }
0x1fd8   :  { %v6895_v30 = vadd.f32 1e-05, %v6893_v29  ;;  %v7971_v29 = vld [vmem:[%s20571_s12] sm:$0xff] }
0x1fda   :  { %17164 = vrsqrt.f32 %v6895_v30  ;;  %v7972_v30 = vld [vmem:[%s20571_s12 + $0x8] sm:$0xff] }
0x1fe0   :  { %v17163_v38 = vpop.eup %17162 }
0x1fe1   :  { %v6898_v19 = vmul.f32 %v17163_v38, %v6882_v34  ;;  %v16281_v38 = vpack.c.bf16 %v7972_v30, %v7971_v29 }
0x1fe3   :  { %v6906_v48 = vmul.f32 %v13604_v52, %v6898_v19 }
0x1fe4   :  { %v17165_v43 = vpop.eup %17164 }
0x1fe5   :  { %v6899_v50 = vmul.f32 %v17165_v43, %v6883_v17  ;;  %v19522_v33 = vadd.f32 %v13605_v47, %v6906_v48  ;;  %v7462_v17 = vld [vmem:[#allocation19 + $0x4] sm:$0xf]  ;;  %v7858_v48 = vld [vmem:[#allocation21] sm:$0xf] }
0x1fe7   :  { %v6907_v63 = vmul.f32 %v13604_v52, %v6899_v50 }
0x1fe9   :  { %v19524_v53 = vadd.f32 %v13605_v47, %v6907_v63 }
0x1feb   :  { %v16229_v37 = vpack.c.bf16 %v19524_v53, %v19522_v33 }
0x1fed   :  { %16230 = vmatprep.subr.bf16.mxu1 %v16229_v37 }
0x1fee   :  { %16232 = vmatpush3.bf16.msra.mxu1 %v16229_v37 }
0x1fef   :  { %16234 = vmatprep.subr.bf16.mxu1 %v18734_v3 }
0x1ff1   :  { %15221 = vmatmul.mubr.msk.f32.vlgmr.msra.gmra.mrb[72].mxu1 %vm1819_vm3, %v6872_v51 }
0x1ff2   :  { %16236 = vmatpush3.bf16.msra.mxu1 %v18734_v3  ;;  %15231 = vmatprep.mubr.msk.f32.mxu1 %vm675_vm0, %v17350_v1  ;;  %v7854_v1 = vld [vmem:[%s20572_s21] sm:$0xff] }
0x1ff3   :  { %16238 = vmatprep.subr.bf16.mxu1 %v18737_v6 }
0x1ff6   :  { %16240 = vmatpush3.bf16.msra.mxu1 %v18737_v6 }
0x1ff7   :  { %16250 = vmatprep.subr.bf16.mxu1 %v18734_v3 }
0x1ff9   :  { %15232 = vmatmul.mubr.msk.f32.vlgmr.msra.gmra.mrb[74].mxu1 %vm675_vm0, %v17351_v58  ;;  %v7855_v58 = vld [vmem:[%s20572_s21 + $0x8] sm:$0xff] }
0x1ffa   :  { %15234 = vmatprep.mubr.msk.f32.mxu1 %vm675_vm0, %v17352_v56  ;;  %16252 = vmatpush3.bf16.msra.mxu1 %v18734_v3  ;;  %v7856_v56 = vld [vmem:[%s20572_s21 + $0x10] sm:$0xff] }
0x1ffb   :  { %16254 = vmatprep.subr.bf16.mxu1 %v18737_v6 }
0x1ffd   :  { %15235 = vmatmul.mubr.msk.f32.gmra.mrb[76].mxu1 %vm675_vm0, %v17353_v4  ;;  %v7857_v4 = vld [vmem:[%s20572_s21 + $0x18] sm:$0xff] }
0x1ffe   :  { %16256 = vmatpush3.bf16.msra.mxu1 %v18737_v6  ;;  %15259 = vmatprep.mubr.msk.f32.mxu1 %vm675_vm0, %v7189_v40  ;;  %v17355_v6 = vld [vmem:[%s20549_s6] sm:$0xff]  ;;  %s20573_s6 = sld [smem:[#allocation103_spill]]  ;;  %v7973_v40 = vld [vmem:[%s20571_s12 + $0x10] sm:$0xff] }
0x2001   :  { %15260 = vmatmul.mubr.msk.f32.vlgmr.msra.gmra.mrb[78].mxu1 %vm675_vm0, %v7190_v8  ;;  %v7974_v8 = vld [vmem:[%s20571_s12 + $0x18] sm:$0xff] }
0x2002   :  { %15262 = vmatprep.mubr.msk.f32.mxu1 %vm675_vm0, %v7191_v21 }
0x2005   :  { %15263 = vmatmul.mubr.msk.f32.gmra.mrb[80].mxu1 %vm675_vm0, %v7192_v55 }
0x2006   :  { %15273 = vmatprep.mubr.msk.f32.mxu1 %vm675_vm0, %v7084_v25  ;;  %v16285_v25 = vpack.c.bf16 %v7974_v8, %v7973_v40 }
0x20c4   :  { %v19546_v39 = vpop.f32.mrb[72].mxu1 }
0x20c5   :  { %v19548_v3 = vpop.f32.mrb[73].mxu1 }
0x20cc   :  { %v15233_v60 = vpop.f32.mrb[74].mxu1 }
0x20cd   :  { %v7089_v44 = vsub.f32 %v17354_v15, %v15233_v60  ;;  %v7065_v62 = vpop.f32.mrb[75].mxu1  ;;  %v8084_v15 = vld [vmem:[%s20573_s6 + $0x8] sm:$0xff] }
0x20ce   :  { %v7088_v7 = vsub.f32 %v17355_v6, %v7065_v62  ;;  %v16257_v41 = vpack.c.bf16 %v15233_v60, %v7065_v62  ;;  %v8083_v60 = vld [vmem:[%s20573_s6] sm:$0xff] }
0x20d0   :  { %v16241_v32 = vpack.c.bf16 %v7089_v44, %v7088_v7  ;;  %v15236_v46 = vpop.f32.mrb[76].mxu1  ;;  %16258 = vmatprep.subr.bf16.mxu1 %v16257_v41  ;;  %v16289_v44 = vpack.c.bf16 %v8084_v15, %v8083_v60  ;;  %v17366_v7 = vld [vmem:[#allocation2] sm:$0xff] }
0x20d1   :  { %v7091_v2 = vsub.f32 %v17356_v9, %v15236_v46  ;;  %v7075_v10 = vpop.f32.mrb[77].mxu1  ;;  %16260 = vmatpush3.bf16.msra.mxu1 %v16257_v41 }
0x20d2   :  { %v7090_v45 = vsub.f32 %v17357_v11, %v7075_v10  ;;  %v16261_v27 = vpack.c.bf16 %v15236_v46, %v7075_v10  ;;  %16242 = vmatprep.subr.bf16.mxu0 %v16241_v32  ;;  %v17368_v10 = vld [vmem:[#allocation2 + $0x10] sm:$0xff] }
0x20d3   :  { %16244 = vmatpush3.bf16.msra.mxu0 %v16241_v32  ;;  %v17367_v32 = vld [vmem:[#allocation2 + $0x8] sm:$0xff] }
0x20d4   :  { %v16245_v5 = vpack.c.bf16 %v7091_v2, %v7090_v45  ;;  %16262 = vmatprep.subr.bf16.mxu1 %v16261_v27  ;;  %v17369_v45 = vld [vmem:[#allocation2 + $0x18] sm:$0xff] }
0x20d5   :  { %16264 = vmatpush3.bf16.msra.mxu1 %v16261_v27 }
0x20d6   :  { %16246 = vmatprep.subr.bf16.mxu0 %v16245_v5 }
0x20d7   :  { %16248 = vmatpush3.bf16.msra.mxu0 %v16245_v5  ;;  %v8085_v5 = vld [vmem:[%s20573_s6 + $0x10] sm:$0xff] }
0x20d8   :  { %15274 = vmatmul.mubr.msk.f32.vlgmr.msra.gmra.mrb[78].mxu1 %vm675_vm0, %v7085_v35 }
0x20d9   :  { %15276 = vmatprep.mubr.msk.f32.mxu1 %vm675_vm0, %v7086_v12 }
0x20da   :  { %15246 = vmatmul.mubr.msk.f32.vlgmr.msra.gmra.mrb[70].mxu0 %vm675_vm0, %v7085_v35  ;;  %v8086_v35 = vld [vmem:[%s20573_s6 + $0x18] sm:$0xff] }
0x20db   :  { %15248 = vmatprep.mubr.msk.f32.mxu0 %vm675_vm0, %v7086_v12  ;;  %v16293_v12 = vpack.c.bf16 %v8086_v35, %v8085_v5 }
0x20dc   :  { %15277 = vmatmul.mubr.msk.f32.gmra.mrb[80].mxu1 %vm675_vm0, %v7087_v57 }
0x20dd   :  { %15317 = vmatprep.mubr.msk.f32.mxu1 %vm675_vm0, %v17359_v42 }
0x20de   :  { %15249 = vmatmul.mubr.msk.f32.gmra.mrb[72].mxu0 %vm675_vm0, %v7087_v57  ;;  %v13652_v57 = vld [vmem:[#allocation33] ss:$0 sm:$0xff] }
0x20df   :  { %15287 = vmatprep.mubr.msk.f32.mxu0 %vm675_vm0, %v17358_v61 }
0x21ad   :  { %v15247_v13 = vpop.f32.mrb[70].mxu0 }
0x21ae   :  { %v7170_v14 = vpop.f32.mrb[71].mxu0 }
0x21af   :  { %v16265_v34 = vpack.c.bf16 %v15247_v13, %v7170_v14 }
0x21b1   :  { %v15250_v18 = vpop.f32.mrb[72].mxu0  ;;  %16266 = vmatprep.subr.bf16.mxu0 %v16265_v34  ;;  %16274 = vmatprep.subr.bf16.mxu1 %v16265_v34 }
0x21b2   :  { %v7180_v20 = vpop.f32.mrb[73].mxu0  ;;  %16268 = vmatpush3.bf16.msra.mxu0 %v16265_v34  ;;  %16276 = vmatpush3.bf16.msra.mxu1 %v16265_v34 }
0x21b3   :  { %v16269_v49 = vpack.c.bf16 %v15250_v18, %v7180_v20 }
0x21b5   :  { %16270 = vmatprep.subr.bf16.mxu0 %v16269_v49  ;;  %16278 = vmatprep.subr.bf16.mxu1 %v16269_v49 }
0x21b6   :  { %16272 = vmatpush3.bf16.msra.mxu0 %v16269_v49  ;;  %16280 = vmatpush3.bf16.msra.mxu1 %v16269_v49 }
0x21b7   :  { %15293 = vmatprep.subr.msk.mxu0 %vm789_vm1, %v7462_v17  ;;  %16282 = vmatprep.subr.bf16.mxu1 %v16281_v38 }
0x21b9   :  { %15288 = vmatmul.mubr.msk.f32.vlgmr.msra.gmra.mrb[74].mxu0 %vm675_vm0, %v17360_v54  ;;  %15318 = vmatmul.mubr.msk.f32.vlgmr.msra.gmra.mrb[82].mxu1 %vm675_vm0, %v17361_v23 }
0x21ba   :  { %15290 = vmatprep.mubr.msk.f32.mxu0 %vm675_vm0, %v17362_v31  ;;  %15294 = vmatpush3.msk.msra.mxu0 %vm789_vm1, %v7462_v17 }
0x21bb   :  { %15320 = vmatprep.mubr.msk.f32.mxu1 %vm675_vm0, %v17363_v26  ;;  %15301 = vmatprep.subr.msk.mxu0 %vm789_vm1, %v7460_v22 }
0x21bc   :  { %16284 = vmatpush3.bf16.msra.mxu1 %v16281_v38 }
0x21bd   :  { %15291 = vmatmul.mubr.msk.f32.gmra.mrb[76].mxu0 %vm675_vm0, %v17364_v36  ;;  %15321 = vmatmul.mubr.msk.f32.gmra.mrb[84].mxu1 %vm675_vm0, %v17365_v28 }
0x21be   :  { %15295 = vmatprep.mubr.msk.f32.mxu0 %vm776_vm2, %v7170_v14  ;;  %16286 = vmatprep.subr.bf16.mxu1 %v16285_v25 }
0x21c0   :  { %16288 = vmatpush3.bf16.msra.mxu1 %v16285_v25 }
0x21c1   :  { %15296 = vmatmul.mubr.msk.f32.vlgmr.msra.gmra.mrb[78].mxu0 %vm776_vm2, %v15247_v13  ;;  %16290 = vmatprep.subr.bf16.mxu1 %v16289_v44 }
0x21c2   :  { %15298 = vmatprep.mubr.msk.f32.mxu0 %vm776_vm2, %v7180_v20  ;;  %15302 = vmatpush3.msk.msra.mxu0 %vm789_vm1, %v7460_v22 }
0x21c3   :  { %15323 = vmatprep.subr.msk.mxu0 %vm789_vm1, %v7749_v59 }
0x21c5   :  { %15299 = vmatmul.mubr.msk.f32.gmra.mrb[80].mxu0 %vm776_vm2, %v15250_v18 }
0x228c   :  { %v15289_v19 = vpop.f32.mrb[74].mxu0  ;;  %v15319_v52 = vpop.f32.mrb[82].mxu1 }
0x228d   :  { %v7441_v43 = vpop.f32.mrb[75].mxu0  ;;  %v7729_v50 = vpop.f32.mrb[83].mxu1 }
0x228e   :  { %15303 = vmatprep.mubr.msk.f32.mxu0 %vm776_vm2, %v7441_v43 }
0x228f   :  { %15304 = vmatmul.mubr.msk.f32.vlgmr.msra.gmra.mrb[78].mxu0 %vm776_vm2, %v15289_v19 }
0x2290   :  { %v15292_v47 = vpop.f32.mrb[76].mxu0  ;;  %15324 = vmatpush3.msk.msra.mxu0 %vm789_vm1, %v7749_v59  ;;  %v15322_v63 = vpop.f32.mrb[84].mxu1 }
0x2291   :  { %v7451_v37 = vpop.f32.mrb[77].mxu0  ;;  %v7739_v51 = vpop.f32.mrb[85].mxu1  ;;  %15331 = vmatprep.subr.msk.mxu0 %vm789_vm1, %v7858_v48 }
0x2292   :  { %15306 = vmatprep.mubr.msk.f32.mxu0 %vm776_vm2, %v7451_v37 }
0x2293   :  { %15307 = vmatmul.mubr.msk.f32.gmra.mrb[80].mxu0 %vm776_vm2, %v15292_v47 }
0x2294   :  { %15325 = vmatprep.mubr.msk.f32.mxu0 %vm776_vm2, %v7729_v50 }
0x2297   :  { %15326 = vmatmul.mubr.msk.f32.vlgmr.msra.gmra.mrb[78].mxu0 %vm776_vm2, %v15319_v52 }
0x2298   :  { %15328 = vmatprep.mubr.msk.f32.mxu0 %vm776_vm2, %v7739_v51  ;;  %15332 = vmatpush3.msk.msra.mxu0 %vm789_vm1, %v7858_v48 }
0x2299   :  { %16306 = vmatprep.subr.bf16.mxu0 %v18809_v0 }
0x229b   :  { %15329 = vmatmul.mubr.msk.f32.gmra.mrb[80].mxu0 %vm776_vm2, %v15322_v63 }
0x229c   :  { %15333 = vmatprep.mubr.msk.f32.mxu0 %vm776_vm2, %v7854_v1 }
0x229f   :  { %15334 = vmatmul.mubr.msk.f32.vlgmr.msra.gmra.mrb[78].mxu0 %vm776_vm2, %v7855_v58 }
0x22a0   :  { %15336 = vmatprep.mubr.msk.f32.mxu0 %vm776_vm2, %v7856_v56  ;;  %16308 = vmatpush3.bf16.msra.mxu0 %v18809_v0 }
0x22a1   :  { %16310 = vmatprep.subr.bf16.mxu0 %v18817_v16 }
0x22a3   :  { %15337 = vmatmul.mubr.msk.f32.gmra.mrb[80].mxu0 %vm776_vm2, %v7857_v4 }
0x22a4   :  { %16312 = vmatpush3.bf16.msra.mxu0 %v18817_v16 }
0x2372   :  { %v15335_v62 = vpop.f32.mrb[78].mxu0 }
0x2373   :  { %v7940_v6 = vpop.f32.mrb[79].mxu0  ;;  %v19613_v46 = vadd.f32 %v17367_v32, %v15335_v62 }
0x2374   :  { %v19611_v41 = vadd.f32 %v17366_v7, %v7940_v6 }
0x2376   :  { %v15338_v9 = vpop.f32.mrb[80].mxu0  ;;  %15347 = vmatprep.mubr.msk.f32.mxu1 %vm675_vm0, %v19611_v41 }
0x2377   :  { %v7950_v2 = vpop.f32.mrb[81].mxu0  ;;  %15348 = vmatmul.mubr.msk.f32.vlgmr.msra.gmra.mrb[86].mxu1 %vm675_vm0, %v19613_v46  ;;  %v19621_v27 = vadd.f32 %v17369_v45, %v15338_v9 }
0x2378   :  { %v19619_v11 = vadd.f32 %v17368_v10, %v7950_v2  ;;  %16292 = vmatpush3.bf16.msra.mxu1 %v16289_v44 }
0x2379   :  { %16294 = vmatprep.subr.bf16.mxu1 %v16293_v12 }
0x237a   :  { %15350 = vmatprep.mubr.msk.f32.mxu1 %vm675_vm0, %v19619_v11 }
0x237b   :  { %15351 = vmatmul.mubr.msk.f32.gmra.mrb[88].mxu1 %vm675_vm0, %v19621_v27 }
0x237c   :  { %16296 = vmatpush3.bf16.msra.mxu1 %v16293_v12 }
0x237d   :  { %16298 = vmatprep.subr.bf16.mxu1 %v16289_v44 }
0x244a   :  { %v15349_v61 = vpop.f32.mrb[86].mxu1 }
0x244b   :  { %v8066_v21 = vadd.f32 %v15349_v61, %v13652_v57  ;;  %v8060_v55 = vpop.f32.mrb[87].mxu1 }
0x244c   :  { %v8061_v42 = vadd.f32 %v13652_v57, %v8060_v55 }
0x244d   :  { %v8080_v13 = vmul.f32 0.59460354, %v8066_v21 }
0x244e   :  { %v15352_v14 = vpop.f32.mrb[88].mxu1  ;;  %v8079_v34 = vmul.f32 0.59460354, %v8061_v42  ;;  %v19629_v18 = vpack.i.bf16 %v8066_v21, %v8061_v42 }
0x244f   :  { %v8076_v20 = vadd.f32 %v15352_v14, %v13652_v57  ;;  %8186 = vrot.lane.b32.xlu1 %v8080_v13, %s18221_s2  ;;  %v8070_v49 = vpop.f32.mrb[89].mxu1  ;;  %v8286_v54 = vmul.f32 %v8080_v13, %v8080_v13 }
0x2450   :  { %v8071_v17 = vadd.f32 %v13652_v57, %v8070_v49  ;;  %15361 = vmatprep.mubr.msk.f32.mxu1 %vm675_vm0, %v8079_v34  ;;  %v8285_v22 = vmul.f32 %v8079_v34, %v8079_v34 }
0x2451   :  { %15362 = vmatmul.mubr.msk.f32.vlgmr.msra.gmra.mrb[90].mxu1 %vm675_vm0, %v8080_v13  ;;  %v8082_v23 = vmul.f32 0.59460354, %v8076_v20 }
0x2452   :  { %8386 = vrot.lane.b32.xlu0 %v8285_v22, %s18221_s2  ;;  %15389 = vmatprep.mubr.msk.f32.mxu0 %vm675_vm0, %v8285_v22  ;;  %v8081_v31 = vmul.f32 0.59460354, %v8071_v17  ;;  %v19636_v26 = vpack.i.bf16 %v8076_v20, %v8071_v17 }
0x2453   :  { %8184 = vrot.lane.b32.xlu1 %v8079_v34, %s18221_s2  ;;  %15390 = vmatmul.mubr.msk.f32.vlgmr.msra.gmra.mrb[82].mxu0 %vm675_vm0, %v8286_v54  ;;  %v8288_v28 = vmul.f32 %v8082_v23, %v8082_v23 }
0x2454   :  { %15364 = vmatprep.mubr.msk.f32.mxu1 %vm675_vm0, %v8081_v31  ;;  %v8287_v36 = vmul.f32 %v8081_v31, %v8081_v31  ;;  %16300 = vmatpush3.bf16.msra.mxu1 %v16289_v44 }
0x2455   :  { %15365 = vmatmul.mubr.msk.f32.gmra.mrb[92].mxu1 %vm675_vm0, %v8082_v23  ;;  %16302 = vmatprep.subr.bf16.mxu1 %v16293_v12 }
0x2456   :  { %15392 = vmatprep.mubr.msk.f32.mxu0 %vm675_vm0, %v8287_v36 }
0x2457   :  { %8188 = vrot.lane.b32.xlu1 %v8081_v31, %s18221_s2  ;;  %15393 = vmatmul.mubr.msk.f32.gmra.mrb[84].mxu0 %vm675_vm0, %v8288_v28 }
0x2458   :  { %16304 = vmatpush3.bf16.msra.mxu1 %v16293_v12 }
0x2459   :  { %16314 = vmatprep.subr.bf16.mxu1 %v18809_v0 }
0x245b   :  { %8190 = vrot.lane.b32.xlu1 %v8082_v23, %s18221_s2 }
0x245f   :  { %8388 = vrot.lane.b32.xlu1 %v8286_v54, %s18221_s2 }
0x2463   :  { %8390 = vrot.lane.b32.xlu1 %v8287_v36, %s18221_s2 }
0x2467   :  { %8392 = vrot.lane.b32.xlu1 %v8288_v28, %s18221_s2 }
0x24c1   :  { %v8187_v59 = vpop.permute.xlu1 %8186 }
0x24c4   :  { %v8387_v19 = vpop.permute.xlu0 %8386 }
0x24c5   :  { %v8185_v29 = vpop.permute.xlu1 %8184 }
0x24c6   :  { %15375 = vmatprep.mubr.msk.f32.mxu1 %vm675_vm0, %v8185_v29 }
0x24c7   :  { %15376 = vmatmul.mubr.msk.f32.vlgmr.msra.gmra.mrb[94].mxu1 %vm675_vm0, %v8187_v59 }
0x24c8   :  { %16316 = vmatpush3.bf16.msra.mxu1 %v18809_v0 }
0x24c9   :  { %v8189_v30 = vpop.permute.xlu1 %8188  ;;  %16318 = vmatprep.subr.bf16.mxu1 %v18817_v16 }
0x24ca   :  { %15378 = vmatprep.mubr.msk.f32.mxu1 %vm675_vm0, %v8189_v30 }
0x24cc   :  { %16320 = vmatpush3.bf16.msra.mxu1 %v18817_v16 }
0x24cd   :  { %v8191_v38 = vpop.permute.xlu1 %8190 }
0x24ce   :  { %15379 = vmatmul.mubr.msk.f32.gmra.mrb[96].mxu1 %vm675_vm0, %v8191_v38 }
0x24cf   :  { %15403 = vmatprep.mubr.msk.f32.mxu1 %vm675_vm0, %v8387_v19 }
0x24d1   :  { %v8389_v52 = vpop.permute.xlu1 %8388 }
0x24d2   :  { %15404 = vmatmul.mubr.msk.f32.vlgmr.msra.gmra.mrb[98].mxu1 %vm675_vm0, %v8389_v52 }
0x24d5   :  { %v8391_v43 = vpop.permute.xlu1 %8390 }
0x24d6   :  { %15406 = vmatprep.mubr.msk.f32.mxu1 %vm675_vm0, %v8391_v43 }
0x24d9   :  { %v8393_v0 = vpop.permute.xlu1 %8392 }
0x24da   :  { %15407 = vmatmul.mubr.msk.f32.gmra.mrb[100].mxu1 %vm675_vm0, %v8393_v0 }
0x2524   :  { %v19661_v50 = vpop.f32.mrb[90].mxu1 }
0x2525   :  { %v19663_v48 = vpop.f32.mrb[91].mxu1  ;;  %v8495_v10 = vsel %vm1819_vm3, %v19661_v50, -inf  ;;  %v8933_v20 = vsel %vm2259_vm4, %v19661_v50, -inf }
0x2526   :  { %v15391_v16 = vpop.f32.mrb[82].mxu0  ;;  %v8492_v5 = vsel %vm1819_vm3, %v19663_v48, -inf  ;;  %v8930_v49 = vsel %vm2259_vm4, %v19663_v48, -inf }
0x2527   :  { %v19666_v47 = vsub.f32 %v19661_v50, %v15391_v16  ;;  %v8367_v63 = vpop.f32.mrb[83].mxu0 }
0x2528   :  { %v19669_v37 = vsub.f32 %v19663_v48, %v8367_v63  ;;  %v19671_v51 = vpop.f32.mrb[92].mxu1 }
0x2529   :  { %v19673_v1 = vpop.f32.mrb[93].mxu1  ;;  %v8501_v35 = vsel %vm1819_vm3, %v19671_v51, -inf  ;;  %v8939_v17 = vsel %vm2259_vm4, %v19671_v51, -inf }
0x252a   :  { %v15394_v58 = vpop.f32.mrb[84].mxu0  ;;  %v8498_v12 = vsel %vm1819_vm3, %v19673_v1, -inf  ;;  %v8936_v22 = vsel %vm2259_vm4, %v19673_v1, -inf }
0x252b   :  { %v19676_v56 = vsub.f32 %v19671_v51, %v15394_v58  ;;  %v8377_v4 = vpop.f32.mrb[85].mxu0 }
0x252c   :  { %v19679_v40 = vsub.f32 %v19673_v1, %v8377_v4 }
0x259a   :  { %v19681_v8 = vpop.f32.mrb[94].mxu1 }
0x259b   :  { %v19683_v25 = vpop.f32.mrb[95].mxu1  ;;  %v8507_v60 = vsel %vm1819_vm3, %v19681_v8, -inf  ;;  %v8945_v55 = vsel %vm2259_vm4, %v19681_v8, -inf }
0x259c   :  { %8508 = vmax.xlane.f32.xlu0 %v8507_v60  ;;  %v8504_v15 = vsel %vm1819_vm3, %v19683_v25, -inf  ;;  %v8942_v13 = vsel %vm2259_vm4, %v19683_v25, -inf }
0x259d   :  { %8505 = vmax.xlane.f32.xlu1 %v8504_v15 }
0x25a1   :  { %v19689_v44 = vpop.f32.mrb[96].mxu1 }
0x25a2   :  { %v19691_v62 = vpop.f32.mrb[97].mxu1  ;;  %v8513_v6 = vsel %vm1819_vm3, %v19689_v44, -inf  ;;  %v8951_v14 = vsel %vm2259_vm4, %v19689_v44, -inf }
0x25a3   :  { %8514 = vmax.xlane.f32.xlu0 %v8513_v6  ;;  %v8510_v7 = vsel %vm1819_vm3, %v19691_v62, -inf  ;;  %v8948_v34 = vsel %vm2259_vm4, %v19691_v62, -inf }
0x25a4   :  { %8511 = vmax.xlane.f32.xlu1 %v8510_v7 }
0x25a5   :  { %v15405_v32 = vpop.f32.mrb[98].mxu1 }
0x25a6   :  { %v19698_v9 = vsub.f32 %v19681_v8, %v15405_v32  ;;  %v8468_v2 = vpop.f32.mrb[99].mxu1 }
0x25a7   :  { %v19703_v45 = vsub.f32 %v19683_v25, %v8468_v2  ;;  %8496 = vmax.xlane.f32.xlu0 %v8495_v10 }
0x25a8   :  { %8493 = vmax.xlane.f32.xlu1 %v8492_v5 }
0x25ab   :  { %8502 = vmax.xlane.f32.xlu0 %v8501_v35 }
0x25ac   :  { %8499 = vmax.xlane.f32.xlu1 %v8498_v12 }
0x25ad   :  { %v15408_v57 = vpop.f32.mrb[100].mxu1 }
0x25ae   :  { %v19712_v61 = vsub.f32 %v19689_v44, %v15408_v57  ;;  %v8478_v21 = vpop.f32.mrb[101].mxu1 }
0x25af   :  { %v19717_v42 = vsub.f32 %v19691_v62, %v8478_v21  ;;  %8946 = vmax.xlane.f32.xlu0 %v8945_v55 }
0x25b0   :  { %8943 = vmax.xlane.f32.xlu1 %v8942_v13 }
0x25b3   :  { %8952 = vmax.xlane.f32.xlu0 %v8951_v14 }
0x25b4   :  { %8949 = vmax.xlane.f32.xlu1 %v8948_v34 }
0x25b7   :  { %8934 = vmax.xlane.f32.xlu0 %v8933_v20 }
0x25b8   :  { %8931 = vmax.xlane.f32.xlu1 %v8930_v49 }
0x25bb   :  { %8940 = vmax.xlane.f32.xlu0 %v8939_v17 }
0x25bc   :  { %8937 = vmax.xlane.f32.xlu1 %v8936_v22 }
0x25cd   :  { %16894 = vrot.lane.b32.xlu1 %v19629_v18, %s18192_s23 }
0x25d1   :  { %16904 = vrot.lane.b32.xlu1 %v19636_v26, %s18192_s23  ;;  %s20574_s23 = sld [smem:[#allocation104_spill]] }
0x2629   :  { %v8509_v54 = vpop.xlane.xlu0 %8508 }
0x262a   :  { %v8506_v23 = vpop.xlane.xlu1 %8505 }
0x262b   :  { %v8516_v28 = vmax.f32 %v8506_v23, %v8509_v54 }
0x2630   :  { %v8515_v31 = vpop.xlane.xlu0 %8514 }
0x2631   :  { %v8512_v36 = vpop.xlane.xlu1 %8511 }
0x2632   :  { %v8517_v59 = vmax.f32 %v8512_v36, %v8515_v31 }
0x2634   :  { %v8518_v29 = vmax.f32 %v8516_v28, %v8517_v59  ;;  %v8497_v30 = vpop.xlane.xlu0 %8496 }
0x2635   :  { %v8494_v38 = vpop.xlane.xlu1 %8493  ;;  %v8530_v31 = vsub.f32 %v19666_v47, %v8497_v30 }
0x2636   :  { %v8519_v19 = vrot.slane %v8518_v29, 4  ;;  %v8529_v52 = vsub.f32 %v19669_v37, %v8494_v38 }
0x2637   :  { %v8535_v38 = vmul.f32 1.442695, %v8530_v31 }
0x2638   :  { %v8520_v43 = vmax.f32 %v8518_v29, %v8519_v19  ;;  %v8533_v0 = vmul.f32 1.442695, %v8529_v52  ;;  %v8503_v16 = vpop.xlane.xlu0 %8502 }
0x2639   :  { %v8500_v63 = vpop.xlane.xlu1 %8499  ;;  %v8532_v28 = vsub.f32 %v19676_v56, %v8503_v16 }
0x263a   :  { %v8521_v58 = vrot.slane %v8520_v43, 2  ;;  %17166 = vpow2.f32 %v8533_v0  ;;  %v8531_v0 = vsub.f32 %v19679_v40, %v8500_v63 }
0x263c   :  { %v8522_v4 = vmax.f32 %v8520_v43, %v8521_v58  ;;  %v8947_v60 = vpop.xlane.xlu0 %8946  ;;  %v8539_v43 = vmul.f32 1.442695, %v8532_v28 }
0x263d   :  { %v8944_v15 = vpop.xlane.xlu1 %8943 }
0x263e   :  { %v8523_v6 = vrot.slane %v8522_v4, 1  ;;  %v8954_v2 = vmax.f32 %v8944_v15, %v8947_v60 }
0x2640   :  { %v8524_v7 = vmax.f32 %v8522_v4, %v8523_v6  ;;  %v8953_v32 = vpop.xlane.xlu0 %8952 }
0x2641   :  { %v8950_v10 = vpop.xlane.xlu1 %8949 }
0x2642   :  { %v8955_v5 = vmax.f32 %v8950_v10, %v8953_v32  ;;  %v8553_v35 = vsub.f32 %v19703_v45, %v8524_v7  ;;  %v8554_v12 = vsub.f32 %v19698_v9, %v8524_v7  ;;  %v8555_v57 = vsub.f32 %v19717_v42, %v8524_v7 }
0x2643   :  { %v8556_v21 = vsub.f32 %v19712_v61, %v8524_v7 }
0x2644   :  { %v17167_v55 = vpop.eup %17166  ;;  %v8956_v13 = vmax.f32 %v8954_v2, %v8955_v5  ;;  %v8557_v14 = vmul.f32 1.442695, %v8553_v35  ;;  %v8559_v34 = vmul.f32 1.442695, %v8554_v12  ;;  %v8561_v17 = vmul.f32 1.442695, %v8555_v57  ;;  %v8935_v52 = vpop.xlane.xlu0 %8934 }
0x2645   :  { %v8541_v20 = vadd.f32 0.0001, %v17167_v55  ;;  %v19742_v49 = vpop.xlane.xlu1 %8931  ;;  %v8563_v23 = vmul.f32 1.442695, %v8556_v21  ;;  %v8964_v16 = vsub.f32 %v19666_v47, %v8935_v52  ;;  %v8537_v2 = vmul.f32 1.442695, %v8531_v0 }
0x2646   :  { %v8957_v22 = vrot.slane %v8956_v13, 4  ;;  %17168 = vpow2.f32 %v8557_v14  ;;  %v8963_v10 = vsub.f32 %v19669_v37, %v19742_v49 }
0x2647   :  { %v8545_v54 = vmul.f32 0.25, %v8541_v20  ;;  %17170 = vpow2.f32 %v8559_v34 }
0x2648   :  { %v8958_v36 = vmax.f32 %v8956_v13, %v8957_v22  ;;  %17172 = vpow2.f32 %v8561_v17  ;;  %v8941_v63 = vpop.xlane.xlu0 %8940  ;;  %v8969_v22 = vmul.f32 1.442695, %v8964_v16 }
0x2649   :  { %15417 = vmatprep.mubr.msk.f32.mxu0 %vm1819_vm3, %v8545_v54  ;;  %v19747_v59 = vpop.xlane.xlu1 %8937  ;;  %17174 = vpow2.f32 %v8563_v23 }
0x264a   :  { %v8959_v29 = vrot.slane %v8958_v36, 2  ;;  %17176 = vpow2.f32 %v8535_v38 }
0x264b   :  { %17178 = vpow2.f32 %v8539_v43 }
0x264c   :  { %v8960_v19 = vmax.f32 %v8958_v36, %v8959_v29  ;;  %17180 = vpow2.f32 %v8537_v2  ;;  %v8966_v36 = vsub.f32 %v19676_v56, %v8941_v63 }
0x264d   :  { %v16895_v58 = vpop.permute.xlu1 %16894 }
0x264e   :  { %v8961_v4 = vrot.slane %v8960_v19, 1  ;;  %v16897_v60 = vunpack.i.h.bf16 %v16895_v58  ;;  %v16896_v30 = vunpack.i.l.bf16 %v16895_v58  ;;  %v8967_v58 = vmul.f32 1.442695, %v8963_v10 }
0x2650   :  { %v17169_v15 = vpop.eup %17168  ;;  %v8962_v6 = vmax.f32 %v8960_v19, %v8961_v4  ;;  %v16333_v7 = vpack.c.bf16 %v16897_v60, %v16896_v30  ;;  %v8965_v4 = vsub.f32 %v19679_v40, %v19747_v59  ;;  %v8973_v30 = vmul.f32 1.442695, %v8966_v36 }
0x2651   :  { %v17171_v32 = vpop.eup %17170  ;;  %v16905_v5 = vpop.permute.xlu1 %16904  ;;  %v8565_v35 = vadd.f32 0.0001, %v17169_v15 }
0x2652   :  { %v17173_v12 = vpop.eup %17172  ;;  %v16907_v57 = vunpack.i.h.bf16 %v16905_v5  ;;  %v16906_v21 = vunpack.i.l.bf16 %v16905_v5  ;;  %16334 = vmatprep.subr.bf16.mxu1 %v16333_v7  ;;  %v8566_v55 = vadd.f32 0.0001, %v17171_v32  ;;  %v8983_v13 = vsub.f32 %v19703_v45, %v8962_v6 }
0x2653   :  { %16336 = vmatpush3.bf16.msra.mxu1 %v16333_v7  ;;  %v8569_v14 = vmul.f32 0.25, %v8565_v35  ;;  %v8567_v34 = vadd.f32 0.0001, %v17173_v12  ;;  %v8984_v20 = vsub.f32 %v19698_v9, %v8962_v6  ;;  %v8985_v17 = vsub.f32 %v19717_v42, %v8962_v6  ;;  %v17175_v31 = vpop.eup %17174 }
0x2654   :  { %v16337_v54 = vpack.c.bf16 %v16907_v57, %v16906_v21  ;;  %v8570_v49 = vmul.f32 0.25, %v8566_v55  ;;  %v8987_v23 = vmul.f32 1.442695, %v8983_v13  ;;  %v8986_v29 = vsub.f32 %v19712_v61, %v8962_v6  ;;  %v17177_v15 = vpop.eup %17176 }
0x2655   :  { %v8989_v28 = vmul.f32 1.442695, %v8984_v20  ;;  %v8568_v19 = vadd.f32 0.0001, %v17175_v31  ;;  %v8571_v52 = vmul.f32 0.25, %v8567_v34  ;;  %v17179_v16 = vpop.eup %17178 }
0x2656   :  { %16338 = vmatprep.subr.bf16.mxu1 %v16337_v54  ;;  %v16321_v38 = vpack.c.bf16 %v8570_v49, %v8569_v14  ;;  %17182 = vpow2.f32 %v8987_v23  ;;  %v8991_v43 = vmul.f32 1.442695, %v8985_v17  ;;  %v8993_v0 = vmul.f32 1.442695, %v8986_v29  ;;  %v17181_v59 = vpop.eup %17180 }
0x2657   :  { %16340 = vmatpush3.bf16.msra.mxu1 %v16337_v54  ;;  %17184 = vpow2.f32 %v8989_v28  ;;  %v8572_v60 = vmul.f32 0.25, %v8568_v19  ;;  %v8971_v7 = vmul.f32 1.442695, %v8965_v4  ;;  %v8542_v10 = vadd.f32 0.0001, %v17177_v15 }
0x2658   :  { %17186 = vpow2.f32 %v8969_v22  ;;  %16323 = vmatprep.subr.msk.bf16.mxu0 %vm18950_vm5, %v16321_v38  ;;  %v8543_v57 = vadd.f32 0.0001, %v17181_v59  ;;  %v8544_v22 = vadd.f32 0.0001, %v17179_v16  ;;  %v9381_v15 = vsel %vm2696_vm6, %v19681_v8, -inf }
0x2659   :  { %16326 = vmatpush3.bf16.xpose.msk.msra.mxu0 %vm18950_vm5, %v16321_v38  ;;  %17188 = vpow2.f32 %v8991_v43  ;;  %v16327_v6 = vpack.c.bf16 %v8572_v60, %v8571_v52  ;;  %v8546_v34 = vmul.f32 0.25, %v8542_v10  ;;  %v9378_v16 = vsel %vm2696_vm6, %v19683_v25, -inf }
0x265a   :  { %17190 = vpow2.f32 %v8993_v0  ;;  %v8547_v36 = vmul.f32 0.25, %v8543_v57  ;;  %v8548_v52 = vmul.f32 0.25, %v8544_v22  ;;  %v9366_v59 = vsel %vm2696_vm6, %v19663_v48, -inf }
0x265b   :  { %17192 = vpow2.f32 %v8967_v58  ;;  %16329 = vmatprep.subr.msk.bf16.mxu0 %vm18950_vm5, %v16327_v6  ;;  %v9375_v10 = vsel %vm2696_vm6, %v19671_v51, -inf }
0x265c   :  { %17194 = vpow2.f32 %v8973_v30 }
0x265d   :  { %17196 = vpow2.f32 %v8971_v7  ;;  %v9387_v7 = vsel %vm2696_vm6, %v19689_v44, -inf }
0x2660   :  { %v17183_v32 = vpop.eup %17182 }
0x2661   :  { %v17185_v2 = vpop.eup %17184  ;;  %16332 = vmatpush3.bf16.xpose.msk.msra.mxu0 %vm18950_vm5, %v16327_v6  ;;  %v8995_v5 = vadd.f32 0.0001, %v17183_v32  ;;  %v9384_v6 = vsel %vm2696_vm6, %v19691_v62, -inf  ;;  %v9369_v32 = vsel %vm2696_vm6, %v19661_v50, -inf }
0x2662   :  { %v17187_v35 = vpop.eup %17186  ;;  %v8996_v12 = vadd.f32 0.0001, %v17185_v2  ;;  %v9372_v2 = vsel %vm2696_vm6, %v19673_v1, -inf }
0x2663   :  { %v17189_v63 = vpop.eup %17188  ;;  %v8999_v21 = vmul.f32 0.25, %v8995_v5  ;;  %v8976_v54 = vadd.f32 0.0001, %v17187_v35  ;;  %v19796_v5 = vld [vmem:[%s20574_s23] sm:$0xff] }
0x2664   :  { %v17191_v55 = vpop.eup %17190  ;;  %v9000_v13 = vmul.f32 0.25, %v8996_v12  ;;  %v8997_v14 = vadd.f32 0.0001, %v17189_v63  ;;  %15437 = vmatprep.subr.mxu1 %v19796_v5 }
0x2665   :  { %v8998_v20 = vadd.f32 0.0001, %v17191_v55  ;;  %v17193_v17 = vpop.eup %17192  ;;  %v8980_v43 = vmul.f32 0.25, %v8976_v54 }
0x2666   :  { %v16898_v49 = vpack.i.bf16 %v9000_v13, %v8999_v21  ;;  %v9001_v23 = vmul.f32 0.25, %v8997_v14  ;;  %v17195_v31 = vpop.eup %17194  ;;  %v8975_v29 = vadd.f32 0.0001, %v17193_v17 }
0x2667   :  { %v9002_v28 = vmul.f32 0.25, %v8998_v20  ;;  %v17197_v19 = vpop.eup %17196  ;;  %v8978_v0 = vadd.f32 0.0001, %v17195_v31 }
0x2668   :  { %16899 = vrot.lane.b32.xlu0 %v16898_v49, %s18222_s0  ;;  %15418 = vmatmul.mubr.msk.f32.vlgmr.msra.gmra.mrb[86].mxu0 %vm1819_vm3, %v8546_v34  ;;  %v8979_v58 = vmul.f32 0.25, %v8975_v29  ;;  %v8977_v4 = vadd.f32 0.0001, %v17197_v19 }
0x2669   :  { %v16908_v38 = vpack.i.bf16 %v9002_v28, %v9001_v23  ;;  %15420 = vmatprep.mubr.msk.f32.mxu0 %vm1819_vm3, %v8547_v36  ;;  %v8982_v60 = vmul.f32 0.25, %v8978_v0 }
0x266a   :  { %v8981_v30 = vmul.f32 0.25, %v8977_v4 }
0x266b   :  { %16909 = vrot.lane.b32.xlu1 %v16908_v38, %s18222_s0 }
0x266c   :  { %9009 = vrot.lane.b32.xlu0 %v8980_v43, %s18222_s0  ;;  %15421 = vmatmul.mubr.msk.f32.gmra.mrb[88].mxu0 %vm1819_vm3, %v8548_v52 }
0x266f   :  { %9007 = vrot.lane.b32.xlu1 %v8979_v58, %s18222_s0 }
0x2670   :  { %9013 = vrot.lane.b32.xlu0 %v8982_v60, %s18222_s0 }
0x2673   :  { %9011 = vrot.lane.b32.xlu1 %v8981_v30, %s18222_s0 }
0x268f   :  { %9382 = vmax.xlane.f32.xlu0 %v9381_v15  ;;  %v19818_v15 = vld [vmem:[%s20575_s27 + $0x8] sm:$0xff] }
0x2693   :  { %9385 = vmax.xlane.f32.xlu0 %v9384_v6 }
0x2697   :  { %9379 = vmax.xlane.f32.xlu1 %v9378_v16  ;;  %9388 = vmax.xlane.f32.xlu0 %v9387_v7  ;;  %v19823_v16 = vld [vmem:[%s20575_s27] sm:$0xff] }
0x269b   :  { %9367 = vmax.xlane.f32.xlu1 %v9366_v59  ;;  %9370 = vmax.xlane.f32.xlu0 %v9369_v32 }
0x269f   :  { %9373 = vmax.xlane.f32.xlu1 %v9372_v2  ;;  %9376 = vmax.xlane.f32.xlu0 %v9375_v10 }
0x26b0   :  { %16914 = vrot.lane.b32.xlu1 %v19629_v18, %s18223_s30 }
0x26da   :  { %v16900_v35 = vpop.permute.xlu0 %16899 }
0x26db   :  { %v16902_v12 = vunpack.i.h.bf16 %v16900_v35  ;;  %v16901_v63 = vunpack.i.l.bf16 %v16900_v35 }
0x26dd   :  { %v16341_v57 = vpack.c.bf16 %v16902_v12, %v16901_v63  ;;  %v16910_v21 = vpop.permute.xlu1 %16909 }
0x26de   :  { %v16912_v55 = vunpack.i.h.bf16 %v16910_v21  ;;  %v16911_v13 = vunpack.i.l.bf16 %v16910_v21  ;;  %v9010_v20 = vpop.permute.xlu0 %9009 }
0x26df   :  { %16343 = vmatprep.subr.msk.bf16.mxu0 %vm18950_vm5, %v16341_v57 }
0x26e0   :  { %v16347_v14 = vpack.c.bf16 %v16912_v55, %v16911_v13  ;;  %16346 = vmatpush3.bf16.xpose.msk.msra.mxu0 %vm18950_vm5, %v16341_v57  ;;  %v19830_v57 = vld [vmem:[%s20575_s27 + $0x18] sm:$0xff]  ;;  %v19834_v13 = vld [vmem:[%s20575_s27 + $0x10] sm:$0xff] }
0x26e1   :  { %v9008_v34 = vpop.permute.xlu1 %9007 }
0x26e2   :  { %15453 = vmatprep.mubr.msk.f32.mxu0 %vm1819_vm3, %v9008_v34  ;;  %16349 = vmatprep.subr.msk.bf16.mxu0 %vm18950_vm5, %v16347_v14  ;;  %v9014_v22 = vpop.permute.xlu0 %9013 }
0x26e5   :  { %v9012_v17 = vpop.permute.xlu1 %9011 }
0x26e8   :  { %16352 = vmatpush3.bf16.xpose.msk.msra.mxu0 %vm18950_vm5, %v16347_v14 }
0x26ef   :  { %15454 = vmatmul.mubr.msk.f32.vlgmr.msra.gmra.mrb[90].mxu0 %vm1819_vm3, %v9010_v20 }
0x26f0   :  { %15456 = vmatprep.mubr.msk.f32.mxu0 %vm1819_vm3, %v9012_v17 }
0x26f3   :  { %15457 = vmatmul.mubr.msk.f32.gmra.mrb[92].mxu0 %vm1819_vm3, %v9014_v22 }
0x271c   :  { %v9383_v54 = vpop.xlane.xlu0 %9382 }
0x2720   :  { %v9386_v49 = vpop.xlane.xlu0 %9385 }
0x2724   :  { %v9380_v23 = vpop.xlane.xlu1 %9379  ;;  %v9389_v31 = vpop.xlane.xlu0 %9388 }
0x2725   :  { %v9390_v36 = vmax.f32 %v9380_v23, %v9383_v54  ;;  %v9391_v28 = vmax.f32 %v9386_v49, %v9389_v31 }
0x2727   :  { %v9392_v29 = vmax.f32 %v9390_v36, %v9391_v28 }
0x2728   :  { %v19811_v43 = vpop.xlane.xlu1 %9367  ;;  %v9371_v12 = vpop.xlane.xlu0 %9370 }
0x2729   :  { %v9393_v38 = vrot.slane %v9392_v29, 4  ;;  %v9400_v23 = vsub.f32 %v19666_v47, %v9371_v12 }
0x272b   :  { %v9394_v19 = vmax.f32 %v9392_v29, %v9393_v38  ;;  %v9405_v28 = vmul.f32 1.442695, %v9400_v23 }
0x272c   :  { %v19813_v4 = vpop.xlane.xlu1 %9373  ;;  %v9377_v36 = vpop.xlane.xlu0 %9376 }
0x272d   :  { %v9395_v52 = vrot.slane %v9394_v19, 2  ;;  %v9402_v29 = vsub.f32 %v19676_v56, %v9377_v36 }
0x272f   :  { %v9396_v0 = vmax.f32 %v9394_v19, %v9395_v52  ;;  %v9409_v38 = vmul.f32 1.442695, %v9402_v29 }
0x2730   :  { %v16915_v30 = vpop.permute.xlu1 %16914 }
0x2731   :  { %v9397_v58 = vrot.slane %v9396_v0, 1  ;;  %v16917_v32 = vunpack.i.h.bf16 %v16915_v30  ;;  %v16916_v2 = vunpack.i.l.bf16 %v16915_v30 }
0x2733   :  { %v19815_v60 = vmax.f32 %v9396_v0, %v9397_v58  ;;  %v19840_v54 = vpack.c.bf16 %v16917_v32, %v16916_v2 }
0x2735   :  { %v9419_v6 = vsub.f32 %v19703_v45, %v19815_v60  ;;  %v9420_v7 = vsub.f32 %v19698_v9, %v19815_v60  ;;  %v9421_v12 = vsub.f32 %v19717_v42, %v19815_v60 }
0x2737   :  { %v9423_v21 = vmul.f32 1.442695, %v9419_v6  ;;  %v9425_v14 = vmul.f32 1.442695, %v9420_v7 }
0x2739   :  { %17198 = vpow2.f32 %v9423_v21  ;;  %v9427_v21 = vmul.f32 1.442695, %v9421_v12 }
0x273a   :  { %17200 = vpow2.f32 %v9425_v14  ;;  %v9399_v14 = vsub.f32 %v19669_v37, %v19811_v43 }
0x273b   :  { %v15419_v59 = vpop.f32.mrb[86].mxu0  ;;  %17202 = vpow2.f32 %v9405_v28  ;;  %v9817_v28 = vsel %vm3133_vm7, %v19681_v8, -inf  ;;  %v9805_v8 = vsel %vm3133_vm7, %v19661_v50, -inf }
0x273c   :  { %v8683_v10 = vmul.f32 %v15419_v59, %v19818_v15  ;;  %v8663_v35 = vpop.f32.mrb[87].mxu0  ;;  %17204 = vpow2.f32 %v9409_v38 }
0x273d   :  { %v8682_v63 = vmul.f32 %v8663_v35, %v19823_v16  ;;  %17206 = vpow2.f32 %v9427_v21 }
0x273e   :  { %v8802_v55 = vsel %vm675_vm0, %v8683_v10, 0.0 }
0x273f   :  { %8803 = vadd.xlane.f32.xlu0 %v8802_v55  ;;  %v15422_v34 = vpop.f32.mrb[88].mxu0  ;;  %15431 = vmatprep.mubr.msk.f32.mxu1 %vm675_vm0, %v8682_v63  ;;  %v8799_v20 = vsel %vm675_vm0, %v8682_v63, 0.0  ;;  %v9422_v63 = vsub.f32 %v19712_v61, %v19815_v60 }
0x2740   :  { %v8685_v17 = vmul.f32 %v15422_v34, %v19830_v57  ;;  %8800 = vadd.xlane.f32.xlu1 %v8799_v20  ;;  %v8673_v22 = vpop.f32.mrb[89].mxu0  ;;  %15432 = vmatmul.mubr.msk.f32.vlgmr.msra.gmra.mrb[102].mxu1 %vm675_vm0, %v8683_v10  ;;  %v9403_v34 = vmul.f32 1.442695, %v9399_v14  ;;  %v9401_v20 = vsub.f32 %v19679_v40, %v19813_v4  ;;  %v9820_v4 = vsel %vm3133_vm7, %v19691_v62, -inf }
0x2741   :  { %v8684_v49 = vmul.f32 %v8673_v22, %v19834_v13  ;;  %15438 = vmatpush3.msra.mxu1 %v19796_v5  ;;  %v9429_v55 = vmul.f32 1.442695, %v9422_v63  ;;  %v9811_v62 = vsel %vm3133_vm7, %v19671_v51, -inf }
0x2742   :  { %16354 = vmatprep.subr.bf16.mxu1 %v19840_v54  ;;  %v8808_v31 = vsel %vm675_vm0, %v8685_v17, 0.0  ;;  %v9407_v22 = vmul.f32 1.442695, %v9401_v20 }
0x2743   :  { %8809 = vadd.xlane.f32.xlu0 %v8808_v31  ;;  %15434 = vmatprep.mubr.msk.f32.mxu1 %vm675_vm0, %v8684_v49  ;;  %v17199_v5 = vpop.eup %17198  ;;  %17208 = vpow2.f32 %v9429_v55 }
0x2744   :  { %15435 = vmatmul.mubr.msk.f32.gmra.mrb[104].mxu1 %vm675_vm0, %v8685_v17  ;;  %v17201_v19 = vpop.eup %17200  ;;  %v9431_v52 = vadd.f32 0.0001, %v17199_v5  ;;  %v8805_v17 = vsel %vm675_vm0, %v8684_v49, 0.0  ;;  %17210 = vpow2.f32 %v9403_v34 }
0x2745   :  { %v9432_v0 = vadd.f32 0.0001, %v17201_v19  ;;  %v17203_v6 = vpop.eup %17202  ;;  %17212 = vpow2.f32 %v9407_v22 }
0x2746   :  { %v9435_v58 = vmul.f32 0.25, %v9431_v52  ;;  %v9412_v7 = vadd.f32 0.0001, %v17203_v6  ;;  %v17205_v32 = vpop.eup %17204  ;;  %v9823_v52 = vsel %vm3133_vm7, %v19689_v44, -inf  ;;  %v9814_v6 = vsel %vm3133_vm7, %v19683_v25, -inf }
0x2747   :  { %v9436_v30 = vmul.f32 0.25, %v9432_v0  ;;  %v9414_v10 = vadd.f32 0.0001, %v17205_v32  ;;  %v17207_v23 = vpop.eup %17206  ;;  %v9802_v44 = vsel %vm3133_vm7, %v19663_v48, -inf }
0x2748   :  { %v9416_v2 = vmul.f32 0.25, %v9412_v7  ;;  %v9433_v60 = vadd.f32 0.0001, %v17207_v23  ;;  %v9808_v7 = vsel %vm3133_vm7, %v19673_v1, -inf }
0x2749   :  { %v16918_v59 = vpack.i.bf16 %v9436_v30, %v9435_v58  ;;  %v9418_v35 = vmul.f32 0.25, %v9414_v10 }
0x274a   :  { %v9437_v43 = vmul.f32 0.25, %v9433_v60 }
0x274d   :  { %v17209_v31 = vpop.eup %17208 }
0x274e   :  { %v9434_v36 = vadd.f32 0.0001, %v17209_v31  ;;  %v17211_v38 = vpop.eup %17210 }
0x274f   :  { %v9411_v5 = vadd.f32 0.0001, %v17211_v38  ;;  %v17213_v19 = vpop.eup %17212 }
0x2750   :  { %v9438_v29 = vmul.f32 0.25, %v9434_v36  ;;  %v9413_v58 = vadd.f32 0.0001, %v17213_v19 }
0x2751   :  { %16924 = vrot.lane.b32.xlu1 %v19636_v26, %s18223_s30  ;;  %v9415_v0 = vmul.f32 0.25, %v9411_v5  ;;  %s20580_s30 = sld [smem:[#allocation110_spill]] }
0x2752   :  { %v16928_v49 = vpack.i.bf16 %v9438_v29, %v9437_v43  ;;  %v9417_v30 = vmul.f32 0.25, %v9413_v58 }
0x2759   :  { %16919 = vrot.lane.b32.xlu0 %v16918_v59, %s18221_s2 }
0x275d   :  { %9445 = vrot.lane.b32.xlu0 %v9416_v2, %s18221_s2 }
0x2761   :  { %9449 = vrot.lane.b32.xlu0 %v9418_v35, %s18221_s2 }
0x2775   :  { %8806 = vadd.xlane.f32.xlu1 %v8805_v17 }
0x2780   :  { %9818 = vmax.xlane.f32.xlu0 %v9817_v28 }
0x2784   :  { %9821 = vmax.xlane.f32.xlu0 %v9820_v4 }
0x2786   :  { %16929 = vrot.lane.b32.xlu1 %v16928_v49, %s18221_s2 }
0x2788   :  { %9824 = vmax.xlane.f32.xlu0 %v9823_v52 }
0x278a   :  { %9443 = vrot.lane.b32.xlu1 %v9415_v0, %s18221_s2 }
0x278c   :  { %9806 = vmax.xlane.f32.xlu0 %v9805_v8 }
0x278e   :  { %9447 = vrot.lane.b32.xlu1 %v9417_v30, %s18221_s2 }
0x2790   :  { %9812 = vmax.xlane.f32.xlu0 %v9811_v62 }
0x27b2   :  { %9815 = vmax.xlane.f32.xlu1 %v9814_v6 }
0x27b6   :  { %9803 = vmax.xlane.f32.xlu1 %v9802_v44 }
0x27ba   :  { %9809 = vmax.xlane.f32.xlu1 %v9808_v7 }
0x27c2   :  { %v15455_v50 = vpop.f32.mrb[90].mxu0 }
0x27c3   :  { %v19884_v59 = vmul.f32 %v15455_v50, %v19818_v15  ;;  %v9109_v32 = vpop.f32.mrb[91].mxu0 }
0x27c4   :  { %v9128_v14 = vmul.f32 %v9109_v32, %v19823_v16 }
0x27c5   :  { %v9244_v51 = vsel %vm675_vm0, %v19884_v59, 0.0 }
0x27c6   :  { %9245 = vadd.xlane.f32.xlu0 %v9244_v51  ;;  %v15458_v2 = vpop.f32.mrb[92].mxu0  ;;  %v9241_v34 = vsel %vm675_vm0, %v9128_v14, 0.0 }
0x27c7   :  { %v19889_v25 = vmul.f32 %v15458_v2, %v19830_v57  ;;  %v19891_v10 = vpop.f32.mrb[93].mxu0 }
0x27c9   :  { %v9250_v48 = vsel %vm675_vm0, %v19889_v25, 0.0 }
0x27ca   :  { %9251 = vadd.xlane.f32.xlu0 %v9250_v48 }
0x27cb   :  { %16934 = vrot.lane.b32.xlu1 %v19629_v18, %s18224_s9 }
0x27cc   :  { %v8804_v1 = vpop.xlane.xlu0 %8803 }
0x27cd   :  { %v8801_v20 = vpop.xlane.xlu1 %8800  ;;  %v8812_v60 = vadd.f32 1e-06, %v8804_v1 }
0x27ce   :  { %v8811_v23 = vadd.f32 1e-06, %v8801_v20 }
0x27d0   :  { %v8810_v35 = vpop.xlane.xlu0 %8809  ;;  %17214 = vrcp.f32 %v8811_v23 }
0x27d1   :  { %v16925_v17 = vpop.permute.xlu1 %16924  ;;  %17216 = vrcp.f32 %v8812_v60  ;;  %v8814_v4 = vadd.f32 1e-06, %v8810_v35  ;;  %v8488_v35 = vld [vmem:[%s20574_s23 + $0x8] sm:$0xff] }
0x27d2   :  { %v16927_v0 = vunpack.i.h.bf16 %v16925_v17  ;;  %v16926_v58 = vunpack.i.l.bf16 %v16925_v17 }
0x27d4   :  { %v16920_v12 = vpop.permute.xlu0 %16919  ;;  %v16357_v32 = vpack.c.bf16 %v16927_v0, %v16926_v58 }
0x27d5   :  { %v16922_v63 = vunpack.i.h.bf16 %v16920_v12  ;;  %v16921_v21 = vunpack.i.l.bf16 %v16920_v12  ;;  %v9130_v12 = vmul.f32 %v19891_v10, %v19834_v13 }
0x27d7   :  { %v16361_v55 = vpack.c.bf16 %v16922_v63, %v16921_v21 }
0x27d8   :  { %v9446_v5 = vpop.permute.xlu0 %9445 }
0x27d9   :  { %16363 = vmatprep.subr.msk.bf16.mxu0 %vm18950_vm5, %v16361_v55 }
0x27da   :  { %16366 = vmatpush3.bf16.xpose.msk.msra.mxu0 %vm18950_vm5, %v16361_v55  ;;  %v17215_v52 = vpop.eup %17214 }
0x27db   :  { %v17217_v30 = vpop.eup %17216 }
0x27dc   :  { %v9450_v6 = vpop.permute.xlu0 %9449 }
0x27ef   :  { %9242 = vadd.xlane.f32.xlu1 %v9241_v34 }
0x2800   :  { %16944 = vrot.lane.b32.xlu1 %v19636_v26, %s18224_s9 }
0x2802   :  { %v8807_v22 = vpop.xlane.xlu1 %8806 }
0x2803   :  { %v8813_v29 = vadd.f32 1e-06, %v8807_v22 }
0x2805   :  { %17218 = vrcp.f32 %v8813_v29 }
0x2806   :  { %v16930_v31 = vpop.permute.xlu1 %16929  ;;  %17220 = vrcp.f32 %v8814_v4 }
0x2807   :  { %v16932_v36 = vunpack.i.h.bf16 %v16930_v31  ;;  %v16931_v28 = vunpack.i.l.bf16 %v16930_v31 }
0x2809   :  { %v16367_v43 = vpack.c.bf16 %v16932_v36, %v16931_v28 }
0x280a   :  { %v9444_v38 = vpop.permute.xlu1 %9443 }
0x280b   :  { %16369 = vmatprep.subr.msk.bf16.mxu0 %vm18950_vm5, %v16367_v43  ;;  %15489 = vmatprep.mubr.msk.f32.mxu0 %vm1819_vm3, %v9444_v38 }
0x280c   :  { %16372 = vmatpush3.bf16.xpose.msk.msra.mxu0 %vm18950_vm5, %v16367_v43 }
0x280d   :  { %v9819_v63 = vpop.xlane.xlu0 %9818 }
0x280e   :  { %v9448_v49 = vpop.permute.xlu1 %9447 }
0x280f   :  { %v17219_v50 = vpop.eup %17218 }
0x2810   :  { %v17221_v2 = vpop.eup %17220 }
0x2811   :  { %v9822_v21 = vpop.xlane.xlu0 %9821 }
0x2813   :  { %v15433_v19 = vpop.f32.mrb[102].mxu1  ;;  %15490 = vmatmul.mubr.msk.f32.vlgmr.msra.gmra.mrb[94].mxu0 %vm1819_vm3, %v9446_v5 }
0x2814   :  { %v8780_v8 = vpop.f32.mrb[103].mxu1  ;;  %15492 = vmatprep.mubr.msk.f32.mxu0 %vm1819_vm3, %v9448_v49  ;;  %v8818_v44 = vmul.f32 %v17217_v30, %v15433_v19 }
0x2815   :  { %v8816_v62 = vmul.f32 %v17215_v52, %v8780_v8  ;;  %v9825_v55 = vpop.xlane.xlu0 %9824 }
0x2816   :  { %v9827_v34 = vmax.f32 %v9822_v21, %v9825_v55 }
0x2817   :  { %v15436_v7 = vpop.f32.mrb[104].mxu1  ;;  %15439 = vmatprep.mubr.msk.f32.mxu1 %vm2151_vm8, %v8816_v62  ;;  %15493 = vmatmul.mubr.msk.f32.gmra.mrb[96].mxu0 %vm1819_vm3, %v9450_v6 }
0x2818   :  { %v8790_v51 = vpop.f32.mrb[105].mxu1  ;;  %15440 = vmatmul.mubr.msk.f32.vlgmr.msra.gmra.mrb[106].mxu1 %vm2151_vm8, %v8818_v44  ;;  %v8822_v1 = vmul.f32 %v17221_v2, %v15436_v7 }
0x2819   :  { %v8820_v48 = vmul.f32 %v17219_v50, %v8790_v51  ;;  %16356 = vmatpush3.bf16.msra.mxu1 %v19840_v54  ;;  %v9247_v54 = vsel %vm675_vm0, %v9130_v12, 0.0  ;;  %v9807_v38 = vpop.xlane.xlu0 %9806 }
0x281a   :  { %16358 = vmatprep.subr.bf16.mxu1 %v16357_v32  ;;  %v9836_v58 = vsub.f32 %v19666_v47, %v9807_v38 }
0x281b   :  { %15442 = vmatprep.mubr.msk.f32.mxu1 %vm2151_vm8, %v8820_v48 }
0x281c   :  { %15443 = vmatmul.mubr.msk.f32.gmra.mrb[108].mxu1 %vm2151_vm8, %v8822_v1  ;;  %v9841_v50 = vmul.f32 1.442695, %v9836_v58 }
0x281d   :  { %16360 = vmatpush3.bf16.msra.mxu1 %v16357_v32  ;;  %15467 = vmatprep.mubr.msk.f32.mxu1 %vm675_vm0, %v9128_v14  ;;  %v9813_v6 = vpop.xlane.xlu0 %9812 }
0x281e   :  { %15473 = vmatprep.subr.mxu1 %v8488_v35 }
0x2820   :  { %15468 = vmatmul.mubr.msk.f32.vlgmr.msra.gmra.mrb[110].mxu1 %vm675_vm0, %v19884_v59 }
0x2821   :  { %15470 = vmatprep.mubr.msk.f32.mxu1 %vm675_vm0, %v9130_v12  ;;  %15474 = vmatpush3.msra.mxu1 %v8488_v35 }
0x2824   :  { %9248 = vadd.xlane.f32.xlu1 %v9247_v54  ;;  %15471 = vmatmul.mubr.msk.f32.gmra.mrb[112].mxu1 %vm675_vm0, %v19889_v25 }
0x283f   :  { %v9816_v14 = vpop.xlane.xlu1 %9815 }
0x2840   :  { %v9826_v20 = vmax.f32 %v9816_v14, %v9819_v63 }
0x2842   :  { %v9828_v17 = vmax.f32 %v9826_v20, %v9827_v34 }
0x2843   :  { %v9804_v10 = vpop.xlane.xlu1 %9803 }
0x2844   :  { %v9829_v22 = vrot.slane %v9828_v17, 4  ;;  %v9835_v25 = vsub.f32 %v19669_v37, %v9804_v10 }
0x2846   :  { %v9830_v23 = vmax.f32 %v9828_v17, %v9829_v22  ;;  %v9839_v8 = vmul.f32 1.442695, %v9835_v25 }
0x2847   :  { %v9810_v59 = vpop.xlane.xlu1 %9809 }
0x2848   :  { %v9831_v31 = vrot.slane %v9830_v23, 2  ;;  %v9837_v37 = vsub.f32 %v19679_v40, %v9810_v59 }
0x284a   :  { %v9832_v60 = vmax.f32 %v9830_v23, %v9831_v31 }
0x284b   :  { %v16935_v36 = vpop.permute.xlu1 %16934 }
0x284c   :  { %v9833_v28 = vrot.slane %v9832_v60, 1  ;;  %v16937_v43 = vunpack.i.h.bf16 %v16935_v36  ;;  %v16936_v29 = vunpack.i.l.bf16 %v16935_v36 }
0x284e   :  { %v9834_v4 = vmax.f32 %v9832_v60, %v9833_v28  ;;  %v19929_v5 = vpack.c.bf16 %v16937_v43, %v16936_v29 }
0x2850   :  { %16374 = vmatprep.subr.bf16.mxu1 %v19929_v5  ;;  %v9857_v49 = vsub.f32 %v19717_v42, %v9834_v4  ;;  %v9858_v19 = vsub.f32 %v19712_v61, %v9834_v4  ;;  %v9855_v52 = vsub.f32 %v19703_v45, %v9834_v4  ;;  %v9856_v0 = vsub.f32 %v19698_v9, %v9834_v4 }
0x2851   :  { %v9838_v42 = vsub.f32 %v19676_v56, %v9813_v6  ;;  %v9843_v61 = vmul.f32 1.442695, %v9837_v37 }
0x2852   :  { %v9863_v30 = vmul.f32 1.442695, %v9857_v49  ;;  %v9865_v62 = vmul.f32 1.442695, %v9858_v19  ;;  %v9859_v44 = vmul.f32 1.442695, %v9855_v52 }
0x2853   :  { %v9861_v7 = vmul.f32 1.442695, %v9856_v0  ;;  %v9845_v9 = vmul.f32 1.442695, %v9838_v42  ;;  %v9246_v29 = vpop.xlane.xlu0 %9245 }
0x2854   :  { %17222 = vpow2.f32 %v9863_v30 }
0x2855   :  { %17224 = vpow2.f32 %v9865_v62 }
0x2856   :  { %17226 = vpow2.f32 %v9839_v8 }
0x2857   :  { %17228 = vpow2.f32 %v9859_v44  ;;  %v9252_v4 = vpop.xlane.xlu0 %9251  ;;  %v9254_v44 = vadd.f32 1e-06, %v9246_v29 }
0x2858   :  { %17230 = vpow2.f32 %v9861_v7 }
0x2859   :  { %17232 = vpow2.f32 %v9841_v50 }
0x285a   :  { %17234 = vpow2.f32 %v9843_v61 }
0x285b   :  { %17236 = vpow2.f32 %v9845_v9 }
0x285e   :  { %v17223_v47 = vpop.eup %17222 }
0x285f   :  { %v17225_v45 = vpop.eup %17224  ;;  %v9869_v32 = vadd.f32 0.0001, %v17223_v47 }
0x2860   :  { %v17227_v51 = vpop.eup %17226  ;;  %v9870_v40 = vadd.f32 0.0001, %v17225_v45 }
0x2861   :  { %v17229_v2 = vpop.eup %17228  ;;  %v9873_v48 = vmul.f32 0.25, %v9869_v32  ;;  %v9847_v63 = vadd.f32 0.0001, %v17227_v51  ;;  %v9256_v32 = vadd.f32 1e-06, %v9252_v4 }
0x2862   :  { %v17231_v1 = vpop.eup %17230  ;;  %v9874_v35 = vmul.f32 0.25, %v9870_v40  ;;  %v9867_v12 = vadd.f32 0.0001, %v17229_v2 }
0x2863   :  { %v9868_v54 = vadd.f32 0.0001, %v17231_v1  ;;  %v17233_v56 = vpop.eup %17232  ;;  %v9851_v22 = vmul.f32 0.25, %v9847_v63 }
0x2864   :  { %v16948_v21 = vpack.i.bf16 %v9874_v35, %v9873_v48  ;;  %v9871_v55 = vmul.f32 0.25, %v9867_v12  ;;  %v17235_v14 = vpop.eup %17234  ;;  %v9848_v20 = vadd.f32 0.0001, %v17233_v56 }
0x2865   :  { %v9872_v34 = vmul.f32 0.25, %v9868_v54  ;;  %v17237_v10 = vpop.eup %17236  ;;  %v9849_v23 = vadd.f32 0.0001, %v17235_v14 }
0x2866   :  { %16949 = vrot.lane.b32.xlu1 %v16948_v21, %s18225_s29  ;;  %v9852_v59 = vmul.f32 0.25, %v9848_v20  ;;  %v9850_v31 = vadd.f32 0.0001, %v17237_v10  ;;  %v19965_v20 = vld [vmem:[#allocation4] sm:$0xff] }
0x2867   :  { %v16938_v17 = vpack.i.bf16 %v9872_v34, %v9871_v55  ;;  %v9853_v60 = vmul.f32 0.25, %v9849_v23 }
0x2868   :  { %v9854_v36 = vmul.f32 0.25, %v9850_v31 }
0x2869   :  { %16939 = vrot.lane.b32.xlu0 %v16938_v17, %s18225_s29 }
0x286a   :  { %9879 = vrot.lane.b32.xlu1 %v9851_v22, %s18225_s29 }
0x286d   :  { %9881 = vrot.lane.b32.xlu0 %v9852_v59, %s18225_s29 }
0x286e   :  { %9883 = vrot.lane.b32.xlu1 %v9853_v60, %s18225_s29 }
0x2871   :  { %9885 = vrot.lane.b32.xlu0 %v9854_v36, %s18225_s29 }
0x287c   :  { %v9243_v28 = vpop.xlane.xlu1 %9242 }
0x287d   :  { %v9253_v6 = vadd.f32 1e-06, %v9243_v28  ;;  %v8489_v28 = vld [vmem:[%s20574_s23 + $0x10] sm:$0xff] }
0x287f   :  { %17238 = vrcp.f32 %v9253_v6 }
0x2880   :  { %v16945_v43 = vpop.permute.xlu1 %16944  ;;  %17240 = vrcp.f32 %v9254_v44 }
0x2881   :  { %v16947_v63 = vunpack.i.h.bf16 %v16945_v43  ;;  %v16946_v21 = vunpack.i.l.bf16 %v16945_v43 }
0x2883   :  { %v16377_v23 = vpack.c.bf16 %v16947_v63, %v16946_v21 }
0x2889   :  { %v17239_v56 = vpop.eup %17238 }
0x288a   :  { %v17241_v14 = vpop.eup %17240 }
0x28b1   :  { %v9249_v38 = vpop.xlane.xlu1 %9248 }
0x28b2   :  { %v9255_v9 = vadd.f32 1e-06, %v9249_v38 }
0x28b4   :  { %17242 = vrcp.f32 %v9255_v9 }
0x28b5   :  { %17244 = vrcp.f32 %v9256_v32 }
0x28be   :  { %v17243_v22 = vpop.eup %17242 }
0x28bf   :  { %v17245_v31 = vpop.eup %17244 }
0x28d8   :  { %v16950_v25 = vpop.permute.xlu1 %16949 }
0x28d9   :  { %v16952_v0 = vunpack.i.h.bf16 %v16950_v25  ;;  %v16951_v58 = vunpack.i.l.bf16 %v16950_v25 }
0x28db   :  { %v16940_v49 = vpop.permute.xlu0 %16939  ;;  %v16387_v62 = vpack.c.bf16 %v16952_v0, %v16951_v58 }
0x28dc   :  { %v16942_v19 = vunpack.i.h.bf16 %v16940_v49  ;;  %v16941_v52 = vunpack.i.l.bf16 %v16940_v49  ;;  %v9880_v8 = vpop.permute.xlu1 %9879 }
0x28dd   :  { %15525 = vmatprep.mubr.msk.f32.mxu0 %vm1819_vm3, %v9880_v8 }
0x28de   :  { %v16381_v30 = vpack.c.bf16 %v16942_v19, %v16941_v52 }
0x28df   :  { %v9882_v2 = vpop.permute.xlu0 %9881 }
0x28e0   :  { %16383 = vmatprep.subr.msk.bf16.mxu0 %vm18950_vm5, %v16381_v30  ;;  %v9884_v1 = vpop.permute.xlu1 %9883 }
0x28e1   :  { %16386 = vmatpush3.bf16.xpose.msk.msra.mxu0 %vm18950_vm5, %v16381_v30 }
0x28e2   :  { %16389 = vmatprep.subr.msk.bf16.mxu0 %vm18950_vm5, %v16387_v62 }
0x28e3   :  { %v9886_v12 = vpop.permute.xlu0 %9885 }
0x28e6   :  { %v15491_v37 = vpop.f32.mrb[94].mxu0 }
0x28e7   :  { %v9565_v7 = vmul.f32 %v15491_v37, %v19818_v15  ;;  %v9545_v50 = vpop.f32.mrb[95].mxu0 }
0x28e8   :  { %v9564_v42 = vmul.f32 %v9545_v50, %v19823_v16 }
0x28e9   :  { %16392 = vmatpush3.bf16.xpose.msk.msra.mxu0 %vm18950_vm5, %v16387_v62  ;;  %v9680_v61 = vsel %vm675_vm0, %v9565_v7, 0.0 }
0x28ea   :  { %9681 = vadd.xlane.f32.xlu0 %v9680_v61  ;;  %v15494_v47 = vpop.f32.mrb[96].mxu0  ;;  %v9677_v45 = vsel %vm675_vm0, %v9564_v42, 0.0 }
0x28eb   :  { %v9567_v51 = vmul.f32 %v15494_v47, %v19830_v57  ;;  %9678 = vadd.xlane.f32.xlu1 %v9677_v45  ;;  %v9555_v40 = vpop.f32.mrb[97].mxu0 }
0x28ec   :  { %v9566_v48 = vmul.f32 %v9555_v40, %v19834_v13 }
0x28ed   :  { %v9686_v24 = vsel %vm675_vm0, %v9567_v51, 0.0 }
0x28ee   :  { %9687 = vadd.xlane.f32.xlu0 %v9686_v24  ;;  %v9683_v35 = vsel %vm675_vm0, %v9566_v48, 0.0 }
0x28f0   :  { %15526 = vmatmul.mubr.msk.f32.vlgmr.msra.gmra.mrb[98].mxu0 %vm1819_vm3, %v9882_v2 }
0x28f1   :  { %15528 = vmatprep.mubr.msk.f32.mxu0 %vm1819_vm3, %v9884_v1 }
0x28f2   :  { %9684 = vadd.xlane.f32.xlu0 %v9683_v35 }
0x28f3   :  { %v15469_v54 = vpop.f32.mrb[110].mxu1 }
0x28f4   :  { %15529 = vmatmul.mubr.msk.f32.gmra.mrb[100].mxu0 %vm1819_vm3, %v9886_v12  ;;  %v9222_v55 = vpop.f32.mrb[111].mxu1  ;;  %v9260_v17 = vmul.f32 %v17241_v14, %v15469_v54 }
0x28f5   :  { %v9258_v34 = vmul.f32 %v17239_v56, %v9222_v55  ;;  %15561 = vmatprep.mubr.msk.f32.mxu0 %vm675_vm0, %v19965_v20  ;;  %v8490_v56 = vld [vmem:[%s20574_s23 + $0x18] sm:$0xff] }
0x28f7   :  { %v15472_v10 = vpop.f32.mrb[112].mxu1  ;;  %15475 = vmatprep.mubr.msk.f32.mxu1 %vm2151_vm8, %v9258_v34 }
0x28f8   :  { %v9232_v59 = vpop.f32.mrb[113].mxu1  ;;  %15476 = vmatmul.mubr.msk.f32.vlgmr.msra.gmra.mrb[106].mxu1 %vm2151_vm8, %v9260_v17  ;;  %v9264_v36 = vmul.f32 %v17245_v31, %v15472_v10 }
0x28f9   :  { %v9262_v60 = vmul.f32 %v17243_v22, %v9232_v59  ;;  %16376 = vmatpush3.bf16.msra.mxu1 %v19929_v5 }
0x28fa   :  { %16378 = vmatprep.subr.bf16.mxu1 %v16377_v23 }
0x28fb   :  { %15478 = vmatprep.mubr.msk.f32.mxu1 %vm2151_vm8, %v9262_v60 }
0x28fc   :  { %16954 = vrot.lane.b32.xlu1 %v19629_v18, %s18226_s3  ;;  %15479 = vmatmul.mubr.msk.f32.gmra.mrb[108].mxu1 %vm2151_vm8, %v9264_v36 }
0x28fd   :  { %16380 = vmatpush3.bf16.msra.mxu1 %v16377_v23  ;;  %15503 = vmatprep.mubr.msk.f32.mxu1 %vm675_vm0, %v9564_v42 }
0x28fe   :  { %15509 = vmatprep.subr.mxu1 %v8489_v28 }
0x2900   :  { %15504 = vmatmul.mubr.msk.f32.vlgmr.msra.gmra.mrb[114].mxu1 %vm675_vm0, %v9565_v7 }
0x2901   :  { %15506 = vmatprep.mubr.msk.f32.mxu1 %vm675_vm0, %v9566_v48  ;;  %15510 = vmatpush3.msra.mxu1 %v8489_v28 }
0x2904   :  { %15507 = vmatmul.mubr.msk.f32.gmra.mrb[116].mxu1 %vm675_vm0, %v9567_v51 }
0x2908   :  { %16959 = vrot.lane.b32.xlu0 %v19636_v26, %s18226_s3 }
0x2977   :  { %v9682_v4 = vpop.xlane.xlu0 %9681 }
0x2978   :  { %v9679_v5 = vpop.xlane.xlu1 %9678  ;;  %v9690_v30 = vadd.f32 1e-06, %v9682_v4 }
0x2979   :  { %v9689_v58 = vadd.f32 1e-06, %v9679_v5 }
0x297b   :  { %v9688_v25 = vpop.xlane.xlu0 %9687  ;;  %17246 = vrcp.f32 %v9689_v58 }
0x297c   :  { %v16955_v43 = vpop.permute.xlu1 %16954  ;;  %17248 = vrcp.f32 %v9690_v30 }
0x297d   :  { %v16957_v18 = vunpack.i.h.bf16 %v16955_v43  ;;  %v16956_v29 = vunpack.i.l.bf16 %v16955_v43 }
0x297f   :  { %v16393_v38 = vpack.c.bf16 %v16957_v18, %v16956_v29  ;;  %v9685_v62 = vpop.xlane.xlu0 %9684 }
0x2981   :  { %16394 = vmatprep.subr.bf16.mxu1 %v16393_v38 }
0x2983   :  { %v16960_v61 = vpop.permute.xlu0 %16959 }
0x2984   :  { %v16961_v45 = vunpack.i.l.bf16 %v16960_v61 }
0x2985   :  { %v17247_v47 = vpop.eup %17246 }
0x2986   :  { %v17249_v51 = vpop.eup %17248 }
0x29c3   :  { %v15527_v49 = vpop.f32.mrb[98].mxu0 }
0x29c4   :  { %v10001_v19 = vmul.f32 %v15527_v49, %v19818_v15  ;;  %v9981_v52 = vpop.f32.mrb[99].mxu0  ;;  %v9691_v15 = vadd.f32 1e-06, %v9685_v62  ;;  %v10336_v49 = vld [vmem:[#allocation36 + $0x8] sm:$0xff] }
0x29c5   :  { %v10000_v0 = vmul.f32 %v9981_v52, %v19823_v16  ;;  %v9692_v16 = vadd.f32 1e-06, %v9688_v25  ;;  %v10335_v25 = vld [vmem:[#allocation36] sm:$0xff]  ;;  %v13689_v52 = vld [vmem:[#allocation34] ss:$0 sm:$0xff] }
0x29c6   :  { %v10116_v8 = vsel %vm675_vm0, %v10001_v19, 0.0  ;;  %17250 = vrcp.f32 %v9691_v15 }
0x29c7   :  { %v15530_v26 = vpop.f32.mrb[100].mxu0  ;;  %10117 = vadd.xlane.f32.xlu0 %v10116_v8  ;;  %v10113_v6 = vsel %vm675_vm0, %v10000_v0, 0.0  ;;  %17252 = vrcp.f32 %v9692_v16  ;;  %v10443_v16 = vld [vmem:[#allocation39] sm:$0xff] }
0x29c8   :  { %v10003_v37 = vmul.f32 %v15530_v26, %v19830_v57  ;;  %10114 = vadd.xlane.f32.xlu1 %v10113_v6  ;;  %v9991_v44 = vpop.f32.mrb[101].mxu0  ;;  %v16962_v57 = vunpack.i.h.bf16 %v16960_v61 }
0x29c9   :  { %v10002_v7 = vmul.f32 %v9991_v44, %v19834_v13 }
0x29ca   :  { %v10122_v50 = vsel %vm675_vm0, %v10003_v37, 0.0  ;;  %v16397_v24 = vpack.c.bf16 %v16962_v57, %v16961_v45  ;;  %v10445_v57 = vld [vmem:[#allocation39 + $0x10] sm:$0xff]  ;;  %v10446_v45 = vld [vmem:[#allocation39 + $0x18] sm:$0xff] }
0x29cb   :  { %10123 = vadd.xlane.f32.xlu0 %v10122_v50  ;;  %v10119_v42 = vsel %vm675_vm0, %v10002_v7, 0.0 }
0x29cc   :  { %10120 = vadd.xlane.f32.xlu1 %v10119_v42  ;;  %v10444_v42 = vld [vmem:[#allocation39 + $0x8] sm:$0xff] }
0x29d0   :  { %v17251_v48 = vpop.eup %17250 }
0x29d1   :  { %v17253_v35 = vpop.eup %17252 }
0x29d3   :  { %v15505_v9 = vpop.f32.mrb[114].mxu1 }
0x29d4   :  { %v9658_v32 = vpop.f32.mrb[115].mxu1  ;;  %v9696_v40 = vmul.f32 %v17249_v51, %v15505_v9  ;;  %v6998_v51 = vsub.f32 %v19524_v53, %v19546_v39 }
0x29d5   :  { %v9694_v13 = vmul.f32 %v17247_v47, %v9658_v32  ;;  %v16417_v47 = vpack.c.bf16 %v10444_v42, %v10443_v16  ;;  %v20018_v32 = vld [vmem:[#allocation4 + $0x18] sm:$0xff] }
0x29d7   :  { %v15508_v2 = vpop.f32.mrb[116].mxu1  ;;  %15511 = vmatprep.mubr.msk.f32.mxu1 %vm2151_vm8, %v9694_v13  ;;  %v10337_v13 = vld [vmem:[#allocation36 + $0x10] sm:$0xff] }
0x29d8   :  { %v9668_v1 = vpop.f32.mrb[117].mxu1  ;;  %15512 = vmatmul.mubr.msk.f32.vlgmr.msra.gmra.mrb[106].mxu1 %vm2151_vm8, %v9696_v40  ;;  %v9700_v54 = vmul.f32 %v17253_v35, %v15508_v2  ;;  %v10338_v40 = vld [vmem:[#allocation36 + $0x18] sm:$0xff]  ;;  %v13747_v35 = vld [vmem:[#allocation40] ss:$0 sm:$0xff] }
0x29d9   :  { %v9698_v12 = vmul.f32 %v17251_v48, %v9668_v1  ;;  %16396 = vmatpush3.bf16.msra.mxu1 %v16393_v38  ;;  %v16413_v2 = vpack.c.bf16 %v10338_v40, %v10337_v13 }
0x29da   :  { %16398 = vmatprep.subr.bf16.mxu1 %v16397_v24 }
0x29db   :  { %15514 = vmatprep.mubr.msk.f32.mxu1 %vm2151_vm8, %v9698_v12 }
0x29dc   :  { %15515 = vmatmul.mubr.msk.f32.gmra.mrb[108].mxu1 %vm2151_vm8, %v9700_v54 }
0x29dd   :  { %16400 = vmatpush3.bf16.msra.mxu1 %v16397_v24  ;;  %15539 = vmatprep.mubr.msk.f32.mxu1 %vm675_vm0, %v10000_v0 }
0x29de   :  { %15545 = vmatprep.subr.mxu1 %v8490_v56 }
0x29e0   :  { %15540 = vmatmul.mubr.msk.f32.vlgmr.msra.gmra.mrb[118].mxu1 %vm675_vm0, %v10001_v19  ;;  %v16409_v19 = vpack.c.bf16 %v10336_v49, %v10335_v25 }
0x29e1   :  { %15542 = vmatprep.mubr.msk.f32.mxu1 %vm675_vm0, %v10002_v7  ;;  %15546 = vmatpush3.msra.mxu1 %v8490_v56 }
0x29e2   :  { %16410 = vmatprep.subr.bf16.mxu1 %v16409_v19 }
0x29e4   :  { %15543 = vmatmul.mubr.msk.f32.gmra.mrb[120].mxu1 %vm675_vm0, %v10003_v37 }
0x2a54   :  { %v10118_v21 = vpop.xlane.xlu0 %10117 }
0x2a55   :  { %v10115_v63 = vpop.xlane.xlu1 %10114  ;;  %v10126_v14 = vadd.f32 1e-06, %v10118_v21 }
0x2a56   :  { %v10125_v55 = vadd.f32 1e-06, %v10115_v63 }
0x2a58   :  { %v10124_v17 = vpop.xlane.xlu0 %10123  ;;  %17254 = vrcp.f32 %v10125_v55 }
0x2a59   :  { %v10121_v34 = vpop.xlane.xlu1 %10120  ;;  %17256 = vrcp.f32 %v10126_v14  ;;  %v10128_v22 = vadd.f32 1e-06, %v10124_v17 }
0x2a5a   :  { %v10127_v10 = vadd.f32 1e-06, %v10121_v34 }
0x2a5c   :  { %17258 = vrcp.f32 %v10127_v10 }
0x2a5d   :  { %17260 = vrcp.f32 %v10128_v22 }
0x2a62   :  { %v17255_v59 = vpop.eup %17254 }
0x2a63   :  { %v17257_v60 = vpop.eup %17256 }
0x2a66   :  { %v17259_v43 = vpop.eup %17258 }
0x2a67   :  { %v17261_v29 = vpop.eup %17260 }
0x2ab3   :  { %v15541_v23 = vpop.f32.mrb[118].mxu1 }
0x2ab4   :  { %v10094_v31 = vpop.f32.mrb[119].mxu1  ;;  %v10132_v28 = vmul.f32 %v17257_v60, %v15541_v23 }
0x2ab5   :  { %v10130_v36 = vmul.f32 %v17255_v59, %v10094_v31  ;;  %v13742_v31 = vld [vmem:[#allocation37] ss:$0 sm:$0xff] }
0x2ab7   :  { %v15544_v5 = vpop.f32.mrb[120].mxu1  ;;  %15547 = vmatprep.mubr.msk.f32.mxu1 %vm2151_vm8, %v10130_v36 }
0x2ab8   :  { %v10104_v18 = vpop.f32.mrb[121].mxu1  ;;  %15548 = vmatmul.mubr.msk.f32.vlgmr.msra.gmra.mrb[106].mxu1 %vm2151_vm8, %v10132_v28  ;;  %v10136_v4 = vmul.f32 %v17261_v29, %v15544_v5 }
0x2ab9   :  { %v10134_v38 = vmul.f32 %v17259_v43, %v10104_v18  ;;  %16412 = vmatpush3.bf16.msra.mxu1 %v16409_v19 }
0x2aba   :  { %16414 = vmatprep.subr.bf16.mxu1 %v16413_v2 }
0x2abb   :  { %15550 = vmatprep.mubr.msk.f32.mxu1 %vm2151_vm8, %v10134_v38 }
0x2abc   :  { %15551 = vmatmul.mubr.msk.f32.gmra.mrb[108].mxu1 %vm2151_vm8, %v10136_v4 }
0x2abd   :  { %16416 = vmatpush3.bf16.msra.mxu1 %v16413_v2 }
0x2b8b   :  { %v15549_v0 = vpop.f32.mrb[106].mxu1 }
0x2b8c   :  { %v16583_v58 = vadd.f32 %v15549_v0, %v13689_v52  ;;  %v10215_v8 = vpop.f32.mrb[107].mxu1 }
0x2b8d   :  { %v16584_v30 = vadd.f32 %v13689_v52, %v10215_v8 }
0x2b8e   :  { %v10239_v62 = vadd.f32 %v16583_v58, %v19613_v46  ;;  %v20008_v46 = vld [vmem:[#allocation4 + $0x8] sm:$0xff] }
0x2b8f   :  { %v10238_v26 = vadd.f32 %v16584_v30, %v19611_v41  ;;  %v15552_v6 = vpop.f32.mrb[108].mxu1  ;;  %v16421_v41 = vpack.c.bf16 %v10446_v45, %v10445_v57 }
0x2b90   :  { %v16585_v37 = vadd.f32 %v15552_v6, %v13689_v52  ;;  %v10225_v44 = vpop.f32.mrb[109].mxu1  ;;  %v20119_v6 = vld [vmem:[%s20578_s28 + $0x8] sm:$0xff] }
0x2b91   :  { %v16586_v7 = vadd.f32 %v13689_v52, %v10225_v44  ;;  %v16401_v15 = vpack.c.bf16 %v10239_v62, %v10238_v26 }
0x2b92   :  { %v10241_v50 = vadd.f32 %v16585_v37, %v19621_v27  ;;  %v20012_v27 = vld [vmem:[#allocation4 + $0x10] sm:$0xff] }
0x2b93   :  { %v10240_v61 = vadd.f32 %v16586_v7, %v19619_v11  ;;  %16402 = vmatprep.subr.bf16.mxu0 %v16401_v15  ;;  %v6997_v11 = vsub.f32 %v19522_v33, %v19548_v3  ;;  %v20122_v7 = vld [vmem:[%s20578_s28] sm:$0xff] }
0x2b94   :  { %16404 = vmatpush3.bf16.msra.mxu0 %v16401_v15 }
0x2b95   :  { %v16405_v9 = vpack.c.bf16 %v10241_v50, %v10240_v61 }
0x2b97   :  { %16406 = vmatprep.subr.bf16.mxu0 %v16405_v9 }
0x2b98   :  { %16408 = vmatpush3.bf16.msra.mxu0 %v16405_v9  ;;  %v20127_v9 = vld [vmem:[%s20578_s28 + $0x10] sm:$0xff] }
0x2b99   :  { %16418 = vmatprep.subr.bf16.mxu0 %v16417_v47 }
0x2b9b   :  { %15562 = vmatmul.mubr.msk.f32.vlgmr.msra.gmra.mrb[102].mxu0 %vm675_vm0, %v20008_v46 }
0x2b9c   :  { %16420 = vmatpush3.bf16.msra.mxu0 %v16417_v47  ;;  %15564 = vmatprep.mubr.msk.f32.mxu0 %vm675_vm0, %v20012_v27 }
0x2b9d   :  { %16422 = vmatprep.subr.bf16.mxu0 %v16421_v41 }
0x2b9f   :  { %15565 = vmatmul.mubr.msk.f32.gmra.mrb[104].mxu0 %vm675_vm0, %v20018_v32 }
0x2ba0   :  { %16424 = vmatpush3.bf16.msra.mxu0 %v16421_v41  ;;  %15589 = vmatprep.mubr.msk.f32.mxu0 %vm675_vm0, %v6997_v11 }
0x2ba3   :  { %15590 = vmatmul.mubr.msk.f32.vlgmr.msra.gmra.mrb[106].mxu0 %vm675_vm0, %v6998_v51  ;;  %v20132_v51 = vld [vmem:[%s20578_s28 + $0x18] sm:$0xff] }
0x2c6e   :  { %v20026_v48 = vpop.f32.mrb[102].mxu0 }
0x2c6f   :  { %v20028_v33 = vpop.f32.mrb[103].mxu0  ;;  %v20034_v24 = vsub.f32 %v10239_v62, %v20026_v48 }
0x2c70   :  { %v20031_v3 = vsub.f32 %v10238_v26, %v20028_v33 }
0x2c72   :  { %v20036_v1 = vpop.f32.mrb[104].mxu0  ;;  %15575 = vmatprep.mubr.msk.f32.mxu1 %vm675_vm0, %v20031_v3 }
0x2c73   :  { %v20040_v53 = vpop.f32.mrb[105].mxu0  ;;  %15576 = vmatmul.mubr.msk.f32.vlgmr.msra.gmra.mrb[122].mxu1 %vm675_vm0, %v20034_v24  ;;  %v20048_v12 = vsub.f32 %v10241_v50, %v20036_v1 }
0x2c74   :  { %v20045_v39 = vsub.f32 %v10240_v61, %v20040_v53 }
0x2c76   :  { %15578 = vmatprep.mubr.msk.f32.mxu1 %vm675_vm0, %v20045_v39  ;;  %v15591_v54 = vpop.f32.mrb[106].mxu0 }
0x2c77   :  { %v10532_v56 = vadd.f32 %v15591_v54, %v13747_v35  ;;  %15579 = vmatmul.mubr.msk.f32.gmra.mrb[124].mxu1 %vm675_vm0, %v20048_v12  ;;  %v10526_v63 = vpop.f32.mrb[107].mxu0 }
0x2c78   :  { %v10527_v21 = vadd.f32 %v13747_v35, %v10526_v63 }
0x2c7a   :  { %v20054_v55 = vpack.i.bf16 %v10532_v56, %v10527_v21  ;;  %v16425_v14 = vpack.c.bf16 %v10532_v56, %v10527_v21 }
0x2c7c   :  { %16969 = vrot.lane.b32.xlu0 %v20054_v55, %s18222_s0  ;;  %16964 = vrot.lane.b32.xlu1 %v20054_v55, %s18227_s19 }
0x2c7d   :  { %16427 = vmatprep.subr.msk.bf16.mxu1 %vm20058_vm14, %v16425_v14 }
0x2c7e   :  { %16430 = vmatpush3.bf16.xpose.msk.msra.mxu1 %vm20058_vm14, %v16425_v14 }
0x2cee   :  { %v16965_v17 = vpop.permute.xlu1 %16964  ;;  %v16970_v59 = vpop.permute.xlu0 %16969 }
0x2cef   :  { %v16967_v10 = vunpack.i.h.bf16 %v16965_v17  ;;  %v16966_v22 = vunpack.i.l.bf16 %v16965_v17  ;;  %v16972_v36 = vunpack.i.h.bf16 %v16970_v59  ;;  %v16971_v28 = vunpack.i.l.bf16 %v16970_v59 }
0x2cf1   :  { %v16435_v23 = vpack.c.bf16 %v16967_v10, %v16966_v22  ;;  %v16445_v38 = vpack.c.bf16 %v16972_v36, %v16971_v28 }
0x2cf3   :  { %16437 = vmatprep.subr.msk.bf16.mxu1 %vm20058_vm14, %v16435_v23 }
0x2d46   :  { %v15577_v60 = vpop.f32.mrb[122].mxu1 }
0x2d47   :  { %v20072_v5 = vadd.f32 %v15577_v60, %v13742_v31  ;;  %v10424_v43 = vpop.f32.mrb[123].mxu1 }
0x2d48   :  { %v20074_v18 = vadd.f32 %v13742_v31, %v10424_v43 }
0x2d49   :  { %10907 = vrot.lane.b32.xlu1 %v20072_v5, %s18227_s19 }
0x2d4a   :  { %v15580_v29 = vpop.f32.mrb[124].mxu1  ;;  %15596 = vmatprep.mubr.msk.f32.mxu1 %vm2151_vm8, %v20074_v18 }
0x2d4b   :  { %v20080_v4 = vadd.f32 %v15580_v29, %v13742_v31  ;;  %v10434_v25 = vpop.f32.mrb[125].mxu1  ;;  %15597 = vmatmul.mubr.msk.f32.vlgmr.msra.gmra.mrb[126].mxu1 %vm2151_vm8, %v20072_v5 }
0x2d4c   :  { %v20084_v49 = vadd.f32 %v13742_v31, %v10434_v25  ;;  %16440 = vmatpush3.bf16.xpose.msk.msra.mxu1 %vm20058_vm14, %v16435_v23 }
0x2d4d   :  { %16447 = vmatprep.subr.msk.bf16.mxu1 %vm20058_vm14, %v16445_v38  ;;  %10911 = vrot.lane.b32.xlu0 %v20080_v4, %s18227_s19 }
0x2d4e   :  { %10905 = vrot.lane.b32.xlu1 %v20074_v18, %s18227_s19  ;;  %15599 = vmatprep.mubr.msk.f32.mxu1 %vm2151_vm8, %v20084_v49 }
0x2d4f   :  { %15600 = vmatmul.mubr.msk.f32.gmra.mrb[128].mxu1 %vm2151_vm8, %v20080_v4 }
0x2d51   :  { %11272 = vrot.lane.b32.xlu0 %v20072_v5, %s18222_s0 }
0x2d52   :  { %10909 = vrot.lane.b32.xlu1 %v20084_v49, %s18227_s19 }
0x2d55   :  { %11276 = vrot.lane.b32.xlu0 %v20080_v4, %s18222_s0 }
0x2d56   :  { %11270 = vrot.lane.b32.xlu1 %v20074_v18, %s18222_s0 }
0x2d5a   :  { %11274 = vrot.lane.b32.xlu1 %v20084_v49, %s18222_s0  ;;  %s18230_s0 = smov 72  }
0x2dbb   :  { %v10908_v19 = vpop.permute.xlu1 %10907 }
0x2dbf   :  { %v10912_v0 = vpop.permute.xlu0 %10911 }
0x2dc0   :  { %v10906_v52 = vpop.permute.xlu1 %10905 }
0x2dc1   :  { %15624 = vmatprep.mubr.msk.f32.mxu1 %vm2151_vm8, %v10906_v52 }
0x2dc2   :  { %15625 = vmatmul.mubr.msk.f32.vlgmr.msra.gmra.mrb[130].mxu1 %vm2151_vm8, %v10908_v19 }
0x2dc3   :  { %16450 = vmatpush3.bf16.xpose.msk.msra.mxu1 %vm20058_vm14, %v16445_v38  ;;  %v11273_v8 = vpop.permute.xlu0 %11272 }
0x2dc4   :  { %v10910_v58 = vpop.permute.xlu1 %10909 }
0x2dc5   :  { %15627 = vmatprep.mubr.msk.f32.mxu1 %vm2151_vm8, %v10910_v58 }
0x2dc6   :  { %15628 = vmatmul.mubr.msk.f32.gmra.mrb[132].mxu1 %vm2151_vm8, %v10912_v0 }
0x2dc7   :  { %v11277_v26 = vpop.permute.xlu0 %11276 }
0x2dc8   :  { %v11271_v30 = vpop.permute.xlu1 %11270 }
0x2dc9   :  { %15652 = vmatprep.mubr.msk.f32.mxu1 %vm2151_vm8, %v11271_v30 }
0x2dca   :  { %15653 = vmatmul.mubr.msk.f32.vlgmr.msra.gmra.mrb[134].mxu1 %vm2151_vm8, %v11273_v8 }
0x2dcc   :  { %v11275_v62 = vpop.permute.xlu1 %11274 }
0x2dcd   :  { %15655 = vmatprep.mubr.msk.f32.mxu1 %vm2151_vm8, %v11275_v62 }
0x2dce   :  { %15656 = vmatmul.mubr.msk.f32.gmra.mrb[136].mxu1 %vm2151_vm8, %v11277_v26 }
0x2e1e   :  { %v15598_v37 = vpop.f32.mrb[126].mxu1 }
0x2e1f   :  { %v10644_v44 = vmul.f32 0.35355338, %v15598_v37  ;;  %v10624_v15 = vpop.f32.mrb[127].mxu1 }
0x2e20   :  { %v10643_v50 = vmul.f32 0.35355338, %v10624_v15 }
0x2e21   :  { %v10648_v16 = vadd.f32 %v10644_v44, %v20119_v6 }
0x2e22   :  { %v10647_v42 = vadd.f32 %v10643_v50, %v20122_v7  ;;  %v15601_v61 = vpop.f32.mrb[128].mxu1 }
0x2e23   :  { %v10634_v47 = vpop.f32.mrb[129].mxu1  ;;  %v10654_v57 = vsel %vm1819_vm3, %v10648_v16, -inf  ;;  %v10646_v45 = vmul.f32 0.35355338, %v15601_v61 }
0x2e24   :  { %v10645_v41 = vmul.f32 0.35355338, %v10634_v47  ;;  %10655 = vmax.xlane.f32.xlu0 %v10654_v57  ;;  %v10651_v11 = vsel %vm1819_vm3, %v10647_v42, -inf }
0x2e25   :  { %10652 = vmax.xlane.f32.xlu1 %v10651_v11  ;;  %v10650_v40 = vadd.f32 %v10646_v45, %v20132_v51 }
0x2e26   :  { %v10649_v13 = vadd.f32 %v10645_v41, %v20127_v9 }
0x2e27   :  { %v10660_v35 = vsel %vm1819_vm3, %v10650_v40, -inf }
0x2e28   :  { %v10657_v2 = vsel %vm1819_vm3, %v10649_v13, -inf }
0x2e29   :  { %10658 = vmax.xlane.f32.xlu0 %v10657_v2 }
0x2e2d   :  { %10661 = vmax.xlane.f32.xlu0 %v10660_v35 }
0x2e95   :  { %v20138_v54 = vpop.f32.mrb[130].mxu1 }
0x2e96   :  { %v10995_v56 = vpop.f32.mrb[131].mxu1 }
0x2e97   :  { %v11014_v2 = vmul.f32 0.35355338, %v10995_v56 }
0x2e99   :  { %v15629_v63 = vpop.f32.mrb[132].mxu1  ;;  %v20185_v35 = vadd.f32 %v11014_v2, %v20122_v7 }
0x2e9a   :  { %v20140_v21 = vpop.f32.mrb[133].mxu1 }
0x2e9d   :  { %v15654_v14 = vpop.f32.mrb[134].mxu1 }
0x2e9e   :  { %v11380_v17 = vmul.f32 0.35355338, %v15654_v14  ;;  %v11360_v10 = vpop.f32.mrb[135].mxu1  ;;  %v11017_v14 = vmul.f32 0.35355338, %v15629_v63 }
0x2e9f   :  { %v11379_v22 = vmul.f32 0.35355338, %v11360_v10 }
0x2ea0   :  { %v20143_v23 = vadd.f32 %v11380_v17, %v20119_v6  ;;  %v20188_v17 = vadd.f32 %v11017_v14, %v20132_v51 }
0x2ea1   :  { %v20146_v59 = vadd.f32 %v11379_v22, %v20122_v7  ;;  %v15657_v31 = vpop.f32.mrb[136].mxu1 }
0x2ea2   :  { %v11382_v60 = vmul.f32 0.35355338, %v15657_v31  ;;  %v11370_v36 = vpop.f32.mrb[137].mxu1  ;;  %v11390_v28 = vsel %vm1819_vm3, %v20143_v23, -inf }
0x2ea3   :  { %v11381_v43 = vmul.f32 0.35355338, %v11370_v36  ;;  %11391 = vmax.xlane.f32.xlu0 %v11390_v28  ;;  %v11387_v29 = vsel %vm1819_vm3, %v20146_v59, -inf }
0x2ea4   :  { %v11386_v38 = vadd.f32 %v11382_v60, %v20132_v51  ;;  %11388 = vmax.xlane.f32.xlu1 %v11387_v29 }
0x2ea5   :  { %v11385_v25 = vadd.f32 %v11381_v43, %v20127_v9 }
0x2ea6   :  { %v11396_v19 = vsel %vm1819_vm3, %v11386_v38, -inf }
0x2ea7   :  { %11397 = vmax.xlane.f32.xlu0 %v11396_v19  ;;  %v11393_v52 = vsel %vm1819_vm3, %v11385_v25, -inf }
0x2ea8   :  { %11394 = vmax.xlane.f32.xlu1 %v11393_v52 }
0x2eb1   :  { %v10656_v0 = vpop.xlane.xlu0 %10655 }
0x2eb2   :  { %v10664_v58 = vsub.f32 %v10648_v16, %v10656_v0  ;;  %v10653_v8 = vpop.xlane.xlu1 %10652 }
0x2eb3   :  { %v10663_v30 = vsub.f32 %v10647_v42, %v10653_v8 }
0x2eb4   :  { %v10669_v62 = vmul.f32 1.442695, %v10664_v58 }
0x2eb5   :  { %v10667_v26 = vmul.f32 1.442695, %v10663_v30 }
0x2eb6   :  { %17262 = vpow2.f32 %v10669_v62  ;;  %v10659_v37 = vpop.xlane.xlu0 %10658 }
0x2eb7   :  { %17264 = vpow2.f32 %v10667_v26  ;;  %v10665_v44 = vsub.f32 %v10649_v13, %v10659_v37 }
0x2eb9   :  { %v10671_v15 = vmul.f32 1.442695, %v10665_v44 }
0x2eba   :  { %v10662_v50 = vpop.xlane.xlu0 %10661 }
0x2ebb   :  { %17266 = vpow2.f32 %v10671_v15  ;;  %v10666_v61 = vsub.f32 %v10650_v40, %v10662_v50 }
0x2ebd   :  { %v10673_v47 = vmul.f32 1.442695, %v10666_v61 }
0x2ebf   :  { %17268 = vpow2.f32 %v10673_v47 }
0x2ec0   :  { %v20156_v57 = vpop.eup %17262 }
0x2ec1   :  { %v20158_v45 = vpop.eup %17264  ;;  %v10678_v16 = vsel %vm1819_vm3, %v20156_v57, 0.0 }
0x2ec2   :  { %10679 = vadd.xlane.f32.xlu0 %v10678_v16  ;;  %v10675_v42 = vsel %vm1819_vm3, %v20158_v45, 0.0 }
0x2ec3   :  { %10676 = vadd.xlane.f32.xlu1 %v10675_v42 }
0x2ec5   :  { %v20164_v41 = vpop.eup %17266 }
0x2ec6   :  { %v10681_v11 = vsel %vm1819_vm3, %v20164_v41, 0.0 }
0x2ec7   :  { %10682 = vadd.xlane.f32.xlu1 %v10681_v11 }
0x2ec9   :  { %v20168_v13 = vpop.eup %17268 }
0x2eca   :  { %v10684_v40 = vsel %vm1819_vm3, %v20168_v13, 0.0 }
0x2ecb   :  { %10685 = vadd.xlane.f32.xlu0 %v10684_v40 }
0x2ed8   :  { %16974 = vrot.lane.b32.xlu1 %v20054_v55, %s18221_s2  ;;  %s18229_s2 = smov 88  }
0x2edc   :  { %16979 = vrot.lane.b32.xlu1 %v20054_v55, %s18225_s29 }
0x2ee0   :  { %11635 = vrot.lane.b32.xlu1 %v20074_v18, %s18228_s1  ;;  %v11022_v18 = vsel %vm1819_vm3, %v20185_v35, -inf }
0x2ee4   :  { %11637 = vrot.lane.b32.xlu1 %v20072_v5, %s18228_s1  ;;  %v11031_v5 = vsel %vm1819_vm3, %v20188_v17, -inf }
0x2ee8   :  { %11639 = vrot.lane.b32.xlu1 %v20084_v49, %s18228_s1 }
0x2eec   :  { %11641 = vrot.lane.b32.xlu1 %v20080_v4, %s18228_s1 }
0x2f10   :  { %11023 = vmax.xlane.f32.xlu1 %v11022_v18 }
0x2f14   :  { %11032 = vmax.xlane.f32.xlu1 %v11031_v5 }
0x2f30   :  { %v11392_v49 = vpop.xlane.xlu0 %11391 }
0x2f31   :  { %v11400_v10 = vsub.f32 %v20143_v23, %v11392_v49  ;;  %v11389_v4 = vpop.xlane.xlu1 %11388 }
0x2f32   :  { %v11399_v56 = vsub.f32 %v20146_v59, %v11389_v4 }
0x2f33   :  { %v11405_v22 = vmul.f32 1.442695, %v11400_v10  ;;  %v11015_v10 = vmul.f32 0.35355338, %v20138_v54 }
0x2f34   :  { %v11403_v31 = vmul.f32 1.442695, %v11399_v56  ;;  %v11398_v63 = vpop.xlane.xlu0 %11397 }
0x2f35   :  { %17270 = vpow2.f32 %v11405_v22  ;;  %v11402_v60 = vsub.f32 %v11386_v38, %v11398_v63  ;;  %v11395_v36 = vpop.xlane.xlu1 %11394 }
0x2f36   :  { %17272 = vpow2.f32 %v11403_v31  ;;  %v11401_v43 = vsub.f32 %v11385_v25, %v11395_v36 }
0x2f37   :  { %v11409_v28 = vmul.f32 1.442695, %v11402_v60 }
0x2f38   :  { %v11407_v29 = vmul.f32 1.442695, %v11401_v43 }
0x2f39   :  { %17274 = vpow2.f32 %v11409_v28 }
0x2f3a   :  { %17276 = vpow2.f32 %v11407_v29  ;;  %v10535_v29 = vld [vmem:[#allocation42] sm:$0xff] }
0x2f3f   :  { %v20196_v19 = vpop.eup %17270 }
0x2f40   :  { %v11414_v23 = vsel %vm1819_vm3, %v20196_v19, 0.0  ;;  %v20200_v52 = vpop.eup %17272 }
0x2f41   :  { %11415 = vadd.xlane.f32.xlu0 %v11414_v23  ;;  %v11411_v59 = vsel %vm1819_vm3, %v20200_v52, 0.0 }
0x2f43   :  { %v20204_v0 = vpop.eup %17274 }
0x2f44   :  { %v11420_v38 = vsel %vm1819_vm3, %v20204_v0, 0.0  ;;  %v20208_v25 = vpop.eup %17276 }
0x2f45   :  { %11412 = vadd.xlane.f32.xlu0 %v11411_v59  ;;  %v11417_v58 = vsel %vm1819_vm3, %v20208_v25, 0.0 }
0x2f49   :  { %11421 = vadd.xlane.f32.xlu0 %v11420_v38 }
0x2f4d   :  { %11418 = vadd.xlane.f32.xlu0 %v11417_v58 }
0x2f4f   :  { %v10680_v8 = vpop.xlane.xlu0 %10679 }
0x2f50   :  { %v10677_v30 = vpop.xlane.xlu1 %10676 }
0x2f51   :  { %17278 = vrcp.f32 %v10677_v30 }
0x2f52   :  { %17280 = vrcp.f32 %v10680_v8 }
0x2f54   :  { %v10683_v62 = vpop.xlane.xlu1 %10682 }
0x2f55   :  { %17282 = vrcp.f32 %v10683_v62 }
0x2f58   :  { %v16975_v26 = vpop.permute.xlu1 %16974  ;;  %v10686_v37 = vpop.xlane.xlu0 %10685 }
0x2f59   :  { %v16977_v44 = vunpack.i.h.bf16 %v16975_v26  ;;  %v16976_v15 = vunpack.i.l.bf16 %v16975_v26  ;;  %17284 = vrcp.f32 %v10686_v37 }
0x2f5b   :  { %v17279_v50 = vpop.eup %17278  ;;  %v16431_v61 = vpack.c.bf16 %v16977_v44, %v16976_v15 }
0x2f5c   :  { %v17281_v47 = vpop.eup %17280  ;;  %v16980_v16 = vpop.permute.xlu1 %16979  ;;  %v10688_v42 = vmul.f32 %v17279_v50, %v20158_v45 }
0x2f5d   :  { %v16982_v11 = vunpack.i.h.bf16 %v16980_v16  ;;  %v16981_v40 = vunpack.i.l.bf16 %v16980_v16  ;;  %16432 = vmatprep.subr.bf16.mxu0 %v16431_v61  ;;  %v10690_v14 = vmul.f32 %v17281_v47, %v20156_v57  ;;  %v11019_v57 = vadd.f32 %v11015_v10, %v20119_v6 }
0x2f5e   :  { %16434 = vmatpush3.bf16.msra.mxu0 %v16431_v61  ;;  %15606 = vmatprep.mubr.msk.f32.mxu0 %vm1819_vm3, %v10688_v42 }
0x2f5f   :  { %v17283_v2 = vpop.eup %17282  ;;  %v16451_v18 = vpack.c.bf16 %v16982_v11, %v16981_v40  ;;  %v11025_v56 = vsel %vm1819_vm3, %v11019_v57, -inf  ;;  %15612 = vmatprep.subr.mxu0 %v10535_v29 }
0x2f60   :  { %v10692_v5 = vmul.f32 %v17283_v2, %v20164_v41  ;;  %v11016_v41 = vmul.f32 0.35355338, %v20140_v21  ;;  %v11636_v31 = vpop.permute.xlu1 %11635 }
0x2f61   :  { %15607 = vmatmul.mubr.msk.f32.vlgmr.msra.gmra.mrb[108].mxu0 %vm1819_vm3, %v10690_v14  ;;  %16452 = vmatprep.subr.bf16.mxu1 %v16451_v18 }
0x2f62   :  { %16454 = vmatpush3.bf16.msra.mxu1 %v16451_v18  ;;  %15609 = vmatprep.mubr.msk.f32.mxu0 %vm1819_vm3, %v10692_v5  ;;  %v11020_v4 = vadd.f32 %v11016_v41, %v20127_v9 }
0x2f63   :  { %v17285_v49 = vpop.eup %17284  ;;  %16984 = vrot.lane.b32.xlu0 %v20054_v55, %s18228_s1  ;;  %15613 = vmatpush3.msra.mxu0 %v10535_v29 }
0x2f64   :  { %v10694_v45 = vmul.f32 %v17285_v49, %v20168_v13  ;;  %v11028_v22 = vsel %vm1819_vm3, %v11020_v4, -inf  ;;  %v11638_v63 = vpop.permute.xlu1 %11637 }
0x2f66   :  { %15610 = vmatmul.mubr.msk.f32.gmra.mrb[110].mxu0 %vm1819_vm3, %v10694_v45 }
0x2f68   :  { %v11640_v60 = vpop.permute.xlu1 %11639 }
0x2f6c   :  { %v11642_v13 = vpop.permute.xlu1 %11641 }
0x2f82   :  { %11026 = vmax.xlane.f32.xlu0 %v11025_v56 }
0x2f86   :  { %11029 = vmax.xlane.f32.xlu0 %v11028_v22 }
0x2f9d   :  { %v11024_v36 = vpop.xlane.xlu1 %11023 }
0x2f9e   :  { %v11034_v28 = vsub.f32 %v20185_v35, %v11024_v36 }
0x2fa0   :  { %v11038_v54 = vmul.f32 1.442695, %v11034_v28 }
0x2fa1   :  { %v11033_v34 = vpop.xlane.xlu1 %11032 }
0x2fa2   :  { %17286 = vpow2.f32 %v11038_v54 }
0x2fac   :  { %v20229_v43 = vpop.eup %17286 }
0x2fad   :  { %v11046_v21 = vsel %vm1819_vm3, %v20229_v43, 0.0 }
0x2fae   :  { %11047 = vadd.xlane.f32.xlu0 %v11046_v21 }
0x2fce   :  { %v11416_v23 = vpop.xlane.xlu0 %11415 }
0x2fcf   :  { %17288 = vrcp.f32 %v11416_v23 }
0x2fd2   :  { %v11413_v59 = vpop.xlane.xlu0 %11412 }
0x2fd3   :  { %17290 = vrcp.f32 %v11413_v59 }
0x2fd6   :  { %v11422_v38 = vpop.xlane.xlu0 %11421 }
0x2fd7   :  { %17292 = vrcp.f32 %v11422_v38 }
0x2fd9   :  { %v17289_v35 = vpop.eup %17288 }
0x2fda   :  { %v11419_v58 = vpop.xlane.xlu0 %11418  ;;  %v11426_v26 = vmul.f32 %v17289_v35, %v20196_v19  ;;  %v11037_v19 = vsub.f32 %v20188_v17, %v11033_v34 }
0x2fdb   :  { %17294 = vrcp.f32 %v11419_v58 }
0x2fdc   :  { %v11044_v16 = vmul.f32 1.442695, %v11037_v19 }
0x2fdd   :  { %v17291_v8 = vpop.eup %17290 }
0x2fde   :  { %v16985_v30 = vpop.permute.xlu0 %16984  ;;  %v11424_v62 = vmul.f32 %v17291_v8, %v20200_v52 }
0x2fdf   :  { %v16987_v37 = vunpack.i.h.bf16 %v16985_v30  ;;  %v16986_v44 = vunpack.i.l.bf16 %v16985_v30 }
0x2fe0   :  { %15662 = vmatprep.mubr.msk.f32.mxu1 %vm1819_vm3, %v11424_v62 }
0x2fe1   :  { %v16455_v15 = vpack.c.bf16 %v16987_v37, %v16986_v44  ;;  %15663 = vmatmul.mubr.msk.f32.vlgmr.msra.gmra.mrb[138].mxu1 %vm1819_vm3, %v11426_v26  ;;  %v17293_v50 = vpop.eup %17292 }
0x2fe2   :  { %v11430_v52 = vmul.f32 %v17293_v50, %v20204_v0 }
0x2fe3   :  { %16457 = vmatprep.subr.msk.bf16.mxu1 %vm20058_vm14, %v16455_v15 }
0x2fe4   :  { %16460 = vmatpush3.bf16.xpose.msk.msra.mxu1 %vm20058_vm14, %v16455_v15 }
0x2fe5   :  { %v17295_v61 = vpop.eup %17294 }
0x2fe6   :  { %v11428_v47 = vmul.f32 %v17295_v61, %v20208_v25 }
0x2fe8   :  { %15665 = vmatprep.mubr.msk.f32.mxu1 %vm1819_vm3, %v11428_v47 }
0x2fe9   :  { %15666 = vmatmul.mubr.msk.f32.gmra.mrb[140].mxu1 %vm1819_vm3, %v11430_v52 }
0x2fea   :  { %15680 = vmatprep.mubr.msk.f32.mxu1 %vm2151_vm8, %v11636_v31 }
0x2fed   :  { %15681 = vmatmul.mubr.msk.f32.vlgmr.msra.gmra.mrb[142].mxu1 %vm2151_vm8, %v11638_v63 }
0x2fee   :  { %15683 = vmatprep.mubr.msk.f32.mxu1 %vm2151_vm8, %v11640_v60 }
0x2ff1   :  { %15684 = vmatmul.mubr.msk.f32.gmra.mrb[144].mxu1 %vm2151_vm8, %v11642_v13 }
0x2ff2   :  { %15712 = vmatprep.mubr.msk.f32.mxu1 %vm675_vm0, %v19965_v20 }
0x300f   :  { %v11027_v25 = vpop.xlane.xlu0 %11026 }
0x3010   :  { %v11035_v0 = vsub.f32 %v11019_v57, %v11027_v25 }
0x3012   :  { %v11040_v42 = vmul.f32 1.442695, %v11035_v0 }
0x3013   :  { %v11030_v11 = vpop.xlane.xlu0 %11029 }
0x3014   :  { %17296 = vpow2.f32 %v11040_v42  ;;  %v11036_v40 = vsub.f32 %v11020_v4, %v11030_v11  ;;  %v10537_v11 = vld [vmem:[#allocation42 + $0x10] sm:$0xff] }
0x3015   :  { %17298 = vpow2.f32 %v11044_v16 }
0x3016   :  { %v11042_v2 = vmul.f32 1.442695, %v11036_v40 }
0x3018   :  { %17300 = vpow2.f32 %v11042_v2 }
0x301e   :  { %v17297_v14 = vpop.eup %17296 }
0x301f   :  { %v11049_v18 = vsel %vm1819_vm3, %v17297_v14, 0.0  ;;  %v17299_v5 = vpop.eup %17298 }
0x3020   :  { %11050 = vadd.xlane.f32.xlu1 %v11049_v18  ;;  %v11055_v20 = vsel %vm1819_vm3, %v17299_v5, 0.0 }
0x3022   :  { %v17301_v49 = vpop.eup %17300 }
0x3023   :  { %v11052_v17 = vsel %vm1819_vm3, %v17301_v49, 0.0 }
0x3024   :  { %11056 = vadd.xlane.f32.xlu1 %v11055_v20  ;;  %11053 = vadd.xlane.f32.xlu0 %v11052_v17 }
0x3034   :  { %v15608_v45 = vpop.f32.mrb[108].mxu0 }
0x3035   :  { %v10779_v10 = vpop.f32.mrb[109].mxu0 }
0x3036   :  { %15614 = vmatprep.mubr.msk.f32.mxu0 %vm2151_vm8, %v10779_v10 }
0x3037   :  { %15615 = vmatmul.mubr.msk.f32.vlgmr.msra.gmra.mrb[112].mxu0 %vm2151_vm8, %v15608_v45 }
0x3039   :  { %v15611_v57 = vpop.f32.mrb[110].mxu0 }
0x303a   :  { %16989 = vrot.lane.b32.xlu0 %v20054_v55, %s18229_s2  ;;  %v10789_v41 = vpop.f32.mrb[111].mxu0 }
0x303b   :  { %15617 = vmatprep.mubr.msk.f32.mxu0 %vm2151_vm8, %v10789_v41  ;;  %v11048_v4 = vpop.xlane.xlu0 %11047 }
0x303c   :  { %17302 = vrcp.f32 %v11048_v4  ;;  %15618 = vmatmul.mubr.msk.f32.gmra.mrb[114].mxu0 %vm2151_vm8, %v15611_v57 }
0x3046   :  { %v17303_v56 = vpop.eup %17302 }
0x3047   :  { %v11059_v22 = vmul.f32 %v17303_v56, %v20229_v43 }
0x3049   :  { %15634 = vmatprep.mubr.msk.f32.mxu0 %vm1819_vm3, %v11059_v22 }
0x30ad   :  { %v11051_v31 = vpop.xlane.xlu1 %11050 }
0x30ae   :  { %17304 = vrcp.f32 %v11051_v31 }
0x30b1   :  { %v11057_v63 = vpop.xlane.xlu1 %11056  ;;  %v11054_v60 = vpop.xlane.xlu0 %11053 }
0x30b2   :  { %17306 = vrcp.f32 %v11057_v63 }
0x30b3   :  { %17308 = vrcp.f32 %v11054_v60 }
0x30b4   :  { %v20262_v13 = vpop.f32.mrb[138].mxu1 }
0x30b5   :  { %v20264_v36 = vpop.f32.mrb[139].mxu1  ;;  %v16990_v28 = vpop.permute.xlu0 %16989 }
0x30b6   :  { %v16992_v54 = vunpack.i.h.bf16 %v16990_v28  ;;  %v16991_v21 = vunpack.i.l.bf16 %v16990_v28 }
0x30b8   :  { %v16441_v29 = vpack.c.bf16 %v16992_v54, %v16991_v21  ;;  %v17305_v23 = vpop.eup %17304 }
0x30b9   :  { %v11061_v59 = vmul.f32 %v17305_v23, %v17297_v14 }
0x30ba   :  { %16442 = vmatprep.subr.bf16.mxu0 %v16441_v29 }
0x30bb   :  { %16444 = vmatpush3.bf16.msra.mxu0 %v16441_v29 }
0x30bc   :  { %v17307_v43 = vpop.eup %17306  ;;  %v20266_v38 = vpop.f32.mrb[140].mxu1 }
0x30bd   :  { %v17309_v58 = vpop.eup %17308  ;;  %v20268_v35 = vpop.f32.mrb[141].mxu1  ;;  %v11065_v62 = vmul.f32 %v17307_v43, %v17299_v5 }
0x30be   :  { %15635 = vmatmul.mubr.msk.f32.vlgmr.msra.gmra.mrb[116].mxu0 %vm1819_vm3, %v11061_v59  ;;  %v11063_v8 = vmul.f32 %v17309_v58, %v17301_v49 }
0x30c0   :  { %15637 = vmatprep.mubr.msk.f32.mxu0 %vm1819_vm3, %v11063_v8  ;;  %v15682_v30 = vpop.f32.mrb[142].mxu1 }
0x30c1   :  { %v11745_v26 = vmul.f32 0.35355338, %v15682_v30  ;;  %v11725_v37 = vpop.f32.mrb[143].mxu1 }
0x30c2   :  { %v11744_v44 = vmul.f32 0.35355338, %v11725_v37  ;;  %15638 = vmatmul.mubr.msk.f32.gmra.mrb[118].mxu0 %vm1819_vm3, %v11065_v62 }
0x30c3   :  { %v11749_v15 = vadd.f32 %v11745_v26, %v20119_v6  ;;  %v10538_v26 = vld [vmem:[#allocation42 + $0x18] sm:$0xff] }
0x30c4   :  { %v15685_v50 = vpop.f32.mrb[144].mxu1  ;;  %v11748_v61 = vadd.f32 %v11744_v44, %v20122_v7  ;;  %v10536_v7 = vld [vmem:[#allocation42 + $0x8] sm:$0xff] }
0x30c5   :  { %v11735_v47 = vpop.f32.mrb[145].mxu1  ;;  %v11755_v52 = vsel %vm1819_vm3, %v11749_v15, -inf  ;;  %v11747_v19 = vmul.f32 0.35355338, %v15685_v50  ;;  %15640 = vmatprep.subr.mxu0 %v10536_v7 }
0x30c6   :  { %v11746_v34 = vmul.f32 0.35355338, %v11735_v47  ;;  %11756 = vmax.xlane.f32.xlu1 %v11755_v52  ;;  %v11752_v0 = vsel %vm1819_vm3, %v11748_v61, -inf  ;;  %15641 = vmatpush3.msra.mxu0 %v10536_v7 }
0x30c7   :  { %v11751_v16 = vadd.f32 %v11747_v19, %v20132_v51  ;;  %15668 = vmatprep.subr.mxu0 %v10537_v11  ;;  %v13764_v19 = vld [vmem:[#allocation43] ss:$0 sm:$0xff] }
0x30c8   :  { %v11750_v25 = vadd.f32 %v11746_v34, %v20127_v9 }
0x30c9   :  { %v11761_v6 = vsel %vm1819_vm3, %v11751_v16, -inf }
0x30ca   :  { %11753 = vmax.xlane.f32.xlu1 %v11752_v0  ;;  %v11758_v42 = vsel %vm1819_vm3, %v11750_v25, -inf }
0x30ce   :  { %11759 = vmax.xlane.f32.xlu1 %v11758_v42 }
0x30d2   :  { %11762 = vmax.xlane.f32.xlu1 %v11761_v6 }
0x3153   :  { %v11757_v40 = vpop.xlane.xlu1 %11756 }
0x3154   :  { %v11765_v2 = vsub.f32 %v11749_v15, %v11757_v40 }
0x3156   :  { %v11770_v14 = vmul.f32 1.442695, %v11765_v2 }
0x3157   :  { %v11754_v9 = vpop.xlane.xlu1 %11753 }
0x3158   :  { %17310 = vpow2.f32 %v11770_v14  ;;  %v11764_v18 = vsub.f32 %v11748_v61, %v11754_v9 }
0x315a   :  { %v11768_v5 = vmul.f32 1.442695, %v11764_v18 }
0x315b   :  { %v11760_v49 = vpop.xlane.xlu1 %11759 }
0x315c   :  { %17312 = vpow2.f32 %v11768_v5  ;;  %v11766_v51 = vsub.f32 %v11750_v25, %v11760_v49  ;;  %v12093_v5 = vld [vmem:[#allocation45] sm:$0xff]  ;;  %v12094_v49 = vld [vmem:[#allocation45 + $0x8] sm:$0xff] }
0x315e   :  { %v11772_v20 = vmul.f32 1.442695, %v11766_v51 }
0x315f   :  { %v11763_v17 = vpop.xlane.xlu1 %11762 }
0x3160   :  { %17314 = vpow2.f32 %v11772_v20  ;;  %v11767_v45 = vsub.f32 %v11751_v16, %v11763_v17  ;;  %v16473_v17 = vpack.c.bf16 %v12094_v49, %v12093_v5 }
0x3162   :  { %v17311_v10 = vpop.eup %17310  ;;  %v11774_v57 = vmul.f32 1.442695, %v11767_v45 }
0x3163   :  { %v11779_v41 = vsel %vm1819_vm3, %v17311_v10, 0.0 }
0x3164   :  { %17316 = vpow2.f32 %v11774_v57  ;;  %11780 = vadd.xlane.f32.xlu1 %v11779_v41 }
0x3166   :  { %v17313_v4 = vpop.eup %17312 }
0x3167   :  { %v11776_v56 = vsel %vm1819_vm3, %v17313_v4, 0.0 }
0x3168   :  { %11777 = vadd.xlane.f32.xlu1 %v11776_v56 }
0x316a   :  { %v17315_v22 = vpop.eup %17314 }
0x316b   :  { %v11782_v31 = vsel %vm1819_vm3, %v17315_v22, 0.0 }
0x316c   :  { %11783 = vadd.xlane.f32.xlu0 %v11782_v31  ;;  %v12231_v31 = vld [vmem:[%s20579_s14 + $0x8] sm:$0xff] }
0x316e   :  { %v17317_v63 = vpop.eup %17316 }
0x316f   :  { %v11785_v60 = vsel %vm1819_vm3, %v17317_v63, 0.0 }
0x3170   :  { %11786 = vadd.xlane.f32.xlu1 %v11785_v60  ;;  %v12233_v60 = vld [vmem:[%s20579_s14 + $0x18] sm:$0xff] }
0x3181   :  { %16994 = vrot.lane.b32.xlu1 %v20054_v55, %s18230_s0 }
0x3191   :  { %v15636_v28 = vpop.f32.mrb[116].mxu0 }
0x3192   :  { %v11150_v54 = vpop.f32.mrb[117].mxu0 }
0x3193   :  { %15642 = vmatprep.mubr.msk.f32.mxu0 %vm2151_vm8, %v11150_v54  ;;  %v12234_v54 = vld [vmem:[%s20579_s14 + $0x20] sm:$0xff] }
0x3194   :  { %15643 = vmatmul.mubr.msk.f32.vlgmr.msra.gmra.mrb[112].mxu0 %vm2151_vm8, %v15636_v28 }
0x3195   :  { %v15639_v21 = vpop.f32.mrb[118].mxu0  ;;  %15669 = vmatpush3.msra.mxu0 %v10537_v11 }
0x3196   :  { %v11160_v29 = vpop.f32.mrb[119].mxu0 }
0x3197   :  { %15645 = vmatprep.mubr.msk.f32.mxu0 %vm2151_vm8, %v11160_v29 }
0x3198   :  { %15646 = vmatmul.mubr.msk.f32.gmra.mrb[114].mxu0 %vm2151_vm8, %v15639_v21  ;;  %v12235_v21 = vld [vmem:[%s20579_s14 + $0x28] sm:$0xff] }
0x3199   :  { %15670 = vmatprep.mubr.msk.f32.mxu0 %vm2151_vm8, %v20264_v36  ;;  %v16489_v29 = vpack.c.bf16 %v12235_v21, %v12234_v54  ;;  %v17376_v21 = vld [vmem:[#allocation4 + $0x8] sm:$0xff] }
0x319c   :  { %15671 = vmatmul.mubr.msk.f32.vlgmr.msra.gmra.mrb[112].mxu0 %vm2151_vm8, %v20262_v13 }
0x319d   :  { %15673 = vmatprep.mubr.msk.f32.mxu0 %vm2151_vm8, %v20268_v35 }
0x31a0   :  { %15674 = vmatmul.mubr.msk.f32.gmra.mrb[114].mxu0 %vm2151_vm8, %v20266_v38 }
0x31f1   :  { %v11781_v55 = vpop.xlane.xlu1 %11780 }
0x31f5   :  { %v11778_v23 = vpop.xlane.xlu1 %11777 }
0x31f6   :  { %17318 = vrcp.f32 %v11778_v23  ;;  %v12237_v23 = vld [vmem:[%s20579_s14 + $0x38] sm:$0xff] }
0x31f7   :  { %17320 = vrcp.f32 %v11781_v55  ;;  %v12236_v55 = vld [vmem:[%s20579_s14 + $0x30] sm:$0xff] }
0x31f9   :  { %v11784_v43 = vpop.xlane.xlu0 %11783 }
0x31fa   :  { %17322 = vrcp.f32 %v11784_v43  ;;  %v16493_v43 = vpack.c.bf16 %v12237_v23, %v12236_v55 }
0x31fd   :  { %v11787_v59 = vpop.xlane.xlu1 %11786 }
0x31fe   :  { %17324 = vrcp.f32 %v11787_v59 }
0x3200   :  { %v17319_v58 = vpop.eup %17318 }
0x3201   :  { %v16995_v8 = vpop.permute.xlu1 %16994  ;;  %v11789_v36 = vmul.f32 %v17319_v58, %v17313_v4  ;;  %v17321_v35 = vpop.eup %17320 }
0x3202   :  { %v16997_v30 = vunpack.i.h.bf16 %v16995_v8  ;;  %v16996_v62 = vunpack.i.l.bf16 %v16995_v8  ;;  %v11791_v38 = vmul.f32 %v17321_v35, %v17311_v10 }
0x3203   :  { %15690 = vmatprep.mubr.msk.f32.mxu0 %vm1819_vm3, %v11789_v36 }
0x3204   :  { %v16461_v13 = vpack.c.bf16 %v16997_v30, %v16996_v62  ;;  %v17323_v37 = vpop.eup %17322 }
0x3205   :  { %v11793_v15 = vmul.f32 %v17323_v37, %v17315_v22  ;;  %v12230_v22 = vld [vmem:[%s20579_s14] sm:$0xff] }
0x3206   :  { %16462 = vmatprep.subr.bf16.mxu0 %v16461_v13 }
0x3207   :  { %16464 = vmatpush3.bf16.msra.mxu0 %v16461_v13 }
0x3208   :  { %15696 = vmatprep.subr.mxu0 %v10538_v26  ;;  %v17325_v44 = vpop.eup %17324 }
0x3209   :  { %v11795_v50 = vmul.f32 %v17325_v44, %v17317_v63  ;;  %v16481_v63 = vpack.c.bf16 %v12231_v31, %v12230_v22 }
0x320a   :  { %15691 = vmatmul.mubr.msk.f32.vlgmr.msra.gmra.mrb[120].mxu0 %vm1819_vm3, %v11791_v38 }
0x320b   :  { %15693 = vmatprep.mubr.msk.f32.mxu0 %vm1819_vm3, %v11793_v15  ;;  %15697 = vmatpush3.msra.mxu0 %v10538_v26 }
0x320c   :  { %16482 = vmatprep.subr.bf16.mxu0 %v16481_v63 }
0x320e   :  { %15694 = vmatmul.mubr.msk.f32.gmra.mrb[122].mxu0 %vm1819_vm3, %v11795_v50 }
0x32dd   :  { %v15692_v61 = vpop.f32.mrb[120].mxu0 }
0x32de   :  { %v11880_v47 = vpop.f32.mrb[121].mxu0 }
0x32df   :  { %15698 = vmatprep.mubr.msk.f32.mxu0 %vm2151_vm8, %v11880_v47 }
0x32e0   :  { %15699 = vmatmul.mubr.msk.f32.vlgmr.msra.gmra.mrb[112].mxu0 %vm2151_vm8, %v15692_v61 }
0x32e1   :  { %v15695_v52 = vpop.f32.mrb[122].mxu0  ;;  %16484 = vmatpush3.bf16.msra.mxu0 %v16481_v63 }
0x32e2   :  { %v11890_v34 = vpop.f32.mrb[123].mxu0 }
0x32e3   :  { %15701 = vmatprep.mubr.msk.f32.mxu0 %vm2151_vm8, %v11890_v34 }
0x32e4   :  { %15702 = vmatmul.mubr.msk.f32.gmra.mrb[114].mxu0 %vm2151_vm8, %v15695_v52 }
0x33b3   :  { %v15700_v25 = vpop.f32.mrb[112].mxu0 }
0x33b4   :  { %v16587_v0 = vadd.f32 %v15700_v25, %v13764_v19  ;;  %v11977_v16 = vpop.f32.mrb[113].mxu0 }
0x33b5   :  { %v16588_v42 = vadd.f32 %v13764_v19, %v11977_v16 }
0x33b6   :  { %v12001_v6 = vadd.f32 %v16587_v0, %v20034_v24  ;;  %v12096_v24 = vld [vmem:[#allocation45 + $0x18] sm:$0xff] }
0x33b7   :  { %v12000_v7 = vadd.f32 %v16588_v42, %v20031_v3  ;;  %v15703_v11 = vpop.f32.mrb[114].mxu0  ;;  %v12095_v3 = vld [vmem:[#allocation45 + $0x10] sm:$0xff] }
0x33b8   :  { %v16589_v40 = vadd.f32 %v15703_v11, %v13764_v19  ;;  %v11987_v2 = vpop.f32.mrb[115].mxu0 }
0x33b9   :  { %v16590_v14 = vadd.f32 %v13764_v19, %v11987_v2  ;;  %v16465_v9 = vpack.c.bf16 %v12001_v6, %v12000_v7 }
0x33ba   :  { %v12003_v18 = vadd.f32 %v16589_v40, %v20048_v12 }
0x33bb   :  { %v12002_v51 = vadd.f32 %v16590_v14, %v20045_v39  ;;  %16466 = vmatprep.subr.bf16.mxu1 %v16465_v9  ;;  %v16477_v39 = vpack.c.bf16 %v12096_v24, %v12095_v3 }
0x33bc   :  { %16468 = vmatpush3.bf16.msra.mxu1 %v16465_v9 }
0x33bd   :  { %v16469_v20 = vpack.c.bf16 %v12003_v18, %v12002_v51 }
0x33bf   :  { %16470 = vmatprep.subr.bf16.mxu1 %v16469_v20 }
0x33c0   :  { %16472 = vmatpush3.bf16.msra.mxu1 %v16469_v20 }
0x33c1   :  { %16474 = vmatprep.subr.bf16.mxu1 %v16473_v17 }
0x33c3   :  { %15713 = vmatmul.mubr.msk.f32.vlgmr.msra.gmra.mrb[146].mxu1 %vm675_vm0, %v20008_v46 }
0x33c4   :  { %15715 = vmatprep.mubr.msk.f32.mxu1 %vm675_vm0, %v20012_v27  ;;  %16476 = vmatpush3.bf16.msra.mxu1 %v16473_v17 }
0x33c5   :  { %16478 = vmatprep.subr.bf16.mxu1 %v16477_v39 }
0x33c7   :  { %15716 = vmatmul.mubr.msk.f32.gmra.mrb[148].mxu1 %vm675_vm0, %v20018_v32 }
0x33c8   :  { %16480 = vmatpush3.bf16.msra.mxu1 %v16477_v39 }
0x3496   :  { %v15714_v12 = vpop.f32.mrb[146].mxu1 }
0x3497   :  { %v20317_v45 = vadd.f32 %v15714_v12, %v20026_v48  ;;  %v12070_v10 = vpop.f32.mrb[147].mxu1  ;;  %v20324_v27 = vsub.f32 %v12001_v6, %v15714_v12 }
0x3498   :  { %v20319_v57 = vsub.f32 %v12000_v7, %v12070_v10  ;;  %v20322_v46 = vadd.f32 %v12070_v10, %v20028_v33  ;;  %v17375_v10 = vld [vmem:[#allocation12] sm:$0xff] }
0x349a   :  { %v15717_v32 = vpop.f32.mrb[148].mxu1  ;;  %15726 = vmatprep.mubr.msk.f32.mxu1 %vm675_vm0, %v20319_v57 }
0x349b   :  { %v20329_v41 = vadd.f32 %v15717_v32, %v20036_v1  ;;  %v12080_v48 = vpop.f32.mrb[149].mxu1  ;;  %15727 = vmatmul.mubr.msk.f32.vlgmr.msra.gmra.mrb[150].mxu1 %vm675_vm0, %v20324_v27  ;;  %v20338_v56 = vsub.f32 %v12003_v18, %v15717_v32  ;;  %v17374_v1 = vld [vmem:[#allocation4] sm:$0xff] }
0x349c   :  { %v20333_v4 = vsub.f32 %v12002_v51, %v12080_v48  ;;  %v20336_v33 = vadd.f32 %v12080_v48, %v20040_v53  ;;  %v12232_v53 = vld [vmem:[%s20579_s14 + $0x10] sm:$0xff] }
0x349d   :  { %v16485_v28 = vpack.c.bf16 %v12233_v60, %v12232_v53 }
0x349e   :  { %15729 = vmatprep.mubr.msk.f32.mxu1 %vm675_vm0, %v20333_v4 }
0x349f   :  { %15730 = vmatmul.mubr.msk.f32.gmra.mrb[152].mxu1 %vm675_vm0, %v20338_v56  ;;  %16486 = vmatprep.subr.bf16.mxu0 %v16485_v28 }
0x34a0   :  { %15762 = vmatprep.mubr.msk.f32.mxu1 %vm675_vm0, %v17374_v1  ;;  %16488 = vmatpush3.bf16.msra.mxu0 %v16485_v28 }
0x34a1   :  { %16490 = vmatprep.subr.bf16.mxu0 %v16489_v29 }
0x34a4   :  { %16492 = vmatpush3.bf16.msra.mxu0 %v16489_v29  ;;  %v17377_v29 = vld [vmem:[#allocation4 + $0x10] sm:$0xff] }
0x34a5   :  { %16494 = vmatprep.subr.bf16.mxu0 %v16493_v43 }
0x34a8   :  { %16496 = vmatpush3.bf16.msra.mxu0 %v16493_v43 }
0x356e   :  { %v15728_v59 = vpop.f32.mrb[150].mxu1 }
0x356f   :  { %v12195_v58 = vmul.f32 %v15728_v59, %v15728_v59  ;;  %v12175_v8 = vpop.f32.mrb[151].mxu1 }
0x3570   :  { %v12194_v36 = vmul.f32 %v12175_v8, %v12175_v8 }
0x3571   :  { %v12199_v30 = vmul.f32 %v15728_v59, %v12195_v58 }
0x3572   :  { %v12198_v62 = vmul.f32 %v12194_v36, %v12175_v8  ;;  %v15731_v13 = vpop.f32.mrb[152].mxu1 }
0x3573   :  { %v12203_v35 = vmul.f32 0.044715, %v12199_v30  ;;  %v12197_v26 = vmul.f32 %v15731_v13, %v15731_v13  ;;  %v12185_v37 = vpop.f32.mrb[153].mxu1 }
0x3574   :  { %v12202_v38 = vmul.f32 0.044715, %v12198_v62  ;;  %v12196_v44 = vmul.f32 %v12185_v37, %v12185_v37 }
0x3575   :  { %v12207_v15 = vadd.f32 %v15728_v59, %v12203_v35  ;;  %v12201_v50 = vmul.f32 %v15731_v13, %v12197_v26  ;;  %v13827_v35 = vld [vmem:[%s20580_s30 + $0x20] sm:$0xff]  ;;  %v13828_v26 = vld [vmem:[%s20580_s30 + $0x28] sm:$0xff] }
0x3576   :  { %v12206_v61 = vadd.f32 %v12202_v38, %v12175_v8  ;;  %v12200_v47 = vmul.f32 %v12196_v44, %v12185_v37 }
0x3577   :  { %v12211_v52 = vmul.f32 0.7978846, %v12207_v15  ;;  %v12205_v34 = vmul.f32 0.044715, %v12201_v50  ;;  %v16513_v15 = vpack.c.bf16 %v13828_v26, %v13827_v35  ;;  %v13830_v50 = vld [vmem:[%s20580_s30 + $0x38] sm:$0xff] }
0x3578   :  { %v12210_v19 = vmul.f32 0.7978846, %v12206_v61  ;;  %v12204_v25 = vmul.f32 0.044715, %v12200_v47  ;;  %v17380_v47 = vld [vmem:[#allocation10 + $0x8] sm:$0xff] }
0x3579   :  { %17326 = vtanh.f32 %v12211_v52  ;;  %v12209_v0 = vadd.f32 %v15731_v13, %v12205_v34  ;;  %v17381_v52 = vld [vmem:[#allocation12 + $0x8] sm:$0xff]  ;;  %v17382_v34 = vld [vmem:[#allocation10 + $0x10] sm:$0xff] }
0x357a   :  { %17328 = vtanh.f32 %v12210_v19  ;;  %v12208_v16 = vadd.f32 %v12204_v25, %v12185_v37  ;;  %v17383_v19 = vld [vmem:[#allocation12 + $0x10] sm:$0xff]  ;;  %v17384_v25 = vld [vmem:[#allocation10 + $0x18] sm:$0xff] }
0x357b   :  { %v12213_v42 = vmul.f32 0.7978846, %v12209_v0  ;;  %v17385_v0 = vld [vmem:[#allocation12 + $0x18] sm:$0xff] }
0x357c   :  { %v12212_v6 = vmul.f32 0.7978846, %v12208_v16 }
0x357d   :  { %17330 = vtanh.f32 %v12213_v42 }
0x357e   :  { %17332 = vtanh.f32 %v12212_v6 }
0x3583   :  { %v17327_v7 = vpop.eup %17326 }
0x3584   :  { %v17329_v11 = vpop.eup %17328  ;;  %v12219_v40 = vadd.f32 1.0, %v17327_v7 }
0x3585   :  { %v12218_v2 = vadd.f32 1.0, %v17329_v11 }
0x3586   :  { %v12223_v14 = vmul.f32 0.5, %v12219_v40 }
0x3587   :  { %v17331_v9 = vpop.eup %17330  ;;  %v12222_v18 = vmul.f32 0.5, %v12218_v2 }
0x3588   :  { %v17333_v5 = vpop.eup %17332  ;;  %v12221_v49 = vadd.f32 1.0, %v17331_v9  ;;  %v12227_v17 = vmul.f32 %v15728_v59, %v12223_v14 }
0x3589   :  { %v12226_v51 = vmul.f32 %v12222_v18, %v12175_v8  ;;  %v12220_v20 = vadd.f32 1.0, %v17333_v5 }
0x358a   :  { %v12225_v3 = vmul.f32 0.5, %v12221_v49 }
0x358b   :  { %v12224_v24 = vmul.f32 0.5, %v12220_v20  ;;  %15748 = vmatprep.mubr.msk.f32.mxu0 %vm3820_vm9, %v12226_v51 }
0x358c   :  { %15749 = vmatmul.mubr.msk.f32.vlgmr.msra.gmra.mrb[124].mxu0 %vm3820_vm9, %v12227_v17  ;;  %v12229_v12 = vmul.f32 %v15731_v13, %v12225_v3 }
0x358d   :  { %v12228_v39 = vmul.f32 %v12224_v24, %v12185_v37 }
0x358f   :  { %15751 = vmatprep.mubr.msk.f32.mxu0 %vm3820_vm9, %v12228_v39 }
0x3590   :  { %15752 = vmatmul.mubr.msk.f32.gmra.mrb[126].mxu0 %vm3820_vm9, %v12229_v12 }
0x3591   :  { %15818 = vmatprep.mubr.msk.f32.mxu0 %vm675_vm0, %v17375_v10 }
0x365f   :  { %v15750_v32 = vpop.f32.mrb[124].mxu0 }
0x3660   :  { %v12336_v48 = vadd.f32 %v15750_v32, %v20324_v27  ;;  %v12316_v1 = vpop.f32.mrb[125].mxu0  ;;  %v17378_v27 = vld [vmem:[#allocation4 + $0x18] sm:$0xff]  ;;  %v12921_v32 = vld [vmem:[#allocation9] sm:$0xff] }
0x3661   :  { %v12335_v22 = vadd.f32 %v12316_v1, %v20319_v57  ;;  %v17379_v57 = vld [vmem:[#allocation10] sm:$0xff]  ;;  %v12522_v1 = vld [vmem:[%s20580_s30 + $0x8] sm:$0xff] }
0x3663   :  { %v16497_v31 = vpack.c.bf16 %v12336_v48, %v12335_v22  ;;  %v15753_v63 = vpop.f32.mrb[126].mxu0 }
0x3664   :  { %v12338_v53 = vadd.f32 %v15753_v63, %v20338_v56  ;;  %v12326_v60 = vpop.f32.mrb[127].mxu0  ;;  %v12524_v63 = vld [vmem:[%s20580_s30 + $0x18] sm:$0xff] }
0x3665   :  { %v12337_v28 = vadd.f32 %v12326_v60, %v20333_v4  ;;  %16498 = vmatprep.subr.bf16.mxu1 %v16497_v31  ;;  %v13843_v60 = vld [vmem:[%s20580_s30 + $0x40] sm:$0xff] }
0x3666   :  { %16500 = vmatpush3.bf16.msra.mxu1 %v16497_v31 }
0x3667   :  { %v16501_v54 = vpack.c.bf16 %v12338_v53, %v12337_v28 }
0x3669   :  { %16502 = vmatprep.subr.bf16.mxu1 %v16501_v54 }
0x366a   :  { %16504 = vmatpush3.bf16.msra.mxu1 %v16501_v54 }
0x366d   :  { %15763 = vmatmul.mubr.msk.f32.vlgmr.msra.gmra.mrb[154].mxu1 %vm675_vm0, %v17376_v21  ;;  %v13845_v21 = vld [vmem:[%s20580_s30 + $0x50] sm:$0xff] }
0x366e   :  { %15765 = vmatprep.mubr.msk.f32.mxu1 %vm675_vm0, %v17377_v29  ;;  %v13846_v29 = vld [vmem:[%s20580_s30 + $0x58] sm:$0xff] }
0x3671   :  { %15766 = vmatmul.mubr.msk.f32.gmra.mrb[156].mxu1 %vm675_vm0, %v17378_v27 }
0x3672   :  { %15776 = vmatprep.mubr.msk.f32.mxu1 %vm675_vm0, %v17379_v57 }
0x3740   :  { %v15764_v4 = vpop.f32.mrb[154].mxu1 }
0x3741   :  { %v12425_v56 = vsub.f32 %v12336_v48, %v15764_v4  ;;  %v12433_v55 = vadd.f32 %v15764_v4, %v20317_v45  ;;  %v12405_v23 = vpop.f32.mrb[155].mxu1  ;;  %v12521_v48 = vld [vmem:[%s20580_s30] sm:$0xff] }
0x3742   :  { %v12424_v43 = vsub.f32 %v12335_v22, %v12405_v23  ;;  %v12432_v59 = vadd.f32 %v20322_v46, %v12405_v23  ;;  %v12523_v22 = vld [vmem:[%s20580_s30 + $0x10] sm:$0xff]  ;;  %v16521_v31 = vpack.c.bf16 %v12522_v1, %v12521_v48  ;;  %v13098_v23 = vld [vmem:[%s18534_s25] sm:$0xff] }
0x3743   :  { %v12928_v58 = vsel %vm675_vm0, %v12425_v56, 0.0 }
0x3744   :  { %v16505_v8 = vpack.c.bf16 %v12433_v55, %v12432_v59  ;;  %12929 = vadd.xlane.f32.xlu0 %v12928_v58  ;;  %v15767_v36 = vpop.f32.mrb[156].mxu1  ;;  %v12925_v30 = vsel %vm675_vm0, %v12424_v43, 0.0 }
0x3745   :  { %v12435_v62 = vadd.f32 %v15767_v36, %v20329_v41  ;;  %12926 = vadd.xlane.f32.xlu1 %v12925_v30  ;;  %v12415_v13 = vpop.f32.mrb[157].mxu1  ;;  %v12427_v46 = vsub.f32 %v12338_v53, %v15767_v36  ;;  %v13829_v41 = vld [vmem:[%s20580_s30 + $0x30] sm:$0xff]  ;;  %v16525_v53 = vpack.c.bf16 %v12524_v63, %v12523_v22 }
0x3746   :  { %v12426_v45 = vsub.f32 %v12337_v28, %v12415_v13  ;;  %v12434_v37 = vadd.f32 %v20336_v33, %v12415_v13  ;;  %16506 = vmatprep.subr.bf16.mxu1 %v16505_v8  ;;  %16530 = vmatprep.subr.bf16.mxu0 %v16505_v8  ;;  %v16517_v33 = vpack.c.bf16 %v13830_v50, %v13829_v41  ;;  %v13844_v28 = vld [vmem:[%s20580_s30 + $0x48] sm:$0xff] }
0x3747   :  { %16508 = vmatpush3.bf16.msra.mxu1 %v16505_v8  ;;  %16532 = vmatpush3.bf16.msra.mxu0 %v16505_v8  ;;  %v12934_v61 = vsel %vm675_vm0, %v12427_v46, 0.0  ;;  %v16537_v54 = vpack.c.bf16 %v13844_v28, %v13843_v60  ;;  %v13857_v60 = vld [vmem:[#allocation49] ss:$0 sm:$0xff] }
0x3748   :  { %v16509_v38 = vpack.c.bf16 %v12435_v62, %v12434_v37  ;;  %v12931_v44 = vsel %vm675_vm0, %v12426_v45, 0.0 }
0x3749   :  { %12932 = vadd.xlane.f32.xlu0 %v12931_v44 }
0x374a   :  { %16510 = vmatprep.subr.bf16.mxu1 %v16509_v38  ;;  %16534 = vmatprep.subr.bf16.mxu0 %v16509_v38 }
0x374b   :  { %16512 = vmatpush3.bf16.msra.mxu1 %v16509_v38  ;;  %16536 = vmatpush3.bf16.msra.mxu0 %v16509_v38 }
0x374c   :  { %16514 = vmatprep.subr.bf16.mxu1 %v16513_v15 }
0x374d   :  { %12935 = vadd.xlane.f32.xlu0 %v12934_v61 }
0x374e   :  { %15777 = vmatmul.mubr.msk.f32.vlgmr.msra.gmra.mrb[158].mxu1 %vm675_vm0, %v17380_v47  ;;  %15819 = vmatmul.mubr.msk.f32.vlgmr.msra.gmra.mrb[128].mxu0 %vm675_vm0, %v17381_v52  ;;  %v13851_v47 = vld [vmem:[#allocation46] ss:$0 sm:$0xff] }
0x374f   :  { %16516 = vmatpush3.bf16.msra.mxu1 %v16513_v15  ;;  %15779 = vmatprep.mubr.msk.f32.mxu1 %vm675_vm0, %v17382_v34 }
0x3750   :  { %16518 = vmatprep.subr.bf16.mxu1 %v16517_v33  ;;  %15821 = vmatprep.mubr.msk.f32.mxu0 %vm675_vm0, %v17383_v19 }
0x3752   :  { %15780 = vmatmul.mubr.msk.f32.gmra.mrb[160].mxu1 %vm675_vm0, %v17384_v25  ;;  %15822 = vmatmul.mubr.msk.f32.gmra.mrb[130].mxu0 %vm675_vm0, %v17385_v0  ;;  %v13852_v25 = vld [vmem:[#allocation48] ss:$0 sm:$0xff] }
0x3753   :  { %16520 = vmatpush3.bf16.msra.mxu1 %v16517_v33  ;;  %15790 = vmatprep.mubr.msk.f32.mxu1 %vm675_vm0, %v12432_v59 }
0x3754   :  { %15846 = vmatprep.mubr.msk.f32.mxu0 %vm675_vm0, %v12921_v32  ;;  %16522 = vmatprep.subr.bf16.mxu1 %v16521_v31 }
0x3756   :  { %15791 = vmatmul.mubr.msk.f32.vlgmr.msra.gmra.mrb[78].mxu1 %vm675_vm0, %v12433_v55 }
0x3757   :  { %15793 = vmatprep.mubr.msk.f32.mxu1 %vm675_vm0, %v12434_v37  ;;  %16524 = vmatpush3.bf16.msra.mxu1 %v16521_v31 }
0x3758   :  { %16526 = vmatprep.subr.bf16.mxu1 %v16525_v53 }
0x375a   :  { %15794 = vmatmul.mubr.msk.f32.gmra.mrb[80].mxu1 %vm675_vm0, %v12435_v62 }
0x375b   :  { %16528 = vmatpush3.bf16.msra.mxu1 %v16525_v53  ;;  %v13206_v53 = vld [vmem:[#allocation15] sm:$0xff] }
0x375c   :  { %16538 = vmatprep.subr.bf16.mxu1 %v16537_v54 }
0x37d1   :  { %v12930_v16 = vpop.xlane.xlu0 %12929 }
0x37d2   :  { %v12938_v42 = vmul.f32 0.03125, %v12930_v16  ;;  %v12927_v6 = vpop.xlane.xlu1 %12926 }
0x37d3   :  { %v12937_v7 = vmul.f32 0.03125, %v12927_v6 }
0x37d4   :  { %v20388_v11 = vsub.f32 %v12425_v56, %v12938_v42  ;;  %v16541_v56 = vpack.c.bf16 %v13846_v29, %v13845_v21 }
0x37d5   :  { %v20390_v40 = vsub.f32 %v12424_v43, %v12937_v7  ;;  %v13099_v43 = vld [vmem:[%s18534_s25 + $0x8] sm:$0xff] }
0x37d6   :  { %v12933_v2 = vpop.xlane.xlu0 %12932  ;;  %v12946_v14 = vmul.f32 %v20388_v11, %v20388_v11  ;;  %v16553_v36 = vpack.c.bf16 %v13099_v43, %v13098_v23  ;;  %v13207_v43 = vld [vmem:[#allocation15 + $0x8] sm:$0xff] }
0x37d7   :  { %v12939_v9 = vmul.f32 0.03125, %v12933_v2  ;;  %v12945_v5 = vmul.f32 %v20390_v40, %v20390_v40 }
0x37d8   :  { %v12952_v18 = vsel %vm675_vm0, %v12946_v14, 0.0 }
0x37d9   :  { %v20397_v49 = vsub.f32 %v12426_v45, %v12939_v9  ;;  %12953 = vadd.xlane.f32.xlu0 %v12952_v18  ;;  %v12949_v17 = vsel %vm675_vm0, %v12945_v5, 0.0 }
0x37da   :  { %v12936_v51 = vpop.xlane.xlu0 %12935 }
0x37db   :  { %v12940_v20 = vmul.f32 0.03125, %v12936_v51  ;;  %v12947_v3 = vmul.f32 %v20397_v49, %v20397_v49 }
0x37dd   :  { %v20402_v24 = vsub.f32 %v12427_v46, %v12940_v20  ;;  %12950 = vadd.xlane.f32.xlu0 %v12949_v17  ;;  %v12955_v39 = vsel %vm675_vm0, %v12947_v3, 0.0  ;;  %v12922_v20 = vld [vmem:[#allocation9 + $0x8] sm:$0xff]  ;;  %v12923_v17 = vld [vmem:[#allocation9 + $0x10] sm:$0xff] }
0x37de   :  { %v13100_v3 = vld [vmem:[%s18534_s25 + $0x10] sm:$0xff] }
0x37df   :  { %v12948_v12 = vmul.f32 %v20402_v24, %v20402_v24 }
0x37e1   :  { %12956 = vadd.xlane.f32.xlu0 %v12955_v39  ;;  %v12958_v10 = vsel %vm675_vm0, %v12948_v12, 0.0 }
0x37e5   :  { %12959 = vadd.xlane.f32.xlu0 %v12958_v10 }
0x3821   :  { %v15778_v27 = vpop.f32.mrb[158].mxu1  ;;  %v15820_v57 = vpop.f32.mrb[128].mxu0 }
0x3822   :  { %v12502_v4 = vpop.f32.mrb[159].mxu1  ;;  %v12790_v55 = vpop.f32.mrb[129].mxu0 }
0x3823   :  { %15804 = vmatprep.mubr.msk.f32.mxu1 %vm675_vm0, %v12502_v4 }
0x3824   :  { %15805 = vmatmul.mubr.msk.f32.vlgmr.msra.gmra.mrb[78].mxu1 %vm675_vm0, %v15778_v27 }
0x3825   :  { %v15781_v59 = vpop.f32.mrb[160].mxu1  ;;  %16540 = vmatpush3.bf16.msra.mxu1 %v16537_v54  ;;  %v15823_v58 = vpop.f32.mrb[130].mxu0 }
0x3826   :  { %v12512_v8 = vpop.f32.mrb[161].mxu1  ;;  %16542 = vmatprep.subr.bf16.mxu1 %v16541_v56  ;;  %v12800_v30 = vpop.f32.mrb[131].mxu0 }
0x3827   :  { %15807 = vmatprep.mubr.msk.f32.mxu1 %vm675_vm0, %v12512_v8 }
0x3828   :  { %15808 = vmatmul.mubr.msk.f32.gmra.mrb[80].mxu1 %vm675_vm0, %v15781_v59 }
0x3829   :  { %16544 = vmatpush3.bf16.msra.mxu1 %v16541_v56  ;;  %15832 = vmatprep.mubr.msk.f32.mxu1 %vm675_vm0, %v12790_v55 }
0x382a   :  { %16554 = vmatprep.subr.bf16.mxu1 %v16553_v36 }
0x382c   :  { %15833 = vmatmul.mubr.msk.f32.vlgmr.msra.gmra.mrb[78].mxu1 %vm675_vm0, %v15820_v57 }
0x382d   :  { %16556 = vmatpush3.bf16.msra.mxu1 %v16553_v36  ;;  %15835 = vmatprep.mubr.msk.f32.mxu1 %vm675_vm0, %v12800_v30 }
0x3830   :  { %15836 = vmatmul.mubr.msk.f32.gmra.mrb[80].mxu1 %vm675_vm0, %v15823_v58 }
0x3866   :  { %v12954_v62 = vpop.xlane.xlu0 %12953 }
0x3867   :  { %v12962_v13 = vmul.f32 0.03125, %v12954_v62 }
0x3869   :  { %v12966_v35 = vadd.f32 1e-05, %v12962_v13 }
0x386a   :  { %v12951_v26 = vpop.xlane.xlu0 %12950 }
0x386b   :  { %17334 = vrsqrt.f32 %v12966_v35  ;;  %v12961_v45 = vmul.f32 0.03125, %v12951_v26 }
0x386d   :  { %v12965_v37 = vadd.f32 1e-05, %v12961_v45 }
0x386e   :  { %v12957_v46 = vpop.xlane.xlu0 %12956 }
0x386f   :  { %17336 = vrsqrt.f32 %v12965_v37  ;;  %v12963_v38 = vmul.f32 0.03125, %v12957_v46 }
0x3871   :  { %v12967_v44 = vadd.f32 1e-05, %v12963_v38 }
0x3872   :  { %v12960_v15 = vpop.xlane.xlu0 %12959 }
0x3873   :  { %17338 = vrsqrt.f32 %v12967_v44  ;;  %v12964_v41 = vmul.f32 0.03125, %v12960_v15 }
0x3875   :  { %v17335_v50 = vpop.eup %17334  ;;  %v12968_v61 = vadd.f32 1e-05, %v12964_v41 }
0x3876   :  { %v12974_v33 = vmul.f32 %v17335_v50, %v20388_v11 }
0x3877   :  { %17340 = vrsqrt.f32 %v12968_v61 }
0x3878   :  { %v12984_v19 = vmul.f32 %v13851_v47, %v12974_v33 }
0x3879   :  { %v17337_v52 = vpop.eup %17336 }
0x387a   :  { %v12973_v34 = vmul.f32 %v17337_v52, %v20390_v40  ;;  %v12994_v6 = vadd.f32 %v13852_v25, %v12984_v19 }
0x387c   :  { %v12983_v0 = vmul.f32 %v13851_v47, %v12973_v34 }
0x387d   :  { %v17339_v16 = vpop.eup %17338 }
0x387e   :  { %v12993_v42 = vadd.f32 %v13852_v25, %v12983_v0  ;;  %v12975_v7 = vmul.f32 %v17339_v16, %v20397_v49  ;;  %v12924_v49 = vld [vmem:[#allocation9 + $0x18] sm:$0xff] }
0x3880   :  { %v16545_v2 = vpack.c.bf16 %v12994_v6, %v12993_v42  ;;  %v12985_v11 = vmul.f32 %v13851_v47, %v12975_v7 }
0x3881   :  { %v17341_v14 = vpop.eup %17340 }
0x3882   :  { %16546 = vmatprep.subr.bf16.mxu0 %v16545_v2  ;;  %v12976_v9 = vmul.f32 %v17341_v14, %v20402_v24  ;;  %v12995_v5 = vadd.f32 %v13852_v25, %v12985_v11  ;;  %v13101_v24 = vld [vmem:[%s18534_s25 + $0x18] sm:$0xff] }
0x3883   :  { %16548 = vmatpush3.bf16.msra.mxu0 %v16545_v2  ;;  %v16557_v39 = vpack.c.bf16 %v13101_v24, %v13100_v3 }
0x3884   :  { %v12986_v18 = vmul.f32 %v13851_v47, %v12976_v9 }
0x3885   :  { %16558 = vmatprep.subr.bf16.mxu1 %v16557_v39 }
0x3886   :  { %v12996_v40 = vadd.f32 %v13852_v25, %v12986_v18  ;;  %16560 = vmatpush3.bf16.msra.mxu1 %v16557_v39 }
0x3888   :  { %v16549_v51 = vpack.c.bf16 %v12996_v40, %v12995_v5 }
0x388a   :  { %16550 = vmatprep.subr.bf16.mxu0 %v16549_v51 }
0x388b   :  { %16552 = vmatpush3.bf16.msra.mxu0 %v16549_v51 }
0x388e   :  { %15847 = vmatmul.mubr.msk.f32.vlgmr.msra.gmra.mrb[132].mxu0 %vm675_vm0, %v12922_v20 }
0x388f   :  { %15849 = vmatprep.mubr.msk.f32.mxu0 %vm675_vm0, %v12923_v17 }
0x3892   :  { %15850 = vmatmul.mubr.msk.f32.gmra.mrb[134].mxu0 %vm675_vm0, %v12924_v49 }
0x3893   :  { %15874 = vmatprep.mubr.msk.f32.mxu0 %vm675_vm0, %v13206_v53 }
0x3961   :  { %v15848_v12 = vpop.f32.mrb[132].mxu0 }
0x3962   :  { %v13075_v10 = vpop.f32.mrb[133].mxu0  ;;  %v13095_v48 = vsub.f32 %v12994_v6, %v15848_v12 }
0x3963   :  { %v13094_v32 = vsub.f32 %v12993_v42, %v13075_v10 }
0x3965   :  { %v15851_v1 = vpop.f32.mrb[134].mxu0  ;;  %15860 = vmatprep.mubr.msk.f32.mxu1 %vm675_vm0, %v13094_v32 }
0x3966   :  { %v13085_v22 = vpop.f32.mrb[135].mxu0  ;;  %15861 = vmatmul.mubr.msk.f32.vlgmr.msra.gmra.mrb[78].mxu1 %vm675_vm0, %v13095_v48  ;;  %v13097_v63 = vsub.f32 %v12996_v40, %v15851_v1 }
0x3967   :  { %v13096_v31 = vsub.f32 %v12995_v5, %v13085_v22 }
0x3969   :  { %15863 = vmatprep.mubr.msk.f32.mxu1 %vm675_vm0, %v13096_v31 }
0x396a   :  { %15864 = vmatmul.mubr.msk.f32.gmra.mrb[80].mxu1 %vm675_vm0, %v13097_v63 }
0x3a39   :  { %v15862_v28 = vpop.f32.mrb[78].mxu1 }
0x3a3a   :  { %v13193_v54 = vadd.f32 %v15862_v28, %v13857_v60  ;;  %v13187_v21 = vpop.f32.mrb[79].mxu1 }
0x3a3b   :  { %v13188_v29 = vadd.f32 %v13857_v60, %v13187_v21 }
0x3a3d   :  { %v16561_v27 = vpack.c.bf16 %v13193_v54, %v13188_v29  ;;  %v15865_v57 = vpop.f32.mrb[80].mxu1 }
0x3a3e   :  { %v13203_v4 = vadd.f32 %v15865_v57, %v13857_v60  ;;  %v13197_v56 = vpop.f32.mrb[81].mxu1 }
0x3a3f   :  { %v13198_v55 = vadd.f32 %v13857_v60, %v13197_v56  ;;  %16562 = vmatprep.subr.bf16.mxu0 %v16561_v27 }
0x3a40   :  { %16564 = vmatpush3.bf16.msra.mxu0 %v16561_v27 }
0x3a41   :  { %v16565_v23 = vpack.c.bf16 %v13203_v4, %v13198_v55 }
0x3a43   :  { %16566 = vmatprep.subr.bf16.mxu0 %v16565_v23 }
0x3a44   :  { %16568 = vmatpush3.bf16.msra.mxu0 %v16565_v23 }
0x3a47   :  { %15875 = vmatmul.mubr.msk.f32.vlgmr.msra.gmra.mrb[136].mxu0 %vm675_vm0, %v13207_v43 }
0x3b1a   :  { %v15876_v59 = vpop.f32.mrb[136].mxu0 }
0x3b1b   :  { %13294 = vst.msk [vmem:[%s18544_s17 + $0x8] sm:$0xff] %vm776_vm2, %v15876_v59  ;;  %v13284_v58 = vpop.f32.mrb[137].mxu0 }
0x3b1c   :  { %13293 = vst.msk [vmem:[%s18544_s17] sm:$0xff] %vm776_vm2, %v13284_v58 }
0x3b1d   :  { %13299 = vsyncpa [#allocation3], 1 }
0x3b1e   :  { %13300 = vsyncpa [#allocation5], 1 }
0x3b1f   :  { %13301 = vsyncpa [#allocation8], 1 }
0x3b20   :  { %13302 = vsyncpa [#allocation11], 1 }
0x3b21   :  { %13303 = vsyncpa [#allocation14], 1 }
0x3b22   :  { %13304 = vsyncpa [#allocation17], 1 }
0x3b23   :  { %13305 = vsyncpa [#allocation20], 1 }
0x3b24   :  { %13306 = vsyncpa [#allocation23], 1 }
0x3b25   :  { %13307 = vsyncpa [#allocation26], 1 }
0x3b26   :  { %13308 = vsyncpa [#allocation29], 1 }
0x3b27   :  { %13309 = vsyncpa [#allocation32], 1 }
0x3b28   :  { %13310 = vsyncpa [#allocation35], 1 }
0x3b29   :  { %13311 = vsyncpa [#allocation38], 1 }
0x3b2a   :  { %13312 = vsyncpa [#allocation41], 1 }
0x3b2b   :  { %13313 = vsyncpa [#allocation44], 1 }
0x3b2c   :  { %13314 = vsyncpa [#allocation47], 1 }
0x3b2d   :  { %13315 = vsyncpa [#allocation50], 1 }

</bundles_post_ra>
